<compile_context>
chip_gen: v6e
topology: v6e:2x2x1
jax: 0.10.0
libtpu: 0.0.40
codegen_flags: <defaults>
</compile_context>

<pallas_src>
import numpy as np
import jax
import jax.numpy as jnp
from jax.experimental import pallas as pl
from jax.experimental.pallas import tpu as pltpu

SELU_ALPHA = 1.6732632423543772
SELU_SCALE = 1.0507009873554805


def _selu(a):
    # clamp before exp: dead branch stays finite for large positive activations
    return SELU_SCALE * jnp.where(
        a > 0.0, a, SELU_ALPHA * (jnp.exp(jnp.minimum(a, 0.0)) - 1.0))


def _build_fused_kernel(geom):
    """geom: three (W_in, Lf, Hp, Wp) tuples, one per layer (static Python ints).

    Activation layout everywhere: dense row-major (H*W, C), channels in lanes.
    The conv output of layer l is computed in "full input width" form: the value
    for spatial position (h, w) lives at row h*W_in + w (rows with w >= W_in-2
    are wrap-around garbage that is never read downstream).
    """
    (W1, Lf1, Hp1, Wp1), (W2, Lf2, Hp2, Wp2), (W3, Lf3, Hp3, Wp3) = geom

    def conv3x3_cin1(a_ref, W_in, Lf, w_ref, b_ref, ysc):
        # Cin == 1: nine VPU broadcast multiply-adds, no MXU needed at all.
        acc = jnp.zeros(ysc.shape, jnp.float32)
        for kh in range(3):
            for kw in range(3):
                sl = a_ref[pl.ds(kh * W_in + kw, Lf), :]          # (Lf, 1)
                wrow = w_ref[pl.ds(kh * 3 + kw, 1), :]            # (1, Cout)
                acc = acc + sl * wrow                             # (Lf, Cout)
        ysc[...] = _selu(acc + b_ref[...])

    def conv3x3(a_ref, W_in, Lf, w_ref, b_ref, ysc):
        # General layer: 9-tap accumulation of (Lf, Cin) @ (Cin, Cout) matmuls,
        # bf16 MXU inputs, f32 accumulator.
        acc = jnp.zeros(ysc.shape, jnp.float32)
        for kh in range(3):
            for kw in range(3):
                sl = a_ref[pl.ds(kh * W_in + kw, Lf), :].astype(jnp.bfloat16)
                acc = acc + jnp.dot(sl, w_ref[kh * 3 + kw],
                                    preferred_element_type=jnp.float32)
        ysc[...] = _selu(acc + b_ref[...])

    def avgpool2x2(ysc, W_in, Hp, Wp, dst_ref):
        # conv output (h, w) is at row h*W_in + w of ysc; pool on the VPU with
        # strided row loads (exact f32, no pool matmul, no P matrix DMA).
        for hp in range(Hp):
            base = 2 * hp * W_in
            if Wp > 1:
                s = (ysc[pl.ds(base,            Wp, stride=2), :]
                     + ysc[pl.ds(base + 1,        Wp, stride=2), :]
                     + ysc[pl.ds(base + W_in,     Wp, stride=2), :]
                     + ysc[pl.ds(base + W_in + 1, Wp, stride=2), :])
            else:
                s = (ysc[pl.ds(base, 1), :] + ysc[pl.ds(base + 1, 1), :]
                     + ysc[pl.ds(base + W_in, 1), :]
                     + ysc[pl.ds(base + W_in + 1, 1), :])
            dst_ref[pl.ds(hp * Wp, Wp), :] = 0.25 * s

    def kernel(x_ref, w1_ref, b1_ref, w2_ref, b2_ref, w3_ref, b3_ref,
               o1_ref, o2_ref, o3_ref, y1_sc, y2_sc, y3_sc):
        # layer 1: conv(1->C0) -> SELU -> pool   -> o1 (dense (Hp1*Wp1, C0))
        conv3x3_cin1(x_ref, W1, Lf1, w1_ref, b1_ref, y1_sc)
        avgpool2x2(y1_sc, W1, Hp1, Wp1, o1_ref)
        # layers 2/3 read their inputs straight from o1/o2 (still VMEM resident)
        conv3x3(o1_ref, W2, Lf2, w2_ref, b2_ref, y2_sc)
        avgpool2x2(y2_sc, W2, Hp2, Wp2, o2_ref)
        conv3x3(o2_ref, W3, Lf3, w3_ref, b3_ref, y3_sc)
        avgpool2x2(y3_sc, W3, Hp3, Wp3, o3_ref)

    return kernel


def _convnet_forward_impl(x, params):
    """x: (B, H, W) float32. Returns (x_out NCHW, [y1, y2, y3]) like ConvNet.forward."""
    B, H, W = x.shape
    (w1, b1), (w2, b2), (w3, b3) = params
    C0, C1, dout = w1.shape[0], w2.shape[0], w3.shape[0]

    # static geometry per layer
    geom = []
    Hl, Wl = H, W
    for _ in range(3):
        Ho, Wo = Hl - 2, Wl - 2                 # valid 3x3 conv
        Hp, Wp = Ho // 2, Wo // 2               # AvgPool2d(2,2), floor mode
        Lf = (Ho - 1) * Wl + Wo                 # rows of the full-width conv output
        geom.append((Wl, Lf, Hp, Wp))
        Hl, Wl = Hp, Wp
    (W1, Lf1, Hp1, Wp1), (W2, Lf2, Hp2, Wp2), (W3, Lf3, Hp3, Wp3) = geom

    # ---- host-side layout plumbing: weights only (no im2col, no pool matrix) ----
    x_flat = x.reshape(B, H * W, 1).astype(jnp.float32)
    w1_mat = jnp.transpose(w1, (2, 3, 1, 0)).reshape(9, C0).astype(jnp.float32)
    w2_mat = jnp.transpose(w2, (2, 3, 1, 0)).reshape(9, C0, C1).astype(jnp.bfloat16)
    w3_mat = jnp.transpose(w3, (2, 3, 1, 0)).reshape(9, C1, dout).astype(jnp.bfloat16)
    b1_mat = b1.reshape(1, C0).astype(jnp.float32)
    b2_mat = b2.reshape(1, C1).astype(jnp.float32)
    b3_mat = b3.reshape(1, dout).astype(jnp.float32)

    kernel = _build_fused_kernel(tuple(geom))

    o1, o2, o3 = pl.pallas_call(
        kernel,
        out_shape=(
            jax.ShapeDtypeStruct((B, Hp1 * Wp1, C0), jnp.float32),
            jax.ShapeDtypeStruct((B, Hp2 * Wp2, C1), jnp.float32),
            jax.ShapeDtypeStruct((B, Hp3 * Wp3, dout), jnp.float32),
        ),
        grid=(B,),
        in_specs=[
            pl.BlockSpec((None, H * W, 1), lambda b: (b, 0, 0)),
            pl.BlockSpec((9, C0), lambda b: (0, 0)),
            pl.BlockSpec((1, C0), lambda b: (0, 0)),
            pl.BlockSpec((9, C0, C1), lambda b: (0, 0, 0)),
            pl.BlockSpec((1, C1), lambda b: (0, 0)),
            pl.BlockSpec((9, C1, dout), lambda b: (0, 0, 0)),
            pl.BlockSpec((1, dout), lambda b: (0, 0)),
        ],
        out_specs=(
            pl.BlockSpec((None, Hp1 * Wp1, C0), lambda b: (b, 0, 0)),
            pl.BlockSpec((None, Hp2 * Wp2, C1), lambda b: (b, 0, 0)),
            pl.BlockSpec((None, Hp3 * Wp3, dout), lambda b: (b, 0, 0)),
        ),
        scratch_shapes=[
            pltpu.VMEM((Lf1, C0), jnp.float32),
            pltpu.VMEM((Lf2, C1), jnp.float32),
            pltpu.VMEM((Lf3, dout), jnp.float32),
        ],
        compiler_params=pltpu.CompilerParams(dimension_semantics=("parallel",)),
    )(x_flat, w1_mat, b1_mat, w2_mat, b2_mat, w3_mat, b3_mat)

    # (B, Hp*Wp, C) -> channel-major flatten so it matches PyTorch x.view(B, -1) on NCHW
    y1 = jnp.transpose(o1, (0, 2, 1)).reshape(B, C0 * Hp1 * Wp1)
    y2 = jnp.transpose(o2, (0, 2, 1)).reshape(B, C1 * Hp2 * Wp2)
    y3 = jnp.transpose(o3, (0, 2, 1)).reshape(B, dout * Hp3 * Wp3)
    x_out = jnp.transpose(o3, (0, 2, 1)).reshape(B, dout, Hp3, Wp3)
    return x_out, [y1, y2, y3]


convnet_forward = jax.jit(_convnet_forward_impl)


def init_convnet_params(key, dout, C):
    """Deterministic PyTorch-Conv2d-style init (uniform +-1/sqrt(fan_in))."""
    chans = [1, C[0], C[1], dout]
    params = []
    for i in range(3):
        cin, cout = chans[i], chans[i + 1]
        key, k1, k2 = jax.random.split(key, 3)
        bound = 1.0 / np.sqrt(cin * 9)
        w = jax.random.uniform(k1, (cout, cin, 3, 3), jnp.float32, -bound, bound)
        b = jax.random.uniform(k2, (cout,), jnp.float32, -bound, bound)
        params.append((w, b))
    return params


def reference_forward(x, params):
    """Independent pure-JAX reference (lax conv + jax.nn.selu + reshape pooling)."""
    x = x[:, None, :, :]
    ys = []
    for (w, b) in params:
        x = jax.lax.conv_general_dilated(
            x, w, window_strides=(1, 1), padding="VALID",
            dimension_numbers=("NCHW", "OIHW", "NCHW"))
        x = jax.nn.selu(x + b[None, :, None, None])
        B_, C_, H_, W_ = x.shape
        Hp, Wp = H_ // 2, W_ // 2
        x = x[:, :, :2 * Hp, :2 * Wp].reshape(B_, C_, Hp, 2, Wp, 2).mean(axis=(3, 5))
        ys.append(x.reshape(B_, -1))
    return x, ys


if __name__ == "__main__":
    # din=25 -> 25x25 input images; small channel counts for the synthetic test
    B, H, W = 2, 25, 25
    dout, C = 16, (16, 16)

    key = jax.random.PRNGKey(0)
    kx, kp = jax.random.split(key)
    x = jax.random.normal(kx, (B, H, W), dtype=jnp.float32)
    params = init_convnet_params(kp, dout=dout, C=C)

    out, ys = convnet_forward(x, params)
    out = jax.block_until_ready(out)
    ys = [jax.block_until_ready(y) for y in ys]

    ref_out, ref_ys = reference_forward(x, params)

    # Expected shapes: 25 ->conv 23 ->pool 11 ->conv 9 ->pool 4 ->conv 2 ->pool 1
    assert out.shape == (B, dout, 1, 1), out.shape
    assert [tuple(y.shape) for y in ys] == [
        (B, C[0] * 11 * 11), (B, C[1] * 4 * 4), (B, dout * 1 * 1)]
    assert out.shape == ref_out.shape

    # tolerance: in-kernel conv matmuls use bf16 MXU inputs (f32 accumulation);
    # the XLA reference conv also runs at reduced MXU precision on TPU.
    assert np.allclose(np.asarray(out), np.asarray(ref_out), rtol=5e-2, atol=5e-2)
    for a, b in zip(ys, ref_ys):
        assert a.shape == b.shape
        assert np.allclose(np.asarray(a), np.asarray(b), rtol=5e-2, atol=5e-2)

    print("KERNEL_OK")
</pallas_src>

<mosaic_0001>
module attributes {stable_mosaic.version = 11 : i64} {
  func.func @kernel(%arg0: i32, %arg1: memref<1x625x1xf32, #tpu.memory_space<vmem>>, %arg2: memref<9x16xf32, #tpu.memory_space<vmem>>, %arg3: memref<1x16xf32, #tpu.memory_space<vmem>>, %arg4: memref<9x16x16xbf16, #tpu.memory_space<vmem>>, %arg5: memref<1x16xf32, #tpu.memory_space<vmem>>, %arg6: memref<9x16x16xbf16, #tpu.memory_space<vmem>>, %arg7: memref<1x16xf32, #tpu.memory_space<vmem>>, %arg8: memref<1x121x16xf32, #tpu.memory_space<vmem>>, %arg9: memref<1x16x16xf32, #tpu.memory_space<vmem>>, %arg10: memref<1x1x16xf32, #tpu.memory_space<vmem>>, %arg11: memref<573x16xf32, #tpu.memory_space<vmem>>, %arg12: memref<97x16xf32, #tpu.memory_space<vmem>>, %arg13: memref<6x16xf32, #tpu.memory_space<vmem>>) attributes {dimension_semantics = [#tpu.dimension_semantics<parallel>], iteration_bounds = array<i64: 2>, scalar_prefetch = 0 : i64, scratch_operands = 3 : i64, tpu.core_type = #tpu.core_type<tc>, window_params = [{transform_indices = @transform_0, window_bounds = array<i64: 1, 625, 1>}, {pipeline_mode = #tpu.pipeline_mode<synchronous>, transform_indices = @transform_1, window_bounds = array<i64: 9, 16>}, {pipeline_mode = #tpu.pipeline_mode<synchronous>, transform_indices = @transform_2, window_bounds = array<i64: 1, 16>}, {pipeline_mode = #tpu.pipeline_mode<synchronous>, transform_indices = @transform_3, window_bounds = array<i64: 9, 16, 16>}, {pipeline_mode = #tpu.pipeline_mode<synchronous>, transform_indices = @transform_4, window_bounds = array<i64: 1, 16>}, {pipeline_mode = #tpu.pipeline_mode<synchronous>, transform_indices = @transform_5, window_bounds = array<i64: 9, 16, 16>}, {pipeline_mode = #tpu.pipeline_mode<synchronous>, transform_indices = @transform_6, window_bounds = array<i64: 1, 16>}, {transform_indices = @transform_7, window_bounds = array<i64: 1, 121, 16>}, {transform_indices = @transform_8, window_bounds = array<i64: 1, 16, 16>}, {transform_indices = @transform_9, window_bounds = array<i64: 1, 1, 16>}]} {
    %cst = arith.constant 0.000000e+00 : f32
    %0 = vector.broadcast %cst : f32 to vector<573x16xf32>
    %c0 = arith.constant 0 : index
    %c0_0 = arith.constant 0 : index
    %c0_1 = arith.constant 0 : index
    %1 = vector.load %arg1[%c0, %c0_0, %c0_1] : memref<1x625x1xf32, #tpu.memory_space<vmem>>, vector<1x573x1xf32>
    %2 = vector.shape_cast %1 : vector<1x573x1xf32> to vector<573x1xf32>
    %c0_2 = arith.constant 0 : index
    %c0_3 = arith.constant 0 : index
    %3 = vector.load %arg2[%c0_2, %c0_3] : memref<9x16xf32, #tpu.memory_space<vmem>>, vector<1x16xf32>
    %4 = vector.broadcast %2 : vector<573x1xf32> to vector<573x16xf32>
    %5 = vector.broadcast %3 : vector<1x16xf32> to vector<573x16xf32>
    %6 = arith.mulf %4, %5 : vector<573x16xf32>
    %7 = arith.addf %0, %6 : vector<573x16xf32>
    %c0_4 = arith.constant 0 : index
    %c1 = arith.constant 1 : index
    %c0_5 = arith.constant 0 : index
    %8 = vector.load %arg1[%c0_4, %c1, %c0_5] : memref<1x625x1xf32, #tpu.memory_space<vmem>>, vector<1x573x1xf32>
    %9 = vector.shape_cast %8 : vector<1x573x1xf32> to vector<573x1xf32>
    %c1_6 = arith.constant 1 : index
    %c0_7 = arith.constant 0 : index
    %10 = vector.load %arg2[%c1_6, %c0_7] : memref<9x16xf32, #tpu.memory_space<vmem>>, vector<1x16xf32>
    %11 = vector.broadcast %9 : vector<573x1xf32> to vector<573x16xf32>
    %12 = vector.broadcast %10 : vector<1x16xf32> to vector<573x16xf32>
    %13 = arith.mulf %11, %12 : vector<573x16xf32>
    %14 = arith.addf %7, %13 : vector<573x16xf32>
    %c0_8 = arith.constant 0 : index
    %c2 = arith.constant 2 : index
    %c0_9 = arith.constant 0 : index
    %15 = vector.load %arg1[%c0_8, %c2, %c0_9] : memref<1x625x1xf32, #tpu.memory_space<vmem>>, vector<1x573x1xf32>
    %16 = vector.shape_cast %15 : vector<1x573x1xf32> to vector<573x1xf32>
    %c2_10 = arith.constant 2 : index
    %c0_11 = arith.constant 0 : index
    %17 = vector.load %arg2[%c2_10, %c0_11] : memref<9x16xf32, #tpu.memory_space<vmem>>, vector<1x16xf32>
    %18 = vector.broadcast %16 : vector<573x1xf32> to vector<573x16xf32>
    %19 = vector.broadcast %17 : vector<1x16xf32> to vector<573x16xf32>
    %20 = arith.mulf %18, %19 : vector<573x16xf32>
    %21 = arith.addf %14, %20 : vector<573x16xf32>
    %c0_12 = arith.constant 0 : index
    %c25 = arith.constant 25 : index
    %c0_13 = arith.constant 0 : index
    %22 = vector.load %arg1[%c0_12, %c25, %c0_13] : memref<1x625x1xf32, #tpu.memory_space<vmem>>, vector<1x573x1xf32>
    %23 = vector.shape_cast %22 : vector<1x573x1xf32> to vector<573x1xf32>
    %c3 = arith.constant 3 : index
    %c0_14 = arith.constant 0 : index
    %24 = vector.load %arg2[%c3, %c0_14] : memref<9x16xf32, #tpu.memory_space<vmem>>, vector<1x16xf32>
    %25 = vector.broadcast %23 : vector<573x1xf32> to vector<573x16xf32>
    %26 = vector.broadcast %24 : vector<1x16xf32> to vector<573x16xf32>
    %27 = arith.mulf %25, %26 : vector<573x16xf32>
    %28 = arith.addf %21, %27 : vector<573x16xf32>
    %c0_15 = arith.constant 0 : index
    %c26 = arith.constant 26 : index
    %c0_16 = arith.constant 0 : index
    %29 = vector.load %arg1[%c0_15, %c26, %c0_16] : memref<1x625x1xf32, #tpu.memory_space<vmem>>, vector<1x573x1xf32>
    %30 = vector.shape_cast %29 : vector<1x573x1xf32> to vector<573x1xf32>
    %c4 = arith.constant 4 : index
    %c0_17 = arith.constant 0 : index
    %31 = vector.load %arg2[%c4, %c0_17] : memref<9x16xf32, #tpu.memory_space<vmem>>, vector<1x16xf32>
    %32 = vector.broadcast %30 : vector<573x1xf32> to vector<573x16xf32>
    %33 = vector.broadcast %31 : vector<1x16xf32> to vector<573x16xf32>
    %34 = arith.mulf %32, %33 : vector<573x16xf32>
    %35 = arith.addf %28, %34 : vector<573x16xf32>
    %c0_18 = arith.constant 0 : index
    %c27 = arith.constant 27 : index
    %c0_19 = arith.constant 0 : index
    %36 = vector.load %arg1[%c0_18, %c27, %c0_19] : memref<1x625x1xf32, #tpu.memory_space<vmem>>, vector<1x573x1xf32>
    %37 = vector.shape_cast %36 : vector<1x573x1xf32> to vector<573x1xf32>
    %c5 = arith.constant 5 : index
    %c0_20 = arith.constant 0 : index
    %38 = vector.load %arg2[%c5, %c0_20] : memref<9x16xf32, #tpu.memory_space<vmem>>, vector<1x16xf32>
    %39 = vector.broadcast %37 : vector<573x1xf32> to vector<573x16xf32>
    %40 = vector.broadcast %38 : vector<1x16xf32> to vector<573x16xf32>
    %41 = arith.mulf %39, %40 : vector<573x16xf32>
    %42 = arith.addf %35, %41 : vector<573x16xf32>
    %c0_21 = arith.constant 0 : index
    %c50 = arith.constant 50 : index
    %c0_22 = arith.constant 0 : index
    %43 = vector.load %arg1[%c0_21, %c50, %c0_22] : memref<1x625x1xf32, #tpu.memory_space<vmem>>, vector<1x573x1xf32>
    %44 = vector.shape_cast %43 : vector<1x573x1xf32> to vector<573x1xf32>
    %c6 = arith.constant 6 : index
    %c0_23 = arith.constant 0 : index
    %45 = vector.load %arg2[%c6, %c0_23] : memref<9x16xf32, #tpu.memory_space<vmem>>, vector<1x16xf32>
    %46 = vector.broadcast %44 : vector<573x1xf32> to vector<573x16xf32>
    %47 = vector.broadcast %45 : vector<1x16xf32> to vector<573x16xf32>
    %48 = arith.mulf %46, %47 : vector<573x16xf32>
    %49 = arith.addf %42, %48 : vector<573x16xf32>
    %c0_24 = arith.constant 0 : index
    %c51 = arith.constant 51 : index
    %c0_25 = arith.constant 0 : index
    %50 = vector.load %arg1[%c0_24, %c51, %c0_25] : memref<1x625x1xf32, #tpu.memory_space<vmem>>, vector<1x573x1xf32>
    %51 = vector.shape_cast %50 : vector<1x573x1xf32> to vector<573x1xf32>
    %c7 = arith.constant 7 : index
    %c0_26 = arith.constant 0 : index
    %52 = vector.load %arg2[%c7, %c0_26] : memref<9x16xf32, #tpu.memory_space<vmem>>, vector<1x16xf32>
    %53 = vector.broadcast %51 : vector<573x1xf32> to vector<573x16xf32>
    %54 = vector.broadcast %52 : vector<1x16xf32> to vector<573x16xf32>
    %55 = arith.mulf %53, %54 : vector<573x16xf32>
    %56 = arith.addf %49, %55 : vector<573x16xf32>
    %c0_27 = arith.constant 0 : index
    %c52 = arith.constant 52 : index
    %c0_28 = arith.constant 0 : index
    %57 = vector.load %arg1[%c0_27, %c52, %c0_28] : memref<1x625x1xf32, #tpu.memory_space<vmem>>, vector<1x573x1xf32>
    %58 = vector.shape_cast %57 : vector<1x573x1xf32> to vector<573x1xf32>
    %c8 = arith.constant 8 : index
    %c0_29 = arith.constant 0 : index
    %59 = vector.load %arg2[%c8, %c0_29] : memref<9x16xf32, #tpu.memory_space<vmem>>, vector<1x16xf32>
    %60 = vector.broadcast %58 : vector<573x1xf32> to vector<573x16xf32>
    %61 = vector.broadcast %59 : vector<1x16xf32> to vector<573x16xf32>
    %62 = arith.mulf %60, %61 : vector<573x16xf32>
    %63 = arith.addf %56, %62 : vector<573x16xf32>
    %c0_30 = arith.constant 0 : index
    %c0_31 = arith.constant 0 : index
    %64 = vector.load %arg3[%c0_30, %c0_31] : memref<1x16xf32, #tpu.memory_space<vmem>>, vector<1x16xf32>
    %65 = vector.broadcast %64 : vector<1x16xf32> to vector<573x16xf32>
    %66 = arith.addf %63, %65 : vector<573x16xf32>
    %cst_32 = arith.constant 0.000000e+00 : f32
    %67 = vector.broadcast %cst_32 : f32 to vector<573x16xf32>
    %68 = arith.cmpf ogt, %66, %67 : vector<573x16xf32>
    %cst_33 = arith.constant 0.000000e+00 : f32
    %69 = vector.broadcast %cst_33 : f32 to vector<573x16xf32>
    %70 = arith.minimumf %66, %69 : vector<573x16xf32>
    %71 = math.exp %70 : vector<573x16xf32>
    %cst_34 = arith.constant 1.000000e+00 : f32
    %72 = vector.broadcast %cst_34 : f32 to vector<573x16xf32>
    %73 = arith.subf %71, %72 : vector<573x16xf32>
    %cst_35 = arith.constant 1.67326319 : f32
    %74 = vector.broadcast %cst_35 : f32 to vector<573x16xf32>
    %75 = arith.mulf %74, %73 : vector<573x16xf32>
    %76 = arith.select %68, %66, %75 : vector<573x16xi1>, vector<573x16xf32>
    %cst_36 = arith.constant 1.05070102 : f32
    %77 = vector.broadcast %cst_36 : f32 to vector<573x16xf32>
    %78 = arith.mulf %77, %76 : vector<573x16xf32>
    %c0_37 = arith.constant 0 : index
    %c0_38 = arith.constant 0 : index
    %79 = vector.load %arg11[%c0_37, %c0_38] : memref<573x16xf32, #tpu.memory_space<vmem>>, vector<573x16xf32>
    tpu.vector_store %arg11[%c0_37, %c0_38], %78 {strides = array<i32>} : memref<573x16xf32, #tpu.memory_space<vmem>>, vector<573x16xf32>,
    %c0_39 = arith.constant 0 : index
    %c0_40 = arith.constant 0 : index
    %80 = tpu.strided_load %arg11[%c0_39, %c0_40] {strides = array<i32: 2, 1>} : memref<573x16xf32, #tpu.memory_space<vmem>>, vector<11x16xf32>
    %c1_41 = arith.constant 1 : index
    %c0_42 = arith.constant 0 : index
    %81 = tpu.strided_load %arg11[%c1_41, %c0_42] {strides = array<i32: 2, 1>} : memref<573x16xf32, #tpu.memory_space<vmem>>, vector<11x16xf32>
    %82 = arith.addf %80, %81 : vector<11x16xf32>
    %c25_43 = arith.constant 25 : index
    %c0_44 = arith.constant 0 : index
    %83 = tpu.strided_load %arg11[%c25_43, %c0_44] {strides = array<i32: 2, 1>} : memref<573x16xf32, #tpu.memory_space<vmem>>, vector<11x16xf32>
    %84 = arith.addf %82, %83 : vector<11x16xf32>
    %c26_45 = arith.constant 26 : index
    %c0_46 = arith.constant 0 : index
    %85 = tpu.strided_load %arg11[%c26_45, %c0_46] {strides = array<i32: 2, 1>} : memref<573x16xf32, #tpu.memory_space<vmem>>, vector<11x16xf32>
    %86 = arith.addf %84, %85 : vector<11x16xf32>
    %cst_47 = arith.constant 2.500000e-01 : f32
    %87 = vector.broadcast %cst_47 : f32 to vector<11x16xf32>
    %88 = arith.mulf %87, %86 : vector<11x16xf32>
    %c0_48 = arith.constant 0 : index
    %c0_49 = arith.constant 0 : index
    %c0_50 = arith.constant 0 : index
    %89 = vector.load %arg8[%c0_48, %c0_49, %c0_50] : memref<1x121x16xf32, #tpu.memory_space<vmem>>, vector<1x11x16xf32>
    %90 = vector.shape_cast %89 : vector<1x11x16xf32> to vector<11x16xf32>
    %91 = vector.shape_cast %88 : vector<11x16xf32> to vector<1x11x16xf32>
    tpu.vector_store %arg8[%c0_48, %c0_49, %c0_50], %91 {strides = array<i32>} : memref<1x121x16xf32, #tpu.memory_space<vmem>>, vector<1x11x16xf32>,
    %c50_51 = arith.constant 50 : index
    %c0_52 = arith.constant 0 : index
    %92 = tpu.strided_load %arg11[%c50_51, %c0_52] {strides = array<i32: 2, 1>} : memref<573x16xf32, #tpu.memory_space<vmem>>, vector<11x16xf32>
    %c51_53 = arith.constant 51 : index
    %c0_54 = arith.constant 0 : index
    %93 = tpu.strided_load %arg11[%c51_53, %c0_54] {strides = array<i32: 2, 1>} : memref<573x16xf32, #tpu.memory_space<vmem>>, vector<11x16xf32>
    %94 = arith.addf %92, %93 : vector<11x16xf32>
    %c75 = arith.constant 75 : index
    %c0_55 = arith.constant 0 : index
    %95 = tpu.strided_load %arg11[%c75, %c0_55] {strides = array<i32: 2, 1>} : memref<573x16xf32, #tpu.memory_space<vmem>>, vector<11x16xf32>
    %96 = arith.addf %94, %95 : vector<11x16xf32>
    %c76 = arith.constant 76 : index
    %c0_56 = arith.constant 0 : index
    %97 = tpu.strided_load %arg11[%c76, %c0_56] {strides = array<i32: 2, 1>} : memref<573x16xf32, #tpu.memory_space<vmem>>, vector<11x16xf32>
    %98 = arith.addf %96, %97 : vector<11x16xf32>
    %cst_57 = arith.constant 2.500000e-01 : f32
    %99 = vector.broadcast %cst_57 : f32 to vector<11x16xf32>
    %100 = arith.mulf %99, %98 : vector<11x16xf32>
    %c0_58 = arith.constant 0 : index
    %c11 = arith.constant 11 : index
    %c0_59 = arith.constant 0 : index
    %101 = vector.load %arg8[%c0_58, %c11, %c0_59] : memref<1x121x16xf32, #tpu.memory_space<vmem>>, vector<1x11x16xf32>
    %102 = vector.shape_cast %101 : vector<1x11x16xf32> to vector<11x16xf32>
    %103 = vector.shape_cast %100 : vector<11x16xf32> to vector<1x11x16xf32>
    tpu.vector_store %arg8[%c0_58, %c11, %c0_59], %103 {strides = array<i32>} : memref<1x121x16xf32, #tpu.memory_space<vmem>>, vector<1x11x16xf32>,
    %c100 = arith.constant 100 : index
    %c0_60 = arith.constant 0 : index
    %104 = tpu.strided_load %arg11[%c100, %c0_60] {strides = array<i32: 2, 1>} : memref<573x16xf32, #tpu.memory_space<vmem>>, vector<11x16xf32>
    %c101 = arith.constant 101 : index
    %c0_61 = arith.constant 0 : index
    %105 = tpu.strided_load %arg11[%c101, %c0_61] {strides = array<i32: 2, 1>} : memref<573x16xf32, #tpu.memory_space<vmem>>, vector<11x16xf32>
    %106 = arith.addf %104, %105 : vector<11x16xf32>
    %c125 = arith.constant 125 : index
    %c0_62 = arith.constant 0 : index
    %107 = tpu.strided_load %arg11[%c125, %c0_62] {strides = array<i32: 2, 1>} : memref<573x16xf32, #tpu.memory_space<vmem>>, vector<11x16xf32>
    %108 = arith.addf %106, %107 : vector<11x16xf32>
    %c126 = arith.constant 126 : index
    %c0_63 = arith.constant 0 : index
    %109 = tpu.strided_load %arg11[%c126, %c0_63] {strides = array<i32: 2, 1>} : memref<573x16xf32, #tpu.memory_space<vmem>>, vector<11x16xf32>
    %110 = arith.addf %108, %109 : vector<11x16xf32>
    %cst_64 = arith.constant 2.500000e-01 : f32
    %111 = vector.broadcast %cst_64 : f32 to vector<11x16xf32>
    %112 = arith.mulf %111, %110 : vector<11x16xf32>
    %c0_65 = arith.constant 0 : index
    %c22 = arith.constant 22 : index
    %c0_66 = arith.constant 0 : index
    %113 = vector.load %arg8[%c0_65, %c22, %c0_66] : memref<1x121x16xf32, #tpu.memory_space<vmem>>, vector<1x11x16xf32>
    %114 = vector.shape_cast %113 : vector<1x11x16xf32> to vector<11x16xf32>
    %115 = vector.shape_cast %112 : vector<11x16xf32> to vector<1x11x16xf32>
    tpu.vector_store %arg8[%c0_65, %c22, %c0_66], %115 {strides = array<i32>} : memref<1x121x16xf32, #tpu.memory_space<vmem>>, vector<1x11x16xf32>,
    %c150 = arith.constant 150 : index
    %c0_67 = arith.constant 0 : index
    %116 = tpu.strided_load %arg11[%c150, %c0_67] {strides = array<i32: 2, 1>} : memref<573x16xf32, #tpu.memory_space<vmem>>, vector<11x16xf32>
    %c151 = arith.constant 151 : index
    %c0_68 = arith.constant 0 : index
    %117 = tpu.strided_load %arg11[%c151, %c0_68] {strides = array<i32: 2, 1>} : memref<573x16xf32, #tpu.memory_space<vmem>>, vector<11x16xf32>
    %118 = arith.addf %116, %117 : vector<11x16xf32>
    %c175 = arith.constant 175 : index
    %c0_69 = arith.constant 0 : index
    %119 = tpu.strided_load %arg11[%c175, %c0_69] {strides = array<i32: 2, 1>} : memref<573x16xf32, #tpu.memory_space<vmem>>, vector<11x16xf32>
    %120 = arith.addf %118, %119 : vector<11x16xf32>
    %c176 = arith.constant 176 : index
    %c0_70 = arith.constant 0 : index
    %121 = tpu.strided_load %arg11[%c176, %c0_70] {strides = array<i32: 2, 1>} : memref<573x16xf32, #tpu.memory_space<vmem>>, vector<11x16xf32>
    %122 = arith.addf %120, %121 : vector<11x16xf32>
    %cst_71 = arith.constant 2.500000e-01 : f32
    %123 = vector.broadcast %cst_71 : f32 to vector<11x16xf32>
    %124 = arith.mulf %123, %122 : vector<11x16xf32>
    %c0_72 = arith.constant 0 : index
    %c33 = arith.constant 33 : index
    %c0_73 = arith.constant 0 : index
    %125 = vector.load %arg8[%c0_72, %c33, %c0_73] : memref<1x121x16xf32, #tpu.memory_space<vmem>>, vector<1x11x16xf32>
    %126 = vector.shape_cast %125 : vector<1x11x16xf32> to vector<11x16xf32>
    %127 = vector.shape_cast %124 : vector<11x16xf32> to vector<1x11x16xf32>
    tpu.vector_store %arg8[%c0_72, %c33, %c0_73], %127 {strides = array<i32>} : memref<1x121x16xf32, #tpu.memory_space<vmem>>, vector<1x11x16xf32>,
    %c200 = arith.constant 200 : index
    %c0_74 = arith.constant 0 : index
    %128 = tpu.strided_load %arg11[%c200, %c0_74] {strides = array<i32: 2, 1>} : memref<573x16xf32, #tpu.memory_space<vmem>>, vector<11x16xf32>
    %c201 = arith.constant 201 : index
    %c0_75 = arith.constant 0 : index
    %129 = tpu.strided_load %arg11[%c201, %c0_75] {strides = array<i32: 2, 1>} : memref<573x16xf32, #tpu.memory_space<vmem>>, vector<11x16xf32>
    %130 = arith.addf %128, %129 : vector<11x16xf32>
    %c225 = arith.constant 225 : index
    %c0_76 = arith.constant 0 : index
    %131 = tpu.strided_load %arg11[%c225, %c0_76] {strides = array<i32: 2, 1>} : memref<573x16xf32, #tpu.memory_space<vmem>>, vector<11x16xf32>
    %132 = arith.addf %130, %131 : vector<11x16xf32>
    %c226 = arith.constant 226 : index
    %c0_77 = arith.constant 0 : index
    %133 = tpu.strided_load %arg11[%c226, %c0_77] {strides = array<i32: 2, 1>} : memref<573x16xf32, #tpu.memory_space<vmem>>, vector<11x16xf32>
    %134 = arith.addf %132, %133 : vector<11x16xf32>
    %cst_78 = arith.constant 2.500000e-01 : f32
    %135 = vector.broadcast %cst_78 : f32 to vector<11x16xf32>
    %136 = arith.mulf %135, %134 : vector<11x16xf32>
    %c0_79 = arith.constant 0 : index
    %c44 = arith.constant 44 : index
    %c0_80 = arith.constant 0 : index
    %137 = vector.load %arg8[%c0_79, %c44, %c0_80] : memref<1x121x16xf32, #tpu.memory_space<vmem>>, vector<1x11x16xf32>
    %138 = vector.shape_cast %137 : vector<1x11x16xf32> to vector<11x16xf32>
    %139 = vector.shape_cast %136 : vector<11x16xf32> to vector<1x11x16xf32>
    tpu.vector_store %arg8[%c0_79, %c44, %c0_80], %139 {strides = array<i32>} : memref<1x121x16xf32, #tpu.memory_space<vmem>>, vector<1x11x16xf32>,
    %c250 = arith.constant 250 : index
    %c0_81 = arith.constant 0 : index
    %140 = tpu.strided_load %arg11[%c250, %c0_81] {strides = array<i32: 2, 1>} : memref<573x16xf32, #tpu.memory_space<vmem>>, vector<11x16xf32>
    %c251 = arith.constant 251 : index
    %c0_82 = arith.constant 0 : index
    %141 = tpu.strided_load %arg11[%c251, %c0_82] {strides = array<i32: 2, 1>} : memref<573x16xf32, #tpu.memory_space<vmem>>, vector<11x16xf32>
    %142 = arith.addf %140, %141 : vector<11x16xf32>
    %c275 = arith.constant 275 : index
    %c0_83 = arith.constant 0 : index
    %143 = tpu.strided_load %arg11[%c275, %c0_83] {strides = array<i32: 2, 1>} : memref<573x16xf32, #tpu.memory_space<vmem>>, vector<11x16xf32>
    %144 = arith.addf %142, %143 : vector<11x16xf32>
    %c276 = arith.constant 276 : index
    %c0_84 = arith.constant 0 : index
    %145 = tpu.strided_load %arg11[%c276, %c0_84] {strides = array<i32: 2, 1>} : memref<573x16xf32, #tpu.memory_space<vmem>>, vector<11x16xf32>
    %146 = arith.addf %144, %145 : vector<11x16xf32>
    %cst_85 = arith.constant 2.500000e-01 : f32
    %147 = vector.broadcast %cst_85 : f32 to vector<11x16xf32>
    %148 = arith.mulf %147, %146 : vector<11x16xf32>
    %c0_86 = arith.constant 0 : index
    %c55 = arith.constant 55 : index
    %c0_87 = arith.constant 0 : index
    %149 = vector.load %arg8[%c0_86, %c55, %c0_87] : memref<1x121x16xf32, #tpu.memory_space<vmem>>, vector<1x11x16xf32>
    %150 = vector.shape_cast %149 : vector<1x11x16xf32> to vector<11x16xf32>
    %151 = vector.shape_cast %148 : vector<11x16xf32> to vector<1x11x16xf32>
    tpu.vector_store %arg8[%c0_86, %c55, %c0_87], %151 {strides = array<i32>} : memref<1x121x16xf32, #tpu.memory_space<vmem>>, vector<1x11x16xf32>,
    %c300 = arith.constant 300 : index
    %c0_88 = arith.constant 0 : index
    %152 = tpu.strided_load %arg11[%c300, %c0_88] {strides = array<i32: 2, 1>} : memref<573x16xf32, #tpu.memory_space<vmem>>, vector<11x16xf32>
    %c301 = arith.constant 301 : index
    %c0_89 = arith.constant 0 : index
    %153 = tpu.strided_load %arg11[%c301, %c0_89] {strides = array<i32: 2, 1>} : memref<573x16xf32, #tpu.memory_space<vmem>>, vector<11x16xf32>
    %154 = arith.addf %152, %153 : vector<11x16xf32>
    %c325 = arith.constant 325 : index
    %c0_90 = arith.constant 0 : index
    %155 = tpu.strided_load %arg11[%c325, %c0_90] {strides = array<i32: 2, 1>} : memref<573x16xf32, #tpu.memory_space<vmem>>, vector<11x16xf32>
    %156 = arith.addf %154, %155 : vector<11x16xf32>
    %c326 = arith.constant 326 : index
    %c0_91 = arith.constant 0 : index
    %157 = tpu.strided_load %arg11[%c326, %c0_91] {strides = array<i32: 2, 1>} : memref<573x16xf32, #tpu.memory_space<vmem>>, vector<11x16xf32>
    %158 = arith.addf %156, %157 : vector<11x16xf32>
    %cst_92 = arith.constant 2.500000e-01 : f32
    %159 = vector.broadcast %cst_92 : f32 to vector<11x16xf32>
    %160 = arith.mulf %159, %158 : vector<11x16xf32>
    %c0_93 = arith.constant 0 : index
    %c66 = arith.constant 66 : index
    %c0_94 = arith.constant 0 : index
    %161 = vector.load %arg8[%c0_93, %c66, %c0_94] : memref<1x121x16xf32, #tpu.memory_space<vmem>>, vector<1x11x16xf32>
    %162 = vector.shape_cast %161 : vector<1x11x16xf32> to vector<11x16xf32>
    %163 = vector.shape_cast %160 : vector<11x16xf32> to vector<1x11x16xf32>
    tpu.vector_store %arg8[%c0_93, %c66, %c0_94], %163 {strides = array<i32>} : memref<1x121x16xf32, #tpu.memory_space<vmem>>, vector<1x11x16xf32>,
    %c350 = arith.constant 350 : index
    %c0_95 = arith.constant 0 : index
    %164 = tpu.strided_load %arg11[%c350, %c0_95] {strides = array<i32: 2, 1>} : memref<573x16xf32, #tpu.memory_space<vmem>>, vector<11x16xf32>
    %c351 = arith.constant 351 : index
    %c0_96 = arith.constant 0 : index
    %165 = tpu.strided_load %arg11[%c351, %c0_96] {strides = array<i32: 2, 1>} : memref<573x16xf32, #tpu.memory_space<vmem>>, vector<11x16xf32>
    %166 = arith.addf %164, %165 : vector<11x16xf32>
    %c375 = arith.constant 375 : index
    %c0_97 = arith.constant 0 : index
    %167 = tpu.strided_load %arg11[%c375, %c0_97] {strides = array<i32: 2, 1>} : memref<573x16xf32, #tpu.memory_space<vmem>>, vector<11x16xf32>
    %168 = arith.addf %166, %167 : vector<11x16xf32>
    %c376 = arith.constant 376 : index
    %c0_98 = arith.constant 0 : index
    %169 = tpu.strided_load %arg11[%c376, %c0_98] {strides = array<i32: 2, 1>} : memref<573x16xf32, #tpu.memory_space<vmem>>, vector<11x16xf32>
    %170 = arith.addf %168, %169 : vector<11x16xf32>
    %cst_99 = arith.constant 2.500000e-01 : f32
    %171 = vector.broadcast %cst_99 : f32 to vector<11x16xf32>
    %172 = arith.mulf %171, %170 : vector<11x16xf32>
    %c0_100 = arith.constant 0 : index
    %c77 = arith.constant 77 : index
    %c0_101 = arith.constant 0 : index
    %173 = vector.load %arg8[%c0_100, %c77, %c0_101] : memref<1x121x16xf32, #tpu.memory_space<vmem>>, vector<1x11x16xf32>
    %174 = vector.shape_cast %173 : vector<1x11x16xf32> to vector<11x16xf32>
    %175 = vector.shape_cast %172 : vector<11x16xf32> to vector<1x11x16xf32>
    tpu.vector_store %arg8[%c0_100, %c77, %c0_101], %175 {strides = array<i32>} : memref<1x121x16xf32, #tpu.memory_space<vmem>>, vector<1x11x16xf32>,
    %c400 = arith.constant 400 : index
    %c0_102 = arith.constant 0 : index
    %176 = tpu.strided_load %arg11[%c400, %c0_102] {strides = array<i32: 2, 1>} : memref<573x16xf32, #tpu.memory_space<vmem>>, vector<11x16xf32>
    %c401 = arith.constant 401 : index
    %c0_103 = arith.constant 0 : index
    %177 = tpu.strided_load %arg11[%c401, %c0_103] {strides = array<i32: 2, 1>} : memref<573x16xf32, #tpu.memory_space<vmem>>, vector<11x16xf32>
    %178 = arith.addf %176, %177 : vector<11x16xf32>
    %c425 = arith.constant 425 : index
    %c0_104 = arith.constant 0 : index
    %179 = tpu.strided_load %arg11[%c425, %c0_104] {strides = array<i32: 2, 1>} : memref<573x16xf32, #tpu.memory_space<vmem>>, vector<11x16xf32>
    %180 = arith.addf %178, %179 : vector<11x16xf32>
    %c426 = arith.constant 426 : index
    %c0_105 = arith.constant 0 : index
    %181 = tpu.strided_load %arg11[%c426, %c0_105] {strides = array<i32: 2, 1>} : memref<573x16xf32, #tpu.memory_space<vmem>>, vector<11x16xf32>
    %182 = arith.addf %180, %181 : vector<11x16xf32>
    %cst_106 = arith.constant 2.500000e-01 : f32
    %183 = vector.broadcast %cst_106 : f32 to vector<11x16xf32>
    %184 = arith.mulf %183, %182 : vector<11x16xf32>
    %c0_107 = arith.constant 0 : index
    %c88 = arith.constant 88 : index
    %c0_108 = arith.constant 0 : index
    %185 = vector.load %arg8[%c0_107, %c88, %c0_108] : memref<1x121x16xf32, #tpu.memory_space<vmem>>, vector<1x11x16xf32>
    %186 = vector.shape_cast %185 : vector<1x11x16xf32> to vector<11x16xf32>
    %187 = vector.shape_cast %184 : vector<11x16xf32> to vector<1x11x16xf32>
    tpu.vector_store %arg8[%c0_107, %c88, %c0_108], %187 {strides = array<i32>} : memref<1x121x16xf32, #tpu.memory_space<vmem>>, vector<1x11x16xf32>,
    %c450 = arith.constant 450 : index
    %c0_109 = arith.constant 0 : index
    %188 = tpu.strided_load %arg11[%c450, %c0_109] {strides = array<i32: 2, 1>} : memref<573x16xf32, #tpu.memory_space<vmem>>, vector<11x16xf32>
    %c451 = arith.constant 451 : index
    %c0_110 = arith.constant 0 : index
    %189 = tpu.strided_load %arg11[%c451, %c0_110] {strides = array<i32: 2, 1>} : memref<573x16xf32, #tpu.memory_space<vmem>>, vector<11x16xf32>
    %190 = arith.addf %188, %189 : vector<11x16xf32>
    %c475 = arith.constant 475 : index
    %c0_111 = arith.constant 0 : index
    %191 = tpu.strided_load %arg11[%c475, %c0_111] {strides = array<i32: 2, 1>} : memref<573x16xf32, #tpu.memory_space<vmem>>, vector<11x16xf32>
    %192 = arith.addf %190, %191 : vector<11x16xf32>
    %c476 = arith.constant 476 : index
    %c0_112 = arith.constant 0 : index
    %193 = tpu.strided_load %arg11[%c476, %c0_112] {strides = array<i32: 2, 1>} : memref<573x16xf32, #tpu.memory_space<vmem>>, vector<11x16xf32>
    %194 = arith.addf %192, %193 : vector<11x16xf32>
    %cst_113 = arith.constant 2.500000e-01 : f32
    %195 = vector.broadcast %cst_113 : f32 to vector<11x16xf32>
    %196 = arith.mulf %195, %194 : vector<11x16xf32>
    %c0_114 = arith.constant 0 : index
    %c99 = arith.constant 99 : index
    %c0_115 = arith.constant 0 : index
    %197 = vector.load %arg8[%c0_114, %c99, %c0_115] : memref<1x121x16xf32, #tpu.memory_space<vmem>>, vector<1x11x16xf32>
    %198 = vector.shape_cast %197 : vector<1x11x16xf32> to vector<11x16xf32>
    %199 = vector.shape_cast %196 : vector<11x16xf32> to vector<1x11x16xf32>
    tpu.vector_store %arg8[%c0_114, %c99, %c0_115], %199 {strides = array<i32>} : memref<1x121x16xf32, #tpu.memory_space<vmem>>, vector<1x11x16xf32>,
    %c500 = arith.constant 500 : index
    %c0_116 = arith.constant 0 : index
    %200 = tpu.strided_load %arg11[%c500, %c0_116] {strides = array<i32: 2, 1>} : memref<573x16xf32, #tpu.memory_space<vmem>>, vector<11x16xf32>
    %c501 = arith.constant 501 : index
    %c0_117 = arith.constant 0 : index
    %201 = tpu.strided_load %arg11[%c501, %c0_117] {strides = array<i32: 2, 1>} : memref<573x16xf32, #tpu.memory_space<vmem>>, vector<11x16xf32>
    %202 = arith.addf %200, %201 : vector<11x16xf32>
    %c525 = arith.constant 525 : index
    %c0_118 = arith.constant 0 : index
    %203 = tpu.strided_load %arg11[%c525, %c0_118] {strides = array<i32: 2, 1>} : memref<573x16xf32, #tpu.memory_space<vmem>>, vector<11x16xf32>
    %204 = arith.addf %202, %203 : vector<11x16xf32>
    %c526 = arith.constant 526 : index
    %c0_119 = arith.constant 0 : index
    %205 = tpu.strided_load %arg11[%c526, %c0_119] {strides = array<i32: 2, 1>} : memref<573x16xf32, #tpu.memory_space<vmem>>, vector<11x16xf32>
    %206 = arith.addf %204, %205 : vector<11x16xf32>
    %cst_120 = arith.constant 2.500000e-01 : f32
    %207 = vector.broadcast %cst_120 : f32 to vector<11x16xf32>
    %208 = arith.mulf %207, %206 : vector<11x16xf32>
    %c0_121 = arith.constant 0 : index
    %c110 = arith.constant 110 : index
    %c0_122 = arith.constant 0 : index
    %209 = vector.load %arg8[%c0_121, %c110, %c0_122] : memref<1x121x16xf32, #tpu.memory_space<vmem>>, vector<1x11x16xf32>
    %210 = vector.shape_cast %209 : vector<1x11x16xf32> to vector<11x16xf32>
    %211 = vector.shape_cast %208 : vector<11x16xf32> to vector<1x11x16xf32>
    tpu.vector_store %arg8[%c0_121, %c110, %c0_122], %211 {strides = array<i32>} : memref<1x121x16xf32, #tpu.memory_space<vmem>>, vector<1x11x16xf32>,
    %cst_123 = arith.constant 0.000000e+00 : f32
    %212 = vector.broadcast %cst_123 : f32 to vector<97x16xf32>
    %c0_124 = arith.constant 0 : index
    %c0_125 = arith.constant 0 : index
    %c0_126 = arith.constant 0 : index
    %213 = vector.load %arg8[%c0_124, %c0_125, %c0_126] : memref<1x121x16xf32, #tpu.memory_space<vmem>>, vector<1x97x16xf32>
    %214 = vector.shape_cast %213 : vector<1x97x16xf32> to vector<97x16xf32>
    %215 = arith.truncf %214 : vector<97x16xf32> to vector<97x16xbf16>
    %c0_127 = arith.constant 0 : index
    %c0_128 = arith.constant 0 : index
    %c0_129 = arith.constant 0 : index
    %216 = vector.load %arg4[%c0_127, %c0_128, %c0_129] : memref<9x16x16xbf16, #tpu.memory_space<vmem>>, vector<1x16x16xbf16>
    %217 = vector.shape_cast %216 : vector<1x16x16xbf16> to vector<16x16xbf16>
    %cst_130 = arith.constant dense<0.000000e+00> : vector<97x16xf32>
    %218 = tpu.matmul %215, %217, %cst_130 {dimension_numbers = #tpu.dot_dimension_numbers<[1], [0], [0], [1], [0, 0, 1, 1], [], []>} : vector<97x16xbf16>, vector<16x16xbf16>, vector<97x16xf32> -> vector<97x16xf32>
    %219 = arith.addf %212, %218 : vector<97x16xf32>
    %c0_131 = arith.constant 0 : index
    %c1_132 = arith.constant 1 : index
    %c0_133 = arith.constant 0 : index
    %220 = vector.load %arg8[%c0_131, %c1_132, %c0_133] : memref<1x121x16xf32, #tpu.memory_space<vmem>>, vector<1x97x16xf32>
    %221 = vector.shape_cast %220 : vector<1x97x16xf32> to vector<97x16xf32>
    %222 = arith.truncf %221 : vector<97x16xf32> to vector<97x16xbf16>
    %c1_134 = arith.constant 1 : index
    %c0_135 = arith.constant 0 : index
    %c0_136 = arith.constant 0 : index
    %223 = vector.load %arg4[%c1_134, %c0_135, %c0_136] : memref<9x16x16xbf16, #tpu.memory_space<vmem>>, vector<1x16x16xbf16>
    %224 = vector.shape_cast %223 : vector<1x16x16xbf16> to vector<16x16xbf16>
    %cst_137 = arith.constant dense<0.000000e+00> : vector<97x16xf32>
    %225 = tpu.matmul %222, %224, %cst_137 {dimension_numbers = #tpu.dot_dimension_numbers<[1], [0], [0], [1], [0, 0, 1, 1], [], []>} : vector<97x16xbf16>, vector<16x16xbf16>, vector<97x16xf32> -> vector<97x16xf32>
    %226 = arith.addf %219, %225 : vector<97x16xf32>
    %c0_138 = arith.constant 0 : index
    %c2_139 = arith.constant 2 : index
    %c0_140 = arith.constant 0 : index
    %227 = vector.load %arg8[%c0_138, %c2_139, %c0_140] : memref<1x121x16xf32, #tpu.memory_space<vmem>>, vector<1x97x16xf32>
    %228 = vector.shape_cast %227 : vector<1x97x16xf32> to vector<97x16xf32>
    %229 = arith.truncf %228 : vector<97x16xf32> to vector<97x16xbf16>
    %c2_141 = arith.constant 2 : index
    %c0_142 = arith.constant 0 : index
    %c0_143 = arith.constant 0 : index
    %230 = vector.load %arg4[%c2_141, %c0_142, %c0_143] : memref<9x16x16xbf16, #tpu.memory_space<vmem>>, vector<1x16x16xbf16>
    %231 = vector.shape_cast %230 : vector<1x16x16xbf16> to vector<16x16xbf16>
    %cst_144 = arith.constant dense<0.000000e+00> : vector<97x16xf32>
    %232 = tpu.matmul %229, %231, %cst_144 {dimension_numbers = #tpu.dot_dimension_numbers<[1], [0], [0], [1], [0, 0, 1, 1], [], []>} : vector<97x16xbf16>, vector<16x16xbf16>, vector<97x16xf32> -> vector<97x16xf32>
    %233 = arith.addf %226, %232 : vector<97x16xf32>
    %c0_145 = arith.constant 0 : index
    %c11_146 = arith.constant 11 : index
    %c0_147 = arith.constant 0 : index
    %234 = vector.load %arg8[%c0_145, %c11_146, %c0_147] : memref<1x121x16xf32, #tpu.memory_space<vmem>>, vector<1x97x16xf32>
    %235 = vector.shape_cast %234 : vector<1x97x16xf32> to vector<97x16xf32>
    %236 = arith.truncf %235 : vector<97x16xf32> to vector<97x16xbf16>
    %c3_148 = arith.constant 3 : index
    %c0_149 = arith.constant 0 : index
    %c0_150 = arith.constant 0 : index
    %237 = vector.load %arg4[%c3_148, %c0_149, %c0_150] : memref<9x16x16xbf16, #tpu.memory_space<vmem>>, vector<1x16x16xbf16>
    %238 = vector.shape_cast %237 : vector<1x16x16xbf16> to vector<16x16xbf16>
    %cst_151 = arith.constant dense<0.000000e+00> : vector<97x16xf32>
    %239 = tpu.matmul %236, %238, %cst_151 {dimension_numbers = #tpu.dot_dimension_numbers<[1], [0], [0], [1], [0, 0, 1, 1], [], []>} : vector<97x16xbf16>, vector<16x16xbf16>, vector<97x16xf32> -> vector<97x16xf32>
    %240 = arith.addf %233, %239 : vector<97x16xf32>
    %c0_152 = arith.constant 0 : index
    %c12 = arith.constant 12 : index
    %c0_153 = arith.constant 0 : index
    %241 = vector.load %arg8[%c0_152, %c12, %c0_153] : memref<1x121x16xf32, #tpu.memory_space<vmem>>, vector<1x97x16xf32>
    %242 = vector.shape_cast %241 : vector<1x97x16xf32> to vector<97x16xf32>
    %243 = arith.truncf %242 : vector<97x16xf32> to vector<97x16xbf16>
    %c4_154 = arith.constant 4 : index
    %c0_155 = arith.constant 0 : index
    %c0_156 = arith.constant 0 : index
    %244 = vector.load %arg4[%c4_154, %c0_155, %c0_156] : memref<9x16x16xbf16, #tpu.memory_space<vmem>>, vector<1x16x16xbf16>
    %245 = vector.shape_cast %244 : vector<1x16x16xbf16> to vector<16x16xbf16>
    %cst_157 = arith.constant dense<0.000000e+00> : vector<97x16xf32>
    %246 = tpu.matmul %243, %245, %cst_157 {dimension_numbers = #tpu.dot_dimension_numbers<[1], [0], [0], [1], [0, 0, 1, 1], [], []>} : vector<97x16xbf16>, vector<16x16xbf16>, vector<97x16xf32> -> vector<97x16xf32>
    %247 = arith.addf %240, %246 : vector<97x16xf32>
    %c0_158 = arith.constant 0 : index
    %c13 = arith.constant 13 : index
    %c0_159 = arith.constant 0 : index
    %248 = vector.load %arg8[%c0_158, %c13, %c0_159] : memref<1x121x16xf32, #tpu.memory_space<vmem>>, vector<1x97x16xf32>
    %249 = vector.shape_cast %248 : vector<1x97x16xf32> to vector<97x16xf32>
    %250 = arith.truncf %249 : vector<97x16xf32> to vector<97x16xbf16>
    %c5_160 = arith.constant 5 : index
    %c0_161 = arith.constant 0 : index
    %c0_162 = arith.constant 0 : index
    %251 = vector.load %arg4[%c5_160, %c0_161, %c0_162] : memref<9x16x16xbf16, #tpu.memory_space<vmem>>, vector<1x16x16xbf16>
    %252 = vector.shape_cast %251 : vector<1x16x16xbf16> to vector<16x16xbf16>
    %cst_163 = arith.constant dense<0.000000e+00> : vector<97x16xf32>
    %253 = tpu.matmul %250, %252, %cst_163 {dimension_numbers = #tpu.dot_dimension_numbers<[1], [0], [0], [1], [0, 0, 1, 1], [], []>} : vector<97x16xbf16>, vector<16x16xbf16>, vector<97x16xf32> -> vector<97x16xf32>
    %254 = arith.addf %247, %253 : vector<97x16xf32>
    %c0_164 = arith.constant 0 : index
    %c22_165 = arith.constant 22 : index
    %c0_166 = arith.constant 0 : index
    %255 = vector.load %arg8[%c0_164, %c22_165, %c0_166] : memref<1x121x16xf32, #tpu.memory_space<vmem>>, vector<1x97x16xf32>
    %256 = vector.shape_cast %255 : vector<1x97x16xf32> to vector<97x16xf32>
    %257 = arith.truncf %256 : vector<97x16xf32> to vector<97x16xbf16>
    %c6_167 = arith.constant 6 : index
    %c0_168 = arith.constant 0 : index
    %c0_169 = arith.constant 0 : index
    %258 = vector.load %arg4[%c6_167, %c0_168, %c0_169] : memref<9x16x16xbf16, #tpu.memory_space<vmem>>, vector<1x16x16xbf16>
    %259 = vector.shape_cast %258 : vector<1x16x16xbf16> to vector<16x16xbf16>
    %cst_170 = arith.constant dense<0.000000e+00> : vector<97x16xf32>
    %260 = tpu.matmul %257, %259, %cst_170 {dimension_numbers = #tpu.dot_dimension_numbers<[1], [0], [0], [1], [0, 0, 1, 1], [], []>} : vector<97x16xbf16>, vector<16x16xbf16>, vector<97x16xf32> -> vector<97x16xf32>
    %261 = arith.addf %254, %260 : vector<97x16xf32>
    %c0_171 = arith.constant 0 : index
    %c23 = arith.constant 23 : index
    %c0_172 = arith.constant 0 : index
    %262 = vector.load %arg8[%c0_171, %c23, %c0_172] : memref<1x121x16xf32, #tpu.memory_space<vmem>>, vector<1x97x16xf32>
    %263 = vector.shape_cast %262 : vector<1x97x16xf32> to vector<97x16xf32>
    %264 = arith.truncf %263 : vector<97x16xf32> to vector<97x16xbf16>
    %c7_173 = arith.constant 7 : index
    %c0_174 = arith.constant 0 : index
    %c0_175 = arith.constant 0 : index
    %265 = vector.load %arg4[%c7_173, %c0_174, %c0_175] : memref<9x16x16xbf16, #tpu.memory_space<vmem>>, vector<1x16x16xbf16>
    %266 = vector.shape_cast %265 : vector<1x16x16xbf16> to vector<16x16xbf16>
    %cst_176 = arith.constant dense<0.000000e+00> : vector<97x16xf32>
    %267 = tpu.matmul %264, %266, %cst_176 {dimension_numbers = #tpu.dot_dimension_numbers<[1], [0], [0], [1], [0, 0, 1, 1], [], []>} : vector<97x16xbf16>, vector<16x16xbf16>, vector<97x16xf32> -> vector<97x16xf32>
    %268 = arith.addf %261, %267 : vector<97x16xf32>
    %c0_177 = arith.constant 0 : index
    %c24 = arith.constant 24 : index
    %c0_178 = arith.constant 0 : index
    %269 = vector.load %arg8[%c0_177, %c24, %c0_178] : memref<1x121x16xf32, #tpu.memory_space<vmem>>, vector<1x97x16xf32>
    %270 = vector.shape_cast %269 : vector<1x97x16xf32> to vector<97x16xf32>
    %271 = arith.truncf %270 : vector<97x16xf32> to vector<97x16xbf16>
    %c8_179 = arith.constant 8 : index
    %c0_180 = arith.constant 0 : index
    %c0_181 = arith.constant 0 : index
    %272 = vector.load %arg4[%c8_179, %c0_180, %c0_181] : memref<9x16x16xbf16, #tpu.memory_space<vmem>>, vector<1x16x16xbf16>
    %273 = vector.shape_cast %272 : vector<1x16x16xbf16> to vector<16x16xbf16>
    %cst_182 = arith.constant dense<0.000000e+00> : vector<97x16xf32>
    %274 = tpu.matmul %271, %273, %cst_182 {dimension_numbers = #tpu.dot_dimension_numbers<[1], [0], [0], [1], [0, 0, 1, 1], [], []>} : vector<97x16xbf16>, vector<16x16xbf16>, vector<97x16xf32> -> vector<97x16xf32>
    %275 = arith.addf %268, %274 : vector<97x16xf32>
    %c0_183 = arith.constant 0 : index
    %c0_184 = arith.constant 0 : index
    %276 = vector.load %arg5[%c0_183, %c0_184] : memref<1x16xf32, #tpu.memory_space<vmem>>, vector<1x16xf32>
    %277 = vector.broadcast %276 : vector<1x16xf32> to vector<97x16xf32>
    %278 = arith.addf %275, %277 : vector<97x16xf32>
    %cst_185 = arith.constant 0.000000e+00 : f32
    %279 = vector.broadcast %cst_185 : f32 to vector<97x16xf32>
    %280 = arith.cmpf ogt, %278, %279 : vector<97x16xf32>
    %cst_186 = arith.constant 0.000000e+00 : f32
    %281 = vector.broadcast %cst_186 : f32 to vector<97x16xf32>
    %282 = arith.minimumf %278, %281 : vector<97x16xf32>
    %283 = math.exp %282 : vector<97x16xf32>
    %cst_187 = arith.constant 1.000000e+00 : f32
    %284 = vector.broadcast %cst_187 : f32 to vector<97x16xf32>
    %285 = arith.subf %283, %284 : vector<97x16xf32>
    %cst_188 = arith.constant 1.67326319 : f32
    %286 = vector.broadcast %cst_188 : f32 to vector<97x16xf32>
    %287 = arith.mulf %286, %285 : vector<97x16xf32>
    %288 = arith.select %280, %278, %287 : vector<97x16xi1>, vector<97x16xf32>
    %cst_189 = arith.constant 1.05070102 : f32
    %289 = vector.broadcast %cst_189 : f32 to vector<97x16xf32>
    %290 = arith.mulf %289, %288 : vector<97x16xf32>
    %c0_190 = arith.constant 0 : index
    %c0_191 = arith.constant 0 : index
    %291 = vector.load %arg12[%c0_190, %c0_191] : memref<97x16xf32, #tpu.memory_space<vmem>>, vector<97x16xf32>
    tpu.vector_store %arg12[%c0_190, %c0_191], %290 {strides = array<i32>} : memref<97x16xf32, #tpu.memory_space<vmem>>, vector<97x16xf32>,
    %c0_192 = arith.constant 0 : index
    %c0_193 = arith.constant 0 : index
    %292 = tpu.strided_load %arg12[%c0_192, %c0_193] {strides = array<i32: 2, 1>} : memref<97x16xf32, #tpu.memory_space<vmem>>, vector<4x16xf32>
    %c1_194 = arith.constant 1 : index
    %c0_195 = arith.constant 0 : index
    %293 = tpu.strided_load %arg12[%c1_194, %c0_195] {strides = array<i32: 2, 1>} : memref<97x16xf32, #tpu.memory_space<vmem>>, vector<4x16xf32>
    %294 = arith.addf %292, %293 : vector<4x16xf32>
    %c11_196 = arith.constant 11 : index
    %c0_197 = arith.constant 0 : index
    %295 = tpu.strided_load %arg12[%c11_196, %c0_197] {strides = array<i32: 2, 1>} : memref<97x16xf32, #tpu.memory_space<vmem>>, vector<4x16xf32>
    %296 = arith.addf %294, %295 : vector<4x16xf32>
    %c12_198 = arith.constant 12 : index
    %c0_199 = arith.constant 0 : index
    %297 = tpu.strided_load %arg12[%c12_198, %c0_199] {strides = array<i32: 2, 1>} : memref<97x16xf32, #tpu.memory_space<vmem>>, vector<4x16xf32>
    %298 = arith.addf %296, %297 : vector<4x16xf32>
    %cst_200 = arith.constant 2.500000e-01 : f32
    %299 = vector.broadcast %cst_200 : f32 to vector<4x16xf32>
    %300 = arith.mulf %299, %298 : vector<4x16xf32>
    %c0_201 = arith.constant 0 : index
    %c0_202 = arith.constant 0 : index
    %c0_203 = arith.constant 0 : index
    %301 = vector.load %arg9[%c0_201, %c0_202, %c0_203] : memref<1x16x16xf32, #tpu.memory_space<vmem>>, vector<1x4x16xf32>
    %302 = vector.shape_cast %301 : vector<1x4x16xf32> to vector<4x16xf32>
    %303 = vector.shape_cast %300 : vector<4x16xf32> to vector<1x4x16xf32>
    tpu.vector_store %arg9[%c0_201, %c0_202, %c0_203], %303 {strides = array<i32>} : memref<1x16x16xf32, #tpu.memory_space<vmem>>, vector<1x4x16xf32>,
    %c22_204 = arith.constant 22 : index
    %c0_205 = arith.constant 0 : index
    %304 = tpu.strided_load %arg12[%c22_204, %c0_205] {strides = array<i32: 2, 1>} : memref<97x16xf32, #tpu.memory_space<vmem>>, vector<4x16xf32>
    %c23_206 = arith.constant 23 : index
    %c0_207 = arith.constant 0 : index
    %305 = tpu.strided_load %arg12[%c23_206, %c0_207] {strides = array<i32: 2, 1>} : memref<97x16xf32, #tpu.memory_space<vmem>>, vector<4x16xf32>
    %306 = arith.addf %304, %305 : vector<4x16xf32>
    %c33_208 = arith.constant 33 : index
    %c0_209 = arith.constant 0 : index
    %307 = tpu.strided_load %arg12[%c33_208, %c0_209] {strides = array<i32: 2, 1>} : memref<97x16xf32, #tpu.memory_space<vmem>>, vector<4x16xf32>
    %308 = arith.addf %306, %307 : vector<4x16xf32>
    %c34 = arith.constant 34 : index
    %c0_210 = arith.constant 0 : index
    %309 = tpu.strided_load %arg12[%c34, %c0_210] {strides = array<i32: 2, 1>} : memref<97x16xf32, #tpu.memory_space<vmem>>, vector<4x16xf32>
    %310 = arith.addf %308, %309 : vector<4x16xf32>
    %cst_211 = arith.constant 2.500000e-01 : f32
    %311 = vector.broadcast %cst_211 : f32 to vector<4x16xf32>
    %312 = arith.mulf %311, %310 : vector<4x16xf32>
    %c0_212 = arith.constant 0 : index
    %c4_213 = arith.constant 4 : index
    %c0_214 = arith.constant 0 : index
    %313 = vector.load %arg9[%c0_212, %c4_213, %c0_214] : memref<1x16x16xf32, #tpu.memory_space<vmem>>, vector<1x4x16xf32>
    %314 = vector.shape_cast %313 : vector<1x4x16xf32> to vector<4x16xf32>
    %315 = vector.shape_cast %312 : vector<4x16xf32> to vector<1x4x16xf32>
    tpu.vector_store %arg9[%c0_212, %c4_213, %c0_214], %315 {strides = array<i32>} : memref<1x16x16xf32, #tpu.memory_space<vmem>>, vector<1x4x16xf32>,
    %c44_215 = arith.constant 44 : index
    %c0_216 = arith.constant 0 : index
    %316 = tpu.strided_load %arg12[%c44_215, %c0_216] {strides = array<i32: 2, 1>} : memref<97x16xf32, #tpu.memory_space<vmem>>, vector<4x16xf32>
    %c45 = arith.constant 45 : index
    %c0_217 = arith.constant 0 : index
    %317 = tpu.strided_load %arg12[%c45, %c0_217] {strides = array<i32: 2, 1>} : memref<97x16xf32, #tpu.memory_space<vmem>>, vector<4x16xf32>
    %318 = arith.addf %316, %317 : vector<4x16xf32>
    %c55_218 = arith.constant 55 : index
    %c0_219 = arith.constant 0 : index
    %319 = tpu.strided_load %arg12[%c55_218, %c0_219] {strides = array<i32: 2, 1>} : memref<97x16xf32, #tpu.memory_space<vmem>>, vector<4x16xf32>
    %320 = arith.addf %318, %319 : vector<4x16xf32>
    %c56 = arith.constant 56 : index
    %c0_220 = arith.constant 0 : index
    %321 = tpu.strided_load %arg12[%c56, %c0_220] {strides = array<i32: 2, 1>} : memref<97x16xf32, #tpu.memory_space<vmem>>, vector<4x16xf32>
    %322 = arith.addf %320, %321 : vector<4x16xf32>
    %cst_221 = arith.constant 2.500000e-01 : f32
    %323 = vector.broadcast %cst_221 : f32 to vector<4x16xf32>
    %324 = arith.mulf %323, %322 : vector<4x16xf32>
    %c0_222 = arith.constant 0 : index
    %c8_223 = arith.constant 8 : index
    %c0_224 = arith.constant 0 : index
    %325 = vector.load %arg9[%c0_222, %c8_223, %c0_224] : memref<1x16x16xf32, #tpu.memory_space<vmem>>, vector<1x4x16xf32>
    %326 = vector.shape_cast %325 : vector<1x4x16xf32> to vector<4x16xf32>
    %327 = vector.shape_cast %324 : vector<4x16xf32> to vector<1x4x16xf32>
    tpu.vector_store %arg9[%c0_222, %c8_223, %c0_224], %327 {strides = array<i32>} : memref<1x16x16xf32, #tpu.memory_space<vmem>>, vector<1x4x16xf32>,
    %c66_225 = arith.constant 66 : index
    %c0_226 = arith.constant 0 : index
    %328 = tpu.strided_load %arg12[%c66_225, %c0_226] {strides = array<i32: 2, 1>} : memref<97x16xf32, #tpu.memory_space<vmem>>, vector<4x16xf32>
    %c67 = arith.constant 67 : index
    %c0_227 = arith.constant 0 : index
    %329 = tpu.strided_load %arg12[%c67, %c0_227] {strides = array<i32: 2, 1>} : memref<97x16xf32, #tpu.memory_space<vmem>>, vector<4x16xf32>
    %330 = arith.addf %328, %329 : vector<4x16xf32>
    %c77_228 = arith.constant 77 : index
    %c0_229 = arith.constant 0 : index
    %331 = tpu.strided_load %arg12[%c77_228, %c0_229] {strides = array<i32: 2, 1>} : memref<97x16xf32, #tpu.memory_space<vmem>>, vector<4x16xf32>
    %332 = arith.addf %330, %331 : vector<4x16xf32>
    %c78 = arith.constant 78 : index
    %c0_230 = arith.constant 0 : index
    %333 = tpu.strided_load %arg12[%c78, %c0_230] {strides = array<i32: 2, 1>} : memref<97x16xf32, #tpu.memory_space<vmem>>, vector<4x16xf32>
    %334 = arith.addf %332, %333 : vector<4x16xf32>
    %cst_231 = arith.constant 2.500000e-01 : f32
    %335 = vector.broadcast %cst_231 : f32 to vector<4x16xf32>
    %336 = arith.mulf %335, %334 : vector<4x16xf32>
    %c0_232 = arith.constant 0 : index
    %c12_233 = arith.constant 12 : index
    %c0_234 = arith.constant 0 : index
    %337 = vector.load %arg9[%c0_232, %c12_233, %c0_234] : memref<1x16x16xf32, #tpu.memory_space<vmem>>, vector<1x4x16xf32>
    %338 = vector.shape_cast %337 : vector<1x4x16xf32> to vector<4x16xf32>
    %339 = vector.shape_cast %336 : vector<4x16xf32> to vector<1x4x16xf32>
    tpu.vector_store %arg9[%c0_232, %c12_233, %c0_234], %339 {strides = array<i32>} : memref<1x16x16xf32, #tpu.memory_space<vmem>>, vector<1x4x16xf32>,
    %cst_235 = arith.constant 0.000000e+00 : f32
    %340 = vector.broadcast %cst_235 : f32 to vector<6x16xf32>
    %c0_236 = arith.constant 0 : index
    %c0_237 = arith.constant 0 : index
    %c0_238 = arith.constant 0 : index
    %341 = vector.load %arg9[%c0_236, %c0_237, %c0_238] : memref<1x16x16xf32, #tpu.memory_space<vmem>>, vector<1x6x16xf32>
    %342 = vector.shape_cast %341 : vector<1x6x16xf32> to vector<6x16xf32>
    %343 = arith.truncf %342 : vector<6x16xf32> to vector<6x16xbf16>
    %c0_239 = arith.constant 0 : index
    %c0_240 = arith.constant 0 : index
    %c0_241 = arith.constant 0 : index
    %344 = vector.load %arg6[%c0_239, %c0_240, %c0_241] : memref<9x16x16xbf16, #tpu.memory_space<vmem>>, vector<1x16x16xbf16>
    %345 = vector.shape_cast %344 : vector<1x16x16xbf16> to vector<16x16xbf16>
    %cst_242 = arith.constant dense<0.000000e+00> : vector<6x16xf32>
    %346 = tpu.matmul %343, %345, %cst_242 {dimension_numbers = #tpu.dot_dimension_numbers<[1], [0], [0], [1], [0, 0, 1, 1], [], []>} : vector<6x16xbf16>, vector<16x16xbf16>, vector<6x16xf32> -> vector<6x16xf32>
    %347 = arith.addf %340, %346 : vector<6x16xf32>
    %c0_243 = arith.constant 0 : index
    %c1_244 = arith.constant 1 : index
    %c0_245 = arith.constant 0 : index
    %348 = vector.load %arg9[%c0_243, %c1_244, %c0_245] : memref<1x16x16xf32, #tpu.memory_space<vmem>>, vector<1x6x16xf32>
    %349 = vector.shape_cast %348 : vector<1x6x16xf32> to vector<6x16xf32>
    %350 = arith.truncf %349 : vector<6x16xf32> to vector<6x16xbf16>
    %c1_246 = arith.constant 1 : index
    %c0_247 = arith.constant 0 : index
    %c0_248 = arith.constant 0 : index
    %351 = vector.load %arg6[%c1_246, %c0_247, %c0_248] : memref<9x16x16xbf16, #tpu.memory_space<vmem>>, vector<1x16x16xbf16>
    %352 = vector.shape_cast %351 : vector<1x16x16xbf16> to vector<16x16xbf16>
    %cst_249 = arith.constant dense<0.000000e+00> : vector<6x16xf32>
    %353 = tpu.matmul %350, %352, %cst_249 {dimension_numbers = #tpu.dot_dimension_numbers<[1], [0], [0], [1], [0, 0, 1, 1], [], []>} : vector<6x16xbf16>, vector<16x16xbf16>, vector<6x16xf32> -> vector<6x16xf32>
    %354 = arith.addf %347, %353 : vector<6x16xf32>
    %c0_250 = arith.constant 0 : index
    %c2_251 = arith.constant 2 : index
    %c0_252 = arith.constant 0 : index
    %355 = vector.load %arg9[%c0_250, %c2_251, %c0_252] : memref<1x16x16xf32, #tpu.memory_space<vmem>>, vector<1x6x16xf32>
    %356 = vector.shape_cast %355 : vector<1x6x16xf32> to vector<6x16xf32>
    %357 = arith.truncf %356 : vector<6x16xf32> to vector<6x16xbf16>
    %c2_253 = arith.constant 2 : index
    %c0_254 = arith.constant 0 : index
    %c0_255 = arith.constant 0 : index
    %358 = vector.load %arg6[%c2_253, %c0_254, %c0_255] : memref<9x16x16xbf16, #tpu.memory_space<vmem>>, vector<1x16x16xbf16>
    %359 = vector.shape_cast %358 : vector<1x16x16xbf16> to vector<16x16xbf16>
    %cst_256 = arith.constant dense<0.000000e+00> : vector<6x16xf32>
    %360 = tpu.matmul %357, %359, %cst_256 {dimension_numbers = #tpu.dot_dimension_numbers<[1], [0], [0], [1], [0, 0, 1, 1], [], []>} : vector<6x16xbf16>, vector<16x16xbf16>, vector<6x16xf32> -> vector<6x16xf32>
    %361 = arith.addf %354, %360 : vector<6x16xf32>
    %c0_257 = arith.constant 0 : index
    %c4_258 = arith.constant 4 : index
    %c0_259 = arith.constant 0 : index
    %362 = vector.load %arg9[%c0_257, %c4_258, %c0_259] : memref<1x16x16xf32, #tpu.memory_space<vmem>>, vector<1x6x16xf32>
    %363 = vector.shape_cast %362 : vector<1x6x16xf32> to vector<6x16xf32>
    %364 = arith.truncf %363 : vector<6x16xf32> to vector<6x16xbf16>
    %c3_260 = arith.constant 3 : index
    %c0_261 = arith.constant 0 : index
    %c0_262 = arith.constant 0 : index
    %365 = vector.load %arg6[%c3_260, %c0_261, %c0_262] : memref<9x16x16xbf16, #tpu.memory_space<vmem>>, vector<1x16x16xbf16>
    %366 = vector.shape_cast %365 : vector<1x16x16xbf16> to vector<16x16xbf16>
    %cst_263 = arith.constant dense<0.000000e+00> : vector<6x16xf32>
    %367 = tpu.matmul %364, %366, %cst_263 {dimension_numbers = #tpu.dot_dimension_numbers<[1], [0], [0], [1], [0, 0, 1, 1], [], []>} : vector<6x16xbf16>, vector<16x16xbf16>, vector<6x16xf32> -> vector<6x16xf32>
    %368 = arith.addf %361, %367 : vector<6x16xf32>
    %c0_264 = arith.constant 0 : index
    %c5_265 = arith.constant 5 : index
    %c0_266 = arith.constant 0 : index
    %369 = vector.load %arg9[%c0_264, %c5_265, %c0_266] : memref<1x16x16xf32, #tpu.memory_space<vmem>>, vector<1x6x16xf32>
    %370 = vector.shape_cast %369 : vector<1x6x16xf32> to vector<6x16xf32>
    %371 = arith.truncf %370 : vector<6x16xf32> to vector<6x16xbf16>
    %c4_267 = arith.constant 4 : index
    %c0_268 = arith.constant 0 : index
    %c0_269 = arith.constant 0 : index
    %372 = vector.load %arg6[%c4_267, %c0_268, %c0_269] : memref<9x16x16xbf16, #tpu.memory_space<vmem>>, vector<1x16x16xbf16>
    %373 = vector.shape_cast %372 : vector<1x16x16xbf16> to vector<16x16xbf16>
    %cst_270 = arith.constant dense<0.000000e+00> : vector<6x16xf32>
    %374 = tpu.matmul %371, %373, %cst_270 {dimension_numbers = #tpu.dot_dimension_numbers<[1], [0], [0], [1], [0, 0, 1, 1], [], []>} : vector<6x16xbf16>, vector<16x16xbf16>, vector<6x16xf32> -> vector<6x16xf32>
    %375 = arith.addf %368, %374 : vector<6x16xf32>
    %c0_271 = arith.constant 0 : index
    %c6_272 = arith.constant 6 : index
    %c0_273 = arith.constant 0 : index
    %376 = vector.load %arg9[%c0_271, %c6_272, %c0_273] : memref<1x16x16xf32, #tpu.memory_space<vmem>>, vector<1x6x16xf32>
    %377 = vector.shape_cast %376 : vector<1x6x16xf32> to vector<6x16xf32>
    %378 = arith.truncf %377 : vector<6x16xf32> to vector<6x16xbf16>
    %c5_274 = arith.constant 5 : index
    %c0_275 = arith.constant 0 : index
    %c0_276 = arith.constant 0 : index
    %379 = vector.load %arg6[%c5_274, %c0_275, %c0_276] : memref<9x16x16xbf16, #tpu.memory_space<vmem>>, vector<1x16x16xbf16>
    %380 = vector.shape_cast %379 : vector<1x16x16xbf16> to vector<16x16xbf16>
    %cst_277 = arith.constant dense<0.000000e+00> : vector<6x16xf32>
    %381 = tpu.matmul %378, %380, %cst_277 {dimension_numbers = #tpu.dot_dimension_numbers<[1], [0], [0], [1], [0, 0, 1, 1], [], []>} : vector<6x16xbf16>, vector<16x16xbf16>, vector<6x16xf32> -> vector<6x16xf32>
    %382 = arith.addf %375, %381 : vector<6x16xf32>
    %c0_278 = arith.constant 0 : index
    %c8_279 = arith.constant 8 : index
    %c0_280 = arith.constant 0 : index
    %383 = vector.load %arg9[%c0_278, %c8_279, %c0_280] : memref<1x16x16xf32, #tpu.memory_space<vmem>>, vector<1x6x16xf32>
    %384 = vector.shape_cast %383 : vector<1x6x16xf32> to vector<6x16xf32>
    %385 = arith.truncf %384 : vector<6x16xf32> to vector<6x16xbf16>
    %c6_281 = arith.constant 6 : index
    %c0_282 = arith.constant 0 : index
    %c0_283 = arith.constant 0 : index
    %386 = vector.load %arg6[%c6_281, %c0_282, %c0_283] : memref<9x16x16xbf16, #tpu.memory_space<vmem>>, vector<1x16x16xbf16>
    %387 = vector.shape_cast %386 : vector<1x16x16xbf16> to vector<16x16xbf16>
    %cst_284 = arith.constant dense<0.000000e+00> : vector<6x16xf32>
    %388 = tpu.matmul %385, %387, %cst_284 {dimension_numbers = #tpu.dot_dimension_numbers<[1], [0], [0], [1], [0, 0, 1, 1], [], []>} : vector<6x16xbf16>, vector<16x16xbf16>, vector<6x16xf32> -> vector<6x16xf32>
    %389 = arith.addf %382, %388 : vector<6x16xf32>
    %c0_285 = arith.constant 0 : index
    %c9 = arith.constant 9 : index
    %c0_286 = arith.constant 0 : index
    %390 = vector.load %arg9[%c0_285, %c9, %c0_286] : memref<1x16x16xf32, #tpu.memory_space<vmem>>, vector<1x6x16xf32>
    %391 = vector.shape_cast %390 : vector<1x6x16xf32> to vector<6x16xf32>
    %392 = arith.truncf %391 : vector<6x16xf32> to vector<6x16xbf16>
    %c7_287 = arith.constant 7 : index
    %c0_288 = arith.constant 0 : index
    %c0_289 = arith.constant 0 : index
    %393 = vector.load %arg6[%c7_287, %c0_288, %c0_289] : memref<9x16x16xbf16, #tpu.memory_space<vmem>>, vector<1x16x16xbf16>
    %394 = vector.shape_cast %393 : vector<1x16x16xbf16> to vector<16x16xbf16>
    %cst_290 = arith.constant dense<0.000000e+00> : vector<6x16xf32>
    %395 = tpu.matmul %392, %394, %cst_290 {dimension_numbers = #tpu.dot_dimension_numbers<[1], [0], [0], [1], [0, 0, 1, 1], [], []>} : vector<6x16xbf16>, vector<16x16xbf16>, vector<6x16xf32> -> vector<6x16xf32>
    %396 = arith.addf %389, %395 : vector<6x16xf32>
    %c0_291 = arith.constant 0 : index
    %c10 = arith.constant 10 : index
    %c0_292 = arith.constant 0 : index
    %397 = vector.load %arg9[%c0_291, %c10, %c0_292] : memref<1x16x16xf32, #tpu.memory_space<vmem>>, vector<1x6x16xf32>
    %398 = vector.shape_cast %397 : vector<1x6x16xf32> to vector<6x16xf32>
    %399 = arith.truncf %398 : vector<6x16xf32> to vector<6x16xbf16>
    %c8_293 = arith.constant 8 : index
    %c0_294 = arith.constant 0 : index
    %c0_295 = arith.constant 0 : index
    %400 = vector.load %arg6[%c8_293, %c0_294, %c0_295] : memref<9x16x16xbf16, #tpu.memory_space<vmem>>, vector<1x16x16xbf16>
    %401 = vector.shape_cast %400 : vector<1x16x16xbf16> to vector<16x16xbf16>
    %cst_296 = arith.constant dense<0.000000e+00> : vector<6x16xf32>
    %402 = tpu.matmul %399, %401, %cst_296 {dimension_numbers = #tpu.dot_dimension_numbers<[1], [0], [0], [1], [0, 0, 1, 1], [], []>} : vector<6x16xbf16>, vector<16x16xbf16>, vector<6x16xf32> -> vector<6x16xf32>
    %403 = arith.addf %396, %402 : vector<6x16xf32>
    %c0_297 = arith.constant 0 : index
    %c0_298 = arith.constant 0 : index
    %404 = vector.load %arg7[%c0_297, %c0_298] : memref<1x16xf32, #tpu.memory_space<vmem>>, vector<1x16xf32>
    %405 = vector.broadcast %404 : vector<1x16xf32> to vector<6x16xf32>
    %406 = arith.addf %403, %405 : vector<6x16xf32>
    %cst_299 = arith.constant 0.000000e+00 : f32
    %407 = vector.broadcast %cst_299 : f32 to vector<6x16xf32>
    %408 = arith.cmpf ogt, %406, %407 : vector<6x16xf32>
    %cst_300 = arith.constant 0.000000e+00 : f32
    %409 = vector.broadcast %cst_300 : f32 to vector<6x16xf32>
    %410 = arith.minimumf %406, %409 : vector<6x16xf32>
    %411 = math.exp %410 : vector<6x16xf32>
    %cst_301 = arith.constant 1.000000e+00 : f32
    %412 = vector.broadcast %cst_301 : f32 to vector<6x16xf32>
    %413 = arith.subf %411, %412 : vector<6x16xf32>
    %cst_302 = arith.constant 1.67326319 : f32
    %414 = vector.broadcast %cst_302 : f32 to vector<6x16xf32>
    %415 = arith.mulf %414, %413 : vector<6x16xf32>
    %416 = arith.select %408, %406, %415 : vector<6x16xi1>, vector<6x16xf32>
    %cst_303 = arith.constant 1.05070102 : f32
    %417 = vector.broadcast %cst_303 : f32 to vector<6x16xf32>
    %418 = arith.mulf %417, %416 : vector<6x16xf32>
    %c0_304 = arith.constant 0 : index
    %c0_305 = arith.constant 0 : index
    %419 = vector.load %arg13[%c0_304, %c0_305] : memref<6x16xf32, #tpu.memory_space<vmem>>, vector<6x16xf32>
    tpu.vector_store %arg13[%c0_304, %c0_305], %418 {strides = array<i32>} : memref<6x16xf32, #tpu.memory_space<vmem>>, vector<6x16xf32>,
    %c0_306 = arith.constant 0 : index
    %c0_307 = arith.constant 0 : index
    %420 = vector.load %arg13[%c0_306, %c0_307] : memref<6x16xf32, #tpu.memory_space<vmem>>, vector<1x16xf32>
    %c1_308 = arith.constant 1 : index
    %c0_309 = arith.constant 0 : index
    %421 = vector.load %arg13[%c1_308, %c0_309] : memref<6x16xf32, #tpu.memory_space<vmem>>, vector<1x16xf32>
    %422 = arith.addf %420, %421 : vector<1x16xf32>
    %c4_310 = arith.constant 4 : index
    %c0_311 = arith.constant 0 : index
    %423 = vector.load %arg13[%c4_310, %c0_311] : memref<6x16xf32, #tpu.memory_space<vmem>>, vector<1x16xf32>
    %424 = arith.addf %422, %423 : vector<1x16xf32>
    %c5_312 = arith.constant 5 : index
    %c0_313 = arith.constant 0 : index
    %425 = vector.load %arg13[%c5_312, %c0_313] : memref<6x16xf32, #tpu.memory_space<vmem>>, vector<1x16xf32>
    %426 = arith.addf %424, %425 : vector<1x16xf32>
    %cst_314 = arith.constant 2.500000e-01 : f32
    %427 = vector.broadcast %cst_314 : f32 to vector<1x16xf32>
    %428 = arith.mulf %427, %426 : vector<1x16xf32>
    %c0_315 = arith.constant 0 : index
    %c0_316 = arith.constant 0 : index
    %c0_317 = arith.constant 0 : index
    %429 = vector.load %arg10[%c0_315, %c0_316, %c0_317] : memref<1x1x16xf32, #tpu.memory_space<vmem>>, vector<1x1x16xf32>
    %430 = vector.shape_cast %429 : vector<1x1x16xf32> to vector<1x16xf32>
    %431 = vector.shape_cast %428 : vector<1x16xf32> to vector<1x1x16xf32>
    tpu.vector_store %arg10[%c0_315, %c0_316, %c0_317], %431 {strides = array<i32>} : memref<1x1x16xf32, #tpu.memory_space<vmem>>, vector<1x1x16xf32>,
    return
  }
  func.func @transform_0(%arg0: i32) -> (i32, i32, i32) {
    %c0_i32 = arith.constant 0 : i32
    %c0_i32_0 = arith.constant 0 : i32
    %c0_i32_1 = arith.constant 0 : i32
    return %arg0, %c0_i32, %c0_i32_0 : i32, i32, i32
  }
  func.func @transform_1(%arg0: i32) -> (i32, i32) {
    %c0_i32 = arith.constant 0 : i32
    %c0_i32_0 = arith.constant 0 : i32
    %c0_i32_1 = arith.constant 0 : i32
    return %c0_i32, %c0_i32_0 : i32, i32
  }
  func.func @transform_2(%arg0: i32) -> (i32, i32) {
    %c0_i32 = arith.constant 0 : i32
    %c0_i32_0 = arith.constant 0 : i32
    %c0_i32_1 = arith.constant 0 : i32
    return %c0_i32, %c0_i32_0 : i32, i32
  }
  func.func @transform_3(%arg0: i32) -> (i32, i32, i32) {
    %c0_i32 = arith.constant 0 : i32
    %c0_i32_0 = arith.constant 0 : i32
    %c0_i32_1 = arith.constant 0 : i32
    %c0_i32_2 = arith.constant 0 : i32
    return %c0_i32, %c0_i32_0, %c0_i32_1 : i32, i32, i32
  }
  func.func @transform_4(%arg0: i32) -> (i32, i32) {
    %c0_i32 = arith.constant 0 : i32
    %c0_i32_0 = arith.constant 0 : i32
    %c0_i32_1 = arith.constant 0 : i32
    return %c0_i32, %c0_i32_0 : i32, i32
  }
  func.func @transform_5(%arg0: i32) -> (i32, i32, i32) {
    %c0_i32 = arith.constant 0 : i32
    %c0_i32_0 = arith.constant 0 : i32
    %c0_i32_1 = arith.constant 0 : i32
    %c0_i32_2 = arith.constant 0 : i32
    return %c0_i32, %c0_i32_0, %c0_i32_1 : i32, i32, i32
  }
  func.func @transform_6(%arg0: i32) -> (i32, i32) {
    %c0_i32 = arith.constant 0 : i32
    %c0_i32_0 = arith.constant 0 : i32
    %c0_i32_1 = arith.constant 0 : i32
    return %c0_i32, %c0_i32_0 : i32, i32
  }
  func.func @transform_7(%arg0: i32) -> (i32, i32, i32) {
    %c0_i32 = arith.constant 0 : i32
    %c0_i32_0 = arith.constant 0 : i32
    %c0_i32_1 = arith.constant 0 : i32
    return %arg0, %c0_i32, %c0_i32_0 : i32, i32, i32
  }
  func.func @transform_8(%arg0: i32) -> (i32, i32, i32) {
    %c0_i32 = arith.constant 0 : i32
    %c0_i32_0 = arith.constant 0 : i32
    %c0_i32_1 = arith.constant 0 : i32
    return %arg0, %c0_i32, %c0_i32_0 : i32, i32, i32
  }
  func.func @transform_9(%arg0: i32) -> (i32, i32, i32) {
    %c0_i32 = arith.constant 0 : i32
    %c0_i32_0 = arith.constant 0 : i32
    %c0_i32_1 = arith.constant 0 : i32
    return %arg0, %c0_i32, %c0_i32_0 : i32, i32, i32
  }
}

</mosaic_0001>

<bundles_post_ra>
// kernel: _convnet_forward_impl.1
= control target key start
LH: loop header
LB: loop body
LE: loop exit
PB: predicated region body
PF: predicated region fallthrough
CT: control target
= control target key end

     0   :  { %s9700_s30 = smov 0   ;;  %s14923_s0 = inlined_call_operand.vmem [shape: f32[2,625,1], index: 0, kind: input, shape index: {}]   ;;  %s14924_s1 = inlined_call_operand.vmem [shape: f32[9,16], index: 1, kind: input, shape index: {}]   ;;  %s14925_s2 = inlined_call_operand.vmem [shape: f32[1,16], index: 2, kind: input, shape index: {}]   ;;  %s14926_s3 = inlined_call_operand.vmem [shape: bf16[9,16,16], index: 3, kind: input, shape index: {}]   ;;  %s14927_s4 = inlined_call_operand.vmem [shape: f32[1,16], index: 4, kind: input, shape index: {}]   ;;  %s14928_s5 = inlined_call_operand.vmem [shape: bf16[9,16,16], index: 5, kind: input, shape index: {}]   ;;  %s14929_s6 = inlined_call_operand.vmem [shape: f32[1,16], index: 6, kind: input, shape index: {}]   ;;  %s14930_s7 = inlined_call_operand.vmem [shape: f32[2,121,16], index: 7, kind: output, shape index: {0}]   ;;  %s14931_s8 = inlined_call_operand.vmem [shape: f32[2,16,16], index: 8, kind: output, shape index: {1}]   ;;  %s14932_s9 = inlined_call_operand.vmem [shape: f32[2,1,16], index: 9, kind: output, shape index: {2}]  }
   0x1 LB: > { %s8753_s10 = sadd.s32 4294967295, %s9645_s30   ;;  %p8757_p0 = scmp.ge.s32.totalorder %s9645_s30, 1  ;;  %s9645_s30 = sphi %s9700_s30, %s20_s30  }
   0x2   : > { %p292_p1 = scmp.lt.s32.totalorder %s9645_s30, 3 }
   0x4   : > { %p293_p2 = pnand %p8757_p0, %p292_p1 }
   0x6   : > { %296 = sbr.rel (%p293_p2) target bundleno = 2136 (0x858), region = 48 }
   0xb   : > { %p336_p3 = scmp.lt.s32.totalorder %s8753_s10, 1  ;;  %v9647_v0 = vmov 0   ;;  %vm9649_vm0 = vmmov 0   ;;  %vm6239_vm2 = vcmask 130048   ;;  %vm6337_vm14 = vcmask 124928  }
   0xc   : > { %9414 = vset.pattern.permute.xlu1 %v9647_v0  ;;  %9413 = vset.pattern.permute.xlu0 %v9647_v0 }
   0xd   : > { %s15927_s10 = smov (!%p336_p3, %s8753_s10), 1 }
   0xe   : > { %s9401_s11 = smul.u32 632, %s15927_s10  ;;  %s8985_s21 = sshll.u32 %s15927_s10, 7 }
   0xf   : > { %s12401_s24 = scalar_lea.vmem %s14930_s7, %s8985_s21  ;;  %s8986_s23 = sshll.u32 %s15927_s10, 4 }
  0x10   : > { %s9714_s14 = scalar_lea.vmem %s14923_s0, %s9401_s11 }
  0x11   : > { %v357_v1 = vld [vmem:[%s9714_s14 + $0x10] sm:$0xff]  ;;  %v355_v2 = vld [vmem:[%s9714_s14] sm:$0xff]  ;;  %v358_v3 = vld [vmem:[%s9714_s14 + $0x18] sm:$0xff] }
  0x12   : > { %440 = vperm.xlu1 %9414, %v357_v1   ;;  %430 = vperm.xlu0 %9413, %v355_v2   ;;  %v356_v4 = vld [vmem:[%s9714_s14 + $0x8] sm:$0xff]  ;;  %v359_v6 = vld [vmem:[%s9714_s14 + $0x20] sm:$0xff]  ;;  %v362_v7 = vld [vmem:[%s9714_s14 + $0x38] sm:$0xff] }
  0x13   : > { %v360_v5 = vld [vmem:[%s9714_s14 + $0x28] sm:$0xff]  ;;  %v361_v8 = vld [vmem:[%s9714_s14 + $0x30] sm:$0xff]  ;;  %v363_v10 = vld [vmem:[%s9714_s14 + $0x40] sm:$0xff] }
  0x14   : > { %v364_v9 = vld [vmem:[%s9714_s14 + $0x48] sm:$0xff]  ;;  %v366_v11 = vld [vmem:[%s9714_s14 + $0x58] sm:$0xff]  ;;  %v365_v12 = vld [vmem:[%s9714_s14 + $0x50] sm:$0xff] }
  0x15   : > { %v368_v13 = vld [vmem:[%s9714_s14 + $0x68] sm:$0xff]  ;;  %v367_v14 = vld [vmem:[%s9714_s14 + $0x60] sm:$0xff]  ;;  %v370_v15 = vld [vmem:[%s9714_s14 + $0x78] sm:$0xff] }
  0x16   : > { %445 = vperm.xlu1 %9414, %v358_v3   ;;  %435 = vperm.xlu0 %9413, %v356_v4   ;;  %v369_v16 = vld [vmem:[%s9714_s14 + $0x70] sm:$0xff]  ;;  %v372_v17 = vld [vmem:[%s9714_s14 + $0x88] sm:$0xff]  ;;  %v371_v18 = vld [vmem:[%s9714_s14 + $0x80] sm:$0xff] }
  0x17   : > { %v374_v19 = vld [vmem:[%s9714_s14 + $0x98] sm:$0xff]  ;;  %v373_v20 = vld [vmem:[%s9714_s14 + $0x90] sm:$0xff]  ;;  %v376_v21 = vld [vmem:[%s9714_s14 + $0xa8] sm:$0xff] }
  0x18   : > { %v375_v22 = vld [vmem:[%s9714_s14 + $0xa0] sm:$0xff]  ;;  %v378_v23 = vld [vmem:[%s9714_s14 + $0xb8] sm:$0xff]  ;;  %v377_v24 = vld [vmem:[%s9714_s14 + $0xb0] sm:$0xff] }
  0x19   : > { %v380_v25 = vld [vmem:[%s9714_s14 + $0xc8] sm:$0xff]  ;;  %v379_v26 = vld [vmem:[%s9714_s14 + $0xc0] sm:$0xff]  ;;  %v382_v27 = vld [vmem:[%s9714_s14 + $0xd8] sm:$0xff] }
  0x1a   : > { %455 = vperm.xlu1 %9414, %v360_v5   ;;  %450 = vperm.xlu0 %9413, %v359_v6   ;;  %v381_v28 = vld [vmem:[%s9714_s14 + $0xd0] sm:$0xff]  ;;  %v384_v29 = vld [vmem:[%s9714_s14 + $0xe8] sm:$0xff]  ;;  %v383_v30 = vld [vmem:[%s9714_s14 + $0xe0] sm:$0xff] }
  0x1b   : > { %v386_v31 = vld [vmem:[%s9714_s14 + $0xf8] sm:$0xff]  ;;  %v385_v32 = vld [vmem:[%s9714_s14 + $0xf0] sm:$0xff]  ;;  %v388_v33 = vld [vmem:[%s9714_s14 + $0x108] sm:$0xff] }
  0x1c   : > { %v387_v34 = vld [vmem:[%s9714_s14 + $0x100] sm:$0xff]  ;;  %v390_v35 = vld [vmem:[%s9714_s14 + $0x118] sm:$0xff]  ;;  %v389_v36 = vld [vmem:[%s9714_s14 + $0x110] sm:$0xff] }
  0x1d   : > { %v392_v37 = vld [vmem:[%s9714_s14 + $0x128] sm:$0xff]  ;;  %v391_v38 = vld [vmem:[%s9714_s14 + $0x120] sm:$0xff]  ;;  %v394_v39 = vld [vmem:[%s9714_s14 + $0x138] sm:$0xff] }
  0x1e   : > { %465 = vperm.xlu1 %9414, %v362_v7   ;;  %460 = vperm.xlu0 %9413, %v361_v8   ;;  %v393_v40 = vld [vmem:[%s9714_s14 + $0x130] sm:$0xff]  ;;  %v396_v41 = vld [vmem:[%s9714_s14 + $0x148] sm:$0xff]  ;;  %v395_v42 = vld [vmem:[%s9714_s14 + $0x140] sm:$0xff] }
  0x1f   : > { %v398_v43 = vld [vmem:[%s9714_s14 + $0x158] sm:$0xff]  ;;  %v397_v44 = vld [vmem:[%s9714_s14 + $0x150] sm:$0xff]  ;;  %v400_v45 = vld [vmem:[%s9714_s14 + $0x168] sm:$0xff] }
  0x20   : > { %v399_v46 = vld [vmem:[%s9714_s14 + $0x160] sm:$0xff]  ;;  %v402_v47 = vld [vmem:[%s9714_s14 + $0x178] sm:$0xff]  ;;  %v401_v48 = vld [vmem:[%s9714_s14 + $0x170] sm:$0xff] }
  0x21   : > { %v404_v49 = vld [vmem:[%s9714_s14 + $0x188] sm:$0xff]  ;;  %v403_v50 = vld [vmem:[%s9714_s14 + $0x180] sm:$0xff]  ;;  %v406_v51 = vld [vmem:[%s9714_s14 + $0x198] sm:$0xff] }
  0x22   : > { %475 = vperm.xlu1 %9414, %v364_v9   ;;  %470 = vperm.xlu0 %9413, %v363_v10   ;;  %v405_v52 = vld [vmem:[%s9714_s14 + $0x190] sm:$0xff]  ;;  %v408_v53 = vld [vmem:[%s9714_s14 + $0x1a8] sm:$0xff]  ;;  %v407_v54 = vld [vmem:[%s9714_s14 + $0x1a0] sm:$0xff] }
  0x23   : > { %v410_v55 = vld [vmem:[%s9714_s14 + $0x1b8] sm:$0xff]  ;;  %v409_v56 = vld [vmem:[%s9714_s14 + $0x1b0] sm:$0xff]  ;;  %v412_v57 = vld [vmem:[%s9714_s14 + $0x1c8] sm:$0xff] }
  0x24   : > { %v411_v58 = vld [vmem:[%s9714_s14 + $0x1c0] sm:$0xff]  ;;  %v414_v59 = vld [vmem:[%s9714_s14 + $0x1d8] sm:$0xff]  ;;  %v413_v60 = vld [vmem:[%s9714_s14 + $0x1d0] sm:$0xff] }
  0x25   : > { %v416_v61 = vld [vmem:[%s9714_s14 + $0x1e8] sm:$0xff]  ;;  %v415_v62 = vld [vmem:[%s9714_s14 + $0x1e0] sm:$0xff]  ;;  %v418_v63 = vld [vmem:[%s9714_s14 + $0x1f8] sm:$0xff] }
  0x26   : > { %485 = vperm.xlu1 %9414, %v366_v11   ;;  %480 = vperm.xlu0 %9413, %v365_v12   ;;  %v417_v0 = vld [vmem:[%s9714_s14 + $0x1f0] sm:$0xff]  ;;  %v420_v3 = vld [vmem:[%s9714_s14 + $0x208] sm:$0xff]  ;;  %v419_v4 = vld [vmem:[%s9714_s14 + $0x200] sm:$0xff] }
  0x27   : > { %v422_v7 = vld [vmem:[%s9714_s14 + $0x218] sm:$0xff]  ;;  %v421_v8 = vld [vmem:[%s9714_s14 + $0x210] sm:$0xff]  ;;  %v424_v11 = vld [vmem:[%s9714_s14 + $0x228] sm:$0xff] }
  0x28   : > { %v423_v12 = vld [vmem:[%s9714_s14 + $0x220] sm:$0xff] }
  0x2a   : > { %495 = vperm.xlu1 %9414, %v368_v13   ;;  %490 = vperm.xlu0 %9413, %v367_v14  }
  0x2e   : > { %505 = vperm.xlu1 %9414, %v370_v15   ;;  %500 = vperm.xlu0 %9413, %v369_v16   ;;  %v426_v15 = vld [vmem:[%s9714_s14 + $0x238] sm:$0x1f]  ;;  %v425_v16 = vld [vmem:[%s9714_s14 + $0x230] sm:$0xff] }
  0x32   : > { %515 = vperm.xlu1 %9414, %v372_v17   ;;  %510 = vperm.xlu0 %9413, %v371_v18  }
  0x36   : > { %525 = vperm.xlu1 %9414, %v374_v19   ;;  %520 = vperm.xlu0 %9413, %v373_v20   ;;  %v937_v19 = vld [vmem:[%s9714_s14 + $0x9] sm:$0xff]  ;;  %v936_v20 = vld [vmem:[%s9714_s14 + $0x1] sm:$0xff] }
  0x3a   : > { %535 = vperm.xlu1 %9414, %v376_v21   ;;  %530 = vperm.xlu0 %9413, %v375_v22  }
  0x3e   : > { %545 = vperm.xlu1 %9414, %v378_v23   ;;  %540 = vperm.xlu0 %9413, %v377_v24   ;;  %v939_v23 = vld [vmem:[%s9714_s14 + $0x19] sm:$0xff]  ;;  %v938_v24 = vld [vmem:[%s9714_s14 + $0x11] sm:$0xff] }
  0x42   : > { %555 = vperm.xlu1 %9414, %v380_v25   ;;  %550 = vperm.xlu0 %9413, %v379_v26  }
  0x46   : > { %565 = vperm.xlu1 %9414, %v382_v27   ;;  %560 = vperm.xlu0 %9413, %v381_v28   ;;  %v941_v27 = vld [vmem:[%s9714_s14 + $0x29] sm:$0xff]  ;;  %v940_v28 = vld [vmem:[%s9714_s14 + $0x21] sm:$0xff] }
  0x4a   : > { %575 = vperm.xlu1 %9414, %v384_v29   ;;  %570 = vperm.xlu0 %9413, %v383_v30  }
  0x4e   : > { %585 = vperm.xlu1 %9414, %v386_v31   ;;  %580 = vperm.xlu0 %9413, %v385_v32   ;;  %v943_v31 = vld [vmem:[%s9714_s14 + $0x39] sm:$0xff]  ;;  %v942_v32 = vld [vmem:[%s9714_s14 + $0x31] sm:$0xff] }
  0x52   : > { %595 = vperm.xlu1 %9414, %v388_v33   ;;  %590 = vperm.xlu0 %9413, %v387_v34  }
  0x56   : > { %605 = vperm.xlu1 %9414, %v390_v35   ;;  %600 = vperm.xlu0 %9413, %v389_v36   ;;  %v945_v35 = vld [vmem:[%s9714_s14 + $0x49] sm:$0xff]  ;;  %v944_v36 = vld [vmem:[%s9714_s14 + $0x41] sm:$0xff] }
  0x5a   : > { %615 = vperm.xlu1 %9414, %v392_v37   ;;  %610 = vperm.xlu0 %9413, %v391_v38  }
  0x5e   : > { %625 = vperm.xlu1 %9414, %v394_v39   ;;  %620 = vperm.xlu0 %9413, %v393_v40   ;;  %v947_v39 = vld [vmem:[%s9714_s14 + $0x59] sm:$0xff]  ;;  %v946_v40 = vld [vmem:[%s9714_s14 + $0x51] sm:$0xff] }
  0x62   : > { %635 = vperm.xlu1 %9414, %v396_v41   ;;  %630 = vperm.xlu0 %9413, %v395_v42  }
  0x66   : > { %645 = vperm.xlu1 %9414, %v398_v43   ;;  %640 = vperm.xlu0 %9413, %v397_v44   ;;  %v949_v43 = vld [vmem:[%s9714_s14 + $0x69] sm:$0xff]  ;;  %v948_v44 = vld [vmem:[%s9714_s14 + $0x61] sm:$0xff] }
  0x6a   : > { %655 = vperm.xlu1 %9414, %v400_v45   ;;  %650 = vperm.xlu0 %9413, %v399_v46  }
  0x6e   : > { %665 = vperm.xlu1 %9414, %v402_v47   ;;  %660 = vperm.xlu0 %9413, %v401_v48   ;;  %v951_v47 = vld [vmem:[%s9714_s14 + $0x79] sm:$0xff]  ;;  %v950_v48 = vld [vmem:[%s9714_s14 + $0x71] sm:$0xff] }
  0x72   : > { %675 = vperm.xlu1 %9414, %v404_v49   ;;  %670 = vperm.xlu0 %9413, %v403_v50  }
  0x76   : > { %685 = vperm.xlu1 %9414, %v406_v51   ;;  %680 = vperm.xlu0 %9413, %v405_v52   ;;  %v953_v51 = vld [vmem:[%s9714_s14 + $0x89] sm:$0xff]  ;;  %v952_v52 = vld [vmem:[%s9714_s14 + $0x81] sm:$0xff] }
  0x7a   : > { %695 = vperm.xlu1 %9414, %v408_v53   ;;  %690 = vperm.xlu0 %9413, %v407_v54  }
  0x7e   : > { %705 = vperm.xlu1 %9414, %v410_v55   ;;  %700 = vperm.xlu0 %9413, %v409_v56   ;;  %v955_v55 = vld [vmem:[%s9714_s14 + $0x99] sm:$0xff]  ;;  %v954_v56 = vld [vmem:[%s9714_s14 + $0x91] sm:$0xff] }
  0x82   : > { %715 = vperm.xlu1 %9414, %v412_v57   ;;  %710 = vperm.xlu0 %9413, %v411_v58  }
  0x86   : > { %725 = vperm.xlu1 %9414, %v414_v59   ;;  %720 = vperm.xlu0 %9413, %v413_v60   ;;  %v957_v59 = vld [vmem:[%s9714_s14 + $0xa9] sm:$0xff]  ;;  %v956_v60 = vld [vmem:[%s9714_s14 + $0xa1] sm:$0xff] }
  0x8a   : > { %735 = vperm.xlu1 %9414, %v416_v61   ;;  %730 = vperm.xlu0 %9413, %v415_v62  }
  0x8d   : > { %v9780_v1 = vpop.permute.xlu1 %440  ;;  %v9782_v2 = vpop.permute.xlu0 %430 }
  0x8e   : > { %745 = vperm.xlu1 %9414, %v418_v63   ;;  %740 = vperm.xlu0 %9413, %v417_v0   ;;  %v959_v63 = vld [vmem:[%s9714_s14 + $0xb9] sm:$0xff]  ;;  %v958_v0 = vld [vmem:[%s9714_s14 + $0xb1] sm:$0xff] }
  0x91   : > { %v9786_v5 = vpop.permute.xlu1 %445  ;;  %v9788_v6 = vpop.permute.xlu0 %435 }
  0x92   : > { %755 = vperm.xlu1 %9414, %v420_v3   ;;  %750 = vperm.xlu0 %9413, %v419_v4  }
  0x95   : > { %v9792_v9 = vpop.permute.xlu1 %455  ;;  %v9794_v10 = vpop.permute.xlu0 %450 }
  0x96   : > { %765 = vperm.xlu1 %9414, %v422_v7   ;;  %760 = vperm.xlu0 %9413, %v421_v8   ;;  %v961_v7 = vld [vmem:[%s9714_s14 + $0xc9] sm:$0xff]  ;;  %v960_v8 = vld [vmem:[%s9714_s14 + $0xc1] sm:$0xff] }
  0x99   : > { %v9798_v13 = vpop.permute.xlu1 %465  ;;  %v9800_v14 = vpop.permute.xlu0 %460 }
  0x9a   : > { %775 = vperm.xlu1 %9414, %v424_v11   ;;  %770 = vperm.xlu0 %9413, %v423_v12  }
  0x9d   : > { %v9804_v17 = vpop.permute.xlu1 %475  ;;  %v9806_v18 = vpop.permute.xlu0 %470 }
  0x9e   : > { %785 = vperm.xlu1 %9414, %v426_v15   ;;  %780 = vperm.xlu0 %9413, %v425_v16   ;;  %v963_v15 = vld [vmem:[%s9714_s14 + $0xd9] sm:$0xff]  ;;  %v962_v16 = vld [vmem:[%s9714_s14 + $0xd1] sm:$0xff] }
  0xa1   : > { %v9810_v21 = vpop.permute.xlu1 %485  ;;  %v9812_v22 = vpop.permute.xlu0 %480 }
  0xa2   : > { %1016 = vperm.xlu1 %9414, %v937_v19   ;;  %1011 = vperm.xlu0 %9413, %v936_v20  }
  0xa5   : > { %v9816_v25 = vpop.permute.xlu1 %495  ;;  %v9818_v26 = vpop.permute.xlu0 %490 }
  0xa6   : > { %1026 = vperm.xlu1 %9414, %v939_v23   ;;  %1021 = vperm.xlu0 %9413, %v938_v24   ;;  %v965_v23 = vld [vmem:[%s9714_s14 + $0xe9] sm:$0xff]  ;;  %v964_v24 = vld [vmem:[%s9714_s14 + $0xe1] sm:$0xff] }
  0xa9   : > { %v9822_v29 = vpop.permute.xlu1 %505  ;;  %v9824_v30 = vpop.permute.xlu0 %500 }
  0xaa   : > { %1036 = vperm.xlu1 %9414, %v941_v27   ;;  %1031 = vperm.xlu0 %9413, %v940_v28  }
  0xad   : > { %v9828_v33 = vpop.permute.xlu1 %515  ;;  %v9830_v34 = vpop.permute.xlu0 %510 }
  0xae   : > { %1046 = vperm.xlu1 %9414, %v943_v31   ;;  %1041 = vperm.xlu0 %9413, %v942_v32   ;;  %v967_v31 = vld [vmem:[%s9714_s14 + $0xf9] sm:$0xff]  ;;  %v966_v32 = vld [vmem:[%s9714_s14 + $0xf1] sm:$0xff] }
  0xb1   : > { %v9834_v37 = vpop.permute.xlu1 %525  ;;  %v9836_v38 = vpop.permute.xlu0 %520 }
  0xb2   : > { %1056 = vperm.xlu1 %9414, %v945_v35   ;;  %1051 = vperm.xlu0 %9413, %v944_v36  }
  0xb5   : > { %v9840_v41 = vpop.permute.xlu1 %535  ;;  %v9842_v42 = vpop.permute.xlu0 %530 }
  0xb6   : > { %1066 = vperm.xlu1 %9414, %v947_v39   ;;  %1061 = vperm.xlu0 %9413, %v946_v40   ;;  %v969_v39 = vld [vmem:[%s9714_s14 + $0x109] sm:$0xff]  ;;  %v968_v40 = vld [vmem:[%s9714_s14 + $0x101] sm:$0xff] }
  0xb9   : > { %v9846_v45 = vpop.permute.xlu1 %545  ;;  %v9848_v46 = vpop.permute.xlu0 %540 }
  0xba   : > { %1076 = vperm.xlu1 %9414, %v949_v43   ;;  %1071 = vperm.xlu0 %9413, %v948_v44  }
  0xbd   : > { %v9852_v49 = vpop.permute.xlu1 %555  ;;  %v9854_v50 = vpop.permute.xlu0 %550 }
  0xbe   : > { %1086 = vperm.xlu1 %9414, %v951_v47   ;;  %1081 = vperm.xlu0 %9413, %v950_v48   ;;  %v971_v47 = vld [vmem:[%s9714_s14 + $0x119] sm:$0xff]  ;;  %v970_v48 = vld [vmem:[%s9714_s14 + $0x111] sm:$0xff] }
  0xc1   : > { %v9858_v53 = vpop.permute.xlu1 %565  ;;  %v9860_v54 = vpop.permute.xlu0 %560 }
  0xc2   : > { %1096 = vperm.xlu1 %9414, %v953_v51   ;;  %1091 = vperm.xlu0 %9413, %v952_v52  }
  0xc5   : > { %v9864_v57 = vpop.permute.xlu1 %575  ;;  %v9866_v58 = vpop.permute.xlu0 %570 }
  0xc6   : > { %1106 = vperm.xlu1 %9414, %v955_v55   ;;  %1101 = vperm.xlu0 %9413, %v954_v56   ;;  %v973_v55 = vld [vmem:[%s9714_s14 + $0x129] sm:$0xff]  ;;  %v972_v56 = vld [vmem:[%s9714_s14 + $0x121] sm:$0xff] }
  0xc9   : > { %v9870_v61 = vpop.permute.xlu1 %585  ;;  %v9872_v62 = vpop.permute.xlu0 %580 }
  0xca   : > { %1116 = vperm.xlu1 %9414, %v957_v59   ;;  %1111 = vperm.xlu0 %9413, %v956_v60  }
  0xcd   : > { %v9876_v3 = vpop.permute.xlu1 %595  ;;  %v9878_v4 = vpop.permute.xlu0 %590 }
  0xce   : > { %1126 = vperm.xlu1 %9414, %v959_v63   ;;  %1121 = vperm.xlu0 %9413, %v958_v0   ;;  %v975_v63 = vld [vmem:[%s9714_s14 + $0x139] sm:$0xff]  ;;  %v974_v0 = vld [vmem:[%s9714_s14 + $0x131] sm:$0xff] }
  0xd1   : > { %v9882_v11 = vpop.permute.xlu1 %605  ;;  %v9884_v12 = vpop.permute.xlu0 %600 }
  0xd2   : > { %1136 = vperm.xlu1 %9414, %v961_v7   ;;  %1131 = vperm.xlu0 %9413, %v960_v8  }
  0xd5   : > { %v9888_v19 = vpop.permute.xlu1 %615  ;;  %v9890_v20 = vpop.permute.xlu0 %610 }
  0xd6   : > { %1146 = vperm.xlu1 %9414, %v963_v15   ;;  %1141 = vperm.xlu0 %9413, %v962_v16   ;;  %v977_v15 = vld [vmem:[%s9714_s14 + $0x149] sm:$0xff]  ;;  %v976_v16 = vld [vmem:[%s9714_s14 + $0x141] sm:$0xff] }
  0xd9   : > { %v9894_v27 = vpop.permute.xlu1 %625  ;;  %v9896_v28 = vpop.permute.xlu0 %620 }
  0xda   : > { %14943 = vst [vmem:[#allocation5_spill] sm:$0xff] %v9896_v28  ;;  %1156 = vperm.xlu1 %9414, %v965_v23   ;;  %1151 = vperm.xlu0 %9413, %v964_v24  }
  0xdd   : > { %v9900_v35 = vpop.permute.xlu1 %635  ;;  %v9902_v36 = vpop.permute.xlu0 %630 }
  0xde   : > { %14944 = vst [vmem:[#allocation6_spill] sm:$0xff] %v9900_v35  ;;  %14945 = vst [vmem:[#allocation7_spill] sm:$0xff] %v9902_v36  ;;  %1166 = vperm.xlu1 %9414, %v967_v31   ;;  %1161 = vperm.xlu0 %9413, %v966_v32   ;;  %v979_v31 = vld [vmem:[%s9714_s14 + $0x159] sm:$0xff]  ;;  %v978_v32 = vld [vmem:[%s9714_s14 + $0x151] sm:$0xff] }
  0xe1   : > { %v9906_v43 = vpop.permute.xlu1 %645  ;;  %v9908_v44 = vpop.permute.xlu0 %640 }
  0xe2   : > { %14946 = vst [vmem:[#allocation8_spill] sm:$0xff] %v9906_v43  ;;  %14947 = vst [vmem:[#allocation9_spill] sm:$0xff] %v9908_v44  ;;  %1176 = vperm.xlu1 %9414, %v969_v39   ;;  %1171 = vperm.xlu0 %9413, %v968_v40  }
  0xe5   : > { %v9912_v51 = vpop.permute.xlu1 %655  ;;  %v9914_v52 = vpop.permute.xlu0 %650 }
  0xe6   : > { %14948 = vst [vmem:[#allocation10_spill] sm:$0xff] %v9912_v51  ;;  %14949 = vst [vmem:[#allocation11_spill] sm:$0xff] %v9914_v52  ;;  %1186 = vperm.xlu1 %9414, %v971_v47   ;;  %1181 = vperm.xlu0 %9413, %v970_v48   ;;  %v981_v47 = vld [vmem:[%s9714_s14 + $0x169] sm:$0xff]  ;;  %v980_v48 = vld [vmem:[%s9714_s14 + $0x161] sm:$0xff] }
  0xe9   : > { %v9918_v59 = vpop.permute.xlu1 %665  ;;  %v9920_v60 = vpop.permute.xlu0 %660 }
  0xea   : > { %14950 = vst [vmem:[#allocation12_spill] sm:$0xff] %v9918_v59  ;;  %14951 = vst [vmem:[#allocation13_spill] sm:$0xff] %v9920_v60  ;;  %1196 = vperm.xlu1 %9414, %v973_v55   ;;  %1191 = vperm.xlu0 %9413, %v972_v56  }
  0xed   : > { %v9924_v7 = vpop.permute.xlu1 %675  ;;  %v9926_v8 = vpop.permute.xlu0 %670 }
  0xee   : > { %14952 = vst [vmem:[#allocation14_spill] sm:$0xff] %v9924_v7  ;;  %14953 = vst [vmem:[#allocation15_spill] sm:$0xff] %v9926_v8  ;;  %1206 = vperm.xlu1 %9414, %v975_v63   ;;  %1201 = vperm.xlu0 %9413, %v974_v0   ;;  %v983_v63 = vld [vmem:[%s9714_s14 + $0x179] sm:$0xff]  ;;  %v982_v0 = vld [vmem:[%s9714_s14 + $0x171] sm:$0xff] }
  0xf1   : > { %v9930_v23 = vpop.permute.xlu1 %685  ;;  %v9932_v24 = vpop.permute.xlu0 %680 }
  0xf2   : > { %14954 = vst [vmem:[#allocation16_spill] sm:$0xff] %v9930_v23  ;;  %14955 = vst [vmem:[#allocation17_spill] sm:$0xff] %v9932_v24  ;;  %1216 = vperm.xlu1 %9414, %v977_v15   ;;  %1211 = vperm.xlu0 %9413, %v976_v16  }
  0xf5   : > { %v9936_v39 = vpop.permute.xlu1 %695  ;;  %v9938_v40 = vpop.permute.xlu0 %690 }
  0xf6   : > { %14956 = vst [vmem:[#allocation18_spill] sm:$0xff] %v9936_v39  ;;  %14957 = vst [vmem:[#allocation19_spill] sm:$0xff] %v9938_v40  ;;  %1226 = vperm.xlu1 %9414, %v979_v31   ;;  %1221 = vperm.xlu0 %9413, %v978_v32   ;;  %v985_v31 = vld [vmem:[%s9714_s14 + $0x189] sm:$0xff]  ;;  %v984_v32 = vld [vmem:[%s9714_s14 + $0x181] sm:$0xff] }
  0xf9   : > { %v9942_v55 = vpop.permute.xlu1 %705  ;;  %v9944_v56 = vpop.permute.xlu0 %700 }
  0xfa   : > { %14958 = vst [vmem:[#allocation20_spill] sm:$0xff] %v9942_v55  ;;  %14959 = vst [vmem:[#allocation21_spill] sm:$0xff] %v9944_v56  ;;  %1236 = vperm.xlu1 %9414, %v981_v47   ;;  %1231 = vperm.xlu0 %9413, %v980_v48   ;;  %v987_v47 = vld [vmem:[%s9714_s14 + $0x199] sm:$0xff]  ;;  %v986_v48 = vld [vmem:[%s9714_s14 + $0x191] sm:$0xff] }
  0xfd   : > { %v9948_v15 = vpop.permute.xlu1 %715  ;;  %v9950_v16 = vpop.permute.xlu0 %710 }
  0xfe   : > { %14960 = vst [vmem:[#allocation22_spill] sm:$0xff] %v9948_v15  ;;  %14961 = vst [vmem:[#allocation23_spill] sm:$0xff] %v9950_v16  ;;  %1246 = vperm.xlu1 %9414, %v983_v63   ;;  %1241 = vperm.xlu0 %9413, %v982_v0   ;;  %v989_v63 = vld [vmem:[%s9714_s14 + $0x1a9] sm:$0xff]  ;;  %v988_v0 = vld [vmem:[%s9714_s14 + $0x1a1] sm:$0xff] }
 0x101   : > { %v9954_v40 = vpop.permute.xlu1 %725  ;;  %v9956_v55 = vpop.permute.xlu0 %720 }
 0x102   : > { %14962 = vst [vmem:[#allocation24_spill] sm:$0xff] %v9954_v40  ;;  %14963 = vst [vmem:[#allocation25_spill] sm:$0xff] %v9956_v55  ;;  %1256 = vperm.xlu1 %9414, %v985_v31   ;;  %1251 = vperm.xlu0 %9413, %v984_v32   ;;  %v991_v31 = vld [vmem:[%s9714_s14 + $0x1b9] sm:$0xff]  ;;  %v990_v32 = vld [vmem:[%s9714_s14 + $0x1b1] sm:$0xff] }
 0x105   : > { %v9960_v56 = vpop.permute.xlu1 %735  ;;  %v9962_v15 = vpop.permute.xlu0 %730 }
 0x106   : > { %14964 = vst [vmem:[#allocation26_spill] sm:$0xff] %v9960_v56  ;;  %14965 = vst [vmem:[#allocation27_spill] sm:$0xff] %v9962_v15  ;;  %1266 = vperm.xlu1 %9414, %v987_v47   ;;  %1261 = vperm.xlu0 %9413, %v986_v48   ;;  %v993_v47 = vld [vmem:[%s9714_s14 + $0x1c9] sm:$0xff]  ;;  %v992_v48 = vld [vmem:[%s9714_s14 + $0x1c1] sm:$0xff] }
 0x109   : > { %v9966_v16 = vpop.permute.xlu1 %745  ;;  %v9968_v40 = vpop.permute.xlu0 %740 }
 0x10a   : > { %14966 = vst [vmem:[#allocation28_spill] sm:$0xff] %v9966_v16  ;;  %14967 = vst [vmem:[#allocation29_spill] sm:$0xff] %v9968_v40  ;;  %1276 = vperm.xlu1 %9414, %v989_v63   ;;  %1271 = vperm.xlu0 %9413, %v988_v0   ;;  %v995_v63 = vld [vmem:[%s9714_s14 + $0x1d9] sm:$0xff]  ;;  %v994_v0 = vld [vmem:[%s9714_s14 + $0x1d1] sm:$0xff] }
 0x10d   : > { %v9972_v55 = vpop.permute.xlu1 %755  ;;  %v9974_v56 = vpop.permute.xlu0 %750 }
 0x10e   : > { %14968 = vst [vmem:[#allocation30_spill] sm:$0xff] %v9972_v55  ;;  %14969 = vst [vmem:[#allocation31_spill] sm:$0xff] %v9974_v56  ;;  %1286 = vperm.xlu1 %9414, %v991_v31   ;;  %1281 = vperm.xlu0 %9413, %v990_v32   ;;  %v997_v31 = vld [vmem:[%s9714_s14 + $0x1e9] sm:$0xff]  ;;  %v996_v32 = vld [vmem:[%s9714_s14 + $0x1e1] sm:$0xff] }
 0x111   : > { %v9978_v15 = vpop.permute.xlu1 %765  ;;  %v9980_v16 = vpop.permute.xlu0 %760 }
 0x112   : > { %14970 = vst [vmem:[#allocation32_spill] sm:$0xff] %v9978_v15  ;;  %14971 = vst [vmem:[#allocation33_spill] sm:$0xff] %v9980_v16  ;;  %1296 = vperm.xlu1 %9414, %v993_v47   ;;  %1291 = vperm.xlu0 %9413, %v992_v48   ;;  %v999_v47 = vld [vmem:[%s9714_s14 + $0x1f9] sm:$0xff]  ;;  %v998_v48 = vld [vmem:[%s9714_s14 + $0x1f1] sm:$0xff] }
 0x115   : > { %v9984_v40 = vpop.permute.xlu1 %775  ;;  %v9986_v55 = vpop.permute.xlu0 %770 }
 0x116   : > { %14972 = vst [vmem:[#allocation34_spill] sm:$0xff] %v9984_v40  ;;  %14973 = vst [vmem:[#allocation35_spill] sm:$0xff] %v9986_v55  ;;  %1306 = vperm.xlu1 %9414, %v995_v63   ;;  %1301 = vperm.xlu0 %9413, %v994_v0   ;;  %v1001_v63 = vld [vmem:[%s9714_s14 + $0x209] sm:$0xff]  ;;  %v1000_v0 = vld [vmem:[%s9714_s14 + $0x201] sm:$0xff] }
 0x119   : > { %v9990_v56 = vpop.permute.xlu1 %785  ;;  %v9992_v15 = vpop.permute.xlu0 %780 }
 0x11a   : > { %14974 = vst [vmem:[#allocation36_spill] sm:$0xff] %v9990_v56  ;;  %14975 = vst [vmem:[#allocation37_spill] sm:$0xff] %v9992_v15  ;;  %1316 = vperm.xlu1 %9414, %v997_v31   ;;  %1311 = vperm.xlu0 %9413, %v996_v32   ;;  %v1003_v31 = vld [vmem:[%s9714_s14 + $0x219] sm:$0xff]  ;;  %v1002_v32 = vld [vmem:[%s9714_s14 + $0x211] sm:$0xff] }
 0x11d   : > { %v9996_v16 = vpop.permute.xlu1 %1016  ;;  %v9998_v40 = vpop.permute.xlu0 %1011 }
 0x11e   : > { %14976 = vst [vmem:[#allocation38_spill] sm:$0xff] %v9996_v16  ;;  %14977 = vst [vmem:[#allocation39_spill] sm:$0xff] %v9998_v40  ;;  %1326 = vperm.xlu1 %9414, %v999_v47   ;;  %1321 = vperm.xlu0 %9413, %v998_v48   ;;  %v1005_v47 = vld [vmem:[%s9714_s14 + $0x229] sm:$0xff]  ;;  %v1004_v48 = vld [vmem:[%s9714_s14 + $0x221] sm:$0xff] }
 0x121   : > { %v10002_v55 = vpop.permute.xlu1 %1026  ;;  %v10004_v56 = vpop.permute.xlu0 %1021 }
 0x122   : > { %14978 = vst [vmem:[#allocation40_spill] sm:$0xff] %v10002_v55  ;;  %14979 = vst [vmem:[#allocation41_spill] sm:$0xff] %v10004_v56  ;;  %1336 = vperm.xlu1 %9414, %v1001_v63   ;;  %1331 = vperm.xlu0 %9413, %v1000_v0   ;;  %v1007_v63 = vld [vmem:[%s9714_s14 + $0x239] sm:$0x1f]  ;;  %v1006_v0 = vld [vmem:[%s9714_s14 + $0x231] sm:$0xff] }
 0x125   : > { %v10008_v15 = vpop.permute.xlu1 %1036  ;;  %v10010_v16 = vpop.permute.xlu0 %1031 }
 0x126   : > { %14980 = vst [vmem:[#allocation42_spill] sm:$0xff] %v10008_v15  ;;  %14981 = vst [vmem:[#allocation43_spill] sm:$0xff] %v10010_v16  ;;  %1346 = vperm.xlu1 %9414, %v1003_v31   ;;  %1341 = vperm.xlu0 %9413, %v1002_v32   ;;  %v1518_v31 = vld [vmem:[%s9714_s14 + $0xa] sm:$0xff]  ;;  %v1517_v32 = vld [vmem:[%s9714_s14 + $0x2] sm:$0xff] }
 0x129   : > { %v10014_v40 = vpop.permute.xlu1 %1046  ;;  %v10016_v55 = vpop.permute.xlu0 %1041 }
 0x12a   : > { %14982 = vst [vmem:[#allocation44_spill] sm:$0xff] %v10014_v40  ;;  %14983 = vst [vmem:[#allocation45_spill] sm:$0xff] %v10016_v55  ;;  %1356 = vperm.xlu1 %9414, %v1005_v47   ;;  %1351 = vperm.xlu0 %9413, %v1004_v48   ;;  %v1520_v47 = vld [vmem:[%s9714_s14 + $0x1a] sm:$0xff]  ;;  %v1519_v48 = vld [vmem:[%s9714_s14 + $0x12] sm:$0xff] }
 0x12d   : > { %v10020_v56 = vpop.permute.xlu1 %1056  ;;  %v10022_v15 = vpop.permute.xlu0 %1051 }
 0x12e   : > { %14984 = vst [vmem:[#allocation46_spill] sm:$0xff] %v10020_v56  ;;  %14985 = vst [vmem:[#allocation47_spill] sm:$0xff] %v10022_v15  ;;  %1366 = vperm.xlu1 %9414, %v1007_v63   ;;  %1361 = vperm.xlu0 %9413, %v1006_v0   ;;  %v1522_v63 = vld [vmem:[%s9714_s14 + $0x2a] sm:$0xff]  ;;  %v1521_v0 = vld [vmem:[%s9714_s14 + $0x22] sm:$0xff] }
 0x131   : > { %v10026_v16 = vpop.permute.xlu1 %1066  ;;  %v10028_v40 = vpop.permute.xlu0 %1061 }
 0x132   : > { %14986 = vst [vmem:[#allocation48_spill] sm:$0xff] %v10026_v16  ;;  %14987 = vst [vmem:[#allocation49_spill] sm:$0xff] %v10028_v40  ;;  %1597 = vperm.xlu1 %9414, %v1518_v31   ;;  %1592 = vperm.xlu0 %9413, %v1517_v32   ;;  %v1524_v31 = vld [vmem:[%s9714_s14 + $0x3a] sm:$0xff]  ;;  %v1523_v32 = vld [vmem:[%s9714_s14 + $0x32] sm:$0xff] }
 0x135   : > { %v10032_v55 = vpop.permute.xlu1 %1076  ;;  %v10034_v56 = vpop.permute.xlu0 %1071 }
 0x136   : > { %14988 = vst [vmem:[#allocation50_spill] sm:$0xff] %v10032_v55  ;;  %14989 = vst [vmem:[#allocation51_spill] sm:$0xff] %v10034_v56  ;;  %1607 = vperm.xlu1 %9414, %v1520_v47   ;;  %1602 = vperm.xlu0 %9413, %v1519_v48   ;;  %v1526_v47 = vld [vmem:[%s9714_s14 + $0x4a] sm:$0xff]  ;;  %v1525_v48 = vld [vmem:[%s9714_s14 + $0x42] sm:$0xff] }
 0x139   : > { %v10038_v15 = vpop.permute.xlu1 %1086  ;;  %v10040_v16 = vpop.permute.xlu0 %1081 }
 0x13a   : > { %14990 = vst [vmem:[#allocation52_spill] sm:$0xff] %v10038_v15  ;;  %14991 = vst [vmem:[#allocation53_spill] sm:$0xff] %v10040_v16  ;;  %1617 = vperm.xlu1 %9414, %v1522_v63   ;;  %1612 = vperm.xlu0 %9413, %v1521_v0   ;;  %v1528_v63 = vld [vmem:[%s9714_s14 + $0x5a] sm:$0xff]  ;;  %v1527_v0 = vld [vmem:[%s9714_s14 + $0x52] sm:$0xff] }
 0x13d   : > { %v10044_v40 = vpop.permute.xlu1 %1096  ;;  %v10046_v55 = vpop.permute.xlu0 %1091 }
 0x13e   : > { %14992 = vst [vmem:[#allocation54_spill] sm:$0xff] %v10044_v40  ;;  %14993 = vst [vmem:[#allocation55_spill] sm:$0xff] %v10046_v55  ;;  %1627 = vperm.xlu1 %9414, %v1524_v31   ;;  %1622 = vperm.xlu0 %9413, %v1523_v32   ;;  %v1530_v31 = vld [vmem:[%s9714_s14 + $0x6a] sm:$0xff]  ;;  %v1529_v32 = vld [vmem:[%s9714_s14 + $0x62] sm:$0xff] }
 0x141   : > { %v10050_v56 = vpop.permute.xlu1 %1106  ;;  %v10052_v15 = vpop.permute.xlu0 %1101 }
 0x142   : > { %14994 = vst [vmem:[#allocation56_spill] sm:$0xff] %v10050_v56  ;;  %14995 = vst [vmem:[#allocation57_spill] sm:$0xff] %v10052_v15  ;;  %1637 = vperm.xlu1 %9414, %v1526_v47   ;;  %1632 = vperm.xlu0 %9413, %v1525_v48   ;;  %v1532_v47 = vld [vmem:[%s9714_s14 + $0x7a] sm:$0xff]  ;;  %v1531_v48 = vld [vmem:[%s9714_s14 + $0x72] sm:$0xff] }
 0x145   : > { %v10056_v16 = vpop.permute.xlu1 %1116  ;;  %v10058_v40 = vpop.permute.xlu0 %1111 }
 0x146   : > { %14996 = vst [vmem:[#allocation58_spill] sm:$0xff] %v10056_v16  ;;  %14997 = vst [vmem:[#allocation59_spill] sm:$0xff] %v10058_v40  ;;  %1647 = vperm.xlu1 %9414, %v1528_v63   ;;  %1642 = vperm.xlu0 %9413, %v1527_v0   ;;  %v1534_v63 = vld [vmem:[%s9714_s14 + $0x8a] sm:$0xff]  ;;  %v1533_v0 = vld [vmem:[%s9714_s14 + $0x82] sm:$0xff] }
 0x149   : > { %v10062_v55 = vpop.permute.xlu1 %1126  ;;  %v10064_v56 = vpop.permute.xlu0 %1121 }
 0x14a   : > { %14998 = vst [vmem:[#allocation60_spill] sm:$0xff] %v10062_v55  ;;  %14999 = vst [vmem:[#allocation61_spill] sm:$0xff] %v10064_v56  ;;  %1657 = vperm.xlu1 %9414, %v1530_v31   ;;  %1652 = vperm.xlu0 %9413, %v1529_v32   ;;  %v1536_v31 = vld [vmem:[%s9714_s14 + $0x9a] sm:$0xff]  ;;  %v1535_v32 = vld [vmem:[%s9714_s14 + $0x92] sm:$0xff] }
 0x14d   : > { %v10068_v15 = vpop.permute.xlu1 %1136  ;;  %v10070_v16 = vpop.permute.xlu0 %1131 }
 0x14e   : > { %15000 = vst [vmem:[#allocation62_spill] sm:$0xff] %v10068_v15  ;;  %15001 = vst [vmem:[#allocation63_spill] sm:$0xff] %v10070_v16  ;;  %1667 = vperm.xlu1 %9414, %v1532_v47   ;;  %1662 = vperm.xlu0 %9413, %v1531_v48   ;;  %v1538_v47 = vld [vmem:[%s9714_s14 + $0xaa] sm:$0xff]  ;;  %v1537_v48 = vld [vmem:[%s9714_s14 + $0xa2] sm:$0xff] }
 0x151   : > { %v10074_v40 = vpop.permute.xlu1 %1146  ;;  %v10076_v55 = vpop.permute.xlu0 %1141 }
 0x152   : > { %15002 = vst [vmem:[#allocation64_spill] sm:$0xff] %v10074_v40  ;;  %15003 = vst [vmem:[#allocation65_spill] sm:$0xff] %v10076_v55  ;;  %1677 = vperm.xlu1 %9414, %v1534_v63   ;;  %1672 = vperm.xlu0 %9413, %v1533_v0   ;;  %v1540_v63 = vld [vmem:[%s9714_s14 + $0xba] sm:$0xff]  ;;  %v1539_v0 = vld [vmem:[%s9714_s14 + $0xb2] sm:$0xff] }
 0x155   : > { %v10080_v56 = vpop.permute.xlu1 %1156  ;;  %v10082_v15 = vpop.permute.xlu0 %1151 }
 0x156   : > { %15004 = vst [vmem:[#allocation66_spill] sm:$0xff] %v10080_v56  ;;  %15005 = vst [vmem:[#allocation67_spill] sm:$0xff] %v10082_v15  ;;  %1687 = vperm.xlu1 %9414, %v1536_v31   ;;  %1682 = vperm.xlu0 %9413, %v1535_v32   ;;  %v1542_v31 = vld [vmem:[%s9714_s14 + $0xca] sm:$0xff]  ;;  %v1541_v32 = vld [vmem:[%s9714_s14 + $0xc2] sm:$0xff] }
 0x159   : > { %v10086_v16 = vpop.permute.xlu1 %1166  ;;  %v10088_v40 = vpop.permute.xlu0 %1161 }
 0x15a   : > { %15006 = vst [vmem:[#allocation68_spill] sm:$0xff] %v10086_v16  ;;  %15007 = vst [vmem:[#allocation69_spill] sm:$0xff] %v10088_v40  ;;  %1697 = vperm.xlu1 %9414, %v1538_v47   ;;  %1692 = vperm.xlu0 %9413, %v1537_v48   ;;  %v1544_v47 = vld [vmem:[%s9714_s14 + $0xda] sm:$0xff]  ;;  %v1543_v48 = vld [vmem:[%s9714_s14 + $0xd2] sm:$0xff] }
 0x15d   : > { %v10092_v55 = vpop.permute.xlu1 %1176  ;;  %v10094_v56 = vpop.permute.xlu0 %1171 }
 0x15e   : > { %15008 = vst [vmem:[#allocation70_spill] sm:$0xff] %v10092_v55  ;;  %15009 = vst [vmem:[#allocation71_spill] sm:$0xff] %v10094_v56  ;;  %1707 = vperm.xlu1 %9414, %v1540_v63   ;;  %1702 = vperm.xlu0 %9413, %v1539_v0   ;;  %v1546_v63 = vld [vmem:[%s9714_s14 + $0xea] sm:$0xff]  ;;  %v1545_v0 = vld [vmem:[%s9714_s14 + $0xe2] sm:$0xff] }
 0x161   : > { %v10098_v15 = vpop.permute.xlu1 %1186  ;;  %v10100_v16 = vpop.permute.xlu0 %1181 }
 0x162   : > { %15010 = vst [vmem:[#allocation72_spill] sm:$0xff] %v10098_v15  ;;  %15011 = vst [vmem:[#allocation73_spill] sm:$0xff] %v10100_v16  ;;  %1717 = vperm.xlu1 %9414, %v1542_v31   ;;  %1712 = vperm.xlu0 %9413, %v1541_v32   ;;  %v1548_v31 = vld [vmem:[%s9714_s14 + $0xfa] sm:$0xff]  ;;  %v1547_v32 = vld [vmem:[%s9714_s14 + $0xf2] sm:$0xff] }
 0x165   : > { %v10104_v40 = vpop.permute.xlu1 %1196  ;;  %v10106_v55 = vpop.permute.xlu0 %1191 }
 0x166   : > { %15012 = vst [vmem:[#allocation74_spill] sm:$0xff] %v10104_v40  ;;  %15013 = vst [vmem:[#allocation75_spill] sm:$0xff] %v10106_v55  ;;  %1727 = vperm.xlu1 %9414, %v1544_v47   ;;  %1722 = vperm.xlu0 %9413, %v1543_v48   ;;  %v1550_v47 = vld [vmem:[%s9714_s14 + $0x10a] sm:$0xff]  ;;  %v1549_v48 = vld [vmem:[%s9714_s14 + $0x102] sm:$0xff] }
 0x169   : > { %v10110_v56 = vpop.permute.xlu1 %1206  ;;  %v10112_v15 = vpop.permute.xlu0 %1201 }
 0x16a   : > { %15014 = vst [vmem:[#allocation76_spill] sm:$0xff] %v10110_v56  ;;  %15015 = vst [vmem:[#allocation77_spill] sm:$0xff] %v10112_v15  ;;  %1737 = vperm.xlu1 %9414, %v1546_v63   ;;  %1732 = vperm.xlu0 %9413, %v1545_v0   ;;  %v1552_v63 = vld [vmem:[%s9714_s14 + $0x11a] sm:$0xff]  ;;  %v1551_v0 = vld [vmem:[%s9714_s14 + $0x112] sm:$0xff] }
 0x16d   : > { %v10116_v16 = vpop.permute.xlu1 %1216  ;;  %v10118_v40 = vpop.permute.xlu0 %1211 }
 0x16e   : > { %15016 = vst [vmem:[#allocation78_spill] sm:$0xff] %v10116_v16  ;;  %15017 = vst [vmem:[#allocation79_spill] sm:$0xff] %v10118_v40  ;;  %1747 = vperm.xlu1 %9414, %v1548_v31   ;;  %1742 = vperm.xlu0 %9413, %v1547_v32   ;;  %v1554_v31 = vld [vmem:[%s9714_s14 + $0x12a] sm:$0xff]  ;;  %v1553_v32 = vld [vmem:[%s9714_s14 + $0x122] sm:$0xff] }
 0x171   : > { %v10122_v55 = vpop.permute.xlu1 %1226  ;;  %v10124_v56 = vpop.permute.xlu0 %1221 }
 0x172   : > { %15018 = vst [vmem:[#allocation80_spill] sm:$0xff] %v10122_v55  ;;  %15019 = vst [vmem:[#allocation81_spill] sm:$0xff] %v10124_v56  ;;  %1757 = vperm.xlu1 %9414, %v1550_v47   ;;  %1752 = vperm.xlu0 %9413, %v1549_v48   ;;  %v1556_v47 = vld [vmem:[%s9714_s14 + $0x13a] sm:$0xff]  ;;  %v1555_v48 = vld [vmem:[%s9714_s14 + $0x132] sm:$0xff] }
 0x175   : > { %v10128_v15 = vpop.permute.xlu1 %1236  ;;  %v10130_v16 = vpop.permute.xlu0 %1231 }
 0x176   : > { %15020 = vst [vmem:[#allocation82_spill] sm:$0xff] %v10128_v15  ;;  %15021 = vst [vmem:[#allocation83_spill] sm:$0xff] %v10130_v16  ;;  %1767 = vperm.xlu1 %9414, %v1552_v63   ;;  %1762 = vperm.xlu0 %9413, %v1551_v0   ;;  %v1558_v63 = vld [vmem:[%s9714_s14 + $0x14a] sm:$0xff]  ;;  %v1557_v0 = vld [vmem:[%s9714_s14 + $0x142] sm:$0xff] }
 0x179   : > { %v10134_v40 = vpop.permute.xlu1 %1246  ;;  %v10136_v55 = vpop.permute.xlu0 %1241 }
 0x17a   : > { %15022 = vst [vmem:[#allocation84_spill] sm:$0xff] %v10134_v40  ;;  %15023 = vst [vmem:[#allocation85_spill] sm:$0xff] %v10136_v55  ;;  %1777 = vperm.xlu1 %9414, %v1554_v31   ;;  %1772 = vperm.xlu0 %9413, %v1553_v32   ;;  %v1560_v31 = vld [vmem:[%s9714_s14 + $0x15a] sm:$0xff]  ;;  %v1559_v32 = vld [vmem:[%s9714_s14 + $0x152] sm:$0xff] }
 0x17d   : > { %v10140_v56 = vpop.permute.xlu1 %1256  ;;  %v10142_v15 = vpop.permute.xlu0 %1251 }
 0x17e   : > { %15024 = vst [vmem:[#allocation86_spill] sm:$0xff] %v10140_v56  ;;  %15025 = vst [vmem:[#allocation87_spill] sm:$0xff] %v10142_v15  ;;  %1787 = vperm.xlu1 %9414, %v1556_v47   ;;  %1782 = vperm.xlu0 %9413, %v1555_v48   ;;  %v1562_v47 = vld [vmem:[%s9714_s14 + $0x16a] sm:$0xff]  ;;  %v1561_v48 = vld [vmem:[%s9714_s14 + $0x162] sm:$0xff] }
 0x181   : > { %v10146_v16 = vpop.permute.xlu1 %1266  ;;  %v10148_v40 = vpop.permute.xlu0 %1261 }
 0x182   : > { %15026 = vst [vmem:[#allocation88_spill] sm:$0xff] %v10146_v16  ;;  %15027 = vst [vmem:[#allocation89_spill] sm:$0xff] %v10148_v40  ;;  %1797 = vperm.xlu1 %9414, %v1558_v63   ;;  %1792 = vperm.xlu0 %9413, %v1557_v0   ;;  %v1564_v63 = vld [vmem:[%s9714_s14 + $0x17a] sm:$0xff]  ;;  %v1563_v0 = vld [vmem:[%s9714_s14 + $0x172] sm:$0xff] }
 0x185   : > { %v10152_v55 = vpop.permute.xlu1 %1276  ;;  %v10154_v56 = vpop.permute.xlu0 %1271 }
 0x186   : > { %15028 = vst [vmem:[#allocation90_spill] sm:$0xff] %v10152_v55  ;;  %15029 = vst [vmem:[#allocation91_spill] sm:$0xff] %v10154_v56  ;;  %1807 = vperm.xlu1 %9414, %v1560_v31   ;;  %1802 = vperm.xlu0 %9413, %v1559_v32   ;;  %v1566_v31 = vld [vmem:[%s9714_s14 + $0x18a] sm:$0xff]  ;;  %v1565_v32 = vld [vmem:[%s9714_s14 + $0x182] sm:$0xff] }
 0x189   : > { %v10158_v15 = vpop.permute.xlu1 %1286  ;;  %v10160_v16 = vpop.permute.xlu0 %1281 }
 0x18a   : > { %15030 = vst [vmem:[#allocation92_spill] sm:$0xff] %v10158_v15  ;;  %15031 = vst [vmem:[#allocation93_spill] sm:$0xff] %v10160_v16  ;;  %1817 = vperm.xlu1 %9414, %v1562_v47   ;;  %1812 = vperm.xlu0 %9413, %v1561_v48   ;;  %v1568_v47 = vld [vmem:[%s9714_s14 + $0x19a] sm:$0xff]  ;;  %v1567_v48 = vld [vmem:[%s9714_s14 + $0x192] sm:$0xff] }
 0x18d   : > { %v10164_v40 = vpop.permute.xlu1 %1296  ;;  %v10166_v55 = vpop.permute.xlu0 %1291 }
 0x18e   : > { %15032 = vst [vmem:[#allocation94_spill] sm:$0xff] %v10164_v40  ;;  %15033 = vst [vmem:[#allocation95_spill] sm:$0xff] %v10166_v55  ;;  %1827 = vperm.xlu1 %9414, %v1564_v63   ;;  %1822 = vperm.xlu0 %9413, %v1563_v0   ;;  %v1570_v63 = vld [vmem:[%s9714_s14 + $0x1aa] sm:$0xff]  ;;  %v1569_v0 = vld [vmem:[%s9714_s14 + $0x1a2] sm:$0xff] }
 0x191   : > { %v10170_v56 = vpop.permute.xlu1 %1306  ;;  %v10172_v15 = vpop.permute.xlu0 %1301 }
 0x192   : > { %15034 = vst [vmem:[#allocation96_spill] sm:$0xff] %v10170_v56  ;;  %15035 = vst [vmem:[#allocation97_spill] sm:$0xff] %v10172_v15  ;;  %1837 = vperm.xlu1 %9414, %v1566_v31   ;;  %1832 = vperm.xlu0 %9413, %v1565_v32   ;;  %v1572_v31 = vld [vmem:[%s9714_s14 + $0x1ba] sm:$0xff]  ;;  %v1571_v32 = vld [vmem:[%s9714_s14 + $0x1b2] sm:$0xff] }
 0x195   : > { %v10176_v16 = vpop.permute.xlu1 %1316  ;;  %v10178_v40 = vpop.permute.xlu0 %1311 }
 0x196   : > { %15036 = vst [vmem:[#allocation98_spill] sm:$0xff] %v10176_v16  ;;  %15037 = vst [vmem:[#allocation99_spill] sm:$0xff] %v10178_v40  ;;  %1847 = vperm.xlu1 %9414, %v1568_v47   ;;  %1842 = vperm.xlu0 %9413, %v1567_v48   ;;  %v1574_v47 = vld [vmem:[%s9714_s14 + $0x1ca] sm:$0xff]  ;;  %v1573_v48 = vld [vmem:[%s9714_s14 + $0x1c2] sm:$0xff] }
 0x199   : > { %v10182_v55 = vpop.permute.xlu1 %1326  ;;  %v10184_v56 = vpop.permute.xlu0 %1321 }
 0x19a   : > { %15038 = vst [vmem:[#allocation100_spill] sm:$0xff] %v10182_v55  ;;  %15039 = vst [vmem:[#allocation101_spill] sm:$0xff] %v10184_v56  ;;  %1857 = vperm.xlu1 %9414, %v1570_v63   ;;  %1852 = vperm.xlu0 %9413, %v1569_v0   ;;  %v1576_v63 = vld [vmem:[%s9714_s14 + $0x1da] sm:$0xff]  ;;  %v1575_v0 = vld [vmem:[%s9714_s14 + $0x1d2] sm:$0xff] }
 0x19d   : > { %v10188_v15 = vpop.permute.xlu1 %1336  ;;  %v10190_v16 = vpop.permute.xlu0 %1331 }
 0x19e   : > { %15040 = vst [vmem:[#allocation102_spill] sm:$0xff] %v10188_v15  ;;  %15041 = vst [vmem:[#allocation103_spill] sm:$0xff] %v10190_v16  ;;  %1867 = vperm.xlu1 %9414, %v1572_v31   ;;  %1862 = vperm.xlu0 %9413, %v1571_v32   ;;  %v1578_v31 = vld [vmem:[%s9714_s14 + $0x1ea] sm:$0xff]  ;;  %v1577_v32 = vld [vmem:[%s9714_s14 + $0x1e2] sm:$0xff] }
 0x1a1   : > { %v10194_v40 = vpop.permute.xlu1 %1346  ;;  %v10196_v55 = vpop.permute.xlu0 %1341 }
 0x1a2   : > { %15042 = vst [vmem:[#allocation104_spill] sm:$0xff] %v10194_v40  ;;  %15043 = vst [vmem:[#allocation105_spill] sm:$0xff] %v10196_v55  ;;  %1877 = vperm.xlu1 %9414, %v1574_v47   ;;  %1872 = vperm.xlu0 %9413, %v1573_v48   ;;  %v1580_v47 = vld [vmem:[%s9714_s14 + $0x1fa] sm:$0xff]  ;;  %v1579_v48 = vld [vmem:[%s9714_s14 + $0x1f2] sm:$0xff] }
 0x1a5   : > { %v10200_v56 = vpop.permute.xlu1 %1356  ;;  %v10202_v15 = vpop.permute.xlu0 %1351 }
 0x1a6   : > { %15044 = vst [vmem:[#allocation106_spill] sm:$0xff] %v10200_v56  ;;  %15045 = vst [vmem:[#allocation107_spill] sm:$0xff] %v10202_v15  ;;  %1887 = vperm.xlu1 %9414, %v1576_v63   ;;  %1882 = vperm.xlu0 %9413, %v1575_v0   ;;  %v1582_v63 = vld [vmem:[%s9714_s14 + $0x20a] sm:$0xff]  ;;  %v1581_v0 = vld [vmem:[%s9714_s14 + $0x202] sm:$0xff] }
 0x1a9   : > { %v10206_v16 = vpop.permute.xlu1 %1366  ;;  %v10208_v40 = vpop.permute.xlu0 %1361 }
 0x1aa   : > { %15046 = vst [vmem:[#allocation108_spill] sm:$0xff] %v10206_v16  ;;  %15047 = vst [vmem:[#allocation109_spill] sm:$0xff] %v10208_v40  ;;  %1897 = vperm.xlu1 %9414, %v1578_v31   ;;  %1892 = vperm.xlu0 %9413, %v1577_v32   ;;  %v1584_v31 = vld [vmem:[%s9714_s14 + $0x21a] sm:$0xff]  ;;  %v1583_v32 = vld [vmem:[%s9714_s14 + $0x212] sm:$0xff] }
 0x1ad   : > { %v10212_v55 = vpop.permute.xlu1 %1597  ;;  %v10214_v56 = vpop.permute.xlu0 %1592 }
 0x1ae   : > { %15048 = vst [vmem:[#allocation110_spill] sm:$0xff] %v10212_v55  ;;  %15049 = vst [vmem:[#allocation111_spill] sm:$0xff] %v10214_v56  ;;  %1907 = vperm.xlu1 %9414, %v1580_v47   ;;  %1902 = vperm.xlu0 %9413, %v1579_v48   ;;  %v1586_v47 = vld [vmem:[%s9714_s14 + $0x22a] sm:$0xff]  ;;  %v1585_v48 = vld [vmem:[%s9714_s14 + $0x222] sm:$0xff] }
 0x1b1   : > { %v10218_v15 = vpop.permute.xlu1 %1607  ;;  %v10220_v16 = vpop.permute.xlu0 %1602 }
 0x1b2   : > { %15050 = vst [vmem:[#allocation112_spill] sm:$0xff] %v10218_v15  ;;  %15051 = vst [vmem:[#allocation113_spill] sm:$0xff] %v10220_v16  ;;  %1917 = vperm.xlu1 %9414, %v1582_v63   ;;  %1912 = vperm.xlu0 %9413, %v1581_v0   ;;  %v1588_v63 = vld [vmem:[%s9714_s14 + $0x23a] sm:$0x1f]  ;;  %v1587_v0 = vld [vmem:[%s9714_s14 + $0x232] sm:$0xff] }
 0x1b5   : > { %v10224_v40 = vpop.permute.xlu1 %1617  ;;  %v10226_v55 = vpop.permute.xlu0 %1612 }
 0x1b6   : > { %15052 = vst [vmem:[#allocation114_spill] sm:$0xff] %v10224_v40  ;;  %15053 = vst [vmem:[#allocation115_spill] sm:$0xff] %v10226_v55  ;;  %1927 = vperm.xlu1 %9414, %v1584_v31   ;;  %1922 = vperm.xlu0 %9413, %v1583_v32   ;;  %v2099_v31 = vld [vmem:[%s9714_s14 + $0x21] sm:$0xff]  ;;  %v2098_v32 = vld [vmem:[%s9714_s14 + $0x19] sm:$0xff] }
 0x1b9   : > { %v10230_v56 = vpop.permute.xlu1 %1627  ;;  %v10232_v15 = vpop.permute.xlu0 %1622 }
 0x1ba   : > { %15054 = vst [vmem:[#allocation116_spill] sm:$0xff] %v10230_v56  ;;  %15055 = vst [vmem:[#allocation117_spill] sm:$0xff] %v10232_v15  ;;  %1937 = vperm.xlu1 %9414, %v1586_v47   ;;  %1932 = vperm.xlu0 %9413, %v1585_v48   ;;  %v2101_v47 = vld [vmem:[%s9714_s14 + $0x31] sm:$0xff]  ;;  %v2100_v48 = vld [vmem:[%s9714_s14 + $0x29] sm:$0xff] }
 0x1bd   : > { %v10236_v16 = vpop.permute.xlu1 %1637  ;;  %v10238_v40 = vpop.permute.xlu0 %1632 }
 0x1be   : > { %15056 = vst [vmem:[#allocation118_spill] sm:$0xff] %v10236_v16  ;;  %15057 = vst [vmem:[#allocation119_spill] sm:$0xff] %v10238_v40  ;;  %1947 = vperm.xlu1 %9414, %v1588_v63   ;;  %1942 = vperm.xlu0 %9413, %v1587_v0   ;;  %v2103_v63 = vld [vmem:[%s9714_s14 + $0x41] sm:$0xff]  ;;  %v2102_v0 = vld [vmem:[%s9714_s14 + $0x39] sm:$0xff] }
 0x1c1   : > { %v10242_v55 = vpop.permute.xlu1 %1647  ;;  %v10244_v56 = vpop.permute.xlu0 %1642 }
 0x1c2   : > { %15058 = vst [vmem:[#allocation120_spill] sm:$0xff] %v10242_v55  ;;  %15059 = vst [vmem:[#allocation121_spill] sm:$0xff] %v10244_v56  ;;  %2178 = vperm.xlu1 %9414, %v2099_v31   ;;  %2173 = vperm.xlu0 %9413, %v2098_v32   ;;  %v2105_v31 = vld [vmem:[%s9714_s14 + $0x51] sm:$0xff]  ;;  %v2104_v32 = vld [vmem:[%s9714_s14 + $0x49] sm:$0xff] }
 0x1c5   : > { %v10248_v15 = vpop.permute.xlu1 %1657  ;;  %v10250_v16 = vpop.permute.xlu0 %1652 }
 0x1c6   : > { %15060 = vst [vmem:[#allocation122_spill] sm:$0xff] %v10248_v15  ;;  %15061 = vst [vmem:[#allocation123_spill] sm:$0xff] %v10250_v16  ;;  %2188 = vperm.xlu1 %9414, %v2101_v47   ;;  %2183 = vperm.xlu0 %9413, %v2100_v48   ;;  %v2107_v47 = vld [vmem:[%s9714_s14 + $0x61] sm:$0xff]  ;;  %v2106_v48 = vld [vmem:[%s9714_s14 + $0x59] sm:$0xff] }
 0x1c9   : > { %v10254_v40 = vpop.permute.xlu1 %1667  ;;  %v10256_v55 = vpop.permute.xlu0 %1662 }
 0x1ca   : > { %15062 = vst [vmem:[#allocation124_spill] sm:$0xff] %v10254_v40  ;;  %15063 = vst [vmem:[#allocation125_spill] sm:$0xff] %v10256_v55  ;;  %2198 = vperm.xlu1 %9414, %v2103_v63   ;;  %2193 = vperm.xlu0 %9413, %v2102_v0   ;;  %v2109_v63 = vld [vmem:[%s9714_s14 + $0x71] sm:$0xff]  ;;  %v2108_v0 = vld [vmem:[%s9714_s14 + $0x69] sm:$0xff] }
 0x1cd   : > { %v10260_v56 = vpop.permute.xlu1 %1677  ;;  %v10262_v15 = vpop.permute.xlu0 %1672 }
 0x1ce   : > { %15064 = vst [vmem:[#allocation126_spill] sm:$0xff] %v10260_v56  ;;  %15065 = vst [vmem:[#allocation127_spill] sm:$0xff] %v10262_v15  ;;  %2208 = vperm.xlu1 %9414, %v2105_v31   ;;  %2203 = vperm.xlu0 %9413, %v2104_v32   ;;  %v2111_v31 = vld [vmem:[%s9714_s14 + $0x81] sm:$0xff]  ;;  %v2110_v32 = vld [vmem:[%s9714_s14 + $0x79] sm:$0xff] }
 0x1d1   : > { %v10266_v16 = vpop.permute.xlu1 %1687  ;;  %v10268_v40 = vpop.permute.xlu0 %1682 }
 0x1d2   : > { %15066 = vst [vmem:[#allocation128_spill] sm:$0xff] %v10266_v16  ;;  %15067 = vst [vmem:[#allocation129_spill] sm:$0xff] %v10268_v40  ;;  %2218 = vperm.xlu1 %9414, %v2107_v47   ;;  %2213 = vperm.xlu0 %9413, %v2106_v48   ;;  %v2113_v47 = vld [vmem:[%s9714_s14 + $0x91] sm:$0xff]  ;;  %v2112_v48 = vld [vmem:[%s9714_s14 + $0x89] sm:$0xff] }
 0x1d5   : > { %v10272_v55 = vpop.permute.xlu1 %1697  ;;  %v10274_v56 = vpop.permute.xlu0 %1692 }
 0x1d6   : > { %15068 = vst [vmem:[#allocation130_spill] sm:$0xff] %v10272_v55  ;;  %15069 = vst [vmem:[#allocation131_spill] sm:$0xff] %v10274_v56  ;;  %2228 = vperm.xlu1 %9414, %v2109_v63   ;;  %2223 = vperm.xlu0 %9413, %v2108_v0   ;;  %v2115_v63 = vld [vmem:[%s9714_s14 + $0xa1] sm:$0xff]  ;;  %v2114_v0 = vld [vmem:[%s9714_s14 + $0x99] sm:$0xff] }
 0x1d9   : > { %v10278_v15 = vpop.permute.xlu1 %1707  ;;  %v10280_v16 = vpop.permute.xlu0 %1702 }
 0x1da   : > { %15070 = vst [vmem:[#allocation132_spill] sm:$0xff] %v10278_v15  ;;  %15071 = vst [vmem:[#allocation133_spill] sm:$0xff] %v10280_v16  ;;  %2238 = vperm.xlu1 %9414, %v2111_v31   ;;  %2233 = vperm.xlu0 %9413, %v2110_v32   ;;  %v2117_v31 = vld [vmem:[%s9714_s14 + $0xb1] sm:$0xff]  ;;  %v2116_v32 = vld [vmem:[%s9714_s14 + $0xa9] sm:$0xff] }
 0x1dd   : > { %v10284_v40 = vpop.permute.xlu1 %1717  ;;  %v10286_v55 = vpop.permute.xlu0 %1712 }
 0x1de   : > { %15072 = vst [vmem:[#allocation134_spill] sm:$0xff] %v10284_v40  ;;  %15073 = vst [vmem:[#allocation135_spill] sm:$0xff] %v10286_v55  ;;  %2248 = vperm.xlu1 %9414, %v2113_v47   ;;  %2243 = vperm.xlu0 %9413, %v2112_v48   ;;  %v2119_v47 = vld [vmem:[%s9714_s14 + $0xc1] sm:$0xff]  ;;  %v2118_v48 = vld [vmem:[%s9714_s14 + $0xb9] sm:$0xff] }
 0x1e1   : > { %v10290_v56 = vpop.permute.xlu1 %1727  ;;  %v10292_v15 = vpop.permute.xlu0 %1722 }
 0x1e2   : > { %15074 = vst [vmem:[#allocation136_spill] sm:$0xff] %v10290_v56  ;;  %15075 = vst [vmem:[#allocation137_spill] sm:$0xff] %v10292_v15  ;;  %2258 = vperm.xlu1 %9414, %v2115_v63   ;;  %2253 = vperm.xlu0 %9413, %v2114_v0   ;;  %v2121_v63 = vld [vmem:[%s9714_s14 + $0xd1] sm:$0xff]  ;;  %v2120_v0 = vld [vmem:[%s9714_s14 + $0xc9] sm:$0xff] }
 0x1e5   : > { %v10296_v16 = vpop.permute.xlu1 %1737  ;;  %v10298_v40 = vpop.permute.xlu0 %1732 }
 0x1e6   : > { %15076 = vst [vmem:[#allocation138_spill] sm:$0xff] %v10296_v16  ;;  %15077 = vst [vmem:[#allocation139_spill] sm:$0xff] %v10298_v40  ;;  %2268 = vperm.xlu1 %9414, %v2117_v31   ;;  %2263 = vperm.xlu0 %9413, %v2116_v32   ;;  %v2123_v31 = vld [vmem:[%s9714_s14 + $0xe1] sm:$0xff]  ;;  %v2122_v32 = vld [vmem:[%s9714_s14 + $0xd9] sm:$0xff] }
 0x1e9   : > { %v10302_v55 = vpop.permute.xlu1 %1747  ;;  %v10304_v56 = vpop.permute.xlu0 %1742 }
 0x1ea   : > { %15078 = vst [vmem:[#allocation140_spill] sm:$0xff] %v10302_v55  ;;  %15079 = vst [vmem:[#allocation141_spill] sm:$0xff] %v10304_v56  ;;  %2278 = vperm.xlu1 %9414, %v2119_v47   ;;  %2273 = vperm.xlu0 %9413, %v2118_v48   ;;  %v2125_v47 = vld [vmem:[%s9714_s14 + $0xf1] sm:$0xff]  ;;  %v2124_v48 = vld [vmem:[%s9714_s14 + $0xe9] sm:$0xff] }
 0x1ed   : > { %v10308_v15 = vpop.permute.xlu1 %1757  ;;  %v10310_v16 = vpop.permute.xlu0 %1752 }
 0x1ee   : > { %15080 = vst [vmem:[#allocation142_spill] sm:$0xff] %v10308_v15  ;;  %15081 = vst [vmem:[#allocation143_spill] sm:$0xff] %v10310_v16  ;;  %2288 = vperm.xlu1 %9414, %v2121_v63   ;;  %2283 = vperm.xlu0 %9413, %v2120_v0   ;;  %v2127_v63 = vld [vmem:[%s9714_s14 + $0x101] sm:$0xff]  ;;  %v2126_v0 = vld [vmem:[%s9714_s14 + $0xf9] sm:$0xff] }
 0x1f1   : > { %v10314_v40 = vpop.permute.xlu1 %1767  ;;  %v10316_v55 = vpop.permute.xlu0 %1762 }
 0x1f2   : > { %15082 = vst [vmem:[#allocation144_spill] sm:$0xff] %v10314_v40  ;;  %15083 = vst [vmem:[#allocation145_spill] sm:$0xff] %v10316_v55  ;;  %2298 = vperm.xlu1 %9414, %v2123_v31   ;;  %2293 = vperm.xlu0 %9413, %v2122_v32   ;;  %v2129_v31 = vld [vmem:[%s9714_s14 + $0x111] sm:$0xff]  ;;  %v2128_v32 = vld [vmem:[%s9714_s14 + $0x109] sm:$0xff] }
 0x1f5   : > { %v10320_v56 = vpop.permute.xlu1 %1777  ;;  %v10322_v15 = vpop.permute.xlu0 %1772 }
 0x1f6   : > { %15084 = vst [vmem:[#allocation146_spill] sm:$0xff] %v10320_v56  ;;  %15085 = vst [vmem:[#allocation147_spill] sm:$0xff] %v10322_v15  ;;  %2308 = vperm.xlu1 %9414, %v2125_v47   ;;  %2303 = vperm.xlu0 %9413, %v2124_v48   ;;  %v2131_v47 = vld [vmem:[%s9714_s14 + $0x121] sm:$0xff]  ;;  %v2130_v48 = vld [vmem:[%s9714_s14 + $0x119] sm:$0xff] }
 0x1f9   : > { %v10326_v16 = vpop.permute.xlu1 %1787  ;;  %v10328_v40 = vpop.permute.xlu0 %1782 }
 0x1fa   : > { %15086 = vst [vmem:[#allocation148_spill] sm:$0xff] %v10326_v16  ;;  %15087 = vst [vmem:[#allocation149_spill] sm:$0xff] %v10328_v40  ;;  %2318 = vperm.xlu1 %9414, %v2127_v63   ;;  %2313 = vperm.xlu0 %9413, %v2126_v0   ;;  %v2133_v63 = vld [vmem:[%s9714_s14 + $0x131] sm:$0xff]  ;;  %v2132_v0 = vld [vmem:[%s9714_s14 + $0x129] sm:$0xff] }
 0x1fd   : > { %v10332_v55 = vpop.permute.xlu1 %1797  ;;  %v10334_v56 = vpop.permute.xlu0 %1792 }
 0x1fe   : > { %15088 = vst [vmem:[#allocation150_spill] sm:$0xff] %v10332_v55  ;;  %15089 = vst [vmem:[#allocation151_spill] sm:$0xff] %v10334_v56  ;;  %2328 = vperm.xlu1 %9414, %v2129_v31   ;;  %2323 = vperm.xlu0 %9413, %v2128_v32   ;;  %v2135_v31 = vld [vmem:[%s9714_s14 + $0x141] sm:$0xff]  ;;  %v2134_v32 = vld [vmem:[%s9714_s14 + $0x139] sm:$0xff] }
 0x201   : > { %v10338_v15 = vpop.permute.xlu1 %1807  ;;  %v10340_v16 = vpop.permute.xlu0 %1802 }
 0x202   : > { %15090 = vst [vmem:[#allocation152_spill] sm:$0xff] %v10338_v15  ;;  %15091 = vst [vmem:[#allocation153_spill] sm:$0xff] %v10340_v16  ;;  %2338 = vperm.xlu1 %9414, %v2131_v47   ;;  %2333 = vperm.xlu0 %9413, %v2130_v48   ;;  %v2137_v47 = vld [vmem:[%s9714_s14 + $0x151] sm:$0xff]  ;;  %v2136_v48 = vld [vmem:[%s9714_s14 + $0x149] sm:$0xff] }
 0x205   : > { %v10344_v40 = vpop.permute.xlu1 %1817  ;;  %v10346_v55 = vpop.permute.xlu0 %1812 }
 0x206   : > { %15092 = vst [vmem:[#allocation154_spill] sm:$0xff] %v10344_v40  ;;  %15093 = vst [vmem:[#allocation155_spill] sm:$0xff] %v10346_v55  ;;  %2348 = vperm.xlu1 %9414, %v2133_v63   ;;  %2343 = vperm.xlu0 %9413, %v2132_v0   ;;  %v2139_v63 = vld [vmem:[%s9714_s14 + $0x161] sm:$0xff]  ;;  %v2138_v0 = vld [vmem:[%s9714_s14 + $0x159] sm:$0xff] }
 0x209   : > { %v10350_v56 = vpop.permute.xlu1 %1827  ;;  %v10352_v15 = vpop.permute.xlu0 %1822 }
 0x20a   : > { %15094 = vst [vmem:[#allocation156_spill] sm:$0xff] %v10350_v56  ;;  %15095 = vst [vmem:[#allocation157_spill] sm:$0xff] %v10352_v15  ;;  %2358 = vperm.xlu1 %9414, %v2135_v31   ;;  %2353 = vperm.xlu0 %9413, %v2134_v32   ;;  %v2141_v31 = vld [vmem:[%s9714_s14 + $0x171] sm:$0xff]  ;;  %v2140_v32 = vld [vmem:[%s9714_s14 + $0x169] sm:$0xff] }
 0x20d   : > { %v10356_v16 = vpop.permute.xlu1 %1837  ;;  %v10358_v40 = vpop.permute.xlu0 %1832 }
 0x20e   : > { %15096 = vst [vmem:[#allocation158_spill] sm:$0xff] %v10356_v16  ;;  %15097 = vst [vmem:[#allocation159_spill] sm:$0xff] %v10358_v40  ;;  %2368 = vperm.xlu1 %9414, %v2137_v47   ;;  %2363 = vperm.xlu0 %9413, %v2136_v48   ;;  %v2143_v47 = vld [vmem:[%s9714_s14 + $0x181] sm:$0xff]  ;;  %v2142_v48 = vld [vmem:[%s9714_s14 + $0x179] sm:$0xff] }
 0x211   : > { %v10362_v55 = vpop.permute.xlu1 %1847  ;;  %v10364_v56 = vpop.permute.xlu0 %1842 }
 0x212   : > { %15098 = vst [vmem:[#allocation160_spill] sm:$0xff] %v10362_v55  ;;  %15099 = vst [vmem:[#allocation161_spill] sm:$0xff] %v10364_v56  ;;  %2378 = vperm.xlu1 %9414, %v2139_v63   ;;  %2373 = vperm.xlu0 %9413, %v2138_v0   ;;  %v2145_v63 = vld [vmem:[%s9714_s14 + $0x191] sm:$0xff]  ;;  %v2144_v0 = vld [vmem:[%s9714_s14 + $0x189] sm:$0xff] }
 0x215   : > { %v10368_v15 = vpop.permute.xlu1 %1857  ;;  %v10370_v16 = vpop.permute.xlu0 %1852 }
 0x216   : > { %15100 = vst [vmem:[#allocation162_spill] sm:$0xff] %v10368_v15  ;;  %15101 = vst [vmem:[#allocation163_spill] sm:$0xff] %v10370_v16  ;;  %2388 = vperm.xlu1 %9414, %v2141_v31   ;;  %2383 = vperm.xlu0 %9413, %v2140_v32   ;;  %v2147_v31 = vld [vmem:[%s9714_s14 + $0x1a1] sm:$0xff]  ;;  %v2146_v32 = vld [vmem:[%s9714_s14 + $0x199] sm:$0xff] }
 0x219   : > { %v10374_v40 = vpop.permute.xlu1 %1867  ;;  %v10376_v55 = vpop.permute.xlu0 %1862 }
 0x21a   : > { %15102 = vst [vmem:[#allocation164_spill] sm:$0xff] %v10374_v40  ;;  %15103 = vst [vmem:[#allocation165_spill] sm:$0xff] %v10376_v55  ;;  %2398 = vperm.xlu1 %9414, %v2143_v47   ;;  %2393 = vperm.xlu0 %9413, %v2142_v48   ;;  %v2149_v47 = vld [vmem:[%s9714_s14 + $0x1b1] sm:$0xff]  ;;  %v2148_v48 = vld [vmem:[%s9714_s14 + $0x1a9] sm:$0xff] }
 0x21d   : > { %v10380_v56 = vpop.permute.xlu1 %1877  ;;  %v10382_v15 = vpop.permute.xlu0 %1872 }
 0x21e   : > { %15104 = vst [vmem:[#allocation166_spill] sm:$0xff] %v10380_v56  ;;  %15105 = vst [vmem:[#allocation167_spill] sm:$0xff] %v10382_v15  ;;  %2408 = vperm.xlu1 %9414, %v2145_v63   ;;  %2403 = vperm.xlu0 %9413, %v2144_v0   ;;  %v2151_v63 = vld [vmem:[%s9714_s14 + $0x1c1] sm:$0xff]  ;;  %v2150_v0 = vld [vmem:[%s9714_s14 + $0x1b9] sm:$0xff] }
 0x221   : > { %v10386_v16 = vpop.permute.xlu1 %1887  ;;  %v10388_v40 = vpop.permute.xlu0 %1882 }
 0x222   : > { %15106 = vst [vmem:[#allocation168_spill] sm:$0xff] %v10386_v16  ;;  %15107 = vst [vmem:[#allocation169_spill] sm:$0xff] %v10388_v40  ;;  %2418 = vperm.xlu1 %9414, %v2147_v31   ;;  %2413 = vperm.xlu0 %9413, %v2146_v32   ;;  %v2153_v31 = vld [vmem:[%s9714_s14 + $0x1d1] sm:$0xff]  ;;  %v2152_v32 = vld [vmem:[%s9714_s14 + $0x1c9] sm:$0xff] }
 0x225   : > { %v10392_v55 = vpop.permute.xlu1 %1897  ;;  %v10394_v56 = vpop.permute.xlu0 %1892 }
 0x226   : > { %15108 = vst [vmem:[#allocation170_spill] sm:$0xff] %v10392_v55  ;;  %15109 = vst [vmem:[#allocation171_spill] sm:$0xff] %v10394_v56  ;;  %2428 = vperm.xlu1 %9414, %v2149_v47   ;;  %2423 = vperm.xlu0 %9413, %v2148_v48   ;;  %v2155_v47 = vld [vmem:[%s9714_s14 + $0x1e1] sm:$0xff]  ;;  %v2154_v48 = vld [vmem:[%s9714_s14 + $0x1d9] sm:$0xff] }
 0x229   : > { %v10398_v15 = vpop.permute.xlu1 %1907  ;;  %v10400_v16 = vpop.permute.xlu0 %1902 }
 0x22a   : > { %15110 = vst [vmem:[#allocation172_spill] sm:$0xff] %v10398_v15  ;;  %15111 = vst [vmem:[#allocation173_spill] sm:$0xff] %v10400_v16  ;;  %2438 = vperm.xlu1 %9414, %v2151_v63   ;;  %2433 = vperm.xlu0 %9413, %v2150_v0   ;;  %v2157_v63 = vld [vmem:[%s9714_s14 + $0x1f1] sm:$0xff]  ;;  %v2156_v0 = vld [vmem:[%s9714_s14 + $0x1e9] sm:$0xff] }
 0x22d   : > { %v10404_v40 = vpop.permute.xlu1 %1917  ;;  %v10406_v55 = vpop.permute.xlu0 %1912 }
 0x22e   : > { %15112 = vst [vmem:[#allocation174_spill] sm:$0xff] %v10404_v40  ;;  %15113 = vst [vmem:[#allocation175_spill] sm:$0xff] %v10406_v55  ;;  %2448 = vperm.xlu1 %9414, %v2153_v31   ;;  %2443 = vperm.xlu0 %9413, %v2152_v32   ;;  %v2159_v31 = vld [vmem:[%s9714_s14 + $0x201] sm:$0xff]  ;;  %v2158_v32 = vld [vmem:[%s9714_s14 + $0x1f9] sm:$0xff] }
 0x231   : > { %v10410_v56 = vpop.permute.xlu1 %1927  ;;  %v10412_v15 = vpop.permute.xlu0 %1922 }
 0x232   : > { %15114 = vst [vmem:[#allocation176_spill] sm:$0xff] %v10410_v56  ;;  %15115 = vst [vmem:[#allocation177_spill] sm:$0xff] %v10412_v15  ;;  %2458 = vperm.xlu1 %9414, %v2155_v47   ;;  %2453 = vperm.xlu0 %9413, %v2154_v48   ;;  %v2161_v47 = vld [vmem:[%s9714_s14 + $0x211] sm:$0xff]  ;;  %v2160_v48 = vld [vmem:[%s9714_s14 + $0x209] sm:$0xff] }
 0x235   : > { %v10416_v16 = vpop.permute.xlu1 %1937  ;;  %v10418_v40 = vpop.permute.xlu0 %1932 }
 0x236   : > { %15116 = vst [vmem:[#allocation178_spill] sm:$0xff] %v10416_v16  ;;  %15117 = vst [vmem:[#allocation179_spill] sm:$0xff] %v10418_v40  ;;  %2468 = vperm.xlu1 %9414, %v2157_v63   ;;  %2463 = vperm.xlu0 %9413, %v2156_v0   ;;  %v2163_v63 = vld [vmem:[%s9714_s14 + $0x221] sm:$0xff]  ;;  %v2162_v0 = vld [vmem:[%s9714_s14 + $0x219] sm:$0xff] }
 0x239   : > { %v10422_v55 = vpop.permute.xlu1 %1947  ;;  %v10424_v56 = vpop.permute.xlu0 %1942 }
 0x23a   : > { %15118 = vst [vmem:[#allocation180_spill] sm:$0xff] %v10422_v55  ;;  %15119 = vst [vmem:[#allocation181_spill] sm:$0xff] %v10424_v56  ;;  %2478 = vperm.xlu1 %9414, %v2159_v31   ;;  %2473 = vperm.xlu0 %9413, %v2158_v32   ;;  %v2165_v31 = vld [vmem:[%s9714_s14 + $0x231] sm:$0xff]  ;;  %v2164_v32 = vld [vmem:[%s9714_s14 + $0x229] sm:$0xff] }
 0x23d   : > { %v10428_v15 = vpop.permute.xlu1 %2178  ;;  %v10430_v16 = vpop.permute.xlu0 %2173 }
 0x23e   : > { %15120 = vst [vmem:[#allocation182_spill] sm:$0xff] %v10428_v15  ;;  %15121 = vst [vmem:[#allocation183_spill] sm:$0xff] %v10430_v16  ;;  %2488 = vperm.xlu1 %9414, %v2161_v47   ;;  %2483 = vperm.xlu0 %9413, %v2160_v48   ;;  %v2167_v47 = vld [vmem:[%s9714_s14 + $0x241] sm:$0xff]  ;;  %v2166_v48 = vld [vmem:[%s9714_s14 + $0x239] sm:$0xff] }
 0x241   : > { %v10434_v40 = vpop.permute.xlu1 %2188  ;;  %v10436_v55 = vpop.permute.xlu0 %2183 }
 0x242   : > { %15122 = vst [vmem:[#allocation184_spill] sm:$0xff] %v10434_v40  ;;  %15123 = vst [vmem:[#allocation185_spill] sm:$0xff] %v10436_v55  ;;  %2498 = vperm.xlu1 %9414, %v2163_v63   ;;  %2493 = vperm.xlu0 %9413, %v2162_v0   ;;  %v2169_v63 = vld [vmem:[%s9714_s14 + $0x251] sm:$0x1f]  ;;  %v2168_v0 = vld [vmem:[%s9714_s14 + $0x249] sm:$0xff] }
 0x245   : > { %v10440_v56 = vpop.permute.xlu1 %2198  ;;  %v10442_v15 = vpop.permute.xlu0 %2193 }
 0x246   : > { %15124 = vst [vmem:[#allocation186_spill] sm:$0xff] %v10440_v56  ;;  %15125 = vst [vmem:[#allocation187_spill] sm:$0xff] %v10442_v15  ;;  %2508 = vperm.xlu1 %9414, %v2165_v31   ;;  %2503 = vperm.xlu0 %9413, %v2164_v32   ;;  %v2680_v31 = vld [vmem:[%s9714_s14 + $0x22] sm:$0xff]  ;;  %v2679_v32 = vld [vmem:[%s9714_s14 + $0x1a] sm:$0xff] }
 0x249   : > { %v10446_v16 = vpop.permute.xlu1 %2208  ;;  %v10448_v40 = vpop.permute.xlu0 %2203 }
 0x24a   : > { %15126 = vst [vmem:[#allocation188_spill] sm:$0xff] %v10446_v16  ;;  %15127 = vst [vmem:[#allocation189_spill] sm:$0xff] %v10448_v40  ;;  %2518 = vperm.xlu1 %9414, %v2167_v47   ;;  %2513 = vperm.xlu0 %9413, %v2166_v48   ;;  %v2682_v47 = vld [vmem:[%s9714_s14 + $0x32] sm:$0xff]  ;;  %v2681_v48 = vld [vmem:[%s9714_s14 + $0x2a] sm:$0xff] }
 0x24d   : > { %v10452_v55 = vpop.permute.xlu1 %2218  ;;  %v10454_v56 = vpop.permute.xlu0 %2213 }
 0x24e   : > { %15128 = vst [vmem:[#allocation190_spill] sm:$0xff] %v10452_v55  ;;  %15129 = vst [vmem:[#allocation191_spill] sm:$0xff] %v10454_v56  ;;  %2528 = vperm.xlu1 %9414, %v2169_v63   ;;  %2523 = vperm.xlu0 %9413, %v2168_v0   ;;  %v2684_v63 = vld [vmem:[%s9714_s14 + $0x42] sm:$0xff]  ;;  %v2683_v0 = vld [vmem:[%s9714_s14 + $0x3a] sm:$0xff] }
 0x251   : > { %v10458_v15 = vpop.permute.xlu1 %2228  ;;  %v10460_v16 = vpop.permute.xlu0 %2223 }
 0x252   : > { %15130 = vst [vmem:[#allocation192_spill] sm:$0xff] %v10458_v15  ;;  %15131 = vst [vmem:[#allocation193_spill] sm:$0xff] %v10460_v16  ;;  %2759 = vperm.xlu1 %9414, %v2680_v31   ;;  %2754 = vperm.xlu0 %9413, %v2679_v32   ;;  %v2686_v31 = vld [vmem:[%s9714_s14 + $0x52] sm:$0xff]  ;;  %v2685_v32 = vld [vmem:[%s9714_s14 + $0x4a] sm:$0xff] }
 0x255   : > { %v10464_v40 = vpop.permute.xlu1 %2238  ;;  %v10466_v55 = vpop.permute.xlu0 %2233 }
 0x256   : > { %15132 = vst [vmem:[#allocation194_spill] sm:$0xff] %v10464_v40  ;;  %15133 = vst [vmem:[#allocation195_spill] sm:$0xff] %v10466_v55  ;;  %2769 = vperm.xlu1 %9414, %v2682_v47   ;;  %2764 = vperm.xlu0 %9413, %v2681_v48   ;;  %v2688_v47 = vld [vmem:[%s9714_s14 + $0x62] sm:$0xff]  ;;  %v2687_v48 = vld [vmem:[%s9714_s14 + $0x5a] sm:$0xff] }
 0x259   : > { %v10470_v56 = vpop.permute.xlu1 %2248  ;;  %v10472_v15 = vpop.permute.xlu0 %2243 }
 0x25a   : > { %15134 = vst [vmem:[#allocation196_spill] sm:$0xff] %v10470_v56  ;;  %15135 = vst [vmem:[#allocation197_spill] sm:$0xff] %v10472_v15  ;;  %2779 = vperm.xlu1 %9414, %v2684_v63   ;;  %2774 = vperm.xlu0 %9413, %v2683_v0   ;;  %v2690_v63 = vld [vmem:[%s9714_s14 + $0x72] sm:$0xff]  ;;  %v2689_v0 = vld [vmem:[%s9714_s14 + $0x6a] sm:$0xff] }
 0x25d   : > { %v10476_v16 = vpop.permute.xlu1 %2258  ;;  %v10478_v40 = vpop.permute.xlu0 %2253 }
 0x25e   : > { %15136 = vst [vmem:[#allocation198_spill] sm:$0xff] %v10476_v16  ;;  %15137 = vst [vmem:[#allocation199_spill] sm:$0xff] %v10478_v40  ;;  %2789 = vperm.xlu1 %9414, %v2686_v31   ;;  %2784 = vperm.xlu0 %9413, %v2685_v32   ;;  %v2692_v31 = vld [vmem:[%s9714_s14 + $0x82] sm:$0xff]  ;;  %v2691_v32 = vld [vmem:[%s9714_s14 + $0x7a] sm:$0xff] }
 0x261   : > { %v10482_v55 = vpop.permute.xlu1 %2268  ;;  %v10484_v56 = vpop.permute.xlu0 %2263 }
 0x262   : > { %15138 = vst [vmem:[#allocation200_spill] sm:$0xff] %v10482_v55  ;;  %15139 = vst [vmem:[#allocation201_spill] sm:$0xff] %v10484_v56  ;;  %2799 = vperm.xlu1 %9414, %v2688_v47   ;;  %2794 = vperm.xlu0 %9413, %v2687_v48   ;;  %v2694_v47 = vld [vmem:[%s9714_s14 + $0x92] sm:$0xff]  ;;  %v2693_v48 = vld [vmem:[%s9714_s14 + $0x8a] sm:$0xff] }
 0x265   : > { %v10488_v15 = vpop.permute.xlu1 %2278  ;;  %v10490_v16 = vpop.permute.xlu0 %2273 }
 0x266   : > { %15140 = vst [vmem:[#allocation202_spill] sm:$0xff] %v10488_v15  ;;  %15141 = vst [vmem:[#allocation203_spill] sm:$0xff] %v10490_v16  ;;  %2809 = vperm.xlu1 %9414, %v2690_v63   ;;  %2804 = vperm.xlu0 %9413, %v2689_v0   ;;  %v2696_v63 = vld [vmem:[%s9714_s14 + $0xa2] sm:$0xff]  ;;  %v2695_v0 = vld [vmem:[%s9714_s14 + $0x9a] sm:$0xff] }
 0x269   : > { %v10494_v40 = vpop.permute.xlu1 %2288  ;;  %v10496_v55 = vpop.permute.xlu0 %2283 }
 0x26a   : > { %15142 = vst [vmem:[#allocation204_spill] sm:$0xff] %v10494_v40  ;;  %15143 = vst [vmem:[#allocation205_spill] sm:$0xff] %v10496_v55  ;;  %2819 = vperm.xlu1 %9414, %v2692_v31   ;;  %2814 = vperm.xlu0 %9413, %v2691_v32   ;;  %v2698_v31 = vld [vmem:[%s9714_s14 + $0xb2] sm:$0xff]  ;;  %v2697_v32 = vld [vmem:[%s9714_s14 + $0xaa] sm:$0xff] }
 0x26d   : > { %v10500_v56 = vpop.permute.xlu1 %2298  ;;  %v10502_v15 = vpop.permute.xlu0 %2293 }
 0x26e   : > { %15144 = vst [vmem:[#allocation206_spill] sm:$0xff] %v10500_v56  ;;  %15145 = vst [vmem:[#allocation207_spill] sm:$0xff] %v10502_v15  ;;  %2829 = vperm.xlu1 %9414, %v2694_v47   ;;  %2824 = vperm.xlu0 %9413, %v2693_v48   ;;  %v2700_v47 = vld [vmem:[%s9714_s14 + $0xc2] sm:$0xff]  ;;  %v2699_v48 = vld [vmem:[%s9714_s14 + $0xba] sm:$0xff] }
 0x271   : > { %v10506_v16 = vpop.permute.xlu1 %2308  ;;  %v10508_v40 = vpop.permute.xlu0 %2303 }
 0x272   : > { %15146 = vst [vmem:[#allocation208_spill] sm:$0xff] %v10506_v16  ;;  %15147 = vst [vmem:[#allocation209_spill] sm:$0xff] %v10508_v40  ;;  %2839 = vperm.xlu1 %9414, %v2696_v63   ;;  %2834 = vperm.xlu0 %9413, %v2695_v0   ;;  %v2702_v63 = vld [vmem:[%s9714_s14 + $0xd2] sm:$0xff]  ;;  %v2701_v0 = vld [vmem:[%s9714_s14 + $0xca] sm:$0xff] }
 0x275   : > { %v10512_v55 = vpop.permute.xlu1 %2318  ;;  %v10514_v56 = vpop.permute.xlu0 %2313 }
 0x276   : > { %15148 = vst [vmem:[#allocation210_spill] sm:$0xff] %v10512_v55  ;;  %15149 = vst [vmem:[#allocation211_spill] sm:$0xff] %v10514_v56  ;;  %2849 = vperm.xlu1 %9414, %v2698_v31   ;;  %2844 = vperm.xlu0 %9413, %v2697_v32   ;;  %v2704_v31 = vld [vmem:[%s9714_s14 + $0xe2] sm:$0xff]  ;;  %v2703_v32 = vld [vmem:[%s9714_s14 + $0xda] sm:$0xff] }
 0x279   : > { %v10518_v15 = vpop.permute.xlu1 %2328  ;;  %v10520_v16 = vpop.permute.xlu0 %2323 }
 0x27a   : > { %15150 = vst [vmem:[#allocation212_spill] sm:$0xff] %v10518_v15  ;;  %15151 = vst [vmem:[#allocation213_spill] sm:$0xff] %v10520_v16  ;;  %2859 = vperm.xlu1 %9414, %v2700_v47   ;;  %2854 = vperm.xlu0 %9413, %v2699_v48   ;;  %v2706_v47 = vld [vmem:[%s9714_s14 + $0xf2] sm:$0xff]  ;;  %v2705_v48 = vld [vmem:[%s9714_s14 + $0xea] sm:$0xff] }
 0x27d   : > { %v10524_v40 = vpop.permute.xlu1 %2338  ;;  %v10526_v55 = vpop.permute.xlu0 %2333 }
 0x27e   : > { %15152 = vst [vmem:[#allocation214_spill] sm:$0xff] %v10524_v40  ;;  %15153 = vst [vmem:[#allocation215_spill] sm:$0xff] %v10526_v55  ;;  %2869 = vperm.xlu1 %9414, %v2702_v63   ;;  %2864 = vperm.xlu0 %9413, %v2701_v0   ;;  %v2708_v63 = vld [vmem:[%s9714_s14 + $0x102] sm:$0xff]  ;;  %v2707_v0 = vld [vmem:[%s9714_s14 + $0xfa] sm:$0xff] }
 0x281   : > { %v10530_v56 = vpop.permute.xlu1 %2348  ;;  %v10532_v15 = vpop.permute.xlu0 %2343 }
 0x282   : > { %15154 = vst [vmem:[#allocation216_spill] sm:$0xff] %v10530_v56  ;;  %15155 = vst [vmem:[#allocation217_spill] sm:$0xff] %v10532_v15  ;;  %2879 = vperm.xlu1 %9414, %v2704_v31   ;;  %2874 = vperm.xlu0 %9413, %v2703_v32   ;;  %v2710_v31 = vld [vmem:[%s9714_s14 + $0x112] sm:$0xff]  ;;  %v2709_v32 = vld [vmem:[%s9714_s14 + $0x10a] sm:$0xff] }
 0x285   : > { %v10536_v16 = vpop.permute.xlu1 %2358  ;;  %v10538_v40 = vpop.permute.xlu0 %2353 }
 0x286   : > { %15156 = vst [vmem:[#allocation218_spill] sm:$0xff] %v10536_v16  ;;  %15157 = vst [vmem:[#allocation219_spill] sm:$0xff] %v10538_v40  ;;  %2889 = vperm.xlu1 %9414, %v2706_v47   ;;  %2884 = vperm.xlu0 %9413, %v2705_v48   ;;  %v2712_v47 = vld [vmem:[%s9714_s14 + $0x122] sm:$0xff]  ;;  %v2711_v48 = vld [vmem:[%s9714_s14 + $0x11a] sm:$0xff] }
 0x289   : > { %v10542_v55 = vpop.permute.xlu1 %2368  ;;  %v10544_v56 = vpop.permute.xlu0 %2363 }
 0x28a   : > { %15158 = vst [vmem:[#allocation220_spill] sm:$0xff] %v10542_v55  ;;  %15159 = vst [vmem:[#allocation221_spill] sm:$0xff] %v10544_v56  ;;  %2899 = vperm.xlu1 %9414, %v2708_v63   ;;  %2894 = vperm.xlu0 %9413, %v2707_v0   ;;  %v2714_v63 = vld [vmem:[%s9714_s14 + $0x132] sm:$0xff]  ;;  %v2713_v0 = vld [vmem:[%s9714_s14 + $0x12a] sm:$0xff] }
 0x28d   : > { %v10548_v15 = vpop.permute.xlu1 %2378  ;;  %v10550_v16 = vpop.permute.xlu0 %2373 }
 0x28e   : > { %15160 = vst [vmem:[#allocation222_spill] sm:$0xff] %v10548_v15  ;;  %15161 = vst [vmem:[#allocation223_spill] sm:$0xff] %v10550_v16  ;;  %2909 = vperm.xlu1 %9414, %v2710_v31   ;;  %2904 = vperm.xlu0 %9413, %v2709_v32   ;;  %v2716_v31 = vld [vmem:[%s9714_s14 + $0x142] sm:$0xff]  ;;  %v2715_v32 = vld [vmem:[%s9714_s14 + $0x13a] sm:$0xff] }
 0x291   : > { %v10554_v40 = vpop.permute.xlu1 %2388  ;;  %v10556_v55 = vpop.permute.xlu0 %2383 }
 0x292   : > { %15162 = vst [vmem:[#allocation224_spill] sm:$0xff] %v10554_v40  ;;  %15163 = vst [vmem:[#allocation225_spill] sm:$0xff] %v10556_v55  ;;  %2919 = vperm.xlu1 %9414, %v2712_v47   ;;  %2914 = vperm.xlu0 %9413, %v2711_v48   ;;  %v2718_v47 = vld [vmem:[%s9714_s14 + $0x152] sm:$0xff]  ;;  %v2717_v48 = vld [vmem:[%s9714_s14 + $0x14a] sm:$0xff] }
 0x295   : > { %v10560_v56 = vpop.permute.xlu1 %2398  ;;  %v10562_v15 = vpop.permute.xlu0 %2393 }
 0x296   : > { %15164 = vst [vmem:[#allocation226_spill] sm:$0xff] %v10560_v56  ;;  %15165 = vst [vmem:[#allocation227_spill] sm:$0xff] %v10562_v15  ;;  %2929 = vperm.xlu1 %9414, %v2714_v63   ;;  %2924 = vperm.xlu0 %9413, %v2713_v0   ;;  %v2720_v63 = vld [vmem:[%s9714_s14 + $0x162] sm:$0xff]  ;;  %v2719_v0 = vld [vmem:[%s9714_s14 + $0x15a] sm:$0xff] }
 0x299   : > { %v10566_v16 = vpop.permute.xlu1 %2408  ;;  %v10568_v40 = vpop.permute.xlu0 %2403 }
 0x29a   : > { %15166 = vst [vmem:[#allocation228_spill] sm:$0xff] %v10566_v16  ;;  %15167 = vst [vmem:[#allocation229_spill] sm:$0xff] %v10568_v40  ;;  %2939 = vperm.xlu1 %9414, %v2716_v31   ;;  %2934 = vperm.xlu0 %9413, %v2715_v32   ;;  %v2722_v31 = vld [vmem:[%s9714_s14 + $0x172] sm:$0xff]  ;;  %v2721_v32 = vld [vmem:[%s9714_s14 + $0x16a] sm:$0xff] }
 0x29d   : > { %v10572_v55 = vpop.permute.xlu1 %2418  ;;  %v10574_v56 = vpop.permute.xlu0 %2413 }
 0x29e   : > { %15168 = vst [vmem:[#allocation230_spill] sm:$0xff] %v10572_v55  ;;  %15169 = vst [vmem:[#allocation231_spill] sm:$0xff] %v10574_v56  ;;  %2949 = vperm.xlu1 %9414, %v2718_v47   ;;  %2944 = vperm.xlu0 %9413, %v2717_v48   ;;  %v2724_v47 = vld [vmem:[%s9714_s14 + $0x182] sm:$0xff]  ;;  %v2723_v48 = vld [vmem:[%s9714_s14 + $0x17a] sm:$0xff] }
 0x2a1   : > { %v10578_v15 = vpop.permute.xlu1 %2428  ;;  %v10580_v16 = vpop.permute.xlu0 %2423 }
 0x2a2   : > { %15170 = vst [vmem:[#allocation232_spill] sm:$0xff] %v10578_v15  ;;  %15171 = vst [vmem:[#allocation233_spill] sm:$0xff] %v10580_v16  ;;  %2959 = vperm.xlu1 %9414, %v2720_v63   ;;  %2954 = vperm.xlu0 %9413, %v2719_v0   ;;  %v2726_v63 = vld [vmem:[%s9714_s14 + $0x192] sm:$0xff]  ;;  %v2725_v0 = vld [vmem:[%s9714_s14 + $0x18a] sm:$0xff] }
 0x2a5   : > { %v10584_v40 = vpop.permute.xlu1 %2438  ;;  %v10586_v55 = vpop.permute.xlu0 %2433 }
 0x2a6   : > { %15172 = vst [vmem:[#allocation234_spill] sm:$0xff] %v10584_v40  ;;  %15173 = vst [vmem:[#allocation235_spill] sm:$0xff] %v10586_v55  ;;  %2969 = vperm.xlu1 %9414, %v2722_v31   ;;  %2964 = vperm.xlu0 %9413, %v2721_v32   ;;  %v2728_v31 = vld [vmem:[%s9714_s14 + $0x1a2] sm:$0xff]  ;;  %v2727_v32 = vld [vmem:[%s9714_s14 + $0x19a] sm:$0xff] }
 0x2a9   : > { %v10590_v56 = vpop.permute.xlu1 %2448  ;;  %v10592_v15 = vpop.permute.xlu0 %2443 }
 0x2aa   : > { %15174 = vst [vmem:[#allocation236_spill] sm:$0xff] %v10590_v56  ;;  %15175 = vst [vmem:[#allocation237_spill] sm:$0xff] %v10592_v15  ;;  %2979 = vperm.xlu1 %9414, %v2724_v47   ;;  %2974 = vperm.xlu0 %9413, %v2723_v48   ;;  %v2730_v47 = vld [vmem:[%s9714_s14 + $0x1b2] sm:$0xff]  ;;  %v2729_v48 = vld [vmem:[%s9714_s14 + $0x1aa] sm:$0xff] }
 0x2ad   : > { %v10596_v16 = vpop.permute.xlu1 %2458  ;;  %v10598_v40 = vpop.permute.xlu0 %2453 }
 0x2ae   : > { %15176 = vst [vmem:[#allocation238_spill] sm:$0xff] %v10596_v16  ;;  %15177 = vst [vmem:[#allocation239_spill] sm:$0xff] %v10598_v40  ;;  %2989 = vperm.xlu1 %9414, %v2726_v63   ;;  %2984 = vperm.xlu0 %9413, %v2725_v0   ;;  %v2732_v63 = vld [vmem:[%s9714_s14 + $0x1c2] sm:$0xff]  ;;  %v2731_v0 = vld [vmem:[%s9714_s14 + $0x1ba] sm:$0xff] }
 0x2b1   : > { %v10602_v55 = vpop.permute.xlu1 %2468  ;;  %v10604_v56 = vpop.permute.xlu0 %2463 }
 0x2b2   : > { %15178 = vst [vmem:[#allocation240_spill] sm:$0xff] %v10602_v55  ;;  %15179 = vst [vmem:[#allocation241_spill] sm:$0xff] %v10604_v56  ;;  %2999 = vperm.xlu1 %9414, %v2728_v31   ;;  %2994 = vperm.xlu0 %9413, %v2727_v32   ;;  %v2734_v31 = vld [vmem:[%s9714_s14 + $0x1d2] sm:$0xff]  ;;  %v2733_v32 = vld [vmem:[%s9714_s14 + $0x1ca] sm:$0xff] }
 0x2b5   : > { %v10608_v15 = vpop.permute.xlu1 %2478  ;;  %v10610_v16 = vpop.permute.xlu0 %2473 }
 0x2b6   : > { %15180 = vst [vmem:[#allocation242_spill] sm:$0xff] %v10608_v15  ;;  %15181 = vst [vmem:[#allocation243_spill] sm:$0xff] %v10610_v16  ;;  %3009 = vperm.xlu1 %9414, %v2730_v47   ;;  %3004 = vperm.xlu0 %9413, %v2729_v48   ;;  %v2736_v47 = vld [vmem:[%s9714_s14 + $0x1e2] sm:$0xff]  ;;  %v2735_v48 = vld [vmem:[%s9714_s14 + $0x1da] sm:$0xff] }
 0x2b9   : > { %v10614_v40 = vpop.permute.xlu1 %2488  ;;  %v10616_v55 = vpop.permute.xlu0 %2483 }
 0x2ba   : > { %15182 = vst [vmem:[#allocation244_spill] sm:$0xff] %v10614_v40  ;;  %15183 = vst [vmem:[#allocation245_spill] sm:$0xff] %v10616_v55  ;;  %3019 = vperm.xlu1 %9414, %v2732_v63   ;;  %3014 = vperm.xlu0 %9413, %v2731_v0   ;;  %v2738_v63 = vld [vmem:[%s9714_s14 + $0x1f2] sm:$0xff]  ;;  %v2737_v0 = vld [vmem:[%s9714_s14 + $0x1ea] sm:$0xff] }
 0x2bd   : > { %v10620_v56 = vpop.permute.xlu1 %2498  ;;  %v10622_v15 = vpop.permute.xlu0 %2493 }
 0x2be   : > { %15184 = vst [vmem:[#allocation246_spill] sm:$0xff] %v10620_v56  ;;  %15185 = vst [vmem:[#allocation247_spill] sm:$0xff] %v10622_v15  ;;  %3029 = vperm.xlu1 %9414, %v2734_v31   ;;  %3024 = vperm.xlu0 %9413, %v2733_v32   ;;  %v2740_v31 = vld [vmem:[%s9714_s14 + $0x202] sm:$0xff]  ;;  %v2739_v32 = vld [vmem:[%s9714_s14 + $0x1fa] sm:$0xff] }
 0x2c1   : > { %v10626_v16 = vpop.permute.xlu1 %2508  ;;  %v10628_v40 = vpop.permute.xlu0 %2503 }
 0x2c2   : > { %15186 = vst [vmem:[#allocation248_spill] sm:$0xff] %v10626_v16  ;;  %15187 = vst [vmem:[#allocation249_spill] sm:$0xff] %v10628_v40  ;;  %3039 = vperm.xlu1 %9414, %v2736_v47   ;;  %3034 = vperm.xlu0 %9413, %v2735_v48   ;;  %v2742_v47 = vld [vmem:[%s9714_s14 + $0x212] sm:$0xff]  ;;  %v2741_v48 = vld [vmem:[%s9714_s14 + $0x20a] sm:$0xff] }
 0x2c5   : > { %v10632_v55 = vpop.permute.xlu1 %2518  ;;  %v10634_v56 = vpop.permute.xlu0 %2513 }
 0x2c6   : > { %15188 = vst [vmem:[#allocation250_spill] sm:$0xff] %v10632_v55  ;;  %15189 = vst [vmem:[#allocation251_spill] sm:$0xff] %v10634_v56  ;;  %3049 = vperm.xlu1 %9414, %v2738_v63   ;;  %3044 = vperm.xlu0 %9413, %v2737_v0   ;;  %v2744_v63 = vld [vmem:[%s9714_s14 + $0x222] sm:$0xff]  ;;  %v2743_v0 = vld [vmem:[%s9714_s14 + $0x21a] sm:$0xff] }
 0x2c9   : > { %v10638_v15 = vpop.permute.xlu1 %2528  ;;  %v10640_v16 = vpop.permute.xlu0 %2523 }
 0x2ca   : > { %15190 = vst [vmem:[#allocation252_spill] sm:$0xff] %v10638_v15  ;;  %15191 = vst [vmem:[#allocation253_spill] sm:$0xff] %v10640_v16  ;;  %3059 = vperm.xlu1 %9414, %v2740_v31   ;;  %3054 = vperm.xlu0 %9413, %v2739_v32   ;;  %v2746_v31 = vld [vmem:[%s9714_s14 + $0x232] sm:$0xff]  ;;  %v2745_v32 = vld [vmem:[%s9714_s14 + $0x22a] sm:$0xff] }
 0x2cd   : > { %v10644_v40 = vpop.permute.xlu1 %2759  ;;  %v10646_v55 = vpop.permute.xlu0 %2754 }
 0x2ce   : > { %15192 = vst [vmem:[#allocation254_spill] sm:$0xff] %v10644_v40  ;;  %15193 = vst [vmem:[#allocation255_spill] sm:$0xff] %v10646_v55  ;;  %3069 = vperm.xlu1 %9414, %v2742_v47   ;;  %3064 = vperm.xlu0 %9413, %v2741_v48   ;;  %v2748_v47 = vld [vmem:[%s9714_s14 + $0x242] sm:$0xff]  ;;  %v2747_v48 = vld [vmem:[%s9714_s14 + $0x23a] sm:$0xff] }
 0x2d1   : > { %v10650_v56 = vpop.permute.xlu1 %2769  ;;  %v10652_v15 = vpop.permute.xlu0 %2764 }
 0x2d2   : > { %15194 = vst [vmem:[#allocation256_spill] sm:$0xff] %v10650_v56  ;;  %15195 = vst [vmem:[#allocation257_spill] sm:$0xff] %v10652_v15  ;;  %3079 = vperm.xlu1 %9414, %v2744_v63   ;;  %3074 = vperm.xlu0 %9413, %v2743_v0   ;;  %v2750_v63 = vld [vmem:[%s9714_s14 + $0x252] sm:$0x1f]  ;;  %v2749_v0 = vld [vmem:[%s9714_s14 + $0x24a] sm:$0xff] }
 0x2d5   : > { %v10656_v16 = vpop.permute.xlu1 %2779  ;;  %v10658_v40 = vpop.permute.xlu0 %2774 }
 0x2d6   : > { %15196 = vst [vmem:[#allocation258_spill] sm:$0xff] %v10656_v16  ;;  %15197 = vst [vmem:[#allocation259_spill] sm:$0xff] %v10658_v40  ;;  %3089 = vperm.xlu1 %9414, %v2746_v31   ;;  %3084 = vperm.xlu0 %9413, %v2745_v32   ;;  %v3261_v31 = vld [vmem:[%s9714_s14 + $0x23] sm:$0xff]  ;;  %v3260_v32 = vld [vmem:[%s9714_s14 + $0x1b] sm:$0xff] }
 0x2d9   : > { %v10662_v55 = vpop.permute.xlu1 %2789  ;;  %v10664_v56 = vpop.permute.xlu0 %2784 }
 0x2da   : > { %15198 = vst [vmem:[#allocation260_spill] sm:$0xff] %v10662_v55  ;;  %15199 = vst [vmem:[#allocation261_spill] sm:$0xff] %v10664_v56  ;;  %3099 = vperm.xlu1 %9414, %v2748_v47   ;;  %3094 = vperm.xlu0 %9413, %v2747_v48   ;;  %v10679_v47 = vld [vmem:[%s9714_s14 + $0x33] sm:$0xff]  ;;  %v3262_v48 = vld [vmem:[%s9714_s14 + $0x2b] sm:$0xff] }
 0x2dd   : > { %v10668_v15 = vpop.permute.xlu1 %2799  ;;  %v10670_v16 = vpop.permute.xlu0 %2794 }
 0x2de   : > { %15200 = vst [vmem:[#allocation262_spill] sm:$0xff] %v10668_v15  ;;  %15201 = vst [vmem:[#allocation263_spill] sm:$0xff] %v10670_v16  ;;  %3109 = vperm.xlu1 %9414, %v2750_v63   ;;  %3104 = vperm.xlu0 %9413, %v2749_v0   ;;  %v10688_v63 = vld [vmem:[%s9714_s14 + $0x43] sm:$0xff]  ;;  %v10691_v0 = vld [vmem:[%s9714_s14 + $0x3b] sm:$0xff] }
 0x2e1   : > { %v10674_v40 = vpop.permute.xlu1 %2809  ;;  %v10676_v55 = vpop.permute.xlu0 %2804 }
 0x2e2   : > { %15202 = vst [vmem:[#allocation264_spill] sm:$0xff] %v10674_v40  ;;  %15203 = vst [vmem:[#allocation265_spill] sm:$0xff] %v10676_v55  ;;  %3340 = vperm.xlu1 %9414, %v3261_v31   ;;  %3335 = vperm.xlu0 %9413, %v3260_v32   ;;  %v10700_v32 = vld [vmem:[%s9714_s14 + $0x53] sm:$0xff] }
 0x2e5   : > { %v10682_v15 = vpop.permute.xlu1 %2819  ;;  %v10684_v16 = vpop.permute.xlu0 %2814 }
 0x2e6   : > { %15204 = vst [vmem:[#allocation266_spill] sm:$0xff] %v10682_v15  ;;  %15205 = vst [vmem:[#allocation267_spill] sm:$0xff] %v10684_v16  ;;  %3350 = vperm.xlu1 %9414, %v10679_v47   ;;  %3345 = vperm.xlu0 %9413, %v3262_v48   ;;  %v10703_v16 = vld [vmem:[%s9714_s14 + $0x4b] sm:$0xff] }
 0x2e9   : > { %v10693_v55 = vpop.permute.xlu1 %2829  ;;  %v10695_v31 = vpop.permute.xlu0 %2824 }
 0x2ea   : > { %15206 = vst [vmem:[#allocation268_spill] sm:$0xff] %v10693_v55  ;;  %15207 = vst [vmem:[#allocation269_spill] sm:$0xff] %v10695_v31  ;;  %3360 = vperm.xlu1 %9414, %v10688_v63   ;;  %3355 = vperm.xlu0 %9413, %v10691_v0   ;;  %v10712_v31 = vld [vmem:[%s9714_s14 + $0x63] sm:$0xff]  ;;  %v10715_v55 = vld [vmem:[%s9714_s14 + $0x5b] sm:$0xff] }
 0x2ed   : > { %v10705_v15 = vpop.permute.xlu1 %2839  ;;  %v10707_v48 = vpop.permute.xlu0 %2834 }
 0x2ee   : > { %15208 = vst [vmem:[#allocation270_spill] sm:$0xff] %v10705_v15  ;;  %15209 = vst [vmem:[#allocation271_spill] sm:$0xff] %v10707_v48  ;;  %3370 = vperm.xlu1 %9414, %v10700_v32   ;;  %3365 = vperm.xlu0 %9413, %v10703_v16   ;;  %v10724_v48 = vld [vmem:[%s9714_s14 + $0x73] sm:$0xff]  ;;  %v10727_v15 = vld [vmem:[%s9714_s14 + $0x6b] sm:$0xff] }
 0x2f1   : > { %v10717_v40 = vpop.permute.xlu1 %2849  ;;  %v10719_v56 = vpop.permute.xlu0 %2844 }
 0x2f2   : > { %15210 = vst [vmem:[#allocation272_spill] sm:$0xff] %v10717_v40  ;;  %15211 = vst [vmem:[#allocation273_spill] sm:$0xff] %v10719_v56  ;;  %3380 = vperm.xlu1 %9414, %v10712_v31   ;;  %3375 = vperm.xlu0 %9413, %v10715_v55   ;;  %v10736_v40 = vld [vmem:[%s9714_s14 + $0x83] sm:$0xff]  ;;  %v10739_v56 = vld [vmem:[%s9714_s14 + $0x7b] sm:$0xff] }
 0x2f5   : > { %v10729_v39 = vpop.permute.xlu1 %2859  ;;  %v10731_v24 = vpop.permute.xlu0 %2854 }
 0x2f6   : > { %15212 = vst [vmem:[#allocation274_spill] sm:$0xff] %v10729_v39  ;;  %15213 = vst [vmem:[#allocation275_spill] sm:$0xff] %v10731_v24  ;;  %3390 = vperm.xlu1 %9414, %v10724_v48   ;;  %3385 = vperm.xlu0 %9413, %v10727_v15   ;;  %v10748_v24 = vld [vmem:[%s9714_s14 + $0x93] sm:$0xff]  ;;  %v10751_v39 = vld [vmem:[%s9714_s14 + $0x8b] sm:$0xff] }
 0x2f9   : > { %v10741_v23 = vpop.permute.xlu1 %2869  ;;  %v10743_v8 = vpop.permute.xlu0 %2864 }
 0x2fa   : > { %15214 = vst [vmem:[#allocation276_spill] sm:$0xff] %v10741_v23  ;;  %15215 = vst [vmem:[#allocation277_spill] sm:$0xff] %v10743_v8  ;;  %3400 = vperm.xlu1 %9414, %v10736_v40   ;;  %3395 = vperm.xlu0 %9413, %v10739_v56   ;;  %v10760_v8 = vld [vmem:[%s9714_s14 + $0xa3] sm:$0xff]  ;;  %v10763_v23 = vld [vmem:[%s9714_s14 + $0x9b] sm:$0xff] }
 0x2fb   : > { %15218 = vst [vmem:[#allocation280_spill] sm:$0xff] %v10760_v8  ;;  %15219 = vst [vmem:[#allocation281_spill] sm:$0xff] %v10763_v23 }
 0x2fd   : > { %v10753_v7 = vpop.permute.xlu1 %2879  ;;  %v10755_v60 = vpop.permute.xlu0 %2874 }
 0x2fe   : > { %15216 = vst [vmem:[#allocation278_spill] sm:$0xff] %v10753_v7  ;;  %15217 = vst [vmem:[#allocation279_spill] sm:$0xff] %v10755_v60  ;;  %3410 = vperm.xlu1 %9414, %v10748_v24   ;;  %3405 = vperm.xlu0 %9413, %v10751_v39   ;;  %v10772_v60 = vld [vmem:[%s9714_s14 + $0xb3] sm:$0xff]  ;;  %v10775_v7 = vld [vmem:[%s9714_s14 + $0xab] sm:$0xff] }
 0x2ff   : > { %15222 = vst [vmem:[#allocation284_spill] sm:$0xff] %v10772_v60  ;;  %15223 = vst [vmem:[#allocation285_spill] sm:$0xff] %v10775_v7 }
 0x301   : > { %v10765_v59 = vpop.permute.xlu1 %2889  ;;  %v10767_v52 = vpop.permute.xlu0 %2884 }
 0x302   : > { %15220 = vst [vmem:[#allocation282_spill] sm:$0xff] %v10765_v59  ;;  %15221 = vst [vmem:[#allocation283_spill] sm:$0xff] %v10767_v52  ;;  %3420 = vperm.xlu1 %9414, %v10760_v8   ;;  %3415 = vperm.xlu0 %9413, %v10763_v23   ;;  %v10784_v59 = vld [vmem:[%s9714_s14 + $0xc3] sm:$0xff]  ;;  %v10787_v52 = vld [vmem:[%s9714_s14 + $0xbb] sm:$0xff] }
 0x303   : > { %15226 = vst [vmem:[#allocation288_spill] sm:$0xff] %v10784_v59  ;;  %15227 = vst [vmem:[#allocation289_spill] sm:$0xff] %v10787_v52 }
 0x305   : > { %v10777_v51 = vpop.permute.xlu1 %2899  ;;  %v10779_v44 = vpop.permute.xlu0 %2894 }
 0x306   : > { %15224 = vst [vmem:[#allocation286_spill] sm:$0xff] %v10777_v51  ;;  %15225 = vst [vmem:[#allocation287_spill] sm:$0xff] %v10779_v44  ;;  %3430 = vperm.xlu1 %9414, %v10772_v60   ;;  %3425 = vperm.xlu0 %9413, %v10775_v7   ;;  %v3283_v44 = vld [vmem:[%s9714_s14 + $0xd3] sm:$0xff]  ;;  %v3282_v51 = vld [vmem:[%s9714_s14 + $0xcb] sm:$0xff] }
 0x307   : > { %v3285_v60 = vld [vmem:[%s9714_s14 + $0xe3] sm:$0xff] }
 0x309   : > { %v10789_v8 = vpop.permute.xlu1 %2909  ;;  %v10791_v23 = vpop.permute.xlu0 %2904 }
 0x30a   : > { %15228 = vst [vmem:[#allocation290_spill] sm:$0xff] %v10789_v8  ;;  %15229 = vst [vmem:[#allocation291_spill] sm:$0xff] %v10791_v23  ;;  %3440 = vperm.xlu1 %9414, %v10784_v59   ;;  %3435 = vperm.xlu0 %9413, %v10787_v52   ;;  %v3284_v8 = vld [vmem:[%s9714_s14 + $0xdb] sm:$0xff]  ;;  %v3287_v52 = vld [vmem:[%s9714_s14 + $0xf3] sm:$0xff] }
 0x30b   : > { %v3286_v59 = vld [vmem:[%s9714_s14 + $0xeb] sm:$0xff] }
 0x30d   : > { %v10797_v43 = vpop.permute.xlu1 %2919  ;;  %v10799_v7 = vpop.permute.xlu0 %2914 }
 0x30e   : > { %15230 = vst [vmem:[#allocation292_spill] sm:$0xff] %v10797_v43  ;;  %15231 = vst [vmem:[#allocation293_spill] sm:$0xff] %v10799_v7  ;;  %3450 = vperm.xlu1 %9414, %v3283_v44   ;;  %3445 = vperm.xlu0 %9413, %v3282_v51   ;;  %v3289_v44 = vld [vmem:[%s9714_s14 + $0x103] sm:$0xff]  ;;  %v3288_v51 = vld [vmem:[%s9714_s14 + $0xfb] sm:$0xff] }
 0x311   : > { %v10803_v36 = vpop.permute.xlu1 %2929  ;;  %v10805_v23 = vpop.permute.xlu0 %2924 }
 0x312   : > { %15232 = vst [vmem:[#allocation294_spill] sm:$0xff] %v10803_v36  ;;  %15233 = vst [vmem:[#allocation295_spill] sm:$0xff] %v10805_v23  ;;  %3460 = vperm.xlu1 %9414, %v3285_v60   ;;  %3455 = vperm.xlu0 %9413, %v3284_v8   ;;  %v3291_v60 = vld [vmem:[%s9714_s14 + $0x113] sm:$0xff]  ;;  %v3290_v8 = vld [vmem:[%s9714_s14 + $0x10b] sm:$0xff] }
 0x315   : > { %v10809_v35 = vpop.permute.xlu1 %2939  ;;  %v10811_v43 = vpop.permute.xlu0 %2934 }
 0x316   : > { %15234 = vst [vmem:[#allocation296_spill] sm:$0xff] %v10809_v35  ;;  %15235 = vst [vmem:[#allocation297_spill] sm:$0xff] %v10811_v43  ;;  %3470 = vperm.xlu1 %9414, %v3287_v52   ;;  %3465 = vperm.xlu0 %9413, %v3286_v59   ;;  %v3293_v52 = vld [vmem:[%s9714_s14 + $0x123] sm:$0xff]  ;;  %v3292_v59 = vld [vmem:[%s9714_s14 + $0x11b] sm:$0xff] }
 0x319   : > { %v10815_v7 = vpop.permute.xlu1 %2949  ;;  %v10817_v36 = vpop.permute.xlu0 %2944 }
 0x31a   : > { %15236 = vst [vmem:[#allocation298_spill] sm:$0xff] %v10815_v7  ;;  %15237 = vst [vmem:[#allocation299_spill] sm:$0xff] %v10817_v36  ;;  %3480 = vperm.xlu1 %9414, %v3289_v44   ;;  %3475 = vperm.xlu0 %9413, %v3288_v51   ;;  %v3295_v44 = vld [vmem:[%s9714_s14 + $0x133] sm:$0xff]  ;;  %v3294_v51 = vld [vmem:[%s9714_s14 + $0x12b] sm:$0xff] }
 0x31d   : > { %v10821_v23 = vpop.permute.xlu1 %2959  ;;  %v10823_v35 = vpop.permute.xlu0 %2954 }
 0x31e   : > { %15238 = vst [vmem:[#allocation300_spill] sm:$0xff] %v10821_v23  ;;  %15239 = vst [vmem:[#allocation301_spill] sm:$0xff] %v10823_v35  ;;  %3490 = vperm.xlu1 %9414, %v3291_v60   ;;  %3485 = vperm.xlu0 %9413, %v3290_v8   ;;  %v3297_v60 = vld [vmem:[%s9714_s14 + $0x143] sm:$0xff]  ;;  %v3296_v8 = vld [vmem:[%s9714_s14 + $0x13b] sm:$0xff] }
 0x321   : > { %v10827_v43 = vpop.permute.xlu1 %2969  ;;  %v10829_v7 = vpop.permute.xlu0 %2964 }
 0x322   : > { %15240 = vst [vmem:[#allocation302_spill] sm:$0xff] %v10827_v43  ;;  %15241 = vst [vmem:[#allocation303_spill] sm:$0xff] %v10829_v7  ;;  %3500 = vperm.xlu1 %9414, %v3293_v52   ;;  %3495 = vperm.xlu0 %9413, %v3292_v59   ;;  %v3299_v52 = vld [vmem:[%s9714_s14 + $0x153] sm:$0xff]  ;;  %v3298_v59 = vld [vmem:[%s9714_s14 + $0x14b] sm:$0xff] }
 0x325   : > { %v10833_v36 = vpop.permute.xlu1 %2979  ;;  %v10835_v23 = vpop.permute.xlu0 %2974 }
 0x326   : > { %15242 = vst [vmem:[#allocation304_spill] sm:$0xff] %v10833_v36  ;;  %15243 = vst [vmem:[#allocation305_spill] sm:$0xff] %v10835_v23  ;;  %3510 = vperm.xlu1 %9414, %v3295_v44   ;;  %3505 = vperm.xlu0 %9413, %v3294_v51   ;;  %v3301_v44 = vld [vmem:[%s9714_s14 + $0x163] sm:$0xff]  ;;  %v3300_v51 = vld [vmem:[%s9714_s14 + $0x15b] sm:$0xff] }
 0x329   : > { %v10839_v35 = vpop.permute.xlu1 %2989  ;;  %v10841_v43 = vpop.permute.xlu0 %2984 }
 0x32a   : > { %15244 = vst [vmem:[#allocation306_spill] sm:$0xff] %v10839_v35  ;;  %15245 = vst [vmem:[#allocation307_spill] sm:$0xff] %v10841_v43  ;;  %3520 = vperm.xlu1 %9414, %v3297_v60   ;;  %3515 = vperm.xlu0 %9413, %v3296_v8   ;;  %v3303_v60 = vld [vmem:[%s9714_s14 + $0x173] sm:$0xff]  ;;  %v3302_v8 = vld [vmem:[%s9714_s14 + $0x16b] sm:$0xff] }
 0x32d   : > { %v10845_v7 = vpop.permute.xlu1 %2999  ;;  %v10847_v36 = vpop.permute.xlu0 %2994 }
 0x32e   : > { %15246 = vst [vmem:[#allocation308_spill] sm:$0xff] %v10845_v7  ;;  %15247 = vst [vmem:[#allocation309_spill] sm:$0xff] %v10847_v36  ;;  %3530 = vperm.xlu1 %9414, %v3299_v52   ;;  %3525 = vperm.xlu0 %9413, %v3298_v59   ;;  %v3305_v52 = vld [vmem:[%s9714_s14 + $0x183] sm:$0xff]  ;;  %v3304_v59 = vld [vmem:[%s9714_s14 + $0x17b] sm:$0xff] }
 0x331   : > { %v10851_v23 = vpop.permute.xlu1 %3009  ;;  %v10853_v35 = vpop.permute.xlu0 %3004 }
 0x332   : > { %15248 = vst [vmem:[#allocation310_spill] sm:$0xff] %v10851_v23  ;;  %15249 = vst [vmem:[#allocation311_spill] sm:$0xff] %v10853_v35  ;;  %3540 = vperm.xlu1 %9414, %v3301_v44   ;;  %3535 = vperm.xlu0 %9413, %v3300_v51   ;;  %v3307_v44 = vld [vmem:[%s9714_s14 + $0x193] sm:$0xff]  ;;  %v3306_v51 = vld [vmem:[%s9714_s14 + $0x18b] sm:$0xff] }
 0x335   : > { %v10857_v43 = vpop.permute.xlu1 %3019  ;;  %v10859_v7 = vpop.permute.xlu0 %3014 }
 0x336   : > { %15250 = vst [vmem:[#allocation312_spill] sm:$0xff] %v10857_v43  ;;  %15251 = vst [vmem:[#allocation313_spill] sm:$0xff] %v10859_v7  ;;  %3550 = vperm.xlu1 %9414, %v3303_v60   ;;  %3545 = vperm.xlu0 %9413, %v3302_v8   ;;  %v3309_v60 = vld [vmem:[%s9714_s14 + $0x1a3] sm:$0xff]  ;;  %v3308_v8 = vld [vmem:[%s9714_s14 + $0x19b] sm:$0xff] }
 0x339   : > { %v10863_v36 = vpop.permute.xlu1 %3029  ;;  %v10865_v23 = vpop.permute.xlu0 %3024 }
 0x33a   : > { %15252 = vst [vmem:[#allocation314_spill] sm:$0xff] %v10863_v36  ;;  %15253 = vst [vmem:[#allocation315_spill] sm:$0xff] %v10865_v23  ;;  %3560 = vperm.xlu1 %9414, %v3305_v52   ;;  %3555 = vperm.xlu0 %9413, %v3304_v59   ;;  %v3311_v52 = vld [vmem:[%s9714_s14 + $0x1b3] sm:$0xff]  ;;  %v3310_v59 = vld [vmem:[%s9714_s14 + $0x1ab] sm:$0xff] }
 0x33d   : > { %v10869_v35 = vpop.permute.xlu1 %3039  ;;  %v10871_v43 = vpop.permute.xlu0 %3034 }
 0x33e   : > { %15254 = vst [vmem:[#allocation316_spill] sm:$0xff] %v10869_v35  ;;  %15255 = vst [vmem:[#allocation317_spill] sm:$0xff] %v10871_v43  ;;  %3570 = vperm.xlu1 %9414, %v3307_v44   ;;  %3565 = vperm.xlu0 %9413, %v3306_v51   ;;  %v3313_v44 = vld [vmem:[%s9714_s14 + $0x1c3] sm:$0xff]  ;;  %v3312_v51 = vld [vmem:[%s9714_s14 + $0x1bb] sm:$0xff] }
 0x341   : > { %v10875_v7 = vpop.permute.xlu1 %3049  ;;  %v10877_v36 = vpop.permute.xlu0 %3044 }
 0x342   : > { %15256 = vst [vmem:[#allocation318_spill] sm:$0xff] %v10875_v7  ;;  %15257 = vst [vmem:[#allocation319_spill] sm:$0xff] %v10877_v36  ;;  %3580 = vperm.xlu1 %9414, %v3309_v60   ;;  %3575 = vperm.xlu0 %9413, %v3308_v8   ;;  %v3315_v60 = vld [vmem:[%s9714_s14 + $0x1d3] sm:$0xff]  ;;  %v3314_v8 = vld [vmem:[%s9714_s14 + $0x1cb] sm:$0xff] }
 0x345   : > { %v10881_v23 = vpop.permute.xlu1 %3059  ;;  %v10883_v35 = vpop.permute.xlu0 %3054 }
 0x346   : > { %15258 = vst [vmem:[#allocation320_spill] sm:$0xff] %v10881_v23  ;;  %15259 = vst [vmem:[#allocation321_spill] sm:$0xff] %v10883_v35  ;;  %3590 = vperm.xlu1 %9414, %v3311_v52   ;;  %3585 = vperm.xlu0 %9413, %v3310_v59   ;;  %v3317_v52 = vld [vmem:[%s9714_s14 + $0x1e3] sm:$0xff]  ;;  %v3316_v59 = vld [vmem:[%s9714_s14 + $0x1db] sm:$0xff] }
 0x349   : > { %v10887_v43 = vpop.permute.xlu1 %3069  ;;  %v10889_v7 = vpop.permute.xlu0 %3064 }
 0x34a   : > { %15260 = vst [vmem:[#allocation322_spill] sm:$0xff] %v10887_v43  ;;  %15261 = vst [vmem:[#allocation323_spill] sm:$0xff] %v10889_v7  ;;  %3600 = vperm.xlu1 %9414, %v3313_v44   ;;  %3595 = vperm.xlu0 %9413, %v3312_v51   ;;  %v3319_v44 = vld [vmem:[%s9714_s14 + $0x1f3] sm:$0xff]  ;;  %v3318_v51 = vld [vmem:[%s9714_s14 + $0x1eb] sm:$0xff] }
 0x34d   : > { %v10893_v36 = vpop.permute.xlu1 %3079  ;;  %v10895_v23 = vpop.permute.xlu0 %3074 }
 0x34e   : > { %15262 = vst [vmem:[#allocation324_spill] sm:$0xff] %v10893_v36  ;;  %15263 = vst [vmem:[#allocation325_spill] sm:$0xff] %v10895_v23  ;;  %3610 = vperm.xlu1 %9414, %v3315_v60   ;;  %3605 = vperm.xlu0 %9413, %v3314_v8   ;;  %v3321_v60 = vld [vmem:[%s9714_s14 + $0x203] sm:$0xff]  ;;  %v3320_v8 = vld [vmem:[%s9714_s14 + $0x1fb] sm:$0xff] }
 0x351   : > { %v10899_v35 = vpop.permute.xlu1 %3089  ;;  %v10901_v43 = vpop.permute.xlu0 %3084 }
 0x352   : > { %15264 = vst [vmem:[#allocation326_spill] sm:$0xff] %v10899_v35  ;;  %15265 = vst [vmem:[#allocation327_spill] sm:$0xff] %v10901_v43  ;;  %3620 = vperm.xlu1 %9414, %v3317_v52   ;;  %3615 = vperm.xlu0 %9413, %v3316_v59   ;;  %v3842_v52 = vld [vmem:[%s9714_s14 + $0x3a] sm:$0xff]  ;;  %v3841_v59 = vld [vmem:[%s9714_s14 + $0x32] sm:$0xff] }
 0x355   : > { %v10905_v7 = vpop.permute.xlu1 %3099  ;;  %v10907_v36 = vpop.permute.xlu0 %3094 }
 0x356   : > { %15266 = vst [vmem:[#allocation328_spill] sm:$0xff] %v10905_v7  ;;  %15267 = vst [vmem:[#allocation329_spill] sm:$0xff] %v10907_v36  ;;  %3630 = vperm.xlu1 %9414, %v3319_v44   ;;  %3625 = vperm.xlu0 %9413, %v3318_v51   ;;  %v3847_v44 = vld [vmem:[%s9714_s14 + $0x62] sm:$0xff] }
 0x357   : > { %v3843_v51 = vld [vmem:[%s9714_s14 + $0x42] sm:$0xff] }
 0x359   : > { %v10911_v23 = vpop.permute.xlu1 %3109  ;;  %v10913_v35 = vpop.permute.xlu0 %3104 }
 0x35a   : > { %15268 = vst [vmem:[#allocation330_spill] sm:$0xff] %v10911_v23  ;;  %15269 = vst [vmem:[#allocation331_spill] sm:$0xff] %v10913_v35  ;;  %3640 = vperm.xlu1 %9414, %v3321_v60   ;;  %3635 = vperm.xlu0 %9413, %v3320_v8   ;;  %v3849_v60 = vld [vmem:[%s9714_s14 + $0x72] sm:$0xff]  ;;  %v3848_v8 = vld [vmem:[%s9714_s14 + $0x6a] sm:$0xff] }
 0x35d   : > { %v10917_v43 = vpop.permute.xlu1 %3340  ;;  %v10919_v7 = vpop.permute.xlu0 %3335 }
 0x35e   : > { %15270 = vst [vmem:[#allocation332_spill] sm:$0xff] %v10917_v43  ;;  %15271 = vst [vmem:[#allocation333_spill] sm:$0xff] %v10919_v7  ;;  %3921 = vperm.xlu1 %9414, %v3842_v52   ;;  %3916 = vperm.xlu0 %9413, %v3841_v59   ;;  %v3845_v52 = vld [vmem:[%s9714_s14 + $0x52] sm:$0xff]  ;;  %v3844_v59 = vld [vmem:[%s9714_s14 + $0x4a] sm:$0xff] }
 0x361   : > { %v10923_v36 = vpop.permute.xlu1 %3350  ;;  %v10925_v23 = vpop.permute.xlu0 %3345 }
 0x362   : > { %15272 = vst [vmem:[#allocation334_spill] sm:$0xff] %v10923_v36  ;;  %15273 = vst [vmem:[#allocation335_spill] sm:$0xff] %v10925_v23  ;;  %3946 = vperm.xlu1 %9414, %v3847_v44   ;;  %3926 = vperm.xlu0 %9413, %v3843_v51   ;;  %v3850_v44 = vld [vmem:[%s9714_s14 + $0x7a] sm:$0xff] }
 0x363   : > { %v3846_v51 = vld [vmem:[%s9714_s14 + $0x5a] sm:$0xff] }
 0x365   : > { %v10929_v35 = vpop.permute.xlu1 %3360  ;;  %v10931_v43 = vpop.permute.xlu0 %3355 }
 0x366   : > { %15274 = vst [vmem:[#allocation336_spill] sm:$0xff] %v10929_v35  ;;  %15275 = vst [vmem:[#allocation337_spill] sm:$0xff] %v10931_v43  ;;  %3956 = vperm.xlu1 %9414, %v3849_v60   ;;  %3951 = vperm.xlu0 %9413, %v3848_v8   ;;  %v3852_v43 = vld [vmem:[%s9714_s14 + $0x8a] sm:$0xff]  ;;  %v3851_v35 = vld [vmem:[%s9714_s14 + $0x82] sm:$0xff] }
 0x369   : > { %v10935_v7 = vpop.permute.xlu1 %3370  ;;  %v10937_v36 = vpop.permute.xlu0 %3365 }
 0x36a   : > { %15276 = vst [vmem:[#allocation338_spill] sm:$0xff] %v10935_v7  ;;  %15277 = vst [vmem:[#allocation339_spill] sm:$0xff] %v10937_v36  ;;  %3936 = vperm.xlu1 %9414, %v3845_v52   ;;  %3931 = vperm.xlu0 %9413, %v3844_v59   ;;  %v15345_v36 = vld [vmem:[#allocation21_spill] sm:$0xff] }
 0x36d   : > { %v10941_v23 = vpop.permute.xlu1 %3380  ;;  %v10943_v28 = vpop.permute.xlu0 %3375 }
 0x36e   : > { %15278 = vst [vmem:[#allocation340_spill] sm:$0xff] %v10941_v23  ;;  %15279 = vst [vmem:[#allocation341_spill] sm:$0xff] %v10943_v28  ;;  %3961 = vperm.xlu1 %9414, %v3850_v44   ;;  %3941 = vperm.xlu0 %9413, %v3846_v51   ;;  %v15341_v28 = vld [vmem:[#allocation20_spill] sm:$0xff] }
 0x371   : > { %v10947_v60 = vpop.permute.xlu1 %3390  ;;  %v10949_v8 = vpop.permute.xlu0 %3385 }
 0x372   : > { %15280 = vst [vmem:[#allocation342_spill] sm:$0xff] %v10947_v60  ;;  %15281 = vst [vmem:[#allocation343_spill] sm:$0xff] %v10949_v8  ;;  %3971 = vperm.xlu1 %9414, %v3852_v43   ;;  %3966 = vperm.xlu0 %9413, %v3851_v35   ;;  %v15337_v8 = vld [vmem:[#allocation18_spill] sm:$0xff]  ;;  %v15339_v60 = vld [vmem:[#allocation19_spill] sm:$0xff] }
 0x375   : > { %v10951_v7 = vpop.permute.xlu1 %3400  ;;  %v10953_v52 = vpop.permute.xlu0 %3395 }
 0x376   : > { %15282 = vst [vmem:[#allocation344_spill] sm:$0xff] %v10951_v7  ;;  %15283 = vst [vmem:[#allocation345_spill] sm:$0xff] %v10953_v52  ;;  %4502 = vperm.xlu1 %9414, %v10691_v0   ;;  %4497 = vperm.xlu0 %9413, %v10679_v47   ;;  %v15335_v52 = vld [vmem:[#allocation17_spill] sm:$0xff] }
 0x379   : > { %v10957_v59 = vpop.permute.xlu1 %3410  ;;  %v10959_v44 = vpop.permute.xlu0 %3405 }
 0x37a   : > { %15284 = vst [vmem:[#allocation346_spill] sm:$0xff] %v10957_v59  ;;  %15285 = vst [vmem:[#allocation347_spill] sm:$0xff] %v10959_v44  ;;  %4527 = vperm.xlu1 %9414, %v10712_v31   ;;  %4507 = vperm.xlu0 %9413, %v10688_v63   ;;  %v15331_v44 = vld [vmem:[#allocation15_spill] sm:$0xff]  ;;  %v15333_v59 = vld [vmem:[#allocation16_spill] sm:$0xff] }
 0x37d   : > { %v10963_v51 = vpop.permute.xlu1 %3420  ;;  %v10965_v35 = vpop.permute.xlu0 %3415 }
 0x37e   : > { %15286 = vst [vmem:[#allocation348_spill] sm:$0xff] %v10963_v51  ;;  %15287 = vst [vmem:[#allocation349_spill] sm:$0xff] %v10965_v35  ;;  %4537 = vperm.xlu1 %9414, %v10724_v48   ;;  %4532 = vperm.xlu0 %9413, %v10727_v15   ;;  %v15325_v35 = vld [vmem:[#allocation12_spill] sm:$0xff]  ;;  %v15329_v51 = vld [vmem:[#allocation14_spill] sm:$0xff] }
 0x381   : > { %v10969_v43 = vpop.permute.xlu1 %3430  ;;  %v10971_v47 = vpop.permute.xlu0 %3425 }
 0x382   : > { %15288 = vst [vmem:[#allocation350_spill] sm:$0xff] %v10969_v43  ;;  %15289 = vst [vmem:[#allocation351_spill] sm:$0xff] %v10971_v47  ;;  %4517 = vperm.xlu1 %9414, %v10700_v32   ;;  %4512 = vperm.xlu0 %9413, %v10703_v16   ;;  %v5004_v16 = vld [vmem:[%s9714_s14 + $0x3c] sm:$0xff]  ;;  %v5003_v32 = vld [vmem:[%s9714_s14 + $0x34] sm:$0xff] }
 0x383   : > { %v15322_v43 = vld [vmem:[#allocation9_spill] sm:$0xff]  ;;  %v15324_v47 = vld [vmem:[#allocation11_spill] sm:$0xff] }
 0x385   : > { %v10975_v63 = vpop.permute.xlu1 %3440  ;;  %v10977_v0 = vpop.permute.xlu0 %3435 }
 0x386   : > { %15290 = vst [vmem:[#allocation352_spill] sm:$0xff] %v10975_v63  ;;  %15291 = vst [vmem:[#allocation353_spill] sm:$0xff] %v10977_v0  ;;  %4542 = vperm.xlu1 %9414, %v10739_v56   ;;  %4522 = vperm.xlu0 %9413, %v10715_v55   ;;  %v5009_v55 = vld [vmem:[%s9714_s14 + $0x64] sm:$0xff] }
 0x387   : > { %v5005_v56 = vld [vmem:[%s9714_s14 + $0x44] sm:$0xff] }
 0x389   : > { %v10981_v31 = vpop.permute.xlu1 %3450  ;;  %v10983_v15 = vpop.permute.xlu0 %3445 }
 0x38a   : > { %15292 = vst [vmem:[#allocation354_spill] sm:$0xff] %v10981_v31  ;;  %15293 = vst [vmem:[#allocation355_spill] sm:$0xff] %v10983_v15  ;;  %4552 = vperm.xlu1 %9414, %v10751_v39   ;;  %4547 = vperm.xlu0 %9413, %v10736_v40   ;;  %v5011_v39 = vld [vmem:[%s9714_s14 + $0x74] sm:$0xff]  ;;  %v5010_v40 = vld [vmem:[%s9714_s14 + $0x6c] sm:$0xff] }
 0x38d   : > { %v10989_v48 = vpop.permute.xlu1 %3460  ;;  %v10991_v0 = vpop.permute.xlu0 %3455 }
 0x38e   : > { %15294 = vst [vmem:[#allocation356_spill] sm:$0xff] %v10989_v48  ;;  %15295 = vst [vmem:[#allocation357_spill] sm:$0xff] %v10991_v0  ;;  %5083 = vperm.xlu1 %9414, %v5004_v16   ;;  %5078 = vperm.xlu0 %9413, %v5003_v32   ;;  %v5007_v16 = vld [vmem:[%s9714_s14 + $0x54] sm:$0xff]  ;;  %v5006_v32 = vld [vmem:[%s9714_s14 + $0x4c] sm:$0xff] }
 0x391   : > { %v10995_v31 = vpop.permute.xlu1 %3470  ;;  %v10997_v15 = vpop.permute.xlu0 %3465 }
 0x392   : > { %15296 = vst [vmem:[#allocation358_spill] sm:$0xff] %v10995_v31  ;;  %15297 = vst [vmem:[#allocation359_spill] sm:$0xff] %v10997_v15  ;;  %5108 = vperm.xlu1 %9414, %v5009_v55   ;;  %5088 = vperm.xlu0 %9413, %v5005_v56   ;;  %v5012_v55 = vld [vmem:[%s9714_s14 + $0x7c] sm:$0xff] }
 0x393   : > { %v5008_v56 = vld [vmem:[%s9714_s14 + $0x5c] sm:$0xff] }
 0x395   : > { %v11001_v63 = vpop.permute.xlu1 %3480  ;;  %v11003_v48 = vpop.permute.xlu0 %3475 }
 0x396   : > { %15298 = vst [vmem:[#allocation360_spill] sm:$0xff] %v11001_v63  ;;  %15299 = vst [vmem:[#allocation361_spill] sm:$0xff] %v11003_v48  ;;  %5118 = vperm.xlu1 %9414, %v5011_v39   ;;  %5113 = vperm.xlu0 %9413, %v5010_v40   ;;  %v5014_v39 = vld [vmem:[%s9714_s14 + $0x8c] sm:$0xff]  ;;  %v5013_v40 = vld [vmem:[%s9714_s14 + $0x84] sm:$0xff] }
 0x399   : > { %v11007_v0 = vpop.permute.xlu1 %3490  ;;  %v11009_v31 = vpop.permute.xlu0 %3485 }
 0x39a   : > { %15300 = vst [vmem:[#allocation362_spill] sm:$0xff] %v11007_v0  ;;  %15301 = vst [vmem:[#allocation363_spill] sm:$0xff] %v11009_v31  ;;  %5098 = vperm.xlu1 %9414, %v5007_v16   ;;  %5093 = vperm.xlu0 %9413, %v5006_v32   ;;  %v3854_v16 = vld [vmem:[%s9714_s14 + $0x9a] sm:$0xff]  ;;  %v3853_v32 = vld [vmem:[%s9714_s14 + $0x92] sm:$0xff] }
 0x39d   : > { %v11013_v15 = vpop.permute.xlu1 %3500  ;;  %v11015_v63 = vpop.permute.xlu0 %3495 }
 0x39e   : > { %15302 = vst [vmem:[#allocation364_spill] sm:$0xff] %v11013_v15  ;;  %15303 = vst [vmem:[#allocation365_spill] sm:$0xff] %v11015_v63  ;;  %5123 = vperm.xlu1 %9414, %v5012_v55   ;;  %5103 = vperm.xlu0 %9413, %v5008_v56   ;;  %v3856_v55 = vld [vmem:[%s9714_s14 + $0xaa] sm:$0xff]  ;;  %v3855_v56 = vld [vmem:[%s9714_s14 + $0xa2] sm:$0xff] }
 0x39f   : > { %v15320_v63 = vld [vmem:[#allocation280_spill] sm:$0xff] }
 0x3a1   : > { %v11019_v48 = vpop.permute.xlu1 %3510  ;;  %v11021_v0 = vpop.permute.xlu0 %3505 }
 0x3a2   : > { %15304 = vst [vmem:[#allocation366_spill] sm:$0xff] %v11019_v48  ;;  %15305 = vst [vmem:[#allocation367_spill] sm:$0xff] %v11021_v0  ;;  %5133 = vperm.xlu1 %9414, %v5014_v39   ;;  %5128 = vperm.xlu0 %9413, %v5013_v40   ;;  %v11034_v48 = vld [vmem:[%s14924_s1] ss:$0 sm:$0xff] }
 0x3a3   : > { %v11042_v40 = vmul.f32 %v11034_v48, %v9780_v1  ;;  %v11064_v1 = vmul.f32 %v11034_v48, %v9794_v10  ;;  %v11269_v7 = vmul.f32 %v11034_v48, %v15335_v52  ;;  %v11289_v52 = vmul.f32 %v11034_v48, %v15345_v36  ;;  %v15355_v36 = vld [vmem:[#allocation40_spill] sm:$0xff] }
 0x3a5   : > { %v11025_v31 = vpop.permute.xlu1 %3520  ;;  %v11027_v15 = vpop.permute.xlu0 %3515  ;;  %15336 = vst [vmem:[#allocation9_spill] sm:$0xff] %v11269_v7  ;;  %15346 = vst [vmem:[#allocation15_spill] sm:$0xff] %v11289_v52  ;;  %v15347_v7 = vld [vmem:[#allocation38_spill] sm:$0xff] }
 0x3a6   : > { %15306 = vst [vmem:[#allocation368_spill] sm:$0xff] %v11025_v31  ;;  %15307 = vst [vmem:[#allocation369_spill] sm:$0xff] %v11027_v15  ;;  %3981 = vperm.xlu1 %9414, %v3854_v16   ;;  %3976 = vperm.xlu0 %9413, %v3853_v32   ;;  %v11046_v16 = vmul.f32 %v11034_v48, %v9782_v2  ;;  %v3858_v32 = vld [vmem:[%s9714_s14 + $0xba] sm:$0xff]  ;;  %v3857_v31 = vld [vmem:[%s9714_s14 + $0xb2] sm:$0xff]  ;;  %v11052_v15 = vmul.f32 %v11034_v48, %v9786_v5 }
 0x3a7   : > { %v11068_v2 = vmul.f32 %v11034_v48, %v9798_v13  ;;  %v11072_v5 = vmul.f32 %v11034_v48, %v9800_v14  ;;  %v11088_v13 = vmul.f32 %v11034_v48, %v9810_v21  ;;  %v11092_v14 = vmul.f32 %v11034_v48, %v9812_v22 }
 0x3a8   : > { %v11108_v21 = vmul.f32 %v11034_v48, %v9824_v30  ;;  %v11112_v22 = vmul.f32 %v11034_v48, %v9828_v33  ;;  %v11129_v30 = vmul.f32 %v11034_v48, %v9840_v41  ;;  %v11133_v33 = vmul.f32 %v11034_v48, %v9842_v42 }
 0x3a9   : > { %v11036_v0 = vpop.permute.xlu1 %3530  ;;  %v11038_v39 = vpop.permute.xlu0 %3525  ;;  %v11153_v42 = vmul.f32 %v11034_v48, %v9854_v50  ;;  %v11174_v50 = vmul.f32 %v11034_v48, %v9870_v61  ;;  %v11194_v61 = vmul.f32 %v11034_v48, %v9884_v12 }
 0x3aa   : > { %15308 = vst [vmem:[#allocation370_spill] sm:$0xff] %v11036_v0  ;;  %15309 = vst [vmem:[#allocation371_spill] sm:$0xff] %v11038_v39  ;;  %3991 = vperm.xlu1 %9414, %v3856_v55   ;;  %3986 = vperm.xlu0 %9413, %v3855_v56   ;;  %v11056_v0 = vmul.f32 %v11034_v48, %v9788_v6  ;;  %v11060_v55 = vmul.f32 %v11034_v48, %v9792_v9  ;;  %v15319_v39 = vld [vmem:[#allocation8_spill] sm:$0xff] }
 0x3ab   : > { %v11076_v6 = vmul.f32 %v11034_v48, %v9804_v17  ;;  %v11080_v9 = vmul.f32 %v11034_v48, %v9806_v18  ;;  %v11096_v17 = vmul.f32 %v11034_v48, %v9816_v25  ;;  %v11100_v18 = vmul.f32 %v11034_v48, %v9818_v26  ;;  %v3859_v25 = vld [vmem:[%s9714_s14 + $0xc2] sm:$0xff] }
 0x3ac   : > { %v11121_v26 = vmul.f32 %v11034_v48, %v9834_v37  ;;  %v11141_v37 = vmul.f32 %v11034_v48, %v9848_v46  ;;  %v11161_v46 = vmul.f32 %v11034_v48, %v9860_v54  ;;  %v11182_v54 = vmul.f32 %v11034_v48, %v9876_v3 }
 0x3ad   : > { %v11082_v56 = vpop.permute.xlu1 %3540  ;;  %v11084_v10 = vpop.permute.xlu0 %3535  ;;  %v11202_v3 = vmul.f32 %v11034_v48, %v9890_v20 }
 0x3ae   : > { %15310 = vst [vmem:[#allocation372_spill] sm:$0xff] %v11082_v56  ;;  %15311 = vst [vmem:[#allocation373_spill] sm:$0xff] %v11084_v10  ;;  %4001 = vperm.xlu1 %9414, %v3858_v32   ;;  %3996 = vperm.xlu0 %9413, %v3857_v31   ;;  %v11104_v10 = vmul.f32 %v11034_v48, %v9822_v29  ;;  %v11117_v31 = vmul.f32 %v11034_v48, %v9830_v34  ;;  %v15318_v56 = vld [vmem:[#allocation7_spill] sm:$0xff] }
 0x3af   : > { %v11125_v29 = vmul.f32 %v11034_v48, %v9836_v38  ;;  %v11137_v34 = vmul.f32 %v11034_v48, %v9846_v45  ;;  %v11145_v38 = vmul.f32 %v11034_v48, %v9852_v49  ;;  %v11157_v45 = vmul.f32 %v11034_v48, %v9858_v53 }
 0x3b0   : > { %v11166_v49 = vmul.f32 %v11034_v48, %v9864_v57  ;;  %v11178_v53 = vmul.f32 %v11034_v48, %v9872_v62  ;;  %v11186_v57 = vmul.f32 %v11034_v48, %v9878_v4  ;;  %v11198_v62 = vmul.f32 %v11034_v48, %v9888_v19 }
 0x3b1   : > { %v11147_v32 = vpop.permute.xlu1 %3550  ;;  %v11149_v41 = vpop.permute.xlu0 %3545  ;;  %v11206_v4 = vmul.f32 %v11034_v48, %v9894_v27  ;;  %v11222_v20 = vmul.f32 %v11034_v48, %v15318_v56  ;;  %v11226_v27 = vmul.f32 %v11034_v48, %v15319_v39  ;;  %v11240_v56 = vmul.f32 %v11034_v48, %v15324_v47 }
 0x3b2   : > { %15312 = vst [vmem:[#allocation374_spill] sm:$0xff] %v11147_v32  ;;  %15313 = vst [vmem:[#allocation375_spill] sm:$0xff] %v11149_v41  ;;  %4557 = vperm.xlu1 %9414, %v10748_v24   ;;  %4006 = vperm.xlu0 %9413, %v3859_v25   ;;  %v11170_v41 = vmul.f32 %v11034_v48, %v9866_v58  ;;  %v11190_v58 = vmul.f32 %v11034_v48, %v9882_v11  ;;  %v15314_v24 = vld [vmem:[#allocation5_spill] sm:$0xff]  ;;  %v15317_v32 = vld [vmem:[#allocation6_spill] sm:$0xff] }
 0x3b3   : > { %v11210_v11 = vmul.f32 %v11034_v48, %v15314_v24  ;;  %v11218_v19 = vmul.f32 %v11034_v48, %v15317_v32  ;;  %v15321_v24 = vld [vmem:[#allocation281_spill] sm:$0xff]  ;;  %v11244_v39 = vmul.f32 %v11034_v48, %v15325_v35  ;;  %v11261_v47 = vmul.f32 %v11034_v48, %v15331_v44 }
 0x3b4   : > { %v11265_v35 = vmul.f32 %v11034_v48, %v15333_v59  ;;  %v11281_v44 = vmul.f32 %v11034_v48, %v15341_v28  ;;  %v15351_v28 = vld [vmem:[#allocation22_spill] sm:$0xff] }
 0x3b5   : > { %v11212_v25 = vpop.permute.xlu1 %3560  ;;  %v11214_v12 = vpop.permute.xlu0 %3555  ;;  %15326 = vst [vmem:[#allocation6_spill] sm:$0xff] %v11244_v39  ;;  %15332 = vst [vmem:[#allocation280_spill] sm:$0xff] %v11261_v47  ;;  %v15356_v47 = vld [vmem:[#allocation41_spill] sm:$0xff]  ;;  %v15373_v39 = vld [vmem:[#allocation30_spill] sm:$0xff] }
 0x3b6   : > { %15315 = vst [vmem:[#allocation5_spill] sm:$0xff] %v11212_v25  ;;  %15316 = vst [vmem:[#allocation376_spill] sm:$0xff] %v11214_v12  ;;  %4567 = vperm.xlu1 %9414, %v15320_v63   ;;  %4562 = vperm.xlu0 %9413, %v15321_v24   ;;  %v11232_v25 = vmul.f32 %v11034_v48, %v15322_v43  ;;  %v15323_v12 = vld [vmem:[#allocation10_spill] sm:$0xff]  ;;  %v11249_v63 = vld [vmem:[%s14924_s1 + $0x1] ss:$0 sm:$0xff] }
 0x3b7   : > { %v11236_v32 = vmul.f32 %v11034_v48, %v15323_v12  ;;  %v15327_v24 = vld [vmem:[#allocation13_spill] sm:$0xff]  ;;  %v11257_v12 = vmul.f32 %v11034_v48, %v15329_v51  ;;  %15334 = vst [vmem:[#allocation281_spill] sm:$0xff] %v11265_v35  ;;  %v11277_v51 = vmul.f32 %v11034_v48, %v15339_v60  ;;  %15342 = vst [vmem:[#allocation12_spill] sm:$0xff] %v11281_v44  ;;  %v15349_v60 = vld [vmem:[#allocation284_spill] sm:$0xff] }
 0x3b8   : > { %v11253_v43 = vmul.f32 %v11034_v48, %v15327_v24  ;;  %v11273_v24 = vmul.f32 %v11034_v48, %v15337_v8  ;;  %v1374_v8 = vmul.f32 %v11249_v63, %v15347_v7  ;;  %v11299_v44 = vmul.f32 %v11034_v48, %v15351_v28  ;;  %v15361_v28 = vld [vmem:[#allocation26_spill] sm:$0xff] }
 0x3b9   : > { %15330 = vst [vmem:[#allocation8_spill] sm:$0xff] %v11257_v12  ;;  %15340 = vst [vmem:[#allocation11_spill] sm:$0xff] %v11277_v51  ;;  %v11283_v23 = vpop.permute.xlu1 %3570  ;;  %v11285_v59 = vpop.permute.xlu0 %3565  ;;  %v15350_v51 = vld [vmem:[#allocation285_spill] sm:$0xff]  ;;  %v1376_v52 = vmul.f32 %v11249_v63, %v15355_v36  ;;  %v1375_v7 = vmul.f32 %v11249_v63, %v15356_v47  ;;  %v15357_v12 = vld [vmem:[#allocation24_spill] sm:$0xff] }
 0x3ba   : > { %15328 = vst [vmem:[#allocation7_spill] sm:$0xff] %v11253_v43  ;;  %15338 = vst [vmem:[#allocation10_spill] sm:$0xff] %v11273_v24  ;;  %v15348_v24 = vld [vmem:[#allocation39_spill] sm:$0xff]  ;;  %4577 = vperm.xlu1 %9414, %v15349_v60   ;;  %4572 = vperm.xlu0 %9413, %v15350_v51   ;;  %v15359_v60 = vld [vmem:[#allocation25_spill] sm:$0xff] }
 0x3bb   : > { %15343 = vst [vmem:[#allocation13_spill] sm:$0xff] %v11283_v23  ;;  %15344 = vst [vmem:[#allocation14_spill] sm:$0xff] %v11285_v59  ;;  %v1373_v35 = vmul.f32 %v11249_v63, %v15348_v24  ;;  %v15353_v23 = vld [vmem:[#allocation23_spill] sm:$0xff]  ;;  %v11311_v24 = vmul.f32 %v11034_v48, %v15357_v12  ;;  %v11315_v51 = vmul.f32 %v11034_v48, %v15359_v60  ;;  %v15366_v47 = vld [vmem:[#allocation28_spill] sm:$0xff] }
 0x3bc   : > { %15352 = vst [vmem:[#allocation16_spill] sm:$0xff] %v11299_v44  ;;  %v11303_v59 = vmul.f32 %v11034_v48, %v15353_v23  ;;  %v11319_v44 = vmul.f32 %v11034_v48, %v15361_v28  ;;  %v15363_v23 = vld [vmem:[#allocation42_spill] sm:$0xff]  ;;  %v15364_v43 = vld [vmem:[#allocation27_spill] sm:$0xff]  ;;  %v11329_v12 = vmul.f32 %v11034_v48, %v15366_v47 }
 0x3bd   : > { %15358 = vst [vmem:[#allocation18_spill] sm:$0xff] %v11311_v24  ;;  %15360 = vst [vmem:[#allocation19_spill] sm:$0xff] %v11315_v51  ;;  %v11325_v36 = vmul.f32 %v11034_v48, %v15364_v43  ;;  %v15368_v24 = vld [vmem:[#allocation29_spill] sm:$0xff]  ;;  %v15370_v51 = vld [vmem:[#allocation43_spill] sm:$0xff]  ;;  %v11343_v43 = vmul.f32 %v11034_v48, %v15373_v39  ;;  %v11349_v47 = vadd.f32 %v1373_v35, %v11046_v16 }
 0x3be   : > { %15354 = vst [vmem:[#allocation17_spill] sm:$0xff] %v11303_v59  ;;  %15362 = vst [vmem:[#allocation20_spill] sm:$0xff] %v11319_v44  ;;  %v1378_v59 = vmul.f32 %v11249_v63, %v15363_v23  ;;  %v11333_v60 = vmul.f32 %v11034_v48, %v15368_v24  ;;  %v1377_v28 = vmul.f32 %v11249_v63, %v15370_v51  ;;  %v11337_v44 = vpop.permute.xlu1 %3580  ;;  %v11339_v23 = vpop.permute.xlu0 %3575  ;;  %v15378_v24 = vld [vmem:[#allocation289_spill] sm:$0xff]  ;;  %v15384_v35 = vld [vmem:[#allocation46_spill] sm:$0xff] }
 0x3bf   : > { %15365 = vst [vmem:[#allocation21_spill] sm:$0xff] %v11325_v36  ;;  %15367 = vst [vmem:[#allocation38_spill] sm:$0xff] %v11329_v12  ;;  %v11346_v36 = vadd.f32 %v1374_v8, %v11056_v0  ;;  %v15377_v12 = vld [vmem:[#allocation288_spill] sm:$0xff]  ;;  %4582 = vperm.xlu0 %9413, %v15378_v24   ;;  %v11354_v51 = vadd.f32 %v1376_v52, %v11052_v15  ;;  %v15382_v39 = vld [vmem:[#allocation45_spill] sm:$0xff] }
 0x3c0   : > { %15369 = vst [vmem:[#allocation39_spill] sm:$0xff] %v11333_v60  ;;  %15371 = vst [vmem:[#allocation284_spill] sm:$0xff] %v11337_v44  ;;  %4587 = vperm.xlu1 %9414, %v15377_v12   ;;  %v11357_v44 = vadd.f32 %v1375_v7, %v11042_v40  ;;  %v1379_v0 = vmul.f32 %v11249_v63, %v15382_v39  ;;  %v5016_v8 = vld [vmem:[%s9714_s14 + $0x9c] sm:$0xff]  ;;  %v11366_v16 = vadd.f32 %v1378_v59, %v11060_v55  ;;  %v15386_v52 = vld [vmem:[#allocation48_spill] sm:$0xff] }
 0x3c1   : > { %15372 = vst [vmem:[#allocation285_spill] sm:$0xff] %v11339_v23  ;;  %15374 = vst [vmem:[#allocation22_spill] sm:$0xff] %v11343_v43  ;;  %v15381_v23 = vld [vmem:[#allocation44_spill] sm:$0xff]  ;;  %v5015_v43 = vld [vmem:[%s9714_s14 + $0x94] sm:$0xff]  ;;  %v1382_v12 = vmul.f32 %v11249_v63, %v15384_v35  ;;  %v1384_v40 = vmul.f32 %v11249_v63, %v15386_v52  ;;  %v11375_v7 = vadd.f32 %v1377_v28, %v11064_v1 }
 0x3c2   : > { %15375 = vst [vmem:[#allocation23_spill] sm:$0xff] %v11346_v36  ;;  %15376 = vst [vmem:[#allocation40_spill] sm:$0xff] %v11349_v47  ;;  %v1380_v48 = vmul.f32 %v11249_v63, %v15381_v23  ;;  %v15385_v24 = vld [vmem:[#allocation47_spill] sm:$0xff]  ;;  %v15388_v23 = vld [vmem:[#allocation49_spill] sm:$0xff] }
 0x3c3   : > { %15379 = vst [vmem:[#allocation41_spill] sm:$0xff] %v11354_v51  ;;  %15380 = vst [vmem:[#allocation24_spill] sm:$0xff] %v11357_v44  ;;  %v1381_v15 = vmul.f32 %v11249_v63, %v15385_v24  ;;  %v1383_v39 = vmul.f32 %v11249_v63, %v15388_v23  ;;  %v15389_v44 = vld [vmem:[#allocation50_spill] sm:$0xff]  ;;  %v15390_v59 = vld [vmem:[#allocation51_spill] sm:$0xff]  ;;  %v11385_v24 = vpop.permute.xlu0 %3585  ;;  %5138 = vperm.xlu0 %9413, %v5015_v43   ;;  %v11397_v23 = vadd.f32 %v1379_v0, %v11072_v5 }
 0x3c4   : > { %15383 = vst [vmem:[#allocation25_spill] sm:$0xff] %v11366_v16  ;;  %15387 = vst [vmem:[#allocation26_spill] sm:$0xff] %v11375_v7  ;;  %v1386_v55 = vmul.f32 %v11249_v63, %v15389_v44  ;;  %v1385_v35 = vmul.f32 %v11249_v63, %v15390_v59  ;;  %v11383_v16 = vpop.permute.xlu1 %3590  ;;  %v15393_v51 = vld [vmem:[#allocation52_spill] sm:$0xff]  ;;  %v15394_v47 = vld [vmem:[#allocation53_spill] sm:$0xff]  ;;  %5143 = vperm.xlu1 %9414, %v5016_v8   ;;  %v11394_v44 = vadd.f32 %v1380_v48, %v11068_v2 }
 0x3c5   : > { %15391 = vst [vmem:[#allocation42_spill] sm:$0xff] %v11383_v16  ;;  %15392 = vst [vmem:[#allocation27_spill] sm:$0xff] %v11385_v24  ;;  %v1388_v52 = vmul.f32 %v11249_v63, %v15393_v51  ;;  %v1387_v1 = vmul.f32 %v11249_v63, %v15394_v47  ;;  %v15395_v28 = vld [vmem:[#allocation54_spill] sm:$0xff]  ;;  %v15396_v59 = vld [vmem:[#allocation55_spill] sm:$0xff]  ;;  %v11406_v47 = vadd.f32 %v1382_v12, %v11076_v6 }
 0x3c6   : > { %v1390_v7 = vmul.f32 %v11249_v63, %v15395_v28  ;;  %v1389_v24 = vmul.f32 %v11249_v63, %v15396_v59  ;;  %v15397_v16 = vld [vmem:[#allocation56_spill] sm:$0xff]  ;;  %v11409_v8 = vadd.f32 %v1381_v15, %v11080_v9  ;;  %v11412_v2 = vadd.f32 %v1384_v40, %v11088_v13  ;;  %v15398_v43 = vld [vmem:[#allocation57_spill] sm:$0xff] }
 0x3c7   : > { %v1392_v51 = vmul.f32 %v11249_v63, %v15397_v16  ;;  %v5018_v36 = vld [vmem:[%s9714_s14 + $0xac] sm:$0xff]  ;;  %v5017_v60 = vld [vmem:[%s9714_s14 + $0xa4] sm:$0xff]  ;;  %v1391_v5 = vmul.f32 %v11249_v63, %v15398_v43  ;;  %v11417_v48 = vadd.f32 %v1383_v39, %v11092_v14  ;;  %v11420_v0 = vadd.f32 %v1386_v55, %v11096_v17  ;;  %v15399_v16 = vld [vmem:[#allocation58_spill] sm:$0xff]  ;;  %v11429_v13 = vpop.permute.xlu0 %3595 }
 0x3c8   : > { %v11423_v6 = vadd.f32 %v1385_v35, %v11100_v18  ;;  %v1394_v9 = vmul.f32 %v11249_v63, %v15399_v16  ;;  %v11427_v12 = vpop.permute.xlu1 %3600  ;;  %15401 = vst [vmem:[#allocation29_spill] sm:$0xff] %v11429_v13  ;;  %v11432_v15 = vadd.f32 %v1388_v52, %v11104_v10  ;;  %v11435_v14 = vadd.f32 %v1387_v1, %v11108_v21  ;;  %v15402_v39 = vld [vmem:[#allocation59_spill] sm:$0xff]  ;;  %v15403_v35 = vld [vmem:[#allocation60_spill] sm:$0xff]  ;;  %v5019_v21 = vld [vmem:[%s9714_s14 + $0xb4] sm:$0xff] }
 0x3c9   : > { %15400 = vst [vmem:[#allocation28_spill] sm:$0xff] %v11427_v12  ;;  %v11438_v40 = vadd.f32 %v1390_v7, %v11112_v22  ;;  %5153 = vperm.xlu1 %9414, %v5018_v36   ;;  %5148 = vperm.xlu0 %9413, %v5017_v60   ;;  %v11441_v17 = vadd.f32 %v1389_v24, %v11117_v31  ;;  %v5020_v52 = vld [vmem:[%s9714_s14 + $0xbc] sm:$0xff]  ;;  %v15404_v22 = vld [vmem:[#allocation61_spill] sm:$0xff]  ;;  %v15407_v28 = vld [vmem:[#allocation64_spill] sm:$0xff] }
 0x3ca   : > { %v11444_v18 = vadd.f32 %v1392_v51, %v11121_v26  ;;  %v1393_v55 = vmul.f32 %v11249_v63, %v15402_v39  ;;  %v1396_v10 = vmul.f32 %v11249_v63, %v15403_v35  ;;  %v11453_v1 = vadd.f32 %v1391_v5, %v11125_v29  ;;  %v15405_v60 = vld [vmem:[#allocation62_spill] sm:$0xff]  ;;  %v15406_v7 = vld [vmem:[#allocation63_spill] sm:$0xff]  ;;  %v15408_v51 = vld [vmem:[#allocation65_spill] sm:$0xff] }
 0x3cb   : > { %v1395_v36 = vmul.f32 %v11249_v63, %v15404_v22  ;;  %v1398_v31 = vmul.f32 %v11249_v63, %v15405_v60  ;;  %v1397_v26 = vmul.f32 %v11249_v63, %v15406_v7  ;;  %v11462_v24 = vadd.f32 %v1394_v9, %v11129_v30  ;;  %v15409_v43 = vld [vmem:[#allocation66_spill] sm:$0xff]  ;;  %v11472_v39 = vpop.permute.xlu0 %3605  ;;  %v15412_v35 = vld [vmem:[#allocation67_spill] sm:$0xff]  ;;  %v15413_v60 = vld [vmem:[#allocation68_spill] sm:$0xff] }
 0x3cc   : > { %v1400_v59 = vmul.f32 %v11249_v63, %v15407_v28  ;;  %v1399_v29 = vmul.f32 %v11249_v63, %v15408_v51  ;;  %v1402_v5 = vmul.f32 %v11249_v63, %v15409_v43  ;;  %v11470_v16 = vpop.permute.xlu1 %3610  ;;  %15411 = vst [vmem:[#allocation30_spill] sm:$0xff] %v11472_v39  ;;  %v1401_v22 = vmul.f32 %v11249_v63, %v15412_v35  ;;  %v15414_v9 = vld [vmem:[#allocation69_spill] sm:$0xff]  ;;  %v15415_v43 = vld [vmem:[#allocation70_spill] sm:$0xff]  ;;  %v5021_v12 = vld [vmem:[%s9714_s14 + $0xc4] sm:$0xff] }
 0x3cd   : > { %15410 = vst [vmem:[#allocation43_spill] sm:$0xff] %v11470_v16  ;;  %v1404_v30 = vmul.f32 %v11249_v63, %v15413_v60  ;;  %v1403_v7 = vmul.f32 %v11249_v63, %v15414_v9  ;;  %5163 = vperm.xlu1 %9414, %v5020_v52   ;;  %5158 = vperm.xlu0 %9413, %v5019_v21   ;;  %v15416_v16 = vld [vmem:[#allocation71_spill] sm:$0xff]  ;;  %v3860_v13 = vld [vmem:[%s9714_s14 + $0xca] sm:$0xff] }
 0x3ce   : > { %v11481_v28 = vadd.f32 %v1393_v55, %v11133_v33  ;;  %v11484_v51 = vadd.f32 %v1396_v10, %v11137_v34  ;;  %v1406_v39 = vmul.f32 %v11249_v63, %v15415_v43  ;;  %v1405_v35 = vmul.f32 %v11249_v63, %v15416_v16  ;;  %v15417_v55 = vld [vmem:[#allocation72_spill] sm:$0xff]  ;;  %v15428_v16 = vld [vmem:[#allocation75_spill] sm:$0xff] }
 0x3cf   : > { %v11493_v60 = vadd.f32 %v1395_v36, %v11141_v37  ;;  %v11496_v52 = vadd.f32 %v1398_v31, %v11145_v38  ;;  %v11499_v33 = vadd.f32 %v1397_v26, %v11153_v42  ;;  %v1408_v34 = vmul.f32 %v11249_v63, %v15417_v55  ;;  %v15419_v36 = vld [vmem:[#allocation73_spill] sm:$0xff]  ;;  %v11516_v42 = vpop.permute.xlu0 %3615 }
 0x3d0   : > { %v11504_v10 = vadd.f32 %v1400_v59, %v11157_v45  ;;  %v11507_v21 = vadd.f32 %v1399_v29, %v11161_v46  ;;  %v11510_v37 = vadd.f32 %v1402_v5, %v11166_v49  ;;  %v1407_v38 = vmul.f32 %v11249_v63, %v15419_v36  ;;  %v11514_v31 = vpop.permute.xlu1 %3620  ;;  %15421 = vst [vmem:[#allocation44_spill] sm:$0xff] %v11516_v42  ;;  %v15427_v29 = vld [vmem:[#allocation74_spill] sm:$0xff]  ;;  %v15436_v55 = vld [vmem:[#allocation81_spill] sm:$0xff] }
 0x3d1   : > { %15420 = vst [vmem:[#allocation289_spill] sm:$0xff] %v11514_v31  ;;  %v11519_v26 = vadd.f32 %v1401_v22, %v11170_v41  ;;  %v11522_v45 = vadd.f32 %v1404_v30, %v11174_v50  ;;  %v11525_v59 = vadd.f32 %v1403_v7, %v11178_v53  ;;  %4011 = vperm.xlu1 %9414, %v3860_v13   ;;  %v3862_v22 = vld [vmem:[%s9714_s14 + $0xda] sm:$0xff]  ;;  %v3861_v50 = vld [vmem:[%s9714_s14 + $0xd2] sm:$0xff]  ;;  %v15430_v53 = vld [vmem:[#allocation76_spill] sm:$0xff] }
 0x3d2   : > { %15418 = vst [vmem:[#allocation288_spill] sm:$0xff] %v11510_v37  ;;  %5168 = vperm.xlu0 %9413, %v5021_v12   ;;  %v11528_v46 = vadd.f32 %v1406_v39, %v11182_v54  ;;  %v11531_v49 = vadd.f32 %v1405_v35, %v11186_v57  ;;  %v1410_v5 = vmul.f32 %v11249_v63, %v15427_v29  ;;  %v15431_v13 = vld [vmem:[#allocation77_spill] sm:$0xff]  ;;  %v15432_v39 = vld [vmem:[#allocation78_spill] sm:$0xff]  ;;  %v15434_v7 = vld [vmem:[#allocation79_spill] sm:$0xff] }
 0x3d3   : > { %15422 = vst [vmem:[#allocation45_spill] sm:$0xff] %v11519_v26  ;;  %15423 = vst [vmem:[#allocation46_spill] sm:$0xff] %v11522_v45  ;;  %v1409_v41 = vmul.f32 %v11249_v63, %v15428_v16  ;;  %v11540_v30 = vadd.f32 %v1408_v34, %v11190_v58  ;;  %v1412_v12 = vmul.f32 %v11249_v63, %v15430_v53  ;;  %v15435_v35 = vld [vmem:[#allocation80_spill] sm:$0xff]  ;;  %v11559_v29 = vpop.permute.xlu0 %3625  ;;  %v15439_v16 = vld [vmem:[#allocation82_spill] sm:$0xff] }
 0x3d4   : > { %15424 = vst [vmem:[#allocation47_spill] sm:$0xff] %v11525_v59  ;;  %15425 = vst [vmem:[#allocation48_spill] sm:$0xff] %v11528_v46  ;;  %v1411_v54 = vmul.f32 %v11249_v63, %v15431_v13  ;;  %v1414_v57 = vmul.f32 %v11249_v63, %v15432_v39  ;;  %v11549_v9 = vadd.f32 %v1407_v38, %v11194_v61  ;;  %v11557_v36 = vpop.permute.xlu1 %3630  ;;  %v15440_v13 = vld [vmem:[#allocation83_spill] sm:$0xff]  ;;  %v15441_v38 = vld [vmem:[#allocation84_spill] sm:$0xff] }
 0x3d5   : > { %15426 = vst [vmem:[#allocation49_spill] sm:$0xff] %v11531_v49  ;;  %15429 = vst [vmem:[#allocation50_spill] sm:$0xff] %v11540_v30  ;;  %v1413_v43 = vmul.f32 %v11249_v63, %v15434_v7  ;;  %v1416_v58 = vmul.f32 %v11249_v63, %v15435_v35  ;;  %v1415_v34 = vmul.f32 %v11249_v63, %v15436_v55  ;;  %4021 = vperm.xlu1 %9414, %v3862_v22   ;;  %v15444_v55 = vld [vmem:[#allocation85_spill] sm:$0xff]  ;;  %v3867_v31 = vld [vmem:[%s9714_s14 + $0x102] sm:$0xff] }
 0x3d6   : > { %15433 = vst [vmem:[#allocation51_spill] sm:$0xff] %v11549_v9  ;;  %15437 = vst [vmem:[#allocation52_spill] sm:$0xff] %v11557_v36  ;;  %v1418_v53 = vmul.f32 %v11249_v63, %v15439_v16  ;;  %v1417_v61 = vmul.f32 %v11249_v63, %v15440_v13  ;;  %v1420_v39 = vmul.f32 %v11249_v63, %v15441_v38  ;;  %4016 = vperm.xlu0 %9413, %v3861_v50   ;;  %v15445_v36 = vld [vmem:[#allocation86_spill] sm:$0xff]  ;;  %v15538_v30 = vld [vmem:[#allocation136_spill] sm:$0xff] }
 0x3d7   : > { %15438 = vst [vmem:[#allocation53_spill] sm:$0xff] %v11559_v29  ;;  %v11568_v7 = vadd.f32 %v1410_v5, %v11198_v62  ;;  %v11571_v35 = vadd.f32 %v1409_v41, %v11202_v3  ;;  %v1419_v29 = vmul.f32 %v11249_v63, %v15444_v55  ;;  %v1422_v16 = vmul.f32 %v11249_v63, %v15445_v36  ;;  %v3866_v42 = vld [vmem:[%s9714_s14 + $0xfa] sm:$0xff]  ;;  %v9415_v3 = vld [vmem:[%s14926_s3 + $0x8] sm:$0xff]   ;;  %v11605_v50 = vpop.permute.xlu0 %3635  ;;  %v15539_v46 = vld [vmem:[#allocation137_spill] sm:$0xff] }
 0x3d8   : > { %v11580_v13 = vadd.f32 %v1412_v12, %v11206_v4  ;;  %v11583_v22 = vadd.f32 %v1411_v54, %v11210_v11  ;;  %v11586_v62 = vadd.f32 %v1414_v57, %v11218_v19  ;;  %v9416_v5 = vld [vmem:[%s14926_s3] sm:$0xff]   ;;  %v11595_v41 = vadd.f32 %v1413_v43, %v11222_v20  ;;  %v11603_v19 = vpop.permute.xlu1 %3640  ;;  %15453 = vst [vmem:[#allocation63_spill] sm:$0xff] %v11605_v50  ;;  %v3864_v55 = vld [vmem:[%s9714_s14 + $0xea] sm:$0xff] }
 0x3d9   : > { %15442 = vst [vmem:[#allocation54_spill] sm:$0xff] %v11568_v7  ;;  %15443 = vst [vmem:[#allocation55_spill] sm:$0xff] %v11571_v35  ;;  %v11598_v4 = vadd.f32 %v1416_v58, %v11226_v27  ;;  %v11601_v11 = vadd.f32 %v1415_v34, %v11232_v25  ;;  %v14939_v12 = vmov 0.0   ;;  %v11610_v20 = vadd.f32 %v1418_v53, %v11236_v32  ;;  %v15456_v27 = vld [vmem:[#allocation6_spill] sm:$0xff]  ;;  %4046 = vperm.xlu1 %9414, %v3867_v31   ;;  %v15458_v25 = vld [vmem:[#allocation7_spill] sm:$0xff] }
 0x3da   : > { %15446 = vst [vmem:[#allocation56_spill] sm:$0xff] %v11580_v13  ;;  %15447 = vst [vmem:[#allocation57_spill] sm:$0xff] %v11583_v22  ;;  %9077 = vmatprep.subr.bf16.mxu0 %v14939_v12  ;;  %9107 = vmatprep.subr.bf16.mxu1 %v14939_v12  ;;  %v11613_v54 = vadd.f32 %v1417_v61, %v11240_v56  ;;  %v11616_v57 = vadd.f32 %v1420_v39, %v15456_v27  ;;  %v15460_v58 = vld [vmem:[#allocation8_spill] sm:$0xff]  ;;  %v15462_v36 = vld [vmem:[#allocation87_spill] sm:$0xff] }
 0x3db   : > { %15448 = vst [vmem:[#allocation58_spill] sm:$0xff] %v11586_v62  ;;  %15449 = vst [vmem:[#allocation59_spill] sm:$0xff] %v11595_v41  ;;  %4041 = vperm.xlu0 %9413, %v3866_v42   ;;  %v11619_v43 = vadd.f32 %v1419_v29, %v15458_v25  ;;  %v11622_v34 = vadd.f32 %v1422_v16, %v15460_v58  ;;  %v1421_v38 = vmul.f32 %v11249_v63, %v15462_v36  ;;  %v3863_v32 = vld [vmem:[%s9714_s14 + $0xe2] sm:$0xff]  ;;  %v15464_v61 = vld [vmem:[#allocation89_spill] sm:$0xff]  ;;  %v11646_v36 = vpop.permute.xlu0 %3916 }
 0x3dc   : > { %15450 = vst [vmem:[#allocation60_spill] sm:$0xff] %v11598_v4  ;;  %15451 = vst [vmem:[#allocation61_spill] sm:$0xff] %v11601_v11  ;;  %9078 = vmatpush3.bf16.msra.mxu0 %v9415_v3  ;;  %9108 = vmatpush3.bf16.msra.mxu1 %v9416_v5  ;;  %v15463_v56 = vld [vmem:[#allocation88_spill] sm:$0xff]  ;;  %v1423_v31 = vmul.f32 %v11249_v63, %v15464_v61  ;;  %v15465_v42 = vld [vmem:[#allocation90_spill] sm:$0xff]  ;;  %v11644_v58 = vpop.permute.xlu1 %3921 }
 0x3dd   : > { %15452 = vst [vmem:[#allocation62_spill] sm:$0xff] %v11603_v19  ;;  %15454 = vst [vmem:[#allocation64_spill] sm:$0xff] %v11610_v20  ;;  %v1424_v53 = vmul.f32 %v11249_v63, %v15463_v56  ;;  %v1426_v29 = vmul.f32 %v11249_v63, %v15465_v42  ;;  %9079 = vmatprep.mubr.msk.bf16.mxu0 %vm9649_vm0, %v14939_v12  ;;  %9109 = vmatprep.mubr.msk.bf16.mxu1 %vm9649_vm0, %v14939_v12  ;;  %v15466_v39 = vld [vmem:[#allocation91_spill] sm:$0xff]  ;;  %v15467_v3 = vld [vmem:[#allocation92_spill] sm:$0xff] }
 0x3de   : > { %15455 = vst [vmem:[#allocation65_spill] sm:$0xff] %v11613_v54  ;;  %15457 = vst [vmem:[#allocation66_spill] sm:$0xff] %v11616_v57  ;;  %v1425_v16 = vmul.f32 %v11249_v63, %v15466_v39  ;;  %v1428_v5 = vmul.f32 %v11249_v63, %v15467_v3  ;;  %v15468_v27 = vld [vmem:[#allocation93_spill] sm:$0xff]  ;;  %9137 = vmatprep.subr.bf16.mxu0 %v14939_v12  ;;  %9167 = vmatprep.subr.bf16.mxu1 %v14939_v12  ;;  %v15469_v56 = vld [vmem:[#allocation94_spill] sm:$0xff] }
 0x3df   : > { %15459 = vst [vmem:[#allocation67_spill] sm:$0xff] %v11619_v43  ;;  %15461 = vst [vmem:[#allocation68_spill] sm:$0xff] %v11622_v34  ;;  %v1427_v25 = vmul.f32 %v11249_v63, %v15468_v27  ;;  %v1430_v61 = vmul.f32 %v11249_v63, %v15469_v56  ;;  %v15470_v42 = vld [vmem:[#allocation95_spill] sm:$0xff]  ;;  %v15471_v3 = vld [vmem:[#allocation96_spill] sm:$0xff]  ;;  %4031 = vperm.xlu1 %9414, %v3864_v55   ;;  %4026 = vperm.xlu0 %9413, %v3863_v32  }
 0x3e0   : > { %v1429_v39 = vmul.f32 %v11249_v63, %v15470_v42  ;;  %v1432_v50 = vmul.f32 %v11249_v63, %v15471_v3  ;;  %v11659_v27 = vld [vmem:[%s14924_s1 + $0x2] ss:$0 sm:$0xff]  ;;  %v15472_v19 = vld [vmem:[#allocation280_spill] sm:$0xff]  ;;  %v15474_v12 = vld [vmem:[#allocation97_spill] sm:$0xff] }
 0x3e1   : > { %v11662_v34 = vadd.f32 %v1421_v38, %v15472_v19  ;;  %v1431_v43 = vmul.f32 %v11249_v63, %v15474_v12  ;;  %v15475_v56 = vld [vmem:[#allocation98_spill] sm:$0xff]  ;;  %v15476_v42 = vld [vmem:[#allocation99_spill] sm:$0xff]  ;;  %v15477_v11 = vld [vmem:[#allocation281_spill] sm:$0xff]  ;;  %v1981_v49 = vmul.f32 %v11659_v27, %v15538_v30 }
 0x3e2   : > { %v1434_v57 = vmul.f32 %v11249_v63, %v15475_v56  ;;  %v1433_v54 = vmul.f32 %v11249_v63, %v15476_v42  ;;  %v3869_v3 = vld [vmem:[%s9714_s14 + $0x112] sm:$0xff]  ;;  %v11673_v4 = vadd.f32 %v1424_v53, %v15477_v11  ;;  %v15486_v62 = vld [vmem:[#allocation12_spill] sm:$0xff]  ;;  %v15488_v22 = vld [vmem:[#allocation15_spill] sm:$0xff] }
 0x3e3   : > { %15473 = vst [vmem:[#allocation69_spill] sm:$0xff] %v11662_v34  ;;  %v3865_v20 = vld [vmem:[%s9714_s14 + $0xf2] sm:$0xff]  ;;  %v15484_v34 = vld [vmem:[#allocation11_spill] sm:$0xff]  ;;  %v11687_v42 = vadd.f32 %v1428_v5, %v15486_v62  ;;  %v11690_v11 = vadd.f32 %v1427_v25, %v15488_v22  ;;  %4056 = vperm.xlu1 %9414, %v3869_v3   ;;  %v15499_v5 = vld [vmem:[#allocation20_spill] sm:$0xff] }
 0x3e4   : > { %15478 = vst [vmem:[#allocation70_spill] sm:$0xff] %v11673_v4  ;;  %v15479_v41 = vld [vmem:[#allocation9_spill] sm:$0xff]  ;;  %v15481_v32 = vld [vmem:[#allocation10_spill] sm:$0xff]  ;;  %v11684_v56 = vadd.f32 %v1425_v16, %v15484_v34  ;;  %4036 = vperm.xlu0 %9413, %v3865_v20   ;;  %v15497_v22 = vld [vmem:[#allocation19_spill] sm:$0xff]  ;;  %v11711_v25 = vadd.f32 %v1434_v57, %v15499_v5 }
 0x3e5   : > { %v11676_v55 = vadd.f32 %v1423_v31, %v15479_v41  ;;  %v11679_v19 = vadd.f32 %v1426_v29, %v15481_v32  ;;  %v15483_v38 = vld [vmem:[#allocation101_spill] sm:$0xff]  ;;  %15487 = vst [vmem:[#allocation74_spill] sm:$0xff] %v11687_v42  ;;  %15489 = vst [vmem:[#allocation75_spill] sm:$0xff] %v11690_v11  ;;  %v15490_v53 = vld [vmem:[#allocation110_spill] sm:$0xff]  ;;  %v11694_v31 = vpop.permute.xlu1 %3946  ;;  %v11696_v29 = vpop.permute.xlu0 %3926  ;;  %v11708_v62 = vadd.f32 %v1431_v43, %v15497_v22 }
 0x3e6   : > { %v1435_v12 = vmul.f32 %v11249_v63, %v15483_v38  ;;  %15485 = vst [vmem:[#allocation73_spill] sm:$0xff] %v11684_v56  ;;  %v1955_v41 = vmul.f32 %v11659_v27, %v15490_v53  ;;  %v15491_v32 = vld [vmem:[#allocation16_spill] sm:$0xff]  ;;  %v15495_v16 = vld [vmem:[#allocation18_spill] sm:$0xff]  ;;  %15500 = vst [vmem:[#allocation80_spill] sm:$0xff] %v11711_v25 }
 0x3e7   : > { %15480 = vst [vmem:[#allocation71_spill] sm:$0xff] %v11676_v55  ;;  %15482 = vst [vmem:[#allocation72_spill] sm:$0xff] %v11679_v19  ;;  %v11699_v38 = vadd.f32 %v1430_v61, %v15491_v32  ;;  %v15493_v19 = vld [vmem:[#allocation17_spill] sm:$0xff]  ;;  %v11705_v56 = vadd.f32 %v1432_v50, %v15495_v16  ;;  %v15503_v42 = vld [vmem:[#allocation111_spill] sm:$0xff] }
 0x3e8   : > { %v11702_v34 = vadd.f32 %v1429_v39, %v15493_v19  ;;  %15498 = vst [vmem:[#allocation79_spill] sm:$0xff] %v11708_v62  ;;  %v15501_v53 = vld [vmem:[#allocation21_spill] sm:$0xff]  ;;  %v1954_v61 = vmul.f32 %v11659_v27, %v15503_v42  ;;  %v3870_v39 = vld [vmem:[%s9714_s14 + $0x11a] sm:$0xff]  ;;  %v15504_v19 = vld [vmem:[#allocation100_spill] sm:$0xff] }
 0x3e9   : > { %15492 = vst [vmem:[#allocation76_spill] sm:$0xff] %v11699_v38  ;;  %15496 = vst [vmem:[#allocation78_spill] sm:$0xff] %v11705_v56  ;;  %v11714_v11 = vadd.f32 %v1433_v54, %v15501_v53  ;;  %v4441_v32 = vld [vmem:[%s9714_s14 + $0xcb] sm:$0xff]  ;;  %v11722_v50 = vmul.f32 %v11249_v63, %v15504_v19  ;;  %v15506_v3 = vld [vmem:[#allocation39_spill] sm:$0xff]  ;;  %4061 = vperm.xlu0 %9413, %v3870_v39  }
 0x3ea   : > { %15494 = vst [vmem:[#allocation77_spill] sm:$0xff] %v11702_v34  ;;  %v11725_v20 = vadd.f32 %v1435_v12, %v15506_v3  ;;  %v15508_v43 = vld [vmem:[#allocation112_spill] sm:$0xff]  ;;  %v15509_v57 = vld [vmem:[#allocation113_spill] sm:$0xff]  ;;  %v15510_v54 = vld [vmem:[#allocation23_spill] sm:$0xff]  ;;  %v11740_v3 = vpop.permute.xlu1 %3956  ;;  %4592 = vperm.xlu1 %9414, %v4441_v32  }
 0x3eb   : > { %15502 = vst [vmem:[#allocation81_spill] sm:$0xff] %v11714_v11  ;;  %15505 = vst [vmem:[#allocation82_spill] sm:$0xff] %v11722_v50  ;;  %v1957_v16 = vmul.f32 %v11659_v27, %v15508_v43  ;;  %v1956_v22 = vmul.f32 %v11659_v27, %v15509_v57  ;;  %v11732_v5 = vadd.f32 %v1955_v41, %v15510_v54  ;;  %v15511_v42 = vld [vmem:[#allocation114_spill] sm:$0xff]  ;;  %v15512_v11 = vld [vmem:[#allocation115_spill] sm:$0xff]  ;;  %v11742_v43 = vpop.permute.xlu0 %3951 }
 0x3ec   : > { %15507 = vst [vmem:[#allocation83_spill] sm:$0xff] %v11725_v20  ;;  %v1959_v53 = vmul.f32 %v11659_v27, %v15511_v42  ;;  %v1958_v63 = vmul.f32 %v11659_v27, %v15512_v11  ;;  %v15513_v19 = vld [vmem:[#allocation116_spill] sm:$0xff]  ;;  %v15514_v50 = vld [vmem:[#allocation117_spill] sm:$0xff]  ;;  %v15515_v20 = vld [vmem:[#allocation118_spill] sm:$0xff] }
 0x3ed   : > { %v1961_v12 = vmul.f32 %v11659_v27, %v15513_v19  ;;  %v1960_v57 = vmul.f32 %v11659_v27, %v15514_v50  ;;  %v1963_v41 = vmul.f32 %v11659_v27, %v15515_v20  ;;  %v15516_v54 = vld [vmem:[#allocation119_spill] sm:$0xff]  ;;  %v15517_v42 = vld [vmem:[#allocation40_spill] sm:$0xff]  ;;  %v15519_v56 = vld [vmem:[#allocation121_spill] sm:$0xff] }
 0x3ee   : > { %v1962_v25 = vmul.f32 %v11659_v27, %v15516_v54  ;;  %v11751_v11 = vadd.f32 %v1954_v61, %v15517_v42  ;;  %v15518_v62 = vld [vmem:[#allocation120_spill] sm:$0xff]  ;;  %v1964_v34 = vmul.f32 %v11659_v27, %v15519_v56  ;;  %v15520_v38 = vld [vmem:[#allocation122_spill] sm:$0xff]  ;;  %v15521_v20 = vld [vmem:[#allocation41_spill] sm:$0xff] }
 0x3ef   : > { %v1965_v19 = vmul.f32 %v11659_v27, %v15518_v62  ;;  %v1967_v50 = vmul.f32 %v11659_v27, %v15520_v38  ;;  %v4443_v55 = vld [vmem:[%s9714_s14 + $0xdb] sm:$0xff]  ;;  %v4442_v4 = vld [vmem:[%s9714_s14 + $0xd3] sm:$0xff]  ;;  %v11762_v13 = vadd.f32 %v1957_v16, %v15521_v20  ;;  %v15522_v54 = vld [vmem:[#allocation24_spill] sm:$0xff]  ;;  %v11778_v16 = vadd.f32 %v1961_v12, %v11394_v44 }
 0x3f0   : > { %v11765_v32 = vadd.f32 %v1956_v22, %v15522_v54  ;;  %v15523_v39 = vld [vmem:[#allocation123_spill] sm:$0xff]  ;;  %v15524_v42 = vld [vmem:[#allocation124_spill] sm:$0xff]  ;;  %v15525_v35 = vld [vmem:[#allocation25_spill] sm:$0xff]  ;;  %v11782_v54 = vpop.permute.xlu1 %3936  ;;  %4602 = vperm.xlu1 %9414, %v4443_v55   ;;  %4597 = vperm.xlu0 %9413, %v4442_v4  }
 0x3f1   : > { %v1966_v61 = vmul.f32 %v11659_v27, %v15523_v39  ;;  %v1969_v62 = vmul.f32 %v11659_v27, %v15524_v42  ;;  %v11772_v56 = vadd.f32 %v1959_v53, %v15525_v35  ;;  %v15526_v7 = vld [vmem:[#allocation26_spill] sm:$0xff]  ;;  %v15527_v20 = vld [vmem:[#allocation125_spill] sm:$0xff]  ;;  %v11784_v39 = vpop.permute.xlu0 %3931  ;;  %v11787_v42 = vadd.f32 %v1960_v57, %v11397_v23  ;;  %v4448_v57 = vld [vmem:[%s9714_s14 + $0x103] sm:$0xff] }
 0x3f2   : > { %v11775_v38 = vadd.f32 %v1958_v63, %v15526_v7  ;;  %v1968_v22 = vmul.f32 %v11659_v27, %v15527_v20  ;;  %v11790_v35 = vadd.f32 %v1963_v41, %v11406_v47  ;;  %v11793_v53 = vadd.f32 %v1962_v25, %v11409_v8  ;;  %v15528_v12 = vld [vmem:[#allocation126_spill] sm:$0xff]  ;;  %v15529_v4 = vld [vmem:[#allocation127_spill] sm:$0xff]  ;;  %v15530_v55 = vld [vmem:[#allocation128_spill] sm:$0xff] }
 0x3f3   : > { %v11796_v44 = vadd.f32 %v1965_v19, %v11412_v2  ;;  %v11799_v7 = vadd.f32 %v1964_v34, %v11417_v48  ;;  %v11802_v63 = vadd.f32 %v1967_v50, %v11420_v0  ;;  %v1971_v23 = vmul.f32 %v11659_v27, %v15528_v12  ;;  %v4447_v47 = vld [vmem:[%s9714_s14 + $0xfb] sm:$0xff]  ;;  %v15531_v34 = vld [vmem:[#allocation129_spill] sm:$0xff]  ;;  %v15534_v20 = vld [vmem:[#allocation132_spill] sm:$0xff] }
 0x3f4   : > { %v11809_v41 = vadd.f32 %v1966_v61, %v11423_v6  ;;  %v11812_v8 = vadd.f32 %v1969_v62, %v11432_v15  ;;  %v1970_v2 = vmul.f32 %v11659_v27, %v15529_v4  ;;  %v1973_v48 = vmul.f32 %v11659_v27, %v15530_v55  ;;  %v15532_v19 = vld [vmem:[#allocation130_spill] sm:$0xff]  ;;  %v15533_v50 = vld [vmem:[#allocation131_spill] sm:$0xff]  ;;  %v11832_v62 = vpop.permute.xlu1 %3961  ;;  %v15535_v12 = vld [vmem:[#allocation133_spill] sm:$0xff]  ;;  %4627 = vperm.xlu1 %9414, %v4448_v57  }
 0x3f5   : > { %v11819_v0 = vadd.f32 %v1968_v22, %v11435_v14  ;;  %v1972_v25 = vmul.f32 %v11659_v27, %v15531_v34  ;;  %v1975_v6 = vmul.f32 %v11659_v27, %v15532_v19  ;;  %v1974_v15 = vmul.f32 %v11659_v27, %v15533_v50  ;;  %v11830_v61 = vld [vmem:[%s14924_s1 + $0x3] ss:$0 sm:$0xff]  ;;  %v11834_v14 = vpop.permute.xlu0 %3941  ;;  %v15536_v55 = vld [vmem:[#allocation134_spill] sm:$0xff]  ;;  %4622 = vperm.xlu0 %9413, %v4447_v47  }
 0x3f6   : > { %v1977_v22 = vmul.f32 %v11659_v27, %v15534_v20  ;;  %v1976_v4 = vmul.f32 %v11659_v27, %v15535_v12  ;;  %v1979_v34 = vmul.f32 %v11659_v27, %v15536_v55  ;;  %v11843_v19 = vadd.f32 %v1971_v23, %v11438_v40  ;;  %v15537_v50 = vld [vmem:[#allocation135_spill] sm:$0xff]  ;;  %v15541_v47 = vld [vmem:[#allocation182_spill] sm:$0xff] }
 0x3f7   : > { %v1978_v9 = vmul.f32 %v11659_v27, %v15537_v50  ;;  %v1980_v20 = vmul.f32 %v11659_v27, %v15539_v46  ;;  %v4444_v59 = vld [vmem:[%s9714_s14 + $0xe3] sm:$0xff]  ;;  %v11854_v12 = vadd.f32 %v1970_v2, %v11441_v17  ;;  %v11857_v57 = vadd.f32 %v1973_v48, %v11444_v18 }
 0x3f8   : > { %v3871_v45 = vld [vmem:[%s9714_s14 + $0x122] sm:$0xff]  ;;  %v2536_v40 = vmul.f32 %v11830_v61, %v15541_v47  ;;  %v11864_v30 = vadd.f32 %v1972_v25, %v11453_v1  ;;  %v11867_v46 = vadd.f32 %v1975_v6, %v11462_v24  ;;  %v11870_v17 = vadd.f32 %v1974_v15, %v11481_v28  ;;  %v11874_v48 = vpop.permute.xlu1 %3971  ;;  %4607 = vperm.xlu1 %9414, %v4444_v59   ;;  %v15552_v15 = vld [vmem:[#allocation138_spill] sm:$0xff] }
 0x3f9   : > { %15540 = vst [vmem:[#allocation84_spill] sm:$0xff] %v11857_v57  ;;  %v15542_v23 = vld [vmem:[#allocation183_spill] sm:$0xff]  ;;  %v15545_v2 = vld [vmem:[#allocation184_spill] sm:$0xff]  ;;  %v11876_v50 = vpop.permute.xlu0 %3966  ;;  %v11879_v47 = vadd.f32 %v1977_v22, %v11484_v51  ;;  %v11882_v1 = vadd.f32 %v1976_v4, %v11493_v60  ;;  %v11885_v25 = vadd.f32 %v1979_v34, %v11496_v52  ;;  %4066 = vperm.xlu0 %9413, %v3871_v45   ;;  %v4446_v60 = vld [vmem:[%s9714_s14 + $0xf3] sm:$0xff] }
 0x3fa   : > { %v2535_v55 = vmul.f32 %v11830_v61, %v15542_v23  ;;  %15543 = vst [vmem:[#allocation85_spill] sm:$0xff] %v11867_v46  ;;  %15544 = vst [vmem:[#allocation86_spill] sm:$0xff] %v11870_v17  ;;  %v2538_v18 = vmul.f32 %v11830_v61, %v15545_v2  ;;  %v11888_v24 = vadd.f32 %v1978_v9, %v11499_v33  ;;  %v4445_v22 = vld [vmem:[%s9714_s14 + $0xeb] sm:$0xff]  ;;  %v15554_v4 = vld [vmem:[#allocation139_spill] sm:$0xff] }
 0x3fb   : > { %15546 = vst [vmem:[#allocation6_spill] sm:$0xff] %v11879_v47  ;;  %15547 = vst [vmem:[#allocation7_spill] sm:$0xff] %v11882_v1  ;;  %v11891_v28 = vadd.f32 %v1981_v49, %v11504_v10  ;;  %v11894_v6 = vadd.f32 %v1980_v20, %v11507_v21  ;;  %v11898_v51 = vmul.f32 %v11659_v27, %v15552_v15  ;;  %v15556_v10 = vld [vmem:[#allocation185_spill] sm:$0xff]  ;;  %v15557_v49 = vld [vmem:[#allocation186_spill] sm:$0xff] }
 0x3fc   : > { %15548 = vst [vmem:[#allocation8_spill] sm:$0xff] %v11885_v25  ;;  %15549 = vst [vmem:[#allocation87_spill] sm:$0xff] %v11888_v24  ;;  %v11904_v52 = vmul.f32 %v11659_v27, %v15554_v4  ;;  %v11907_v45 = vadd.f32 %v2536_v40, %v11732_v5  ;;  %v11910_v33 = vadd.f32 %v2535_v55, %v11751_v11  ;;  %v15558_v34 = vld [vmem:[#allocation187_spill] sm:$0xff]  ;;  %v15559_v20 = vld [vmem:[#allocation188_spill] sm:$0xff]  ;;  %v11923_v40 = vpop.permute.xlu1 %4502  ;;  %4617 = vperm.xlu1 %9414, %v4446_v60  }
 0x3fd   : > { %15550 = vst [vmem:[#allocation88_spill] sm:$0xff] %v11891_v28  ;;  %15551 = vst [vmem:[#allocation89_spill] sm:$0xff] %v11894_v6  ;;  %v2537_v21 = vmul.f32 %v11830_v61, %v15556_v10  ;;  %v11915_v59 = vadd.f32 %v2538_v18, %v11762_v13  ;;  %v2540_v9 = vmul.f32 %v11830_v61, %v15557_v49  ;;  %v11925_v11 = vpop.permute.xlu0 %4497  ;;  %v15560_v23 = vld [vmem:[#allocation189_spill] sm:$0xff]  ;;  %v15561_v2 = vld [vmem:[#allocation190_spill] sm:$0xff]  ;;  %4612 = vperm.xlu0 %9413, %v4445_v22  }
 0x3fe   : > { %15553 = vst [vmem:[#allocation90_spill] sm:$0xff] %v11898_v51  ;;  %15555 = vst [vmem:[#allocation91_spill] sm:$0xff] %v11904_v52  ;;  %v2539_v27 = vmul.f32 %v11830_v61, %v15558_v34  ;;  %v2542_v5 = vmul.f32 %v11830_v61, %v15559_v20  ;;  %v2541_v55 = vmul.f32 %v11830_v61, %v15560_v23  ;;  %v15562_v18 = vld [vmem:[#allocation191_spill] sm:$0xff]  ;;  %v15563_v4 = vld [vmem:[#allocation192_spill] sm:$0xff] }
 0x3ff   : > { %v2544_v13 = vmul.f32 %v11830_v61, %v15561_v2  ;;  %v2543_v15 = vmul.f32 %v11830_v61, %v15562_v18  ;;  %v2546_v10 = vmul.f32 %v11830_v61, %v15563_v4  ;;  %v15564_v49 = vld [vmem:[#allocation193_spill] sm:$0xff]  ;;  %v15565_v20 = vld [vmem:[#allocation194_spill] sm:$0xff]  ;;  %v15566_v6 = vld [vmem:[#allocation195_spill] sm:$0xff]  ;;  %v2609_v2 = vadd.f32 %v2537_v21, %v11765_v32 }
 0x400   : > { %v2545_v34 = vmul.f32 %v11830_v61, %v15564_v49  ;;  %v2548_v28 = vmul.f32 %v11830_v61, %v15565_v20  ;;  %v2547_v23 = vmul.f32 %v11830_v61, %v15566_v6  ;;  %v4451_v24 = vld [vmem:[%s9714_s14 + $0x11b] sm:$0xff]  ;;  %v4450_v25 = vld [vmem:[%s9714_s14 + $0x113] sm:$0xff]  ;;  %v15567_v1 = vld [vmem:[#allocation196_spill] sm:$0xff]  ;;  %v2612_v49 = vadd.f32 %v2540_v9, %v11772_v56  ;;  %v11960_v21 = vpop.permute.xlu1 %4527 }
 0x401   : > { %v2550_v60 = vmul.f32 %v11830_v61, %v15567_v1  ;;  %v15568_v22 = vld [vmem:[#allocation197_spill] sm:$0xff]  ;;  %v15569_v4 = vld [vmem:[#allocation198_spill] sm:$0xff]  ;;  %v2611_v20 = vadd.f32 %v2539_v27, %v11775_v38  ;;  %v2614_v6 = vadd.f32 %v2542_v5, %v11778_v16  ;;  %v15570_v17 = vld [vmem:[#allocation199_spill] sm:$0xff]  ;;  %v2613_v56 = vadd.f32 %v2541_v55, %v11787_v42  ;;  %4642 = vperm.xlu1 %9414, %v4451_v24  }
 0x402   : > { %v2549_v18 = vmul.f32 %v11830_v61, %v15568_v22  ;;  %v2552_v47 = vmul.f32 %v11830_v61, %v15569_v4  ;;  %v2551_v32 = vmul.f32 %v11830_v61, %v15570_v17  ;;  %v11958_v1 = vld [vmem:[%s14924_s1 + $0x4] ss:$0 sm:$0xff]  ;;  %v11962_v22 = vpop.permute.xlu0 %4507  ;;  %v2616_v9 = vadd.f32 %v2544_v13, %v11790_v35  ;;  %4637 = vperm.xlu0 %9413, %v4450_v25   ;;  %v5023_v4 = vld [vmem:[%s9714_s14 + $0xd4] sm:$0xff]  ;;  %v5022_v46 = vld [vmem:[%s9714_s14 + $0xcc] sm:$0xff] }
 0x403   : > { %v2615_v38 = vadd.f32 %v2543_v15, %v11793_v53  ;;  %v2618_v16 = vadd.f32 %v2546_v10, %v11796_v44  ;;  %v2617_v17 = vadd.f32 %v2545_v34, %v11799_v7  ;;  %v11970_v27 = vadd.f32 %v2548_v28, %v11802_v63  ;;  %v15575_v44 = vld [vmem:[#allocation254_spill] sm:$0xff]  ;;  %v15577_v25 = vld [vmem:[#allocation255_spill] sm:$0xff]  ;;  %v15578_v24 = vld [vmem:[#allocation256_spill] sm:$0xff] }
 0x404   : > { %v11973_v5 = vadd.f32 %v2547_v23, %v11809_v41  ;;  %v11978_v42 = vadd.f32 %v2550_v60, %v11812_v8  ;;  %v11981_v35 = vadd.f32 %v2549_v18, %v11819_v0  ;;  %v11984_v53 = vadd.f32 %v2552_v47, %v11843_v19  ;;  %v15579_v28 = vld [vmem:[#allocation257_spill] sm:$0xff]  ;;  %v12000_v19 = vld [vmem:[%s14924_s1 + $0x5] ss:$0 sm:$0xff]  ;;  %v12002_v47 = vpop.permute.xlu1 %4537  ;;  %v15581_v15 = vld [vmem:[#allocation258_spill] sm:$0xff] }
 0x405   : > { %v3117_v7 = vmul.f32 %v11958_v1, %v15575_v44  ;;  %v11989_v63 = vadd.f32 %v2551_v32, %v11854_v12  ;;  %v3116_v41 = vmul.f32 %v11958_v1, %v15577_v25  ;;  %v3119_v8 = vmul.f32 %v11958_v1, %v15578_v24  ;;  %v15580_v55 = vld [vmem:[#allocation201_spill] sm:$0xff]  ;;  %v15582_v34 = vld [vmem:[#allocation259_spill] sm:$0xff]  ;;  %5178 = vperm.xlu1 %9414, %v5023_v4   ;;  %v15583_v60 = vld [vmem:[#allocation260_spill] sm:$0xff] }
 0x406   : > { %15571 = vst [vmem:[#allocation92_spill] sm:$0xff] %v11973_v5  ;;  %15572 = vst [vmem:[#allocation93_spill] sm:$0xff] %v11978_v42  ;;  %v3118_v0 = vmul.f32 %v11958_v1, %v15579_v28  ;;  %v12004_v12 = vpop.permute.xlu0 %4532  ;;  %v12008_v13 = vmul.f32 %v11830_v61, %v15580_v55  ;;  %v3121_v10 = vmul.f32 %v11958_v1, %v15581_v15  ;;  %5173 = vperm.xlu0 %9413, %v5022_v46   ;;  %v15584_v32 = vld [vmem:[#allocation261_spill] sm:$0xff]  ;;  %v15585_v25 = vld [vmem:[#allocation262_spill] sm:$0xff] }
 0x407   : > { %15573 = vst [vmem:[#allocation94_spill] sm:$0xff] %v11981_v35  ;;  %15574 = vst [vmem:[#allocation95_spill] sm:$0xff] %v11984_v53  ;;  %v3120_v23 = vmul.f32 %v11958_v1, %v15582_v34  ;;  %v3123_v18 = vmul.f32 %v11958_v1, %v15583_v60  ;;  %v3122_v44 = vmul.f32 %v11958_v1, %v15584_v32  ;;  %v15586_v28 = vld [vmem:[#allocation263_spill] sm:$0xff]  ;;  %v15587_v52 = vld [vmem:[#allocation264_spill] sm:$0xff] }
 0x408   : > { %15576 = vst [vmem:[#allocation96_spill] sm:$0xff] %v11989_v63  ;;  %v3125_v24 = vmul.f32 %v11958_v1, %v15585_v25  ;;  %v3124_v61 = vmul.f32 %v11958_v1, %v15586_v28  ;;  %v5028_v55 = vld [vmem:[%s9714_s14 + $0xfc] sm:$0xff]  ;;  %v3189_v15 = vadd.f32 %v3117_v7, %v11907_v45  ;;  %v3127_v4 = vmul.f32 %v11958_v1, %v15587_v52  ;;  %v15588_v46 = vld [vmem:[#allocation265_spill] sm:$0xff]  ;;  %v15589_v60 = vld [vmem:[#allocation332_spill] sm:$0xff]  ;;  %v12035_v45 = vpop.permute.xlu1 %4517 }
 0x409   : > { %v5024_v57 = vld [vmem:[%s9714_s14 + $0xdc] sm:$0xff]  ;;  %v3126_v34 = vmul.f32 %v11958_v1, %v15588_v46  ;;  %v3698_v26 = vmul.f32 %v12000_v19, %v15589_v60  ;;  %v3188_v32 = vadd.f32 %v3116_v41, %v11910_v33  ;;  %v3191_v25 = vadd.f32 %v3119_v8, %v11915_v59  ;;  %v15590_v51 = vld [vmem:[#allocation333_spill] sm:$0xff]  ;;  %5203 = vperm.xlu1 %9414, %v5028_v55  }
 0x40a   : > { %v3190_v28 = vadd.f32 %v3118_v0, %v2609_v2  ;;  %v3697_v37 = vmul.f32 %v12000_v19, %v15590_v51  ;;  %v12037_v7 = vpop.permute.xlu0 %4512  ;;  %v3193_v52 = vadd.f32 %v3121_v10, %v2612_v49  ;;  %v3192_v63 = vadd.f32 %v3120_v23, %v2611_v20  ;;  %v15591_v46 = vld [vmem:[#allocation334_spill] sm:$0xff]  ;;  %5183 = vperm.xlu0 %9413, %v5024_v57   ;;  %v4452_v59 = vld [vmem:[%s9714_s14 + $0x123] sm:$0xff] }
 0x40b   : > { %v3700_v53 = vmul.f32 %v12000_v19, %v15591_v46  ;;  %v3195_v60 = vadd.f32 %v3123_v18, %v2614_v6  ;;  %v3194_v33 = vadd.f32 %v3122_v44, %v2613_v56  ;;  %v3197_v41 = vadd.f32 %v3125_v24, %v2616_v9  ;;  %v5029_v2 = vld [vmem:[%s9714_s14 + $0x104] sm:$0xff]  ;;  %v15594_v6 = vld [vmem:[#allocation337_spill] sm:$0xff]  ;;  %v15595_v9 = vld [vmem:[#allocation338_spill] sm:$0xff] }
 0x40c   : > { %v3196_v35 = vadd.f32 %v3124_v61, %v2615_v38  ;;  %v3199_v8 = vadd.f32 %v3127_v4, %v2618_v16  ;;  %v3198_v0 = vadd.f32 %v3126_v34, %v2617_v17  ;;  %v3770_v51 = vadd.f32 %v3698_v26, %v3189_v15  ;;  %v15592_v42 = vld [vmem:[#allocation335_spill] sm:$0xff]  ;;  %v15593_v10 = vld [vmem:[#allocation336_spill] sm:$0xff]  ;;  %v12056_v38 = vpop.permute.xlu1 %4542  ;;  %v15598_v24 = vld [vmem:[#allocation341_spill] sm:$0xff] }
 0x40d   : > { %v3699_v5 = vmul.f32 %v12000_v19, %v15592_v42  ;;  %v12048_v49 = vld [vmem:[%s14924_s1 + $0x6] ss:$0 sm:$0xff]  ;;  %v3769_v20 = vadd.f32 %v3697_v37, %v3188_v32  ;;  %v3702_v57 = vmul.f32 %v12000_v19, %v15593_v10  ;;  %v3701_v56 = vmul.f32 %v12000_v19, %v15594_v6  ;;  %v15597_v37 = vld [vmem:[#allocation340_spill] sm:$0xff]  ;;  %v12067_v44 = vld [vmem:[%s14924_s1 + $0x7] ss:$0 sm:$0xff]  ;;  %4647 = vperm.xlu1 %9414, %v4452_v59  }
 0x40e   : > { %v3704_v26 = vmul.f32 %v12000_v19, %v15595_v9  ;;  %v12058_v16 = vpop.permute.xlu0 %4522  ;;  %v3772_v17 = vadd.f32 %v3700_v53, %v3191_v25  ;;  %v15596_v42 = vld [vmem:[#allocation339_spill] sm:$0xff]  ;;  %v3706_v18 = vmul.f32 %v12000_v19, %v15597_v37  ;;  %5208 = vperm.xlu0 %9413, %v5029_v2   ;;  %v3705_v61 = vmul.f32 %v12000_v19, %v15598_v24  ;;  %v15599_v55 = vld [vmem:[#allocation342_spill] sm:$0xff]  ;;  %v5026_v32 = vld [vmem:[%s9714_s14 + $0xec] sm:$0xff] }
 0x40f   : > { %v3703_v23 = vmul.f32 %v12000_v19, %v15596_v42  ;;  %v3708_v15 = vmul.f32 %v12000_v19, %v15599_v55  ;;  %v15600_v53 = vld [vmem:[#allocation343_spill] sm:$0xff]  ;;  %v4279_v34 = vmul.f32 %v12048_v49, %v11644_v58  ;;  %v3771_v46 = vadd.f32 %v3699_v5, %v3190_v28 }
 0x410   : > { %v3707_v4 = vmul.f32 %v12000_v19, %v15600_v53  ;;  %v5025_v25 = vld [vmem:[%s9714_s14 + $0xe4] sm:$0xff]  ;;  %v4278_v10 = vmul.f32 %v12048_v49, %v11646_v36  ;;  %v4284_v59 = vmul.f32 %v12048_v49, %v11694_v31  ;;  %v4280_v2 = vmul.f32 %v12048_v49, %v11696_v29  ;;  %v12087_v37 = vpop.permute.xlu1 %4552  ;;  %v12125_v55 = vld [vmem:[%s14925_s2] ss:$0 sm:$0xff] }
 0x411   : > { %v3774_v6 = vadd.f32 %v3702_v57, %v3193_v52  ;;  %v3773_v9 = vadd.f32 %v3701_v56, %v3192_v63  ;;  %v3776_v42 = vadd.f32 %v3704_v26, %v3195_v60  ;;  %v4860_v58 = vmul.f32 %v12067_v44, %v11923_v40  ;;  %5193 = vperm.xlu1 %9414, %v5026_v32   ;;  %v12100_v40 = vld [vmem:[%s14924_s1 + $0x8] ss:$0 sm:$0xff]  ;;  %v5031_v57 = vld [vmem:[%s9714_s14 + $0x114] sm:$0xff]  ;;  %v5032_v32 = vld [vmem:[%s9714_s14 + $0x11c] sm:$0xff] }
 0x412   : > { %v12089_v5 = vpop.permute.xlu0 %4547  ;;  %v3775_v28 = vadd.f32 %v3703_v23, %v3194_v33  ;;  %v3778_v36 = vadd.f32 %v3706_v18, %v3197_v41  ;;  %v4859_v31 = vmul.f32 %v12067_v44, %v11925_v11  ;;  %5188 = vperm.xlu0 %9413, %v5025_v25   ;;  %v3777_v29 = vadd.f32 %v3705_v61, %v3196_v35  ;;  %v5027_v56 = vld [vmem:[%s9714_s14 + $0xf4] sm:$0xff] }
 0x413   : > { %v12093_v52 = vadd.f32 %v3708_v15, %v3199_v8  ;;  %v12095_v63 = vadd.f32 %v3707_v4, %v3198_v0  ;;  %v4351_v60 = vadd.f32 %v4279_v34, %v3770_v51  ;;  %v4350_v33 = vadd.f32 %v4278_v10, %v3769_v20  ;;  %v3868_v15 = vld [vmem:[%s9714_s14 + $0x10a] sm:$0xff] }
 0x414   : > { %v4356_v41 = vadd.f32 %v4284_v59, %v3775_v28  ;;  %v4352_v26 = vadd.f32 %v4280_v2, %v3771_v46  ;;  %v4286_v11 = vmul.f32 %v12048_v49, %v11740_v3  ;;  %v4285_v35 = vmul.f32 %v12048_v49, %v11742_v43  ;;  %v5084_v23 = vpop.permute.xlu1 %5083 }
 0x415   : > { %v4282_v8 = vmul.f32 %v12048_v49, %v11782_v54  ;;  %v4281_v0 = vmul.f32 %v12048_v49, %v11784_v39  ;;  %v4932_v51 = vadd.f32 %v4860_v58, %v4351_v60  ;;  %v4931_v20 = vadd.f32 %v4859_v31, %v4350_v33  ;;  %5218 = vperm.xlu1 %9414, %v5031_v57  }
 0x416   : > { %v5079_v18 = vpop.permute.xlu0 %5078  ;;  %v5441_v24 = vmul.f32 %v12100_v40, %v5084_v23  ;;  %5198 = vperm.xlu0 %9413, %v5027_v56   ;;  %v4287_v3 = vmul.f32 %v12048_v49, %v11832_v62  ;;  %v4283_v43 = vmul.f32 %v12048_v49, %v11834_v14  ;;  %v4865_v54 = vmul.f32 %v12067_v44, %v11960_v21  ;;  %v3872_v56 = vld [vmem:[%s9714_s14 + $0x12a] sm:$0xff] }
 0x417   : > { %v5440_v61 = vmul.f32 %v12100_v40, %v5079_v18  ;;  %v4861_v39 = vmul.f32 %v12067_v44, %v11962_v22  ;;  %v4358_v53 = vadd.f32 %v4286_v11, %v3777_v29  ;;  %v4867_v4 = vmul.f32 %v12067_v44, %v12002_v47 }
 0x418   : > { %v5513_v62 = vadd.f32 %v5441_v24, %v4932_v51  ;;  %v4357_v14 = vadd.f32 %v4285_v35, %v3776_v42  ;;  %v4354_v25 = vadd.f32 %v4282_v8, %v3773_v9  ;;  %v4353_v21 = vadd.f32 %v4281_v0, %v3772_v17  ;;  %v5109_v46 = vpop.permute.xlu1 %5108 }
 0x419   : > { %v5512_v34 = vadd.f32 %v5440_v61, %v4931_v20  ;;  %v4866_v22 = vmul.f32 %v12067_v44, %v12004_v12  ;;  %v5446_v47 = vmul.f32 %v12100_v40, %v5109_v46  ;;  %4051 = vperm.xlu1 %9414, %v3868_v15   ;;  %v4359_v42 = vadd.f32 %v4287_v3, %v3778_v36  ;;  %v3873_v12 = vld [vmem:[%s9714_s14 + $0x132] sm:$0xff]  ;;  %v5033_v20 = vld [vmem:[%s9714_s14 + $0x124] sm:$0xff] }
 0x41a   : > { %v5089_v10 = vpop.permute.xlu0 %5088  ;;  %v12134_v59 = vadd.f32 %v12125_v55, %v5513_v62  ;;  %v4355_v9 = vadd.f32 %v4283_v43, %v3774_v6  ;;  %v4937_v17 = vadd.f32 %v4865_v54, %v4356_v41  ;;  %v4933_v28 = vadd.f32 %v4861_v39, %v4352_v26  ;;  %5223 = vperm.xlu0 %9413, %v5032_v32   ;;  %v3874_v43 = vld [vmem:[%s9714_s14 + $0x13a] sm:$0xff] }
 0x41b   : > { %v12137_v2 = vadd.f32 %v12125_v55, %v5512_v34  ;;  %v5442_v58 = vmul.f32 %v12100_v40, %v5089_v10  ;;  %v12144_v31 = vmul.f32 %v12048_v49, %v11874_v48  ;;  %v4939_v29 = vadd.f32 %v4867_v4, %v4358_v53 }
 0x41c   : > { %v5736_v60 = vmin.f32 %v12134_v59, 0.0  ;;  %v4938_v33 = vadd.f32 %v4866_v22, %v4357_v14  ;;  %v4863_v36 = vmul.f32 %v12067_v44, %v12035_v45  ;;  %v5518_v6 = vadd.f32 %v5446_v47, %v4937_v17  ;;  %v5119_v26 = vpop.permute.xlu1 %5118 }
 0x41d   : > { %v5735_v57 = vmin.f32 %v12137_v2, 0.0  ;;  %v5514_v41 = vadd.f32 %v5442_v58, %v4933_v28  ;;  %v5448_v48 = vmul.f32 %v12100_v40, %v5119_v26  ;;  %4076 = vperm.xlu1 %9414, %v3873_v12   ;;  %v4862_v51 = vmul.f32 %v12067_v44, %v12037_v7  ;;  %v3875_v58 = vld [vmem:[%s9714_s14 + $0x142] sm:$0xff] }
 0x41e   : > { %v5114_v11 = vpop.permute.xlu0 %5113  ;;  %v5809_v35 = vmul.f32 1.442695, %v5736_v60  ;;  %v4868_v23 = vmul.f32 %v12067_v44, %v12056_v38  ;;  %v12158_v45 = vadd.f32 %v12125_v55, %v5518_v6  ;;  %4071 = vperm.xlu0 %9413, %v3872_v56   ;;  %v4864_v24 = vmul.f32 %v12067_v44, %v12058_v16  ;;  %v15601_v6 = vld [vmem:[#allocation266_spill] sm:$0xff] }
 0x41f   : > { %v5807_v8 = vmul.f32 1.442695, %v5735_v57  ;;  %v5447_v0 = vmul.f32 %v12100_v40, %v5114_v11  ;;  %v12161_v18 = vadd.f32 %v12125_v55, %v5514_v41  ;;  %v5520_v61 = vadd.f32 %v5448_v48, %v4939_v29 }
 0x420   : > { %9433 = vpow2.f32 %v5809_v35  ;;  %v4288_v7 = vmul.f32 %v12048_v49, %v11876_v50  ;;  %v4935_v38 = vadd.f32 %v4863_v36, %v4354_v25  ;;  %v5741_v54 = vmin.f32 %v12158_v45, 0.0  ;;  %v5099_v39 = vpop.permute.xlu1 %5098  ;;  %v3876_v25 = vld [vmem:[%s9714_s14 + $0x14a] sm:$0xff]  ;;  %v3877_v35 = vld [vmem:[%s9714_s14 + $0x152] sm:$0xff] }
 0x421   : > { %v5519_v3 = vadd.f32 %v5447_v0, %v4938_v33  ;;  %9435 = vpow2.f32 %v5807_v8  ;;  %v5737_v53 = vmin.f32 %v12161_v18, 0.0  ;;  %v12172_v4 = vadd.f32 %v12125_v55, %v5520_v61  ;;  %5228 = vperm.xlu1 %9414, %v5033_v20   ;;  %v4449_v36 = vld [vmem:[%s9714_s14 + $0x10b] sm:$0xff] }
 0x422   : > { %v5094_v15 = vpop.permute.xlu0 %5093  ;;  %v5444_v62 = vmul.f32 %v12100_v40, %v5099_v39  ;;  %v4934_v50 = vadd.f32 %v4862_v51, %v4353_v21  ;;  %v4940_v34 = vadd.f32 %v4868_v23, %v4359_v42  ;;  %v5819_v32 = vmul.f32 1.442695, %v5741_v54  ;;  %4081 = vperm.xlu0 %9413, %v3874_v43   ;;  %v4454_v43 = vld [vmem:[%s9714_s14 + $0x133] sm:$0xff] }
 0x423   : > { %v12175_v16 = vadd.f32 %v12125_v55, %v5519_v3  ;;  %v5443_v14 = vmul.f32 %v12100_v40, %v5094_v15  ;;  %v4936_v22 = vadd.f32 %v4864_v24, %v4355_v9  ;;  %v4870_v46 = vmul.f32 %v12067_v44, %v12087_v37 }
 0x424   : > { %v5811_v10 = vmul.f32 1.442695, %v5737_v53  ;;  %v5743_v47 = vmin.f32 %v12172_v4, 0.0  ;;  %9437 = vpow2.f32 %v5819_v32  ;;  %v5516_v28 = vadd.f32 %v5444_v62, %v4935_v38  ;;  %v5124_v42 = vpop.permute.xlu1 %5123  ;;  %v15602_v38 = vld [vmem:[#allocation267_spill] sm:$0xff]  ;;  %v4453_v53 = vld [vmem:[%s9714_s14 + $0x12b] sm:$0xff] }
 0x425   : > { %v5742_v17 = vmin.f32 %v12175_v16, 0.0  ;;  %v5515_v21 = vadd.f32 %v5443_v14, %v4934_v50  ;;  %v5449_v9 = vmul.f32 %v12100_v40, %v5124_v42  ;;  %4091 = vperm.xlu1 %9414, %v3876_v25   ;;  %v4869_v37 = vmul.f32 %v12067_v44, %v12089_v5 }
 0x426   : > { %v5104_v12 = vpop.permute.xlu0 %5103  ;;  %9439 = vpow2.f32 %v5811_v10  ;;  %v5823_v29 = vmul.f32 1.442695, %v5743_v47  ;;  %v12190_v56 = vadd.f32 %v12125_v55, %v5516_v28  ;;  %4086 = vperm.xlu0 %9413, %v3875_v58   ;;  %v3129_v41 = vmul.f32 %v11958_v1, %v15601_v6  ;;  %v3878_v28 = vld [vmem:[%s9714_s14 + $0x15a] sm:$0xff] }
 0x427   : > { %v5445_v60 = vmul.f32 %v12100_v40, %v5104_v12  ;;  %v5821_v57 = vmul.f32 1.442695, %v5742_v17  ;;  %v12193_v33 = vadd.f32 %v12125_v55, %v5515_v21  ;;  %v5521_v26 = vadd.f32 %v5449_v9, %v4940_v34  ;;  %v15603_v21 = vld [vmem:[#allocation92_spill] sm:$0xff]  ;;  %v4455_v9 = vld [vmem:[%s9714_s14 + $0x13b] sm:$0xff] }
 0x428   : > { %9441 = vpow2.f32 %v5823_v29  ;;  %v4361_v8 = vadd.f32 %v12144_v31, %v12093_v52  ;;  %v4360_v5 = vadd.f32 %v4288_v7, %v12095_v63  ;;  %v5739_v48 = vmin.f32 %v12190_v56, 0.0  ;;  %v5134_v0 = vpop.permute.xlu1 %5133  ;;  %v15604_v12 = vld [vmem:[#allocation268_spill] sm:$0xff] }
 0x429   : > { %v5517_v11 = vadd.f32 %v5445_v60, %v4936_v22  ;;  %9443 = vpow2.f32 %v5821_v57  ;;  %v5738_v23 = vmin.f32 %v12193_v33, 0.0  ;;  %v12205_v20 = vadd.f32 %v12125_v55, %v5521_v26  ;;  %4632 = vperm.xlu1 %9414, %v4449_v36  }
 0x42a   : > { %v5129_v51 = vpop.permute.xlu0 %5128  ;;  %v5451_v61 = vmul.f32 %v12100_v40, %v5134_v0  ;;  %v4942_v52 = vadd.f32 %v4870_v46, %v4361_v8  ;;  %v4941_v31 = vadd.f32 %v4869_v37, %v4360_v5  ;;  %v5815_v63 = vmul.f32 1.442695, %v5739_v48  ;;  %4096 = vperm.xlu0 %9413, %v3877_v35   ;;  %v4457_v0 = vld [vmem:[%s9714_s14 + $0x14b] sm:$0xff] }
 0x42b   : > { %v12208_v24 = vadd.f32 %v12125_v55, %v5517_v11  ;;  %v5450_v3 = vmul.f32 %v12100_v40, %v5129_v51  ;;  %v12215_v7 = vadd.f32 %v12008_v13, %v11864_v30  ;;  %v3128_v54 = vmul.f32 %v11958_v1, %v15602_v38  ;;  %v15605_v51 = vld [vmem:[#allocation269_spill] sm:$0xff]  ;;  %v15607_v38 = vld [vmem:[#allocation271_spill] sm:$0xff] }
 0x42c   : > { %v5813_v39 = vmul.f32 1.442695, %v5738_v23  ;;  %v5744_v15 = vmin.f32 %v12205_v20, 0.0  ;;  %9445 = vpow2.f32 %v5815_v63  ;;  %v5523_v34 = vadd.f32 %v5451_v61, %v4942_v52  ;;  %v12222_v14 = vpop.permute.xlu1 %3981 }
 0x42d   : > { %v9434_v62 = vpop.eup %9433  ;;  %v5740_v50 = vmin.f32 %v12208_v24, 0.0  ;;  %v5522_v32 = vadd.f32 %v5450_v3, %v4941_v31  ;;  %v12227_v13 = vadd.f32 %v3129_v41, %v11970_v27  ;;  %4657 = vperm.xlu1 %9414, %v4454_v43   ;;  %v12237_v42 = vadd.f32 %v3128_v54, %v15603_v21  ;;  %v15606_v3 = vld [vmem:[#allocation270_spill] sm:$0xff] }
 0x42e   : > { %v12224_v25 = vpop.permute.xlu0 %3976  ;;  %v9436_v30 = vpop.eup %9435  ;;  %v8774_v22 = vadd.f32 -1.0, %v9434_v62  ;;  %9447 = vpow2.f32 %v5813_v39  ;;  %v5825_v46 = vmul.f32 1.442695, %v5744_v15  ;;  %v12230_v58 = vadd.f32 %v12125_v55, %v5523_v34  ;;  %4652 = vperm.xlu0 %9413, %v4453_v53   ;;  %v15608_v34 = vld [vmem:[#allocation273_spill] sm:$0xff] }
 0x42f   : > { %v8773_v10 = vadd.f32 -1.0, %v9436_v30  ;;  %v5817_v47 = vmul.f32 1.442695, %v5740_v50  ;;  %v12233_v17 = vadd.f32 %v12125_v55, %v5522_v32  ;;  %v3131_v27 = vmul.f32 %v11958_v1, %v15604_v12 }
 0x430   : > { %v6024_v29 = vmul.f32 1.6732632, %v8774_v22  ;;  %9449 = vpow2.f32 %v5825_v46  ;;  %vm5664_vm1 = vcmp.gt.f32.partialorder %v12134_v59, 0.0  ;;  %v5746_v37 = vmin.f32 %v12230_v58, 0.0  ;;  %v12244_v57 = vpop.permute.xlu1 %3991  ;;  %v5030_v46 = vld [vmem:[%s9714_s14 + $0x10c] sm:$0xff] }
 0x431   : > { %v6023_v60 = vmul.f32 1.6732632, %v8773_v10  ;;  %9451 = vpow2.f32 %v5817_v47  ;;  %v9438_v6 = vpop.eup %9437  ;;  %vm5663_vm3 = vcmp.gt.f32.partialorder %v12137_v2, 0.0  ;;  %v5745_v26 = vmin.f32 %v12233_v17, 0.0  ;;  %4101 = vperm.xlu1 %9414, %v3878_v28   ;;  %v15609_v10 = vld [vmem:[#allocation344_spill] sm:$0xff] }
 0x432   : > { %v12246_v36 = vpop.permute.xlu0 %3986  ;;  %v6096_v41 = vsel %vm5664_vm1, %v12134_v59, %v6024_v29  ;;  %v8779_v5 = vadd.f32 -1.0, %v9438_v6  ;;  %v5829_v48 = vmul.f32 1.442695, %v5746_v37  ;;  %4662 = vperm.xlu0 %9413, %v4455_v9   ;;  %v3130_v23 = vmul.f32 %v11958_v1, %v15605_v51  ;;  %v4456_v59 = vld [vmem:[%s9714_s14 + $0x143] sm:$0xff]  ;;  %v4458_v29 = vld [vmem:[%s9714_s14 + $0x153] sm:$0xff] }
 0x433   : > { %v9440_v11 = vpop.eup %9439  ;;  %v6168_v35 = vmul.f32 1.050701, %v6096_v41  ;;  %v6095_v8 = vsel %vm5663_vm3, %v12137_v2, %v6023_v60  ;;  %v5827_v31 = vmul.f32 1.442695, %v5745_v26  ;;  %v3133_v43 = vmul.f32 %v11958_v1, %v15606_v3  ;;  %v15610_v9 = vld [vmem:[#allocation345_spill] sm:$0xff] }
 0x434   : > { %v6167_v61 = vmul.f32 1.050701, %v6095_v8  ;;  %v8775_v52 = vadd.f32 -1.0, %v9440_v11  ;;  %v3132_v54 = vmul.f32 %v11958_v1, %v15607_v38  ;;  %v6029_v2 = vmul.f32 1.6732632, %v8779_v5  ;;  %v12261_v39 = vpop.permute.xlu1 %4001  ;;  %v15611_v26 = vld [vmem:[#allocation93_spill] sm:$0xff] }
 0x435   : > { %v9442_v63 = vpop.eup %9441  ;;  %6241 = vst.msk [vmem:[#allocation2 + $0x8] sm:$0xff] %vm6239_vm2, %v6168_v35  ;;  %9453 = vpow2.f32 %v5829_v48  ;;  %vm5669_vm4 = vcmp.gt.f32.partialorder %v12158_v45, 0.0  ;;  %4672 = vperm.xlu1 %9414, %v4457_v0   ;;  %v3134_v32 = vmul.f32 %v11958_v1, %v15608_v34  ;;  %vm5665_vm5 = vcmp.gt.f32.partialorder %v12161_v18, 0.0  ;;  %v15612_v35 = vld [vmem:[#allocation94_spill] sm:$0xff]  ;;  %v15613_v48 = vld [vmem:[#allocation95_spill] sm:$0xff]  ;;  %v5034_v3 = vld [vmem:[%s9714_s14 + $0x12c] sm:$0xff] }
 0x436   : > { %v12263_v15 = vpop.permute.xlu0 %3996  ;;  %v9444_v53 = vpop.eup %9443  ;;  %6240 = vst.msk [vmem:[#allocation2] sm:$0xff] %vm6239_vm2, %v6167_v61  ;;  %v6025_v62 = vmul.f32 1.6732632, %v8775_v52  ;;  %v8781_v50 = vadd.f32 -1.0, %v9442_v63  ;;  %9455 = vpow2.f32 %v5827_v31  ;;  %v6101_v30 = vsel %vm5669_vm4, %v12158_v45, %v6029_v2  ;;  %4667 = vperm.xlu0 %9413, %v4456_v59   ;;  %v15614_v52 = vld [vmem:[#allocation96_spill] sm:$0xff]  ;;  %v15616_v34 = vld [vmem:[#allocation347_spill] sm:$0xff] }
 0x437   : > { %v8780_v22 = vadd.f32 -1.0, %v9444_v53  ;;  %v3710_v47 = vmul.f32 %v12000_v19, %v15609_v10  ;;  %v6173_v28 = vmul.f32 1.050701, %v6101_v30  ;;  %v3709_v60 = vmul.f32 %v12000_v19, %v15610_v9  ;;  %v15615_v53 = vld [vmem:[#allocation346_spill] sm:$0xff]  ;;  %v15617_v30 = vld [vmem:[#allocation348_spill] sm:$0xff] }
 0x438   : > { %v6097_v21 = vsel %vm5665_vm5, %v12161_v18, %v6025_v62  ;;  %v6031_v12 = vmul.f32 1.6732632, %v8781_v50  ;;  %vm5671_vm6 = vcmp.gt.f32.partialorder %v12172_v4, 0.0  ;;  %v12279_v45 = vpop.permute.xlu1 %4557  ;;  %v3203_v11 = vadd.f32 %v3131_v27, %v15611_v26 }
 0x439   : > { %v6169_v37 = vmul.f32 1.050701, %v6097_v21  ;;  %v6030_v1 = vmul.f32 1.6732632, %v8780_v22  ;;  %v9446_v41 = vpop.eup %9445  ;;  %v12285_v8 = vadd.f32 %v3130_v23, %v15612_v35  ;;  %6246 = vst.msk [vmem:[#allocation2 + $0x30] sm:$0xff] %vm6239_vm2, %v6173_v28  ;;  %vm5670_vm7 = vcmp.gt.f32.partialorder %v12175_v16, 0.0  ;;  %5213 = vperm.xlu1 %9414, %v5030_v46  }
 0x43a   : > { %v12281_v6 = vpop.permute.xlu0 %4006  ;;  %v6103_v18 = vsel %vm5671_vm6, %v12172_v4, %v6031_v12  ;;  %v3205_v0 = vadd.f32 %v3133_v43, %v15613_v48  ;;  %v8777_v27 = vadd.f32 -1.0, %v9446_v41  ;;  %4677 = vperm.xlu0 %9413, %v4458_v29   ;;  %v5035_v23 = vld [vmem:[%s9714_s14 + $0x134] sm:$0xff]  ;;  %v3204_v31 = vadd.f32 %v3132_v54, %v15614_v52 }
 0x43b   : > { %v9448_v5 = vpop.eup %9447  ;;  %6242 = vst.msk [vmem:[#allocation2 + $0x10] sm:$0xff] %vm6239_vm2, %v6169_v37  ;;  %v6175_v51 = vmul.f32 1.050701, %v6103_v18  ;;  %v6102_v61 = vsel %vm5670_vm7, %v12175_v16, %v6030_v1  ;;  %v12296_v59 = vadd.f32 %v3134_v32, %v12215_v7  ;;  %v12300_v2 = vadd.f32 %v3710_v47, %v12227_v13  ;;  %v4459_v47 = vld [vmem:[%s9714_s14 + $0x15b] sm:$0xff]  ;;  %v15618_v28 = vld [vmem:[#allocation349_spill] sm:$0xff] }
 0x43c   : > { %v6174_v4 = vmul.f32 1.050701, %v6102_v61  ;;  %v8776_v63 = vadd.f32 -1.0, %v9448_v5  ;;  %v12303_v43 = vadd.f32 %v3709_v60, %v12237_v42  ;;  %v3712_v16 = vmul.f32 %v12000_v19, %v15615_v53  ;;  %v12308_v62 = vpop.permute.xlu1 %4567  ;;  %v5036_v60 = vld [vmem:[%s9714_s14 + $0x13c] sm:$0xff] }
 0x43d   : > { %v9450_v38 = vpop.eup %9449  ;;  %6248 = vst.msk [vmem:[#allocation2 + $0x40] sm:$0xff] %vm6239_vm2, %v6175_v51  ;;  %v6027_v54 = vmul.f32 1.6732632, %v8777_v27  ;;  %v3711_v32 = vmul.f32 %v12000_v19, %v15616_v34  ;;  %vm5667_vm8 = vcmp.gt.f32.partialorder %v12190_v56, 0.0  ;;  %5238 = vperm.xlu1 %9414, %v5035_v23   ;;  %v3714_v22 = vmul.f32 %v12000_v19, %v15617_v30  ;;  %v15619_v18 = vld [vmem:[#allocation351_spill] sm:$0xff]  ;;  %v5038_v23 = vld [vmem:[%s9714_s14 + $0x14c] sm:$0xff] }
 0x43e   : > { %v4563_v7 = vpop.permute.xlu0 %4562  ;;  %v9452_v50 = vpop.eup %9451  ;;  %6247 = vst.msk [vmem:[#allocation2 + $0x38] sm:$0xff] %vm6239_vm2, %v6174_v4  ;;  %v6026_v13 = vmul.f32 1.6732632, %v8776_v63  ;;  %v8782_v42 = vadd.f32 -1.0, %v9450_v38  ;;  %vm5666_vm9 = vcmp.gt.f32.partialorder %v12193_v33, 0.0  ;;  %5233 = vperm.xlu0 %9413, %v5034_v3   ;;  %v3713_v21 = vmul.f32 %v12000_v19, %v15618_v28  ;;  %v5037_v63 = vld [vmem:[%s9714_s14 + $0x144] sm:$0xff] }
 0x43f   : > { %v6099_v46 = vsel %vm5667_vm8, %v12190_v56, %v6027_v54  ;;  %v8778_v10 = vadd.f32 -1.0, %v9452_v50  ;;  %v3784_v37 = vadd.f32 %v3712_v16, %v3203_v11  ;;  %vm5672_vm10 = vcmp.gt.f32.partialorder %v12205_v20, 0.0  ;;  %v5039_v54 = vld [vmem:[%s9714_s14 + $0x154] sm:$0xff]  ;;  %v6317_v50 = vld [vmem:[#allocation2 + $0x1] ss:$2 sm:$0xff] }
 0x440   : > { %v6171_v12 = vmul.f32 1.050701, %v6099_v46  ;;  %v6098_v29 = vsel %vm5666_vm9, %v12193_v33, %v6026_v13  ;;  %v6032_v9 = vmul.f32 1.6732632, %v8782_v42  ;;  %v12324_v26 = vpop.permute.xlu1 %4577  ;;  %v3715_v5 = vmul.f32 %v12000_v19, %v15619_v18 }
 0x441   : > { %v6170_v1 = vmul.f32 1.050701, %v6098_v29  ;;  %v6028_v41 = vmul.f32 1.6732632, %v8778_v10  ;;  %vm5668_vm11 = vcmp.gt.f32.partialorder %v12208_v24, 0.0  ;;  %v4291_v11 = vmul.f32 %v12048_v49, %v12222_v14  ;;  %4682 = vperm.xlu1 %9414, %v4459_v47  }
 0x442   : > { %v12326_v56 = vpop.permute.xlu0 %4572  ;;  %v9454_v35 = vpop.eup %9453  ;;  %6244 = vst.msk [vmem:[#allocation2 + $0x20] sm:$0xff] %vm6239_vm2, %v6171_v12  ;;  %v6104_v33 = vsel %vm5672_vm10, %v12205_v20, %v6032_v9  ;;  %v4290_v19 = vmul.f32 %v12048_v49, %v12224_v25  ;;  %5243 = vperm.xlu0 %9413, %v5036_v60   ;;  %v3783_v20 = vadd.f32 %v3711_v32, %v12285_v8  ;;  %vm5674_vm12 = vcmp.gt.f32.partialorder %v12230_v58, 0.0  ;;  %v6315_v42 = vld [vmem:[#allocation2 + $0x10] ss:$2 sm:$0x7] }
 0x443   : > { %v9456_v48 = vpop.eup %9455  ;;  %6243 = vst.msk [vmem:[#allocation2 + $0x18] sm:$0xff] %vm6239_vm2, %v6170_v1  ;;  %v6176_v51 = vmul.f32 1.050701, %v6104_v33  ;;  %v6100_v61 = vsel %vm5668_vm11, %v12208_v24, %v6028_v41  ;;  %v8784_v27 = vadd.f32 -1.0, %v9454_v35  ;;  %v3786_v52 = vadd.f32 %v3714_v22, %v3205_v0  ;;  %v3881_v1 = vld [vmem:[%s9714_s14 + $0x172] sm:$0xff] }
 0x444   : > { %v3785_v4 = vadd.f32 %v3713_v21, %v3204_v31  ;;  %v4293_v14 = vmul.f32 %v12048_v49, %v12244_v57  ;;  %v6172_v3 = vmul.f32 1.050701, %v6100_v61  ;;  %v4292_v24 = vmul.f32 %v12048_v49, %v12246_v36  ;;  %v12351_v0 = vpop.permute.xlu1 %4587  ;;  %v6319_v47 = vld [vmem:[#allocation2 + $0x11] ss:$2 sm:$0x7] }
 0x445   : > { %6249 = vst.msk [vmem:[#allocation2 + $0x48] sm:$0xff] %vm6239_vm2, %v6176_v51  ;;  %v4295_v25 = vmul.f32 %v12048_v49, %v12261_v39  ;;  %v4871_v8 = vmul.f32 %v12067_v44, %v12279_v45  ;;  %v12354_v57 = vadd.f32 %v3715_v5, %v12296_v59  ;;  %v6034_v38 = vmul.f32 1.6732632, %v8784_v27  ;;  %5253 = vperm.xlu1 %9414, %v5038_v23   ;;  %v3879_v45 = vld [vmem:[%s9714_s14 + $0x162] sm:$0xff]  ;;  %v3880_v5 = vld [vmem:[%s9714_s14 + $0x16a] sm:$0xff] }
 0x446   : > { %v4583_v31 = vpop.permute.xlu0 %4582  ;;  %v8783_v53 = vadd.f32 -1.0, %v9456_v48  ;;  %v4872_v16 = vmul.f32 %v12067_v44, %v4563_v7  ;;  %6245 = vst.msk [vmem:[#allocation2 + $0x28] sm:$0xff] %vm6239_vm2, %v6172_v3  ;;  %vm5673_vm13 = vcmp.gt.f32.partialorder %v12233_v17, 0.0  ;;  %v4363_v36 = vadd.f32 %v4291_v11, %v12300_v2  ;;  %5248 = vperm.xlu0 %9413, %v5037_v63   ;;  %v6313_v59 = vld [vmem:[#allocation2] ss:$2 sm:$0xff]  ;;  %v3885_v63 = vld [vmem:[%s9714_s14 + $0x192] sm:$0xff] }
 0x447   : > { %v4362_v39 = vadd.f32 %v4290_v19, %v12303_v43  ;;  %v6106_v34 = vsel %vm5674_vm12, %v12230_v58, %v6034_v38  ;;  %v4365_v7 = vadd.f32 %v4293_v14, %v3784_v37  ;;  %v4294_v13 = vmul.f32 %v12048_v49, %v12263_v15  ;;  %v6340_v11 = vld [vmem:[#allocation2 + $0x32] ss:$2 sm:$0xff]  ;;  %v6344_v48 = vld [vmem:[#allocation2 + $0x33] ss:$2 sm:$0xff] }
 0x448   : > { %v6033_v32 = vmul.f32 1.6732632, %v8783_v53  ;;  %v6178_v30 = vmul.f32 1.050701, %v6106_v34  ;;  %v4364_v22 = vadd.f32 %v4292_v24, %v3783_v20  ;;  %v4367_v46 = vadd.f32 %v4295_v25, %v3786_v52  ;;  %v5144_v2 = vpop.permute.xlu1 %5143  ;;  %v3884_v53 = vld [vmem:[%s9714_s14 + $0x18a] sm:$0xff] }
 0x449   : > { %v4943_v10 = vadd.f32 %v4871_v8, %v4362_v39  ;;  %v4944_v58 = vadd.f32 %v4872_v16, %v4363_v36  ;;  %v5453_v12 = vmul.f32 %v12100_v40, %v5144_v2  ;;  %4106 = vperm.xlu1 %9414, %v3879_v45   ;;  %v6320_v29 = vadd.f32 %v6317_v50, %v6313_v59 }
 0x44a   : > { %v5139_v43 = vpop.permute.xlu0 %5138  ;;  %v6323_v28 = vld [vmem:[#allocation2 + $0x19] ss:$2 sm:$0xff]  ;;  %v6105_v21 = vsel %vm5673_vm13, %v12233_v17, %v6033_v32  ;;  %6251 = vst.msk [vmem:[#allocation2 + $0x58] sm:$0xff] %vm6239_vm2, %v6178_v30  ;;  %v4873_v60 = vmul.f32 %v12067_v44, %v12308_v62  ;;  %v4874_v37 = vmul.f32 %v12067_v44, %v12326_v56  ;;  %5258 = vperm.xlu0 %9413, %v5039_v54  }
 0x44b   : > { %v5452_v15 = vmul.f32 %v12100_v40, %v5139_v43  ;;  %v6177_v9 = vmul.f32 1.050701, %v6105_v21  ;;  %v4366_v17 = vadd.f32 %v4294_v13, %v3785_v4  ;;  %v4875_v41 = vmul.f32 %v12067_v44, %v12324_v26 }
 0x44c   : > { %v5525_v35 = vadd.f32 %v5453_v12, %v4944_v58  ;;  %v6321_v33 = vadd.f32 %v6319_v47, %v6315_v42  ;;  %v6326_v51 = vadd.f32 %v6323_v28, %v6320_v29  ;;  %v4296_v62 = vmul.f32 %v12048_v49, %v12281_v6  ;;  %v5154_v61 = vpop.permute.xlu1 %5153  ;;  %v3886_v47 = vld [vmem:[%s9714_s14 + $0x19a] sm:$0xff] }
 0x44d   : > { %v5524_v18 = vadd.f32 %v5452_v15, %v4943_v10  ;;  %6250 = vst.msk [vmem:[#allocation2 + $0x50] sm:$0xff] %vm6239_vm2, %v6177_v9  ;;  %v4876_v56 = vmul.f32 %v12067_v44, %v4583_v31  ;;  %v6325_v19 = vld [vmem:[#allocation2 + $0x29] ss:$2 sm:$0x7]  ;;  %v6329_v26 = vld [vmem:[#allocation2 + $0x1a] ss:$2 sm:$0xff]  ;;  %v5455_v52 = vmul.f32 %v12100_v40, %v5154_v61  ;;  %4116 = vperm.xlu1 %9414, %v3881_v1  }
 0x44e   : > { %v5149_v27 = vpop.permute.xlu0 %5148  ;;  %v12387_v23 = vadd.f32 %v12125_v55, %v5525_v35  ;;  %v6327_v49 = vadd.f32 %v6325_v19, %v6321_v33  ;;  %v4945_v6 = vadd.f32 %v4873_v60, %v4364_v22  ;;  %v4946_v14 = vadd.f32 %v4874_v37, %v4365_v7  ;;  %4111 = vperm.xlu0 %9413, %v3880_v5   ;;  %v6331_v25 = vld [vmem:[#allocation2 + $0x2a] ss:$2 sm:$0x7]  ;;  %v5040_v10 = vld [vmem:[%s9714_s14 + $0x15c] sm:$0xff] }
 0x44f   : > { %v12390_v20 = vadd.f32 %v12125_v55, %v5524_v18  ;;  %v5454_v4 = vmul.f32 %v12100_v40, %v5149_v27  ;;  %v6332_v3 = vadd.f32 %v6329_v26, %v6326_v51  ;;  %v6347_v24 = vadd.f32 %v6344_v48, %v6340_v11  ;;  %v15620_v15 = vld [vmem:[#allocation288_spill] sm:$0xff]  ;;  %v15621_v29 = vld [vmem:[#allocation90_spill] sm:$0xff]  ;;  %v12439_v33 = vld [vmem:[%s14924_s1 + $0x2] ss:$0 sm:$0xff] }
 0x450   : > { %v4947_v8 = vadd.f32 %v4875_v41, %v4366_v17  ;;  %v5748_v31 = vmin.f32 %v12387_v23, 0.0  ;;  %v5527_v16 = vadd.f32 %v5455_v52, %v4946_v14  ;;  %v5164_v39 = vpop.permute.xlu1 %5163  ;;  %v6333_v54 = vadd.f32 %v6331_v25, %v6327_v49  ;;  %v3883_v18 = vld [vmem:[%s9714_s14 + $0x182] sm:$0xff]  ;;  %v15623_v51 = vld [vmem:[#allocation141_spill] sm:$0xff]  ;;  %v3882_v27 = vld [vmem:[%s9714_s14 + $0x17a] sm:$0xff] }
 0x451   : > { %v5747_v38 = vmin.f32 %v12390_v20, 0.0  ;;  %v5526_v36 = vadd.f32 %v5454_v4, %v4945_v6  ;;  %v6334_v59 = vmul.f32 0.25, %v6332_v3  ;;  %v4948_v50 = vadd.f32 %v4876_v56, %v4367_v46  ;;  %4136 = vperm.xlu1 %9414, %v3885_v63   ;;  %v15622_v11 = vld [vmem:[#allocation140_spill] sm:$0xff]  ;;  %v15624_v19 = vld [vmem:[#allocation142_spill] sm:$0xff]  ;;  %v15625_v6 = vld [vmem:[#allocation143_spill] sm:$0xff] }
 0x452   : > { %v5159_v45 = vpop.permute.xlu0 %5158  ;;  %v5833_v34 = vmul.f32 1.442695, %v5748_v31  ;;  %v5457_v32 = vmul.f32 %v12100_v40, %v5164_v39  ;;  %v4877_v13 = vmul.f32 %v12067_v44, %v12351_v0  ;;  %v12408_v30 = vadd.f32 %v12125_v55, %v5527_v16  ;;  %4131 = vperm.xlu0 %9413, %v3884_v53   ;;  %v15626_v63 = vld [vmem:[#allocation144_spill] sm:$0xff]  ;;  %v15627_v25 = vld [vmem:[#allocation145_spill] sm:$0xff] }
 0x453   : > { %v5456_v7 = vmul.f32 %v12100_v40, %v5159_v45  ;;  %v5831_v42 = vmul.f32 1.442695, %v5747_v38  ;;  %v12411_v22 = vadd.f32 %v12125_v55, %v5526_v36  ;;  %6336 = vst.msk [vmem:[%s12401_s24] sm:$0xff] %vm6239_vm2, %v6334_v59  ;;  %v6335_v28 = vmul.f32 0.25, %v6333_v54  ;;  %v3888_v53 = vld [vmem:[%s9714_s14 + $0x1aa] sm:$0xff]  ;;  %v15628_v36 = vld [vmem:[#allocation146_spill] sm:$0xff] }
 0x454   : > { %v6350_v46 = vld [vmem:[#allocation2 + $0x4b] ss:$2 sm:$0xff]  ;;  %9457 = vpow2.f32 %v5833_v34  ;;  %v5529_v2 = vadd.f32 %v5457_v32, %v4948_v50  ;;  %v4368_v44 = vadd.f32 %v4296_v62, %v12354_v57  ;;  %v5750_v0 = vmin.f32 %v12408_v30, 0.0  ;;  %v12419_v58 = vpop.permute.xlu1 %4011  ;;  %v6356_v60 = vld [vmem:[#allocation2 + $0x4c] ss:$2 sm:$0xff]  ;;  %v15629_v45 = vld [vmem:[#allocation147_spill] sm:$0xff] }
 0x455   : > { %v5528_v43 = vadd.f32 %v5456_v7, %v4947_v8  ;;  %v6353_v21 = vadd.f32 %v6350_v46, %v6347_v24  ;;  %9459 = vpow2.f32 %v5831_v42  ;;  %v12423_v9 = vadd.f32 %v15621_v29, %v15620_v15  ;;  %5263 = vperm.xlu1 %9414, %v5040_v10   ;;  %6338 = vst.msk [vmem:[%s12401_s24 + $0x8] sm:$0x7] %vm6337_vm14, %v6335_v28  ;;  %v15630_v59 = vld [vmem:[#allocation148_spill] sm:$0xff]  ;;  %v15631_v32 = vld [vmem:[#allocation149_spill] sm:$0xff]  ;;  %v15635_v28 = vld [vmem:[#allocation46_spill] sm:$0xff] }
 0x456   : > { %v5169_v12 = vpop.permute.xlu0 %5168  ;;  %v5749_v37 = vmin.f32 %v12411_v22, 0.0  ;;  %v12427_v1 = vadd.f32 %v12125_v55, %v5529_v2  ;;  %v4949_v17 = vadd.f32 %v4877_v13, %v4368_v44  ;;  %v5837_v41 = vmul.f32 1.442695, %v5750_v0  ;;  %4141 = vperm.xlu0 %9413, %v3886_v47   ;;  %v3887_v34 = vld [vmem:[%s9714_s14 + $0x1a2] sm:$0xff]  ;;  %v15632_v13 = vld [vmem:[#allocation150_spill] sm:$0xff]  ;;  %v15633_v2 = vld [vmem:[#allocation45_spill] sm:$0xff] }
 0x457   : > { %v12430_v57 = vadd.f32 %v12125_v55, %v5528_v43  ;;  %v5458_v35 = vmul.f32 %v12100_v40, %v5169_v12  ;;  %v6359_v5 = vadd.f32 %v6356_v60, %v6353_v21  ;;  %v1985_v48 = vmul.f32 %v12439_v33, %v15622_v11  ;;  %v15634_v43 = vld [vmem:[#allocation91_spill] sm:$0xff]  ;;  %v15639_v29 = vld [vmem:[#allocation48_spill] sm:$0xff]  ;;  %v15644_v11 = vld [vmem:[#allocation50_spill] sm:$0xff] }
 0x458   : > { %v1984_v62 = vmul.f32 %v12439_v33, %v15623_v51  ;;  %v5835_v56 = vmul.f32 1.442695, %v5749_v37  ;;  %v5752_v61 = vmin.f32 %v12427_v1, 0.0  ;;  %v1987_v40 = vmul.f32 %v12439_v33, %v15624_v19  ;;  %v12450_v4 = vpop.permute.xlu1 %4021  ;;  %v15637_v44 = vld [vmem:[#allocation47_spill] sm:$0xff]  ;;  %v15641_v37 = vld [vmem:[#allocation49_spill] sm:$0xff] }
 0x459   : > { %9461 = vpow2.f32 %v5837_v41  ;;  %v5751_v26 = vmin.f32 %v12430_v57, 0.0  ;;  %v5530_v52 = vadd.f32 %v5458_v35, %v4949_v17  ;;  %v1986_v14 = vmul.f32 %v12439_v33, %v15625_v6  ;;  %4126 = vperm.xlu1 %9414, %v3883_v18   ;;  %v15638_v12 = vld [vmem:[#allocation151_spill] sm:$0xff]  ;;  %v15643_v41 = vld [vmem:[#allocation152_spill] sm:$0xff] }
 0x45a   : > { %v12452_v49 = vpop.permute.xlu0 %4016  ;;  %v1989_v3 = vmul.f32 %v12439_v33, %v15626_v63  ;;  %9463 = vpow2.f32 %v5835_v56  ;;  %v5841_v24 = vmul.f32 1.442695, %v5752_v61  ;;  %v1988_v8 = vmul.f32 %v12439_v33, %v15627_v25  ;;  %4121 = vperm.xlu0 %9413, %v3882_v27   ;;  %v15646_v51 = vld [vmem:[#allocation51_spill] sm:$0xff]  ;;  %v15648_v56 = vld [vmem:[#allocation54_spill] sm:$0xff] }
 0x45b   : > { %v5839_v31 = vmul.f32 1.442695, %v5751_v26  ;;  %v12461_v38 = vadd.f32 %v12125_v55, %v5530_v52  ;;  %v6361_v16 = vmul.f32 0.25, %v6359_v5  ;;  %v1991_v39 = vmul.f32 %v12439_v33, %v15628_v36  ;;  %v4460_v5 = vld [vmem:[%s9714_s14 + $0x163] sm:$0xff]  ;;  %v15660_v36 = vld [vmem:[#allocation153_spill] sm:$0xff] }
 0x45c   : > { %v1990_v54 = vmul.f32 %v12439_v33, %v15629_v45  ;;  %v1993_v50 = vmul.f32 %v12439_v33, %v15630_v59  ;;  %9465 = vpow2.f32 %v5841_v24  ;;  %v1992_v7 = vmul.f32 %v12439_v33, %v15631_v32  ;;  %v12476_v10 = vpop.permute.xlu1 %4046  ;;  %v15650_v27 = vld [vmem:[#allocation55_spill] sm:$0xff]  ;;  %v15652_v52 = vld [vmem:[#allocation56_spill] sm:$0xff]  ;;  %v15661_v45 = vld [vmem:[#allocation154_spill] sm:$0xff] }
 0x45d   : > { %v1995_v55 = vmul.f32 %v12439_v33, %v15632_v13  ;;  %9467 = vpow2.f32 %v5839_v31  ;;  %v5753_v42 = vmin.f32 %v12461_v38, 0.0  ;;  %6363 = vst.msk [vmem:[%s12401_s24 + $0xb] sm:$0xff] %vm6239_vm2, %v6361_v16  ;;  %v12484_v47 = vadd.f32 %v15634_v43, %v15633_v2  ;;  %4151 = vperm.xlu1 %9414, %v3888_v53   ;;  %v15658_v53 = vld [vmem:[#allocation59_spill] sm:$0xff]  ;;  %v15665_v13 = vld [vmem:[#allocation156_spill] sm:$0xff]  ;;  %v4462_v43 = vld [vmem:[%s9714_s14 + $0x173] sm:$0xff] }
 0x45e   : > { %v12478_v46 = vpop.permute.xlu0 %4041  ;;  %v12487_v21 = vadd.f32 %v1985_v48, %v15635_v28  ;;  %v12490_v0 = vadd.f32 %v1984_v62, %v15637_v44  ;;  %v1994_v15 = vmul.f32 %v12439_v33, %v15638_v12  ;;  %v12495_v60 = vadd.f32 %v1987_v40, %v15639_v29  ;;  %4146 = vperm.xlu0 %9413, %v3887_v34   ;;  %v3889_v40 = vld [vmem:[%s9714_s14 + $0x1b2] sm:$0xff]  ;;  %v15664_v32 = vld [vmem:[#allocation155_spill] sm:$0xff] }
 0x45f   : > { %v12498_v17 = vadd.f32 %v1986_v14, %v15641_v37  ;;  %v1997_v35 = vmul.f32 %v12439_v33, %v15643_v41  ;;  %v5843_v18 = vmul.f32 1.442695, %v5753_v42  ;;  %v12504_v48 = vadd.f32 %v1989_v3, %v15644_v11  ;;  %v15654_v14 = vld [vmem:[#allocation57_spill] sm:$0xff]  ;;  %v15656_v3 = vld [vmem:[#allocation58_spill] sm:$0xff]  ;;  %v6599_v2 = vld [vmem:[%s12401_s24] sm:$0xff] }
 0x460   : > { %15636 = vst [vmem:[#allocation280_spill] sm:$0xff] %v12487_v21  ;;  %15640 = vst [vmem:[#allocation97_spill] sm:$0xff] %v12495_v60  ;;  %v12507_v62 = vadd.f32 %v1988_v8, %v15646_v51  ;;  %v12510_v61 = vadd.f32 %v1991_v39, %v15648_v56  ;;  %v12513_v19 = vadd.f32 %v1990_v54, %v15650_v27  ;;  %v12525_v25 = vpop.permute.xlu1 %4031  ;;  %v15666_v28 = vld [vmem:[#allocation157_spill] sm:$0xff]  ;;  %v12550_v12 = vld [vmem:[%s14924_s1 + $0x3] ss:$0 sm:$0xff]  ;;  %vm5676_vm15 = vcmp.gt.f32.partialorder %v12387_v23, 0.0 }
 0x461   : > { %15642 = vst [vmem:[#allocation98_spill] sm:$0xff] %v12498_v17  ;;  %15645 = vst [vmem:[#allocation99_spill] sm:$0xff] %v12504_v48  ;;  %v9458_v26 = vpop.eup %9457  ;;  %v12517_v6 = vadd.f32 %v1993_v50, %v15652_v52  ;;  %v12520_v63 = vadd.f32 %v1992_v7, %v15654_v14  ;;  %v12523_v24 = vadd.f32 %v1995_v55, %v15656_v3  ;;  %9469 = vpow2.f32 %v5843_v18  ;;  %v15662_v50 = vld [vmem:[#allocation60_spill] sm:$0xff]  ;;  %v15668_v37 = vld [vmem:[#allocation202_spill] sm:$0xff] }
 0x462   : > { %15647 = vst [vmem:[#allocation281_spill] sm:$0xff] %v12507_v62  ;;  %15649 = vst [vmem:[#allocation9_spill] sm:$0xff] %v12510_v61  ;;  %v12527_v8 = vpop.permute.xlu0 %4026  ;;  %v9460_v31 = vpop.eup %9459  ;;  %v12530_v16 = vadd.f32 %v1994_v15, %v15658_v53  ;;  %v1996_v39 = vmul.f32 %v12439_v33, %v15660_v36  ;;  %v1999_v54 = vmul.f32 %v12439_v33, %v15661_v45  ;;  %v8786_v59 = vadd.f32 -1.0, %v9458_v26  ;;  %v15667_v15 = vld [vmem:[#allocation200_spill] sm:$0xff]  ;;  %v15669_v14 = vld [vmem:[#allocation61_spill] sm:$0xff] }
 0x463   : > { %15651 = vst [vmem:[#allocation10_spill] sm:$0xff] %v12513_v19  ;;  %15653 = vst [vmem:[#allocation101_spill] sm:$0xff] %v12517_v6  ;;  %4687 = vperm.xlu1 %9414, %v4460_v5   ;;  %v12537_v34 = vadd.f32 %v1997_v35, %v15662_v50  ;;  %v1998_v7 = vmul.f32 %v12439_v33, %v15664_v32  ;;  %v2001_v55 = vmul.f32 %v12439_v33, %v15665_v13  ;;  %v6621_v18 = vld [vmem:[%s12401_s24 + $0x1] sm:$0xff]  ;;  %v4461_v26 = vld [vmem:[%s9714_s14 + $0x16b] sm:$0xff] }
 0x464   : > { %15655 = vst [vmem:[#allocation11_spill] sm:$0xff] %v12520_v63  ;;  %15657 = vst [vmem:[#allocation12_spill] sm:$0xff] %v12523_v24  ;;  %v8785_v42 = vadd.f32 -1.0, %v9460_v31  ;;  %4156 = vperm.xlu0 %9413, %v3889_v40   ;;  %v2000_v44 = vmul.f32 %v12439_v33, %v15666_v28  ;;  %v2554_v29 = vmul.f32 %v12550_v12, %v15667_v15  ;;  %v6036_v35 = vmul.f32 1.6732632, %v8786_v59  ;;  %v6622_v5 = vld [vmem:[%s12401_s24 + $0x9] sm:$0xff]  ;;  %v12560_v27 = vpop.permute.xlu1 %4056 }
 0x465   : > { %15659 = vst [vmem:[#allocation15_spill] sm:$0xff] %v12530_v16  ;;  %15663 = vst [vmem:[#allocation110_spill] sm:$0xff] %v12537_v34  ;;  %v2556_v41 = vmul.f32 %v12550_v12, %v15668_v37  ;;  %v6600_v11 = vld [vmem:[%s12401_s24 + $0x8] sm:$0xff]  ;;  %v6634_v56 = vpack.c.bf16 %v6622_v5, %v6621_v18  ;;  %v12566_v3 = vadd.f32 %v1996_v39, %v15669_v14  ;;  %vm5675_vm1 = vcmp.gt.f32.partialorder %v12390_v20, 0.0  ;;  %v15673_v59 = vld [vmem:[#allocation65_spill] sm:$0xff] }
 0x466   : > { %v6035_v51 = vmul.f32 1.6732632, %v8785_v42  ;;  %v6612_v33 = vpack.c.bf16 %v6600_v11, %v6599_v2  ;;  %v12562_v40 = vpop.permute.xlu0 %4036  ;;  %v9462_v52 = vpop.eup %9461  ;;  %v15671_v31 = vld [vmem:[#allocation64_spill] sm:$0xff]  ;;  %v6108_v36 = vsel %vm5676_vm15, %v12387_v23, %v6036_v35  ;;  %v12574_v50 = vadd.f32 %v1998_v7, %v15673_v59  ;;  %v4466_v39 = vld [vmem:[%s9714_s14 + $0x193] sm:$0xff]  ;;  %v15677_v23 = vld [vmem:[#allocation67_spill] sm:$0xff] }
 0x467   : > { %15670 = vst [vmem:[#allocation16_spill] sm:$0xff] %v12566_v3  ;;  %v12569_v53 = vadd.f32 %v1999_v54, %v15671_v31  ;;  %4697 = vperm.xlu1 %9414, %v4462_v43   ;;  %v9464_v45 = vpop.eup %9463  ;;  %v6180_v32 = vmul.f32 1.050701, %v6108_v36  ;;  %v8788_v42 = vadd.f32 -1.0, %v9462_v52  ;;  %9080 = vmatmul.mubr.msk.bf16.vlgmr.msra.gmra.mxu0 %vm6239_vm2, %v6634_v56  ;;  %v15675_v54 = vld [vmem:[#allocation66_spill] sm:$0xff]  ;;  %v12584_v28 = vadd.f32 %v2000_v44, %v15677_v23  ;;  %v15680_v37 = vld [vmem:[#allocation84_spill] sm:$0xff] }
 0x468   : > { %15674 = vst [vmem:[#allocation18_spill] sm:$0xff] %v12574_v50  ;;  %v6107_v13 = vsel %vm5675_vm1, %v12390_v20, %v6035_v51  ;;  %9110 = vmatmul.mubr.msk.bf16.vlgmr.msra.gmra.mxu1 %vm6239_vm2, %v6612_v33  ;;  %v12581_v2 = vadd.f32 %v2001_v55, %v15675_v54  ;;  %v8787_v15 = vadd.f32 -1.0, %v9464_v45  ;;  %4692 = vperm.xlu0 %9413, %v4461_v26   ;;  %v15679_v7 = vmov 0.0   ;;  %v15681_v18 = vld [vmem:[#allocation85_spill] sm:$0xff]  ;;  %v15682_v11 = vld [vmem:[#allocation203_spill] sm:$0xff]  ;;  %v12597_v33 = vpop.permute.xlu1 %4592  ;;  %v15685_v23 = vld [vmem:[#allocation206_spill] sm:$0xff] }
 0x469   : > { %15672 = vst [vmem:[#allocation17_spill] sm:$0xff] %v12569_v53  ;;  %15678 = vst [vmem:[#allocation20_spill] sm:$0xff] %v12584_v28  ;;  %v6179_v43 = vmul.f32 1.050701, %v6107_v13  ;;  %9083 = vmatprep.mubr.msk.bf16.mxu0 %vm9649_vm0, %v15679_v7  ;;  %v9466_v20 = vpop.eup %9465  ;;  %v12589_v35 = vadd.f32 %v2554_v29, %v15680_v37  ;;  %v12592_v5 = vadd.f32 %v2556_v41, %v15681_v18  ;;  %v6038_v44 = vmul.f32 1.6732632, %v8788_v42 }
 0x46a   : > { %15676 = vst [vmem:[#allocation19_spill] sm:$0xff] %v12581_v2  ;;  %v2555_v55 = vmul.f32 %v12550_v12, %v15682_v11  ;;  %v6342_v51 = vld [vmem:[#allocation2 + $0x42] ss:$2 sm:$0x7]  ;;  %6253 = vst.msk [vmem:[#allocation2 + $0x68] sm:$0xff] %vm6239_vm2, %v6180_v32  ;;  %v12599_v26 = vpop.permute.xlu0 %4061  ;;  %v4465_v52 = vld [vmem:[%s9714_s14 + $0x18b] sm:$0xff]  ;;  %9113 = vmatprep.mubr.msk.bf16.mxu1 %vm9649_vm0, %v15679_v7  ;;  %v9468_v29 = vpop.eup %9467  ;;  %v2560_v37 = vmul.f32 %v12550_v12, %v15685_v23 }
 0x46b   : > { %v6346_v56 = vld [vmem:[#allocation2 + $0x43] ss:$2 sm:$0x7]  ;;  %v15683_v41 = vld [vmem:[#allocation204_spill] sm:$0xff]  ;;  %6252 = vst.msk [vmem:[#allocation2 + $0x60] sm:$0xff] %vm6239_vm2, %v6179_v43  ;;  %vm5678_vm3 = vcmp.gt.f32.partialorder %v12408_v30, 0.0  ;;  %4717 = vperm.xlu1 %9414, %v4466_v39  }
 0x46c   : > { %v2558_v14 = vmul.f32 %v12550_v12, %v15683_v41  ;;  %v6037_v31 = vmul.f32 1.6732632, %v8787_v15  ;;  %v8790_v36 = vadd.f32 -1.0, %v9466_v20  ;;  %v15684_v45 = vld [vmem:[#allocation205_spill] sm:$0xff]  ;;  %v6110_v13 = vsel %vm5678_vm3, %v12408_v30, %v6038_v44  ;;  %v4463_v54 = vld [vmem:[%s9714_s14 + $0x17b] sm:$0xff]  ;;  %4712 = vperm.xlu0 %9413, %v4465_v52   ;;  %v12619_v30 = vpop.permute.xlu1 %4602  ;;  %v15716_v60 = vld [vmem:[#allocation360_spill] sm:$0xff] }
 0x46d   : > { %v2557_v59 = vmul.f32 %v12550_v12, %v15684_v45  ;;  %v6352_v32 = vld [vmem:[#allocation2 + $0x5b] ss:$2 sm:$0x7]  ;;  %vm5677_vm4 = vcmp.gt.f32.partialorder %v12411_v22, 0.0  ;;  %v8789_v42 = vadd.f32 -1.0, %v9468_v29  ;;  %v15686_v39 = vld [vmem:[#allocation207_spill] sm:$0xff]  ;;  %v6348_v28 = vadd.f32 %v6346_v56, %v6342_v51 }
 0x46e   : > { %v6182_v43 = vmul.f32 1.050701, %v6110_v13  ;;  %v6109_v18 = vsel %vm5677_vm4, %v12411_v22, %v6037_v31  ;;  %v6040_v15 = vmul.f32 1.6732632, %v8790_v36  ;;  %v2559_v20 = vmul.f32 %v12550_v12, %v15686_v39  ;;  %v12621_v44 = vpop.permute.xlu0 %4597  ;;  %v4467_v29 = vld [vmem:[%s9714_s14 + $0x19b] sm:$0xff]  ;;  %v9470_v45 = vpop.eup %9469  ;;  %v4468_v39 = vld [vmem:[%s9714_s14 + $0x1a3] sm:$0xff] }
 0x46f   : > { %v6181_v11 = vmul.f32 1.050701, %v6109_v18  ;;  %vm5680_vm5 = vcmp.gt.f32.partialorder %v12427_v1, 0.0  ;;  %v6039_v41 = vmul.f32 1.6732632, %v8789_v42  ;;  %v15687_v23 = vld [vmem:[#allocation86_spill] sm:$0xff]  ;;  %4702 = vperm.xlu1 %9414, %v4463_v54  }
 0x470   : > { %v2627_v13 = vadd.f32 %v2555_v55, %v15687_v23  ;;  %6255 = vst.msk [vmem:[#allocation2 + $0x78] sm:$0xff] %vm6239_vm2, %v6182_v43  ;;  %v6112_v22 = vsel %vm5680_vm5, %v12427_v1, %v6040_v15  ;;  %vm5679_vm6 = vcmp.gt.f32.partialorder %v12430_v57, 0.0  ;;  %v15688_v52 = vld [vmem:[#allocation6_spill] sm:$0xff]  ;;  %v8791_v18 = vadd.f32 -1.0, %v9470_v45  ;;  %v15689_v2 = vld [vmem:[#allocation7_spill] sm:$0xff]  ;;  %v15690_v51 = vld [vmem:[#allocation8_spill] sm:$0xff]  ;;  %4722 = vperm.xlu0 %9413, %v4467_v29  }
 0x471   : > { %v2630_v31 = vadd.f32 %v2558_v14, %v15688_v52  ;;  %6254 = vst.msk [vmem:[#allocation2 + $0x70] sm:$0xff] %vm6239_vm2, %v6181_v11  ;;  %v6184_v36 = vmul.f32 1.050701, %v6112_v22  ;;  %v6111_v42 = vsel %vm5679_vm6, %v12430_v57, %v6039_v41  ;;  %v2629_v55 = vadd.f32 %v2557_v59, %v15689_v2  ;;  %v15691_v1 = vld [vmem:[#allocation87_spill] sm:$0xff]  ;;  %v15692_v54 = vld [vmem:[#allocation209_spill] sm:$0xff]  ;;  %v15693_v52 = vld [vmem:[#allocation210_spill] sm:$0xff]  ;;  %v12640_v41 = vpop.permute.xlu1 %4627 }
 0x472   : > { %v2632_v56 = vadd.f32 %v2560_v37, %v15690_v51  ;;  %v6354_v43 = vadd.f32 %v6352_v32, %v6348_v28  ;;  %v6183_v23 = vmul.f32 1.050701, %v6111_v42  ;;  %v2631_v15 = vadd.f32 %v2559_v20, %v15691_v1  ;;  %v6358_v22 = vld [vmem:[#allocation2 + $0x5c] ss:$2 sm:$0x7]  ;;  %v12642_v2 = vpop.permute.xlu0 %4622  ;;  %v4464_v28 = vld [vmem:[%s9714_s14 + $0x183] sm:$0xff] }
 0x473   : > { %v2561_v14 = vmul.f32 %v12550_v12, %v15692_v54  ;;  %v2564_v11 = vmul.f32 %v12550_v12, %v15693_v52  ;;  %6257 = vst.msk [vmem:[#allocation2 + $0x88] sm:$0xff] %vm6239_vm2, %v6184_v36  ;;  %v6041_v57 = vmul.f32 1.6732632, %v8791_v18  ;;  %v15694_v59 = vld [vmem:[#allocation211_spill] sm:$0xff]  ;;  %v15695_v20 = vld [vmem:[#allocation272_spill] sm:$0xff]  ;;  %vm5681_vm7 = vcmp.gt.f32.partialorder %v12461_v38, 0.0  ;;  %4727 = vperm.xlu1 %9414, %v4468_v39  }
 0x474   : > { %v2563_v32 = vmul.f32 %v12550_v12, %v15694_v59  ;;  %v12650_v37 = vld [vmem:[%s14924_s1 + $0x4] ss:$0 sm:$0xff]  ;;  %6256 = vst.msk [vmem:[#allocation2 + $0x80] sm:$0xff] %vm6239_vm2, %v6183_v23  ;;  %v6360_v45 = vadd.f32 %v6358_v22, %v6354_v43  ;;  %v15696_v36 = vld [vmem:[#allocation274_spill] sm:$0xff]  ;;  %v15698_v1 = vld [vmem:[#allocation276_spill] sm:$0xff]  ;;  %4707 = vperm.xlu0 %9413, %v4464_v28  }
 0x475   : > { %v3135_v29 = vmul.f32 %v12650_v37, %v15695_v20  ;;  %v3137_v42 = vmul.f32 %v12650_v37, %v15696_v36  ;;  %v15697_v18 = vld [vmem:[#allocation275_spill] sm:$0xff]  ;;  %v3139_v54 = vmul.f32 %v12650_v37, %v15698_v1  ;;  %v6113_v52 = vsel %vm5681_vm7, %v12461_v38, %v6041_v57  ;;  %v4470_v59 = vld [vmem:[%s9714_s14 + $0x1b3] sm:$0xff]  ;;  %v15701_v36 = vld [vmem:[#allocation208_spill] sm:$0xff] }
 0x476   : > { %v3136_v51 = vmul.f32 %v12650_v37, %v15697_v18  ;;  %v15699_v20 = vld [vmem:[#allocation277_spill] sm:$0xff]  ;;  %v15700_v50 = vld [vmem:[#allocation278_spill] sm:$0xff]  ;;  %v6185_v43 = vmul.f32 1.050701, %v6113_v52  ;;  %v6362_v22 = vmul.f32 0.25, %v6360_v45  ;;  %v12670_v53 = vmul.f32 %v12550_v12, %v15701_v36  ;;  %v15703_v1 = vld [vmem:[#allocation279_spill] sm:$0xff] }
 0x477   : > { %v3138_v23 = vmul.f32 %v12650_v37, %v15699_v20  ;;  %v3141_v39 = vmul.f32 %v12650_v37, %v15700_v50  ;;  %v15702_v18 = vld [vmem:[#allocation89_spill] sm:$0xff]  ;;  %v3140_v38 = vmul.f32 %v12650_v37, %v15703_v1  ;;  %v15704_v57 = vld [vmem:[#allocation283_spill] sm:$0xff]  ;;  %v12677_v20 = vpop.permute.xlu1 %4607  ;;  %v12679_v50 = vpop.permute.xlu0 %4066  ;;  %v2636_v45 = vadd.f32 %v2564_v11, %v12423_v9  ;;  %v15705_v36 = vld [vmem:[#allocation286_spill] sm:$0xff]  ;;  %4737 = vperm.xlu1 %9414, %v4470_v59  }
 0x478   : > { %v2633_v3 = vadd.f32 %v2561_v14, %v15702_v18  ;;  %v3142_v34 = vmul.f32 %v12650_v37, %v15704_v57  ;;  %v4469_v28 = vld [vmem:[%s9714_s14 + $0x1ab] sm:$0xff]  ;;  %v2635_v52 = vadd.f32 %v2563_v32, %v12484_v47  ;;  %v3145_v16 = vmul.f32 %v12650_v37, %v15705_v36  ;;  %v15706_v14 = vld [vmem:[#allocation287_spill] sm:$0xff]  ;;  %6258 = vst.msk [vmem:[#allocation2 + $0x90] sm:$0xff] %vm6239_vm2, %v6185_v43  ;;  %v6368_v61 = vld [vmem:[#allocation2 + $0x74] ss:$2 sm:$0x7] }
 0x479   : > { %v3144_v18 = vmul.f32 %v12650_v37, %v15706_v14  ;;  %v6366_v1 = vld [vmem:[#allocation2 + $0x64] ss:$2 sm:$0xff]  ;;  %6364 = vst.msk [vmem:[%s12401_s24 + $0x13] sm:$0x7] %vm6337_vm14, %v6362_v22  ;;  %v3207_v9 = vadd.f32 %v3135_v29, %v12589_v35  ;;  %v3209_v47 = vadd.f32 %v3137_v42, %v12592_v5  ;;  %v3208_v11 = vadd.f32 %v3136_v51, %v2627_v13  ;;  %v6370_v32 = vld [vmem:[#allocation2 + $0x65] ss:$2 sm:$0xff] }
 0x47a   : > { %v15707_v57 = vld [vmem:[#allocation213_spill] sm:$0xff]  ;;  %v3211_v63 = vadd.f32 %v3139_v54, %v2630_v31  ;;  %v3210_v14 = vadd.f32 %v3138_v23, %v2629_v55  ;;  %v3213_v6 = vadd.f32 %v3141_v39, %v2632_v56  ;;  %v6373_v43 = vadd.f32 %v6370_v32, %v6366_v1  ;;  %4732 = vperm.xlu0 %9413, %v4469_v28   ;;  %v15708_v35 = vld [vmem:[#allocation350_spill] sm:$0xff]  ;;  %v15709_v13 = vld [vmem:[#allocation352_spill] sm:$0xff] }
 0x47b   : > { %v12693_v24 = vmul.f32 %v12550_v12, %v15707_v57  ;;  %v5042_v36 = vld [vmem:[%s9714_s14 + $0x16c] sm:$0xff]  ;;  %v3212_v59 = vadd.f32 %v3140_v38, %v2631_v15  ;;  %v3214_v22 = vadd.f32 %v3142_v34, %v2633_v3  ;;  %v12701_v57 = vld [vmem:[%s14924_s1 + $0x5] ss:$0 sm:$0xff]  ;;  %v6372_v42 = vld [vmem:[#allocation2 + $0x75] ss:$2 sm:$0x7]  ;;  %v12707_v55 = vpop.permute.xlu1 %4617  ;;  %v12709_v56 = vpop.permute.xlu0 %4612  ;;  %v3217_v34 = vadd.f32 %v3145_v16, %v2636_v45 }
 0x47c   : > { %v3716_v5 = vmul.f32 %v12701_v57, %v15708_v35  ;;  %v3718_v29 = vmul.f32 %v12701_v57, %v15709_v13  ;;  %v6376_v31 = vld [vmem:[#allocation2 + $0x7d] ss:$2 sm:$0xff]  ;;  %v12712_v3 = vadd.f32 %v3144_v18, %v2635_v52  ;;  %v15710_v51 = vld [vmem:[#allocation353_spill] sm:$0xff]  ;;  %5273 = vperm.xlu1 %9414, %v5042_v36   ;;  %v6382_v13 = vld [vmem:[#allocation2 + $0x7e] ss:$2 sm:$0xff]  ;;  %v3726_v21 = vmul.f32 %v12701_v57, %v15716_v60 }
 0x47d   : > { %v5041_v15 = vld [vmem:[%s9714_s14 + $0x164] sm:$0xff]  ;;  %v3717_v54 = vmul.f32 %v12701_v57, %v15710_v51  ;;  %v6379_v23 = vadd.f32 %v6376_v31, %v6373_v43  ;;  %v15711_v39 = vld [vmem:[#allocation354_spill] sm:$0xff]  ;;  %v5046_v52 = vld [vmem:[%s9714_s14 + $0x18c] sm:$0xff]  ;;  %v6374_v43 = vadd.f32 %v6372_v42, %v6368_v61 }
 0x47e   : > { %v3720_v38 = vmul.f32 %v12701_v57, %v15711_v39  ;;  %v15712_v28 = vld [vmem:[#allocation355_spill] sm:$0xff]  ;;  %v15713_v32 = vld [vmem:[#allocation356_spill] sm:$0xff]  ;;  %v15714_v18 = vld [vmem:[#allocation357_spill] sm:$0xff]  ;;  %5268 = vperm.xlu0 %9413, %v5041_v15   ;;  %v3788_v39 = vadd.f32 %v3716_v5, %v3207_v9 }
 0x47f   : > { %v3719_v1 = vmul.f32 %v12701_v57, %v15712_v28  ;;  %v3722_v35 = vmul.f32 %v12701_v57, %v15713_v32  ;;  %v12725_v16 = vld [vmem:[%s14924_s1 + $0x6] ss:$0 sm:$0xff]  ;;  %v3721_v36 = vmul.f32 %v12701_v57, %v15714_v18  ;;  %v6385_v51 = vadd.f32 %v6382_v13, %v6379_v23  ;;  %v6378_v62 = vld [vmem:[#allocation2 + $0x8d] ss:$2 sm:$0x7]  ;;  %v12743_v42 = vpop.permute.xlu1 %4642  ;;  %v5043_v15 = vld [vmem:[%s9714_s14 + $0x174] sm:$0xff] }
 0x480   : > { %v4297_v45 = vmul.f32 %v12725_v16, %v12419_v58  ;;  %v4298_v31 = vmul.f32 %v12725_v16, %v12452_v49  ;;  %v3790_v28 = vadd.f32 %v3718_v29, %v3209_v47  ;;  %v15715_v32 = vld [vmem:[#allocation359_spill] sm:$0xff]  ;;  %v12745_v49 = vpop.permute.xlu0 %4637  ;;  %v3789_v9 = vadd.f32 %v3717_v54, %v3208_v11  ;;  %5293 = vperm.xlu1 %9414, %v5046_v52   ;;  %v6384_v48 = vld [vmem:[#allocation2 + $0x8e] ss:$2 sm:$0x7]  ;;  %v12765_v60 = vld [vmem:[%s14924_s1 + $0x8] ss:$0 sm:$0xff] }
 0x481   : > { %v3723_v19 = vmul.f32 %v12701_v57, %v15715_v32  ;;  %v12739_v58 = vld [vmem:[%s14924_s1 + $0x7] ss:$0 sm:$0xff]  ;;  %v6380_v47 = vadd.f32 %v6378_v62, %v6374_v43  ;;  %v6387_v29 = vmul.f32 0.25, %v6385_v51  ;;  %v3792_v23 = vadd.f32 %v3720_v38, %v3211_v63  ;;  %v5047_v38 = vld [vmem:[%s9714_s14 + $0x194] sm:$0xff] }
 0x482   : > { %v4878_v61 = vmul.f32 %v12739_v58, %v12597_v33  ;;  %v4879_v5 = vmul.f32 %v12739_v58, %v12621_v44  ;;  %v3791_v13 = vadd.f32 %v3719_v1, %v3210_v14  ;;  %v3794_v18 = vadd.f32 %v3722_v35, %v3213_v6  ;;  %v5048_v33 = vld [vmem:[%s9714_s14 + $0x19c] sm:$0xff]  ;;  %5278 = vperm.xlu0 %9413, %v5043_v15  }
 0x483   : > { %v4369_v32 = vadd.f32 %v4297_v45, %v3788_v39  ;;  %v12751_v17 = vadd.f32 %v3721_v36, %v3212_v59  ;;  %v4370_v11 = vadd.f32 %v4298_v31, %v3789_v9  ;;  %v6386_v62 = vadd.f32 %v6384_v48, %v6380_v47  ;;  %6389 = vst.msk [vmem:[%s12401_s24 + $0x16] sm:$0xff] %vm6239_vm2, %v6387_v29  ;;  %v5179_v54 = vpop.permute.xlu1 %5178  ;;  %v5045_v36 = vld [vmem:[%s9714_s14 + $0x184] sm:$0xff] }
 0x484   : > { %v3795_v44 = vadd.f32 %v3723_v19, %v3214_v22  ;;  %v4299_v63 = vmul.f32 %v12725_v16, %v12450_v4  ;;  %v4303_v6 = vmul.f32 %v12725_v16, %v12478_v46  ;;  %v5174_v59 = vpop.permute.xlu0 %5173  ;;  %v5460_v48 = vmul.f32 %v12765_v60, %v5179_v54  ;;  %5303 = vperm.xlu1 %9414, %v5048_v33   ;;  %v15717_v22 = vld [vmem:[#allocation361_spill] sm:$0xff] }
 0x485   : > { %v4950_v14 = vadd.f32 %v4878_v61, %v4369_v32  ;;  %v4951_v1 = vadd.f32 %v4879_v5, %v4370_v11  ;;  %v5459_v19 = vmul.f32 %v12765_v60, %v5174_v59  ;;  %v6388_v4 = vmul.f32 0.25, %v6386_v62  ;;  %v5050_v32 = vld [vmem:[%s9714_s14 + $0x1ac] sm:$0xff]  ;;  %v5049_v59 = vld [vmem:[%s9714_s14 + $0x1a4] sm:$0xff] }
 0x486   : > { %v3725_v46 = vmul.f32 %v12701_v57, %v15717_v22  ;;  %v4304_v35 = vmul.f32 %v12725_v16, %v12476_v10  ;;  %v4880_v45 = vmul.f32 %v12739_v58, %v12619_v30  ;;  %v4884_v52 = vmul.f32 %v12739_v58, %v12642_v2  ;;  %5298 = vperm.xlu0 %9413, %v5047_v38  }
 0x487   : > { %v12778_v43 = vadd.f32 %v3726_v21, %v3217_v34  ;;  %v4301_v31 = vmul.f32 %v12725_v16, %v12525_v25  ;;  %v5532_v51 = vadd.f32 %v5460_v48, %v4951_v1  ;;  %v5531_v39 = vadd.f32 %v5459_v19, %v4950_v14  ;;  %6390 = vst.msk [vmem:[%s12401_s24 + $0x1e] sm:$0x7] %vm6337_vm14, %v6388_v4  ;;  %v5204_v15 = vpop.permute.xlu1 %5203  ;;  %v5044_v34 = vld [vmem:[%s9714_s14 + $0x17c] sm:$0xff] }
 0x488   : > { %v4371_v61 = vadd.f32 %v4299_v63, %v3790_v28  ;;  %v4375_v10 = vadd.f32 %v4303_v6, %v3794_v18  ;;  %v4300_v30 = vmul.f32 %v12725_v16, %v12527_v8  ;;  %v4885_v2 = vmul.f32 %v12739_v58, %v12640_v41  ;;  %v5184_v21 = vpop.permute.xlu0 %5183  ;;  %v12792_v25 = vld [vmem:[%s14925_s2] ss:$0 sm:$0xff]  ;;  %5288 = vperm.xlu1 %9414, %v5045_v36   ;;  %v3891_v19 = vld [vmem:[%s9714_s14 + $0x1c2] sm:$0xff] }
 0x489   : > { %v12795_v9 = vadd.f32 %v12792_v25, %v5532_v51  ;;  %v12798_v28 = vadd.f32 %v12792_v25, %v5531_v39  ;;  %v5465_v47 = vmul.f32 %v12765_v60, %v5204_v15  ;;  %v5461_v8 = vmul.f32 %v12765_v60, %v5184_v21 }
 0x48a   : > { %v3797_v41 = vadd.f32 %v3725_v46, %v12712_v3  ;;  %v4376_v5 = vadd.f32 %v4304_v35, %v3795_v44  ;;  %v4952_v29 = vadd.f32 %v4880_v45, %v4371_v61  ;;  %v4956_v18 = vadd.f32 %v4884_v52, %v4375_v10  ;;  %5283 = vperm.xlu0 %9413, %v5044_v34   ;;  %v6623_v46 = vld [vmem:[%s12401_s24 + $0x11] sm:$0xff] }
 0x48b   : > { %v4373_v33 = vadd.f32 %v4301_v31, %v3792_v23  ;;  %v4306_v11 = vmul.f32 %v12725_v16, %v12560_v27  ;;  %v5755_v62 = vmin.f32 %v12795_v9, 0.0  ;;  %v5754_v63 = vmin.f32 %v12798_v28, 0.0  ;;  %v12810_v54 = vpop.permute.xlu1 %4647  ;;  %v6601_v61 = vld [vmem:[%s12401_s24 + $0x10] sm:$0xff] }
 0x48c   : > { %v4372_v6 = vadd.f32 %v4300_v30, %v3791_v13  ;;  %v4882_v14 = vmul.f32 %v12739_v58, %v12709_v56  ;;  %v5537_v3 = vadd.f32 %v5465_v47, %v4956_v18  ;;  %v5533_v44 = vadd.f32 %v5461_v8, %v4952_v29  ;;  %v5209_v23 = vpop.permute.xlu0 %5208  ;;  %5313 = vperm.xlu1 %9414, %v5050_v32   ;;  %v5051_v30 = vld [vmem:[%s9714_s14 + $0x1b4] sm:$0xff] }
 0x48d   : > { %v4957_v27 = vadd.f32 %v4885_v2, %v4376_v5  ;;  %v5847_v38 = vmul.f32 1.442695, %v5755_v62  ;;  %v5845_v1 = vmul.f32 1.442695, %v5754_v63  ;;  %v5466_v48 = vmul.f32 %v12765_v60, %v5209_v23  ;;  %v3893_v5 = vld [vmem:[%s9714_s14 + $0x1d2] sm:$0xff] }
 0x48e   : > { %v4302_v13 = vmul.f32 %v12725_v16, %v12562_v40  ;;  %v4881_v56 = vmul.f32 %v12739_v58, %v12677_v20  ;;  %v12820_v4 = vadd.f32 %v12792_v25, %v5537_v3  ;;  %v12823_v22 = vadd.f32 %v12792_v25, %v5533_v44  ;;  %v6624_v35 = vld [vmem:[%s12401_s24 + $0x19] sm:$0xff]  ;;  %5308 = vperm.xlu0 %9413, %v5049_v59  }
 0x48f   : > { %v6602_v45 = vld [vmem:[%s12401_s24 + $0x18] sm:$0xff]  ;;  %v4378_v52 = vadd.f32 %v4306_v11, %v3797_v41  ;;  %9471 = vpow2.f32 %v5847_v38  ;;  %v5538_v36 = vadd.f32 %v5466_v48, %v4957_v27  ;;  %v6635_v31 = vpack.c.bf16 %v6624_v35, %v6623_v46  ;;  %v5194_v39 = vpop.permute.xlu1 %5193 }
 0x490   : > { %v4954_v40 = vadd.f32 %v4882_v14, %v4373_v33  ;;  %v4887_v20 = vmul.f32 %v12739_v58, %v12745_v49  ;;  %9473 = vpow2.f32 %v5845_v1  ;;  %v5760_v51 = vmin.f32 %v12820_v4, 0.0  ;;  %v5189_v10 = vpop.permute.xlu0 %5188  ;;  %4166 = vperm.xlu1 %9414, %v3891_v19   ;;  %v3892_v14 = vld [vmem:[%s9714_s14 + $0x1ca] sm:$0xff]  ;;  %v3894_v38 = vld [vmem:[%s9714_s14 + $0x1da] sm:$0xff] }
 0x491   : > { %v5756_v2 = vmin.f32 %v12823_v22, 0.0  ;;  %v12835_v15 = vadd.f32 %v12792_v25, %v5538_v36  ;;  %v5463_v21 = vmul.f32 %v12765_v60, %v5194_v39  ;;  %9084 = vmatmul.mubr.msk.bf16.gmra.mxu0 %vm6239_vm2, %v6635_v31  ;;  %v6613_v34 = vpack.c.bf16 %v6602_v45, %v6601_v61  ;;  %v15718_v1 = vld [vmem:[#allocation291_spill] sm:$0xff] }
 0x492   : > { %v4953_v49 = vadd.f32 %v4881_v56, %v4372_v6  ;;  %v4883_v47 = vmul.f32 %v12739_v58, %v12707_v55  ;;  %v5857_v8 = vmul.f32 1.442695, %v5760_v51  ;;  %v5462_v41 = vmul.f32 %v12765_v60, %v5189_v10  ;;  %9087 = vmatprep.mubr.msk.bf16.mxu0 %vm9649_vm0, %v15679_v7  ;;  %5318 = vperm.xlu0 %9413, %v5051_v30   ;;  %v15719_v56 = vld [vmem:[#allocation212_spill] sm:$0xff]  ;;  %v3890_v36 = vld [vmem:[%s9714_s14 + $0x1ba] sm:$0xff] }
 0x493   : > { %v4374_v29 = vadd.f32 %v4302_v13, %v12751_v17  ;;  %v5849_v18 = vmul.f32 1.442695, %v5756_v2  ;;  %v5761_v32 = vmin.f32 %v12835_v15, 0.0  ;;  %v5535_v33 = vadd.f32 %v5463_v21, %v4954_v40  ;;  %9114 = vmatmul.mubr.msk.bf16.gmra.mxu1 %vm6239_vm2, %v6613_v34  ;;  %v5219_v63 = vpop.permute.xlu1 %5218  ;;  %v15720_v40 = vld [vmem:[#allocation363_spill] sm:$0xff]  ;;  %v3896_v21 = vld [vmem:[%s9714_s14 + $0x1ea] sm:$0xff] }
 0x494   : > { %v4307_v55 = vmul.f32 %v12725_v16, %v12599_v26  ;;  %v4959_v11 = vadd.f32 %v4887_v20, %v4378_v52  ;;  %9475 = vpow2.f32 %v5857_v8  ;;  %v5534_v62 = vadd.f32 %v5462_v41, %v4953_v49  ;;  %v5199_v6 = vpop.permute.xlu0 %5198  ;;  %9117 = vmatprep.mubr.msk.bf16.mxu1 %vm9649_vm0, %v15679_v7  ;;  %4176 = vperm.xlu1 %9414, %v3893_v5  }
 0x495   : > { %9477 = vpow2.f32 %v5849_v18  ;;  %v5859_v17 = vmul.f32 1.442695, %v5761_v32  ;;  %v12854_v3 = vadd.f32 %v12792_v25, %v5535_v33  ;;  %v5468_v44 = vmul.f32 %v12765_v60, %v5219_v63  ;;  %v3895_v18 = vld [vmem:[%s9714_s14 + $0x1e2] sm:$0xff] }
 0x496   : > { %v4955_v26 = vadd.f32 %v4883_v47, %v4374_v29  ;;  %v4888_v23 = vmul.f32 %v12739_v58, %v12743_v42  ;;  %v12860_v59 = vadd.f32 %v12792_v25, %v5534_v62  ;;  %v5464_v27 = vmul.f32 %v12765_v60, %v5199_v6  ;;  %4171 = vperm.xlu0 %9413, %v3892_v14   ;;  %v15721_v47 = vld [vmem:[#allocation88_spill] sm:$0xff] }
 0x497   : > { %v3146_v48 = vmul.f32 %v12650_v37, %v15718_v1  ;;  %9479 = vpow2.f32 %v5859_v17  ;;  %v5758_v19 = vmin.f32 %v12854_v3, 0.0  ;;  %v5540_v13 = vadd.f32 %v5468_v44, %v4959_v11  ;;  %v12871_v52 = vpop.permute.xlu1 %4051  ;;  %v4473_v44 = vld [vmem:[%s9714_s14 + $0x1cb] sm:$0xff] }
 0x498   : > { %v2566_v46 = vmul.f32 %v12550_v12, %v15719_v56  ;;  %v4379_v42 = vadd.f32 %v4307_v55, %v12778_v43  ;;  %v5757_v35 = vmin.f32 %v12860_v59, 0.0  ;;  %v5536_v45 = vadd.f32 %v5464_v27, %v4955_v26  ;;  %v5224_v61 = vpop.permute.xlu0 %5223  ;;  %4181 = vperm.xlu1 %9414, %v3894_v38   ;;  %v15723_v26 = vld [vmem:[#allocation214_spill] sm:$0xff] }
 0x499   : > { %v2637_v31 = vadd.f32 %v12693_v24, %v12490_v0  ;;  %v3727_v20 = vmul.f32 %v12701_v57, %v15720_v40  ;;  %v5853_v51 = vmul.f32 1.442695, %v5758_v19  ;;  %v12879_v39 = vadd.f32 %v12792_v25, %v5540_v13  ;;  %v4472_v19 = vld [vmem:[%s9714_s14 + $0x1c3] sm:$0xff] }
 0x49a   : > { %v4960_v10 = vadd.f32 %v4888_v23, %v4379_v42  ;;  %v5851_v43 = vmul.f32 1.442695, %v5757_v35  ;;  %v12882_v30 = vadd.f32 %v12792_v25, %v5536_v45  ;;  %v5469_v2 = vmul.f32 %v12765_v60, %v5224_v61  ;;  %4161 = vperm.xlu0 %9413, %v3890_v36   ;;  %v15724_v61 = vld [vmem:[#allocation215_spill] sm:$0xff] }
 0x49b   : > { %v3218_v34 = vadd.f32 %v3146_v48, %v2637_v31  ;;  %v4308_v0 = vmul.f32 %v12725_v16, %v12679_v50  ;;  %9481 = vpow2.f32 %v5853_v51  ;;  %v5763_v24 = vmin.f32 %v12879_v39, 0.0  ;;  %v12894_v29 = vpop.permute.xlu1 %4076  ;;  %v4471_v51 = vld [vmem:[%s9714_s14 + $0x1bb] sm:$0xff] }
 0x49c   : > { %v9472_v49 = vpop.eup %9471  ;;  %v12891_v8 = vadd.f32 %v12670_v53, %v15721_v47  ;;  %9483 = vpow2.f32 %v5851_v43  ;;  %v5759_v41 = vmin.f32 %v12882_v30, 0.0  ;;  %v5541_v5 = vadd.f32 %v5469_v2, %v4960_v10  ;;  %v12899_v62 = vpop.permute.xlu0 %4071  ;;  %4191 = vperm.xlu1 %9414, %v3896_v21   ;;  %v15722_v53 = vld [vmem:[#allocation280_spill] sm:$0xff] }
 0x49d   : > { %v9474_v32 = vpop.eup %9473  ;;  %v3799_v33 = vadd.f32 %v3727_v20, %v3218_v34  ;;  %v8793_v50 = vadd.f32 -1.0, %v9472_v49  ;;  %v4889_v55 = vmul.f32 %v12739_v58, %v12810_v54  ;;  %v5863_v11 = vmul.f32 1.442695, %v5763_v24  ;;  %v15725_v34 = vld [vmem:[#allocation97_spill] sm:$0xff]  ;;  %v15726_v24 = vld [vmem:[#allocation216_spill] sm:$0xff] }
 0x49e   : > { %v12902_v63 = vadd.f32 %v2566_v46, %v15722_v53  ;;  %v8792_v6 = vadd.f32 -1.0, %v9474_v32  ;;  %v5855_v14 = vmul.f32 1.442695, %v5759_v41  ;;  %v12905_v17 = vadd.f32 %v12792_v25, %v5541_v5  ;;  %4186 = vperm.xlu0 %9413, %v3895_v18   ;;  %v4474_v41 = vld [vmem:[%s9714_s14 + $0x1d3] sm:$0xff] }
 0x49f   : > { %v2568_v23 = vmul.f32 %v12550_v12, %v15723_v26  ;;  %v4380_v27 = vadd.f32 %v4308_v0, %v3799_v33  ;;  %v6043_v38 = vmul.f32 1.6732632, %v8793_v50  ;;  %9485 = vpow2.f32 %v5863_v11  ;;  %v5229_v48 = vpop.permute.xlu1 %5228  ;;  %v15727_v50 = vld [vmem:[#allocation217_spill] sm:$0xff]  ;;  %v15728_v11 = vld [vmem:[#allocation219_spill] sm:$0xff] }
 0x4a0   : > { %vm5683_vm8 = vcmp.gt.f32.partialorder %v12795_v9, 0.0  ;;  %v6042_v54 = vmul.f32 1.6732632, %v8792_v6  ;;  %9487 = vpow2.f32 %v5855_v14  ;;  %v5764_v1 = vmin.f32 %v12905_v17, 0.0  ;;  %v12916_v35 = vpop.permute.xlu0 %4081  ;;  %4752 = vperm.xlu1 %9414, %v4473_v44   ;;  %v4476_v14 = vld [vmem:[%s9714_s14 + $0x1e3] sm:$0xff]  ;;  %v15729_v44 = vld [vmem:[#allocation282_spill] sm:$0xff] }
 0x4a1   : > { %v9476_v13 = vpop.eup %9475  ;;  %v6115_v56 = vsel %vm5683_vm8, %v12795_v9, %v6043_v38  ;;  %vm5682_vm9 = vcmp.gt.f32.partialorder %v12798_v28, 0.0  ;;  %v4961_v46 = vadd.f32 %v4889_v55, %v4380_v27  ;;  %v5470_v42 = vmul.f32 %v12765_v60, %v5229_v48 }
 0x4a2   : > { %v9478_v45 = vpop.eup %9477  ;;  %v6187_v36 = vmul.f32 1.050701, %v6115_v56  ;;  %v6114_v31 = vsel %vm5682_vm9, %v12798_v28, %v6042_v54  ;;  %v8798_v40 = vadd.f32 -1.0, %v9476_v13  ;;  %v5865_v20 = vmul.f32 1.442695, %v5764_v1  ;;  %4747 = vperm.xlu0 %9413, %v4472_v19   ;;  %v15730_v1 = vld [vmem:[#allocation290_spill] sm:$0xff] }
 0x4a3   : > { %v2567_v10 = vmul.f32 %v12550_v12, %v15724_v61  ;;  %v6186_v9 = vmul.f32 1.050701, %v6114_v31  ;;  %v8794_v43 = vadd.f32 -1.0, %v9478_v45  ;;  %v5542_v2 = vadd.f32 %v5470_v42, %v4961_v46  ;;  %v12928_v47 = vpop.permute.xlu1 %4091  ;;  %v4475_v13 = vld [vmem:[%s9714_s14 + $0x1db] sm:$0xff] }
 0x4a4   : > { %v9480_v21 = vpop.eup %9479  ;;  %v12923_v0 = vadd.f32 %v2568_v23, %v15725_v34  ;;  %v2570_v49 = vmul.f32 %v12550_v12, %v15726_v24  ;;  %6260 = vst.msk [vmem:[#allocation2 + $0xa0] sm:$0xff] %vm6239_vm2, %v6187_v36  ;;  %v6048_v28 = vmul.f32 1.6732632, %v8798_v40  ;;  %9489 = vpow2.f32 %v5865_v20  ;;  %v12936_v33 = vpop.permute.xlu0 %4086  ;;  %4742 = vperm.xlu1 %9414, %v4471_v51   ;;  %v15731_v46 = vld [vmem:[#allocation98_spill] sm:$0xff]  ;;  %v15732_v45 = vld [vmem:[#allocation99_spill] sm:$0xff]  ;;  %v15733_v20 = vld [vmem:[#allocation292_spill] sm:$0xff] }
 0x4a5   : > { %6259 = vst.msk [vmem:[#allocation2 + $0x98] sm:$0xff] %vm6239_vm2, %v6186_v9  ;;  %vm5688_vm10 = vcmp.gt.f32.partialorder %v12820_v4, 0.0  ;;  %v6044_v5 = vmul.f32 1.6732632, %v8794_v43  ;;  %v8799_v18 = vadd.f32 -1.0, %v9480_v21  ;;  %v12934_v32 = vadd.f32 %v12792_v25, %v5542_v2  ;;  %v15734_v2 = vld [vmem:[#allocation281_spill] sm:$0xff] }
 0x4a6   : > { %v2569_v55 = vmul.f32 %v12550_v12, %v15727_v50  ;;  %v2571_v53 = vmul.f32 %v12550_v12, %v15728_v11  ;;  %v6120_v6 = vsel %vm5688_vm10, %v12820_v4, %v6048_v28  ;;  %vm5684_vm11 = vcmp.gt.f32.partialorder %v12823_v22, 0.0  ;;  %4757 = vperm.xlu0 %9413, %v4474_v41   ;;  %v15735_v34 = vld [vmem:[#allocation10_spill] sm:$0xff]  ;;  %v4477_v50 = vld [vmem:[%s9714_s14 + $0x1eb] sm:$0xff] }
 0x4a7   : > { %v3143_v26 = vmul.f32 %v12650_v37, %v15729_v44  ;;  %v6192_v23 = vmul.f32 1.050701, %v6120_v6  ;;  %v6116_v27 = vsel %vm5684_vm11, %v12823_v22, %v6044_v5  ;;  %v6049_v38 = vmul.f32 1.6732632, %v8799_v18  ;;  %v12952_v4 = vpop.permute.xlu1 %4632  ;;  %v15736_v11 = vld [vmem:[#allocation293_spill] sm:$0xff] }
 0x4a8   : > { %v9482_v54 = vpop.eup %9481  ;;  %v3147_v48 = vmul.f32 %v12650_v37, %v15730_v1  ;;  %v6188_v19 = vmul.f32 1.050701, %v6116_v27  ;;  %vm5689_vm12 = vcmp.gt.f32.partialorder %v12835_v15, 0.0  ;;  %v5765_v12 = vmin.f32 %v12934_v32, 0.0  ;;  %v12959_v40 = vpop.permute.xlu0 %4096  ;;  %4767 = vperm.xlu1 %9414, %v4476_v14   ;;  %v5055_v27 = vld [vmem:[%s9714_s14 + $0x1d4] sm:$0xff]  ;;  %v15738_v1 = vld [vmem:[#allocation295_spill] sm:$0xff] }
 0x4a9   : > { %v9484_v56 = vpop.eup %9483  ;;  %v2639_v42 = vadd.f32 %v2567_v10, %v15731_v46  ;;  %v2642_v22 = vadd.f32 %v2570_v49, %v15732_v45  ;;  %6265 = vst.msk [vmem:[#allocation2 + $0xc8] sm:$0xff] %vm6239_vm2, %v6192_v23  ;;  %v6121_v36 = vsel %vm5689_vm12, %v12835_v15, %v6049_v38  ;;  %v8796_v31 = vadd.f32 -1.0, %v9482_v54  ;;  %v5053_v10 = vld [vmem:[%s9714_s14 + $0x1c4] sm:$0xff]  ;;  %v15737_v38 = vld [vmem:[#allocation294_spill] sm:$0xff]  ;;  %v5054_v45 = vld [vmem:[%s9714_s14 + $0x1cc] sm:$0xff] }
 0x4aa   : > { %v3149_v51 = vmul.f32 %v12650_v37, %v15733_v20  ;;  %6261 = vst.msk [vmem:[#allocation2 + $0xa8] sm:$0xff] %vm6239_vm2, %v6188_v19  ;;  %v6193_v61 = vmul.f32 1.050701, %v6121_v36  ;;  %v8795_v9 = vadd.f32 -1.0, %v9484_v56  ;;  %v5867_v43 = vmul.f32 1.442695, %v5765_v12  ;;  %4762 = vperm.xlu0 %9413, %v4475_v13  }
 0x4ab   : > { %v2641_v21 = vadd.f32 %v2569_v55, %v15734_v2  ;;  %v2643_v24 = vadd.f32 %v2571_v53, %v15735_v34  ;;  %v3215_v15 = vadd.f32 %v3143_v26, %v12891_v8  ;;  %v6046_v49 = vmul.f32 1.6732632, %v8796_v31  ;;  %v12971_v18 = vpop.permute.xlu1 %4657  ;;  %v15739_v12 = vld [vmem:[#allocation297_spill] sm:$0xff]  ;;  %v15740_v56 = vld [vmem:[#allocation358_spill] sm:$0xff] }
 0x4ac   : > { %v9486_v28 = vpop.eup %9485  ;;  %v3219_v41 = vadd.f32 %v3147_v48, %v12902_v63  ;;  %6266 = vst.msk [vmem:[#allocation2 + $0xd0] sm:$0xff] %vm6239_vm2, %v6193_v61  ;;  %vm5686_vm13 = vcmp.gt.f32.partialorder %v12854_v3, 0.0  ;;  %v6045_v5 = vmul.f32 1.6732632, %v8795_v9  ;;  %9491 = vpow2.f32 %v5867_v43  ;;  %v12978_v63 = vpop.permute.xlu0 %4652  ;;  %5328 = vperm.xlu1 %9414, %v5053_v10   ;;  %v15741_v20 = vld [vmem:[#allocation362_spill] sm:$0xff]  ;;  %v15742_v9 = vld [vmem:[#allocation364_spill] sm:$0xff] }
 0x4ad   : > { %v9488_v55 = vpop.eup %9487  ;;  %v3148_v53 = vmul.f32 %v12650_v37, %v15736_v11  ;;  %v6118_v8 = vsel %vm5686_vm13, %v12854_v3, %v6046_v49  ;;  %vm5685_vm15 = vcmp.gt.f32.partialorder %v12860_v59, 0.0  ;;  %v8801_v6 = vadd.f32 -1.0, %v9486_v28  ;;  %v5056_v34 = vld [vmem:[%s9714_s14 + $0x1dc] sm:$0xff] }
 0x4ae   : > { %v3221_v14 = vadd.f32 %v3149_v51, %v12923_v0  ;;  %v6190_v44 = vmul.f32 1.050701, %v6118_v8  ;;  %v6117_v26 = vsel %vm5685_vm15, %v12860_v59, %v6045_v5  ;;  %v8797_v23 = vadd.f32 -1.0, %v9488_v55  ;;  %4772 = vperm.xlu0 %9413, %v4477_v50  }
 0x4af   : > { %v3151_v54 = vmul.f32 %v12650_v37, %v15737_v38  ;;  %v3150_v3 = vmul.f32 %v12650_v37, %v15738_v1  ;;  %v6189_v48 = vmul.f32 1.050701, %v6117_v26  ;;  %v6051_v19 = vmul.f32 1.6732632, %v8801_v6  ;;  %v12993_v46 = vpop.permute.xlu1 %4101  ;;  %v6392_v6 = vld [vmem:[#allocation2 + $0x96] ss:$2 sm:$0xff] }
 0x4b0   : > { %v3152_v13 = vmul.f32 %v12650_v37, %v15739_v12  ;;  %v3724_v0 = vmul.f32 %v12701_v57, %v15740_v56  ;;  %6263 = vst.msk [vmem:[#allocation2 + $0xb8] sm:$0xff] %vm6239_vm2, %v6190_v44  ;;  %vm5691_vm1 = vcmp.gt.f32.partialorder %v12879_v39, 0.0  ;;  %v6047_v59 = vmul.f32 1.6732632, %v8797_v23  ;;  %v13001_v61 = vpop.permute.xlu0 %4662  ;;  %5338 = vperm.xlu1 %9414, %v5055_v27   ;;  %v6396_v44 = vld [vmem:[#allocation2 + $0x97] ss:$2 sm:$0xff] }
 0x4b1   : > { %v9490_v36 = vpop.eup %9489  ;;  %v3220_v31 = vadd.f32 %v3148_v53, %v2639_v42  ;;  %v3728_v51 = vmul.f32 %v12701_v57, %v15741_v20  ;;  %6262 = vst.msk [vmem:[#allocation2 + $0xb0] sm:$0xff] %vm6239_vm2, %v6189_v48  ;;  %v6123_v37 = vsel %vm5691_vm1, %v12879_v39, %v6051_v19  ;;  %vm5687_vm3 = vcmp.gt.f32.partialorder %v12882_v30, 0.0  ;;  %v5052_v39 = vld [vmem:[%s9714_s14 + $0x1bc] sm:$0xff]  ;;  %v15743_v53 = vld [vmem:[#allocation365_spill] sm:$0xff] }
 0x4b2   : > { %v3730_v43 = vmul.f32 %v12701_v57, %v15742_v9  ;;  %v6195_v10 = vmul.f32 1.050701, %v6123_v37  ;;  %v6119_v2 = vsel %vm5687_vm3, %v12882_v30, %v6047_v59  ;;  %v8802_v42 = vadd.f32 -1.0, %v9490_v36  ;;  %5333 = vperm.xlu0 %9413, %v5054_v45   ;;  %v15745_v27 = vld [vmem:[#allocation367_spill] sm:$0xff]  ;;  %v5058_v1 = vld [vmem:[%s9714_s14 + $0x1ec] sm:$0xff] }
 0x4b3   : > { %v3223_v49 = vadd.f32 %v3151_v54, %v2642_v22  ;;  %v3222_v28 = vadd.f32 %v3150_v3, %v2641_v21  ;;  %v6191_v5 = vmul.f32 1.050701, %v6119_v2  ;;  %v4305_v50 = vmul.f32 %v12725_v16, %v12871_v52  ;;  %v13013_v26 = vpop.permute.xlu1 %4672  ;;  %v15744_v21 = vld [vmem:[#allocation366_spill] sm:$0xff]  ;;  %v15746_v3 = vld [vmem:[#allocation369_spill] sm:$0xff]  ;;  %v5057_v36 = vld [vmem:[%s9714_s14 + $0x1e4] sm:$0xff] }
 0x4b4   : > { %v3224_v55 = vadd.f32 %v3152_v13, %v2643_v24  ;;  %v3796_v11 = vadd.f32 %v3724_v0, %v3215_v15  ;;  %v3729_v8 = vmul.f32 %v12701_v57, %v15743_v53  ;;  %6268 = vst.msk [vmem:[#allocation2 + $0xe0] sm:$0xff] %vm6239_vm2, %v6195_v10  ;;  %v6052_v30 = vmul.f32 1.6732632, %v8802_v42  ;;  %v13021_v24 = vpop.permute.xlu0 %4667  ;;  %5343 = vperm.xlu1 %9414, %v5056_v34   ;;  %v6394_v12 = vld [vmem:[#allocation2 + $0xa6] ss:$2 sm:$0x7] }
 0x4b5   : > { %v3800_v22 = vadd.f32 %v3728_v51, %v3219_v41  ;;  %v3732_v23 = vmul.f32 %v12701_v57, %v15744_v21  ;;  %6264 = vst.msk [vmem:[#allocation2 + $0xc0] sm:$0xff] %vm6239_vm2, %v6191_v5  ;;  %vm5692_vm4 = vcmp.gt.f32.partialorder %v12905_v17, 0.0  ;;  %v4886_v52 = vmul.f32 %v12739_v58, %v12952_v4  ;;  %v3898_v42 = vld [vmem:[%s9714_s14 + $0x1fa] sm:$0xff] }
 0x4b6   : > { %v3802_v15 = vadd.f32 %v3730_v43, %v3221_v14  ;;  %v3731_v38 = vmul.f32 %v12701_v57, %v15745_v27  ;;  %v6124_v54 = vsel %vm5692_vm4, %v12905_v17, %v6052_v30  ;;  %v4310_v41 = vmul.f32 %v12725_v16, %v12894_v29  ;;  %5323 = vperm.xlu0 %9413, %v5052_v39   ;;  %v6398_v14 = vld [vmem:[#allocation2 + $0xa7] ss:$2 sm:$0x7] }
 0x4b7   : > { %v3733_v48 = vmul.f32 %v12701_v57, %v15746_v3  ;;  %v6399_v19 = vadd.f32 %v6396_v44, %v6392_v6  ;;  %v4377_v4 = vadd.f32 %v4305_v50, %v3796_v11  ;;  %v6196_v13 = vmul.f32 1.050701, %v6124_v54  ;;  %v5214_v45 = vpop.permute.xlu1 %5213  ;;  %v3897_v44 = vld [vmem:[%s9714_s14 + $0x1f2] sm:$0xff] }
 0x4b8   : > { %v3801_v56 = vadd.f32 %v3729_v8, %v3220_v31  ;;  %v6402_v0 = vld [vmem:[#allocation2 + $0xaf] ss:$2 sm:$0xff]  ;;  %v4309_v59 = vmul.f32 %v12725_v16, %v12899_v62  ;;  %v4311_v17 = vmul.f32 %v12725_v16, %v12916_v35  ;;  %v4891_v29 = vmul.f32 %v12739_v58, %v12971_v18  ;;  %v13042_v43 = vpop.permute.xlu0 %4677  ;;  %5353 = vperm.xlu1 %9414, %v5058_v1   ;;  %v6408_v35 = vld [vmem:[#allocation2 + $0xb0] ss:$2 sm:$0xff] }
 0x4b9   : > { %v9492_v20 = vpop.eup %9491  ;;  %v13038_v51 = vadd.f32 %v3732_v23, %v3223_v49  ;;  %v6405_v37 = vadd.f32 %v6402_v0, %v6399_v19  ;;  %6269 = vst.msk [vmem:[#allocation2 + $0xe8] sm:$0xff] %vm6239_vm2, %v6196_v13  ;;  %v4958_v31 = vadd.f32 %v4886_v52, %v4377_v4  ;;  %v5467_v9 = vmul.f32 %v12765_v60, %v5214_v45  ;;  %v3899_v4 = vld [vmem:[%s9714_s14 + $0x202] sm:$0xff] }
 0x4ba   : > { %v3803_v62 = vadd.f32 %v3731_v38, %v3222_v28  ;;  %v4382_v10 = vadd.f32 %v4310_v41, %v3801_v56  ;;  %v8803_v18 = vadd.f32 -1.0, %v9492_v20  ;;  %v4890_v2 = vmul.f32 %v12739_v58, %v12978_v63  ;;  %5348 = vperm.xlu0 %9413, %v5057_v36   ;;  %v6422_v56 = vld [vmem:[#allocation2 + $0xc9] ss:$2 sm:$0xff]  ;;  %v3902_v36 = vld [vmem:[%s9714_s14 + $0x21a] sm:$0xff] }
 0x4bb   : > { %v13047_v34 = vadd.f32 %v3733_v48, %v3224_v55  ;;  %v6400_v49 = vadd.f32 %v6398_v14, %v6394_v12  ;;  %v5539_v5 = vadd.f32 %v5467_v9, %v4958_v31  ;;  %v6411_v50 = vadd.f32 %v6408_v35, %v6405_v37  ;;  %v5239_v6 = vpop.permute.xlu1 %5238 }
 0x4bc   : > { %v6404_v39 = vld [vmem:[#allocation2 + $0xbf] ss:$2 sm:$0x7]  ;;  %v4381_v11 = vadd.f32 %v4309_v59, %v3800_v22  ;;  %v4383_v53 = vadd.f32 %v4311_v17, %v3802_v15  ;;  %v4963_v8 = vadd.f32 %v4891_v29, %v4382_v10  ;;  %v4892_v28 = vmul.f32 %v12739_v58, %v13001_v61  ;;  %v5234_v23 = vpop.permute.xlu0 %5233  ;;  %4201 = vperm.xlu1 %9414, %v3898_v42   ;;  %v3900_v15 = vld [vmem:[%s9714_s14 + $0x20a] sm:$0xff] }
 0x4bd   : > { %v6406_v30 = vadd.f32 %v6404_v39, %v6400_v49  ;;  %v6053_v21 = vmul.f32 1.6732632, %v8803_v18  ;;  %v13053_v63 = vadd.f32 %v12792_v25, %v5539_v5  ;;  %v5472_v55 = vmul.f32 %v12765_v60, %v5239_v6  ;;  %v6410_v27 = vld [vmem:[#allocation2 + $0xc0] ss:$2 sm:$0x7] }
 0x4be   : > { %vm5693_vm5 = vcmp.gt.f32.partialorder %v12934_v32, 0.0  ;;  %v4962_v22 = vadd.f32 %v4890_v2, %v4381_v11  ;;  %v5471_v52 = vmul.f32 %v12765_v60, %v5234_v23  ;;  %v6413_v61 = vmul.f32 0.25, %v6411_v50  ;;  %4196 = vperm.xlu0 %9413, %v3897_v44   ;;  %v3901_v2 = vld [vmem:[%s9714_s14 + $0x212] sm:$0xff] }
 0x4bf   : > { %v6125_v38 = vsel %vm5693_vm5, %v12934_v32, %v6053_v21  ;;  %v4313_v54 = vmul.f32 %v12725_v16, %v12928_v47  ;;  %v5762_v41 = vmin.f32 %v13053_v63, 0.0  ;;  %v5544_v1 = vadd.f32 %v5472_v55, %v4963_v8  ;;  %v13065_v12 = vpop.permute.xlu1 %4682  ;;  %v6418_v32 = vld [vmem:[#allocation2 + $0xc8] ss:$2 sm:$0xff]  ;;  %v4479_v8 = vld [vmem:[%s9714_s14 + $0x1fb] sm:$0xff] }
 0x4c0   : > { %v6197_v3 = vmul.f32 1.050701, %v6125_v38  ;;  %v4312_v48 = vmul.f32 %v12725_v16, %v12936_v33  ;;  %v5543_v19 = vadd.f32 %v5471_v52, %v4962_v22  ;;  %v6412_v13 = vadd.f32 %v6410_v27, %v6406_v30  ;;  %6415 = vst.msk [vmem:[%s12401_s24 + $0x21] sm:$0xff] %vm6239_vm2, %v6413_v61  ;;  %v5244_v17 = vpop.permute.xlu0 %5243  ;;  %4211 = vperm.xlu1 %9414, %v3900_v15   ;;  %v6428_v42 = vld [vmem:[#allocation2 + $0xe1] ss:$2 sm:$0xff]  ;;  %v4478_v52 = vld [vmem:[%s9714_s14 + $0x1f3] sm:$0xff] }
 0x4c1   : > { %v4964_v14 = vadd.f32 %v4892_v28, %v4383_v53  ;;  %v4894_v47 = vmul.f32 %v12739_v58, %v13013_v26  ;;  %v5861_v0 = vmul.f32 1.442695, %v5762_v41  ;;  %v13073_v59 = vadd.f32 %v12792_v25, %v5544_v1  ;;  %v13102_v28 = vld [vmem:[%s14924_s1 + $0x2] ss:$0 sm:$0xff]  ;;  %v13116_v27 = vld [vmem:[%s14924_s1 + $0x3] ss:$0 sm:$0xff] }
 0x4c2   : > { %6270 = vst.msk [vmem:[#allocation2 + $0xf0] sm:$0xff] %vm6239_vm2, %v6197_v3  ;;  %v4893_v33 = vmul.f32 %v12739_v58, %v13021_v24  ;;  %v13079_v29 = vadd.f32 %v12792_v25, %v5543_v19  ;;  %v5473_v45 = vmul.f32 %v12765_v60, %v5244_v17  ;;  %v6414_v26 = vmul.f32 0.25, %v6412_v13  ;;  %4206 = vperm.xlu0 %9413, %v3899_v4   ;;  %v15748_v15 = vld [vmem:[#allocation159_spill] sm:$0xff]  ;;  %v3322_v13 = vld [vmem:[%s9714_s14 + $0x20b] sm:$0xff] }
 0x4c3   : > { %v4385_v20 = vadd.f32 %v4313_v54, %v13038_v51  ;;  %v4314_v37 = vmul.f32 %v12725_v16, %v12959_v40  ;;  %9493 = vpow2.f32 %v5861_v0  ;;  %v5767_v31 = vmin.f32 %v13073_v59, 0.0  ;;  %v5254_v18 = vpop.permute.xlu1 %5253  ;;  %v13136_v17 = vld [vmem:[%s14924_s1 + $0x4] ss:$0 sm:$0xff] }
 0x4c4   : > { %v6425_v9 = vadd.f32 %v6422_v56, %v6418_v32  ;;  %v4384_v35 = vadd.f32 %v4312_v48, %v3803_v62  ;;  %v5766_v24 = vmin.f32 %v13079_v29, 0.0  ;;  %v5545_v10 = vadd.f32 %v5473_v45, %v4964_v14  ;;  %6416 = vst.msk [vmem:[%s12401_s24 + $0x29] sm:$0x7] %vm6337_vm14, %v6414_v26  ;;  %v5249_v50 = vpop.permute.xlu0 %5248  ;;  %4221 = vperm.xlu1 %9414, %v3902_v36   ;;  %v15750_v56 = vld [vmem:[#allocation68_spill] sm:$0xff]  ;;  %v15754_v26 = vld [vmem:[#allocation161_spill] sm:$0xff] }
 0x4c5   : > { %v4966_v49 = vadd.f32 %v4894_v47, %v4385_v20  ;;  %v4895_v51 = vmul.f32 %v12739_v58, %v13042_v43  ;;  %v5871_v40 = vmul.f32 1.442695, %v5767_v31  ;;  %v5475_v5 = vmul.f32 %v12765_v60, %v5254_v18  ;;  %v15747_v43 = vld [vmem:[#allocation158_spill] sm:$0xff]  ;;  %v15751_v47 = vld [vmem:[#allocation160_spill] sm:$0xff]  ;;  %15752 = vst [vmem:[#allocation21_spill] sm:$0xff] %v13136_v17 }
 0x4c6   : > { %v4965_v39 = vadd.f32 %v4893_v33, %v4384_v35  ;;  %v5869_v62 = vmul.f32 1.442695, %v5766_v24  ;;  %v13095_v11 = vadd.f32 %v12792_v25, %v5545_v10  ;;  %v5474_v53 = vmul.f32 %v12765_v60, %v5249_v50  ;;  %4216 = vperm.xlu0 %9413, %v3901_v2   ;;  %v15753_v33 = vld [vmem:[#allocation296_spill] sm:$0xff]  ;;  %v15755_v24 = vld [vmem:[#allocation9_spill] sm:$0xff]  ;;  %v15758_v50 = vld [vmem:[#allocation163_spill] sm:$0xff] }
 0x4c7   : > { %v2003_v6 = vmul.f32 %v13102_v28, %v15747_v43  ;;  %v4386_v44 = vadd.f32 %v4314_v37, %v13047_v34  ;;  %9495 = vpow2.f32 %v5871_v40  ;;  %v5547_v30 = vadd.f32 %v5475_v5, %v4966_v49  ;;  %v13108_v22 = vpop.permute.xlu1 %4106  ;;  %v15749_v34 = vld [vmem:[#allocation218_spill] sm:$0xff]  ;;  %v4480_v35 = vld [vmem:[%s9714_s14 + $0x203] sm:$0xff] }
 0x4c8   : > { %v6431_v21 = vadd.f32 %v6428_v42, %v6425_v9  ;;  %9497 = vpow2.f32 %v5869_v62  ;;  %v5768_v55 = vmin.f32 %v13095_v11, 0.0  ;;  %v5546_v23 = vadd.f32 %v5474_v53, %v4965_v39  ;;  %v5259_v3 = vpop.permute.xlu0 %5258  ;;  %4782 = vperm.xlu1 %9414, %v4479_v8   ;;  %v15756_v18 = vld [vmem:[#allocation368_spill] sm:$0xff]  ;;  %v15757_v40 = vld [vmem:[#allocation162_spill] sm:$0xff] }
 0x4c9   : > { %v2002_v61 = vmul.f32 %v13102_v28, %v15748_v15  ;;  %v2572_v38 = vmul.f32 %v13116_v27, %v15749_v34  ;;  %v6434_v54 = vld [vmem:[#allocation2 + $0xe2] ss:$2 sm:$0xff]  ;;  %v4967_v41 = vadd.f32 %v4895_v51, %v4386_v44  ;;  %v13121_v1 = vadd.f32 %v12792_v25, %v5547_v30  ;;  %v13160_v8 = vld [vmem:[%s9714_s14 + $0x213] sm:$0xff] }
 0x4ca   : > { %v5873_v48 = vmul.f32 1.442695, %v5768_v55  ;;  %v13124_v19 = vadd.f32 %v12792_v25, %v5546_v23  ;;  %v5476_v4 = vmul.f32 %v12765_v60, %v5259_v3  ;;  %v6437_v32 = vadd.f32 %v6434_v54, %v6431_v21  ;;  %4777 = vperm.xlu0 %9413, %v4478_v52   ;;  %v15759_v43 = vld [vmem:[#allocation164_spill] sm:$0xff]  ;;  %v15760_v21 = vld [vmem:[#allocation69_spill] sm:$0xff] }
 0x4cb   : > { %v13129_v14 = vadd.f32 %v2003_v6, %v15750_v56  ;;  %v2005_v0 = vmul.f32 %v13102_v28, %v15751_v47  ;;  %v3153_v45 = vmul.f32 %v13136_v17, %v15753_v33  ;;  %v5770_v36 = vmin.f32 %v13121_v1, 0.0  ;;  %v13144_v9 = vpop.permute.xlu1 %4116  ;;  %v15761_v23 = vld [vmem:[#allocation165_spill] sm:$0xff]  ;;  %v15765_v56 = vld [vmem:[#allocation166_spill] sm:$0xff] }
 0x4cc   : > { %v2004_v20 = vmul.f32 %v13102_v28, %v15754_v26  ;;  %9499 = vpow2.f32 %v5873_v48  ;;  %v5769_v37 = vmin.f32 %v13124_v19, 0.0  ;;  %v5548_v31 = vadd.f32 %v5476_v4, %v4967_v41  ;;  %v13150_v49 = vpop.permute.xlu0 %4111  ;;  %3645 = vperm.xlu1 %9414, %v3322_v13   ;;  %v15764_v4 = vld [vmem:[#allocation72_spill] sm:$0xff]  ;;  %v5059_v33 = vld [vmem:[%s9714_s14 + $0x1f4] sm:$0xff] }
 0x4cd   : > { %v2644_v10 = vadd.f32 %v2572_v38, %v15755_v24  ;;  %v3734_v2 = vmul.f32 %v12701_v57, %v15756_v18  ;;  %v5877_v42 = vmul.f32 1.442695, %v5770_v36  ;;  %v6439_v51 = vmul.f32 0.25, %v6437_v32  ;;  %v15762_v38 = vld [vmem:[#allocation70_spill] sm:$0xff]  ;;  %v15770_v24 = vld [vmem:[#allocation167_spill] sm:$0xff] }
 0x4ce   : > { %v2007_v5 = vmul.f32 %v13102_v28, %v15757_v40  ;;  %v2006_v39 = vmul.f32 %v13102_v28, %v15758_v50  ;;  %v5875_v62 = vmul.f32 1.442695, %v5769_v37  ;;  %v13157_v53 = vadd.f32 %v12792_v25, %v5548_v31  ;;  %4787 = vperm.xlu0 %9413, %v4480_v35   ;;  %v15768_v31 = vld [vmem:[#allocation75_spill] sm:$0xff] }
 0x4cf   : > { %v2009_v57 = vmul.f32 %v13102_v28, %v15759_v43  ;;  %v3225_v6 = vadd.f32 %v3153_v45, %v2644_v10  ;;  %v4315_v44 = vmul.f32 %v12725_v16, %v12993_v46  ;;  %9501 = vpow2.f32 %v5877_v42  ;;  %6441 = vst.msk [vmem:[%s12401_s24 + $0x2c] sm:$0xff] %vm6239_vm2, %v6439_v51  ;;  %v13174_v34 = vpop.permute.xlu1 %4136  ;;  %v15766_v45 = vld [vmem:[#allocation73_spill] sm:$0xff] }
 0x4d0   : > { %v9494_v30 = vpop.eup %9493  ;;  %v13169_v55 = vadd.f32 %v2002_v61, %v15760_v21  ;;  %v2008_v52 = vmul.f32 %v13102_v28, %v15761_v23  ;;  %9503 = vpow2.f32 %v5875_v62  ;;  %v5771_v15 = vmin.f32 %v13157_v53, 0.0  ;;  %v13181_v3 = vpop.permute.xlu0 %4131  ;;  %4797 = vperm.xlu1 %9414, %v13160_v8   ;;  %v15763_v61 = vld [vmem:[#allocation71_spill] sm:$0xff]  ;;  %v15771_v62 = vld [vmem:[#allocation76_spill] sm:$0xff] }
 0x4d1   : > { %v13177_v54 = vadd.f32 %v2005_v0, %v15762_v38  ;;  %v3806_v16 = vadd.f32 %v3734_v2, %v3225_v6  ;;  %v8800_v46 = vadd.f32 -1.0, %v9494_v30  ;;  %v4896_v41 = vmul.f32 %v12739_v58, %v13065_v12  ;;  %v15767_v58 = vld [vmem:[#allocation74_spill] sm:$0xff] }
 0x4d2   : > { %v13185_v48 = vadd.f32 %v2004_v20, %v15763_v61  ;;  %v13188_v32 = vadd.f32 %v2007_v5, %v15764_v4  ;;  %v2011_v47 = vmul.f32 %v13102_v28, %v15765_v56  ;;  %v5879_v0 = vmul.f32 1.442695, %v5771_v15  ;;  %4792 = vperm.xlu0 %9413, %v3322_v13   ;;  %v13206_v2 = vld [vmem:[%s9714_s14 + $0x21b] sm:$0xff] }
 0x4d3   : > { %v13194_v36 = vadd.f32 %v2006_v39, %v15766_v45  ;;  %v13197_v12 = vadd.f32 %v2009_v57, %v15767_v58  ;;  %v4387_v26 = vadd.f32 %v4315_v44, %v3806_v16  ;;  %v6050_v37 = vmul.f32 1.6732632, %v8800_v46  ;;  %v5264_v18 = vpop.permute.xlu1 %5263  ;;  %v6625_v39 = vld [vmem:[%s12401_s24 + $0x21] sm:$0xff]  ;;  %v15774_v46 = vld [vmem:[#allocation221_spill] sm:$0xff]  ;;  %v15775_v61 = vld [vmem:[#allocation222_spill] sm:$0xff] }
 0x4d4   : > { %v9496_v20 = vpop.eup %9495  ;;  %v13200_v35 = vadd.f32 %v2008_v52, %v15768_v31  ;;  %v2010_v10 = vmul.f32 %v13102_v28, %v15770_v24  ;;  %vm5690_vm6 = vcmp.gt.f32.partialorder %v13053_v63, 0.0  ;;  %9505 = vpow2.f32 %v5879_v0  ;;  %v13210_v50 = vpop.permute.xlu0 %4141  ;;  %5358 = vperm.xlu1 %9414, %v5059_v33   ;;  %v15773_v57 = vld [vmem:[#allocation220_spill] sm:$0xff]  ;;  %v5060_v0 = vld [vmem:[%s9714_s14 + $0x1fc] sm:$0xff] }
 0x4d5   : > { %v9498_v42 = vpop.eup %9497  ;;  %v6122_v51 = vsel %vm5690_vm6, %v13053_v63, %v6050_v37  ;;  %v8805_v13 = vadd.f32 -1.0, %v9496_v20  ;;  %v4968_v40 = vadd.f32 %v4896_v41, %v4387_v26  ;;  %v5477_v5 = vmul.f32 %v12765_v60, %v5264_v18  ;;  %v6603_v63 = vld [vmem:[%s12401_s24 + $0x20] sm:$0xff]  ;;  %v15777_v31 = vld [vmem:[#allocation224_spill] sm:$0xff] }
 0x4d6   : > { %15769 = vst [vmem:[#allocation111_spill] sm:$0xff] %v13200_v35  ;;  %v13214_v43 = vadd.f32 %v2011_v47, %v15771_v62  ;;  %v2574_v6 = vmul.f32 %v13116_v27, %v15773_v57  ;;  %v6194_v44 = vmul.f32 1.050701, %v6122_v51  ;;  %v8804_v30 = vadd.f32 -1.0, %v9498_v42  ;;  %v6626_v21 = vld [vmem:[%s12401_s24 + $0x29] sm:$0xff]  ;;  %4802 = vperm.xlu0 %9413, %v13206_v2   ;;  %v15776_v45 = vld [vmem:[#allocation223_spill] sm:$0xff] }
 0x4d7   : > { %v6604_v23 = vld [vmem:[%s12401_s24 + $0x28] sm:$0xff]  ;;  %v6055_v52 = vmul.f32 1.6732632, %v8805_v13  ;;  %v5549_v15 = vadd.f32 %v5477_v5, %v4968_v40  ;;  %v6636_v60 = vpack.c.bf16 %v6626_v21, %v6625_v39  ;;  %v2573_v41 = vmul.f32 %v13116_v27, %v15774_v46  ;;  %v13229_v47 = vpop.permute.xlu1 %4126  ;;  %v15782_v57 = vld [vmem:[#allocation101_spill] sm:$0xff] }
 0x4d8   : > { %15772 = vst [vmem:[#allocation100_spill] sm:$0xff] %v13214_v43  ;;  %v6614_v38 = vpack.c.bf16 %v6604_v23, %v6603_v63  ;;  %v5061_v16 = vld [vmem:[%s9714_s14 + $0x204] sm:$0xff]  ;;  %v2576_v4 = vmul.f32 %v13116_v27, %v15775_v61  ;;  %6267 = vst.msk [vmem:[#allocation2 + $0xd8] sm:$0xff] %vm6239_vm2, %v6194_v44  ;;  %vm5695_vm7 = vcmp.gt.f32.partialorder %v13073_v59, 0.0  ;;  %v6054_v56 = vmul.f32 1.6732632, %v8804_v30  ;;  %v13241_v20 = vpop.permute.xlu0 %4121 }
 0x4d9   : > { %v9500_v33 = vpop.eup %9499  ;;  %v2575_v58 = vmul.f32 %v13116_v27, %v15776_v45  ;;  %v6127_v26 = vsel %vm5695_vm7, %v13073_v59, %v6055_v52  ;;  %vm5694_vm8 = vcmp.gt.f32.partialorder %v13079_v29, 0.0  ;;  %v13237_v37 = vadd.f32 %v12792_v25, %v5549_v15  ;;  %9088 = vmatmul.mubr.msk.bf16.gmra.mxu0 %vm6239_vm2, %v6636_v60  ;;  %5368 = vperm.xlu1 %9414, %v5061_v16   ;;  %v15778_v25 = vld [vmem:[#allocation77_spill] sm:$0xff]  ;;  %v15780_v13 = vld [vmem:[#allocation168_spill] sm:$0xff]  ;;  %v15783_v30 = vld [vmem:[#allocation11_spill] sm:$0xff] }
 0x4da   : > { %9118 = vmatmul.mubr.msk.bf16.gmra.mxu1 %vm6239_vm2, %v6614_v38  ;;  %v2578_v24 = vmul.f32 %v13116_v27, %v15777_v31  ;;  %v6199_v18 = vmul.f32 1.050701, %v6127_v26  ;;  %v6126_v42 = vsel %vm5694_vm8, %v13079_v29, %v6054_v56  ;;  %v8806_v51 = vadd.f32 -1.0, %v9500_v33  ;;  %9091 = vmatprep.mubr.msk.bf16.mxu0 %vm9649_vm0, %v15679_v7  ;;  %v5062_v62 = vld [vmem:[%s9714_s14 + $0x20c] sm:$0xff]  ;;  %v3903_v52 = vld [vmem:[%s9714_s14 + $0x222] sm:$0xff]  ;;  %v15788_v26 = vld [vmem:[#allocation226_spill] sm:$0xff] }
 0x4db   : > { %v13249_v59 = vadd.f32 %v2010_v10, %v15778_v25  ;;  %v13253_v40 = vmul.f32 %v13102_v28, %v15780_v13  ;;  %v6198_v5 = vmul.f32 1.050701, %v6126_v42  ;;  %v5772_v39 = vmin.f32 %v13237_v37, 0.0  ;;  %5363 = vperm.xlu0 %9413, %v5060_v0   ;;  %9121 = vmatprep.mubr.msk.bf16.mxu1 %vm9649_vm0, %v15679_v7  ;;  %v15784_v10 = vld [vmem:[#allocation12_spill] sm:$0xff]  ;;  %v13269_v23 = vpop.permute.xlu1 %4151  ;;  %v15785_v60 = vld [vmem:[#allocation15_spill] sm:$0xff] }
 0x4dc   : > { %v9502_v29 = vpop.eup %9501  ;;  %v13260_v44 = vadd.f32 %v2574_v6, %v15782_v57  ;;  %v13263_v21 = vadd.f32 %v2573_v41, %v15783_v30  ;;  %v13266_v63 = vadd.f32 %v2576_v4, %v15784_v10  ;;  %6272 = vst.msk [vmem:[#allocation2 + $0x100] sm:$0xff] %vm6239_vm2, %v6199_v18  ;;  %v6056_v28 = vmul.f32 1.6732632, %v8806_v51  ;;  %v13277_v46 = vpop.permute.xlu0 %4146  ;;  %v15786_v41 = vld [vmem:[#allocation110_spill] sm:$0xff]  ;;  %v15787_v4 = vld [vmem:[#allocation225_spill] sm:$0xff]  ;;  %v15789_v18 = vld [vmem:[#allocation227_spill] sm:$0xff] }
 0x4dd   : > { %15779 = vst [vmem:[#allocation39_spill] sm:$0xff] %v13249_v59  ;;  %15781 = vst [vmem:[#allocation112_spill] sm:$0xff] %v13253_v40  ;;  %v9504_v15 = vpop.eup %9503  ;;  %v13273_v38 = vadd.f32 %v2575_v58, %v15785_v60  ;;  %vm5696_vm9 = vcmp.gt.f32.partialorder %v13095_v11, 0.0  ;;  %v8808_v6 = vadd.f32 -1.0, %v9502_v29  ;;  %v5881_v16 = vmul.f32 1.442695, %v5772_v39  ;;  %5373 = vperm.xlu1 %9414, %v5062_v62  }
 0x4de   : > { %6271 = vst.msk [vmem:[#allocation2 + $0xf8] sm:$0xff] %vm6239_vm2, %v6198_v5  ;;  %v13280_v61 = vadd.f32 %v2578_v24, %v15786_v41  ;;  %v2577_v56 = vmul.f32 %v13116_v27, %v15787_v4  ;;  %v6128_v0 = vsel %vm5696_vm9, %v13095_v11, %v6056_v28  ;;  %v8807_v33 = vadd.f32 -1.0, %v9504_v15  ;;  %v5064_v45 = vld [vmem:[%s9714_s14 + $0x21c] sm:$0xff]  ;;  %v5063_v58 = vld [vmem:[%s9714_s14 + $0x214] sm:$0xff]  ;;  %v15790_v51 = vld [vmem:[#allocation228_spill] sm:$0xff] }
 0x4df   : > { %v2580_v31 = vmul.f32 %v13116_v27, %v15788_v26  ;;  %v2579_v42 = vmul.f32 %v13116_v27, %v15789_v18  ;;  %v2582_v25 = vmul.f32 %v13116_v27, %v15790_v51  ;;  %v6420_v24 = vld [vmem:[#allocation2 + $0xd8] ss:$2 sm:$0x7]  ;;  %v6424_v13 = vld [vmem:[#allocation2 + $0xd9] ss:$2 sm:$0x7]  ;;  %9507 = vpow2.f32 %v5881_v16  ;;  %4226 = vperm.xlu0 %9413, %v3903_v52   ;;  %v13293_v62 = vpop.permute.xlu1 %4687 }
 0x4e0   : > { %v6426_v5 = vadd.f32 %v6424_v13, %v6420_v24  ;;  %v6200_v39 = vmul.f32 1.050701, %v6128_v0  ;;  %v6058_v11 = vmul.f32 1.6732632, %v8808_v6  ;;  %v6057_v29 = vmul.f32 1.6732632, %v8807_v33  ;;  %v13301_v60 = vpop.permute.xlu0 %4156 }
 0x4e1   : > { %v9506_v57 = vpop.eup %9505  ;;  %v15791_v30 = vld [vmem:[#allocation229_spill] sm:$0xff]  ;;  %v15792_v28 = vld [vmem:[#allocation230_spill] sm:$0xff]  ;;  %vm5698_vm10 = vcmp.gt.f32.partialorder %v13121_v1, 0.0  ;;  %vm5697_vm11 = vcmp.gt.f32.partialorder %v13124_v19, 0.0  ;;  %v15793_v52 = vld [vmem:[#allocation231_spill] sm:$0xff]  ;;  %5383 = vperm.xlu1 %9414, %v5064_v45   ;;  %vm5699_vm12 = vcmp.gt.f32.partialorder %v13157_v53, 0.0 }
 0x4e2   : > { %v2581_v10 = vmul.f32 %v13116_v27, %v15791_v30  ;;  %v2584_v15 = vmul.f32 %v13116_v27, %v15792_v28  ;;  %v2583_v6 = vmul.f32 %v13116_v27, %v15793_v52  ;;  %v6430_v16 = vld [vmem:[#allocation2 + $0xf1] ss:$2 sm:$0x7]  ;;  %6273 = vst.msk [vmem:[#allocation2 + $0x108] sm:$0xff] %vm6239_vm2, %v6200_v39  ;;  %v6130_v41 = vsel %vm5698_vm10, %v13121_v1, %v6058_v11  ;;  %v15794_v33 = vld [vmem:[#allocation16_spill] sm:$0xff]  ;;  %v15796_v52 = vld [vmem:[#allocation18_spill] sm:$0xff] }
 0x4e3   : > { %v6129_v4 = vsel %vm5697_vm11, %v13124_v19, %v6057_v29  ;;  %v8809_v0 = vadd.f32 -1.0, %v9506_v57  ;;  %v13309_v26 = vadd.f32 %v2577_v56, %v15794_v33  ;;  %v6202_v18 = vmul.f32 1.050701, %v6130_v41  ;;  %5378 = vperm.xlu0 %9413, %v5063_v58   ;;  %v5065_v24 = vld [vmem:[%s9714_s14 + $0x224] sm:$0xff]  ;;  %v15795_v30 = vld [vmem:[#allocation17_spill] sm:$0xff]  ;;  %v13316_v19 = vpop.permute.xlu1 %4697  ;;  %v15802_v33 = vld [vmem:[#allocation298_spill] sm:$0xff] }
 0x4e4   : > { %v6201_v51 = vmul.f32 1.050701, %v6129_v4  ;;  %v6432_v13 = vadd.f32 %v6430_v16, %v6426_v5  ;;  %v2652_v28 = vadd.f32 %v2580_v31, %v15795_v30  ;;  %v2651_v59 = vadd.f32 %v2579_v42, %v15796_v52  ;;  %v15797_v39 = vld [vmem:[#allocation232_spill] sm:$0xff]  ;;  %v6436_v11 = vld [vmem:[#allocation2 + $0xf2] ss:$2 sm:$0x7] }
 0x4e5   : > { %v2586_v1 = vmul.f32 %v13116_v27, %v15797_v39  ;;  %v6059_v43 = vmul.f32 1.6732632, %v8809_v0  ;;  %v13319_v45 = vld [vmem:[%s9714_s14 + $0x223] sm:$0xff]  ;;  %v15799_v57 = vld [vmem:[#allocation233_spill] sm:$0xff]  ;;  %6275 = vst.msk [vmem:[#allocation2 + $0x118] sm:$0xff] %vm6239_vm2, %v6202_v18  ;;  %v13329_v16 = vadd.f32 %v2584_v15, %v13129_v14  ;;  %v2655_v41 = vadd.f32 %v2583_v6, %v13169_v55  ;;  %5388 = vperm.xlu1 %9414, %v5065_v24  }
 0x4e6   : > { %v15798_v56 = vld [vmem:[#allocation19_spill] sm:$0xff]  ;;  %v2585_v58 = vmul.f32 %v13116_v27, %v15799_v57  ;;  %6274 = vst.msk [vmem:[#allocation2 + $0x110] sm:$0xff] %vm6239_vm2, %v6201_v51  ;;  %v6438_v31 = vadd.f32 %v6436_v11, %v6432_v13  ;;  %v15800_v42 = vld [vmem:[#allocation20_spill] sm:$0xff]  ;;  %v9417_v0 = vld [vmem:[%s14926_s3 + $0x10] sm:$0xff]   ;;  %v3155_v18 = vmul.f32 %v13136_v17, %v15802_v33  ;;  %vm5700_vm13 = vcmp.gt.f32.partialorder %v13237_v37, 0.0 }
 0x4e7   : > { %v2654_v29 = vadd.f32 %v2582_v25, %v15798_v56  ;;  %v2653_v5 = vadd.f32 %v2581_v10, %v15800_v42  ;;  %15801 = vst [vmem:[#allocation113_spill] sm:$0xff] %v13329_v16  ;;  %v6131_v4 = vsel %vm5699_vm12, %v13157_v53, %v6059_v43  ;;  %v13333_v25 = vpop.permute.xlu0 %4692  ;;  %v15803_v51 = vld [vmem:[#allocation299_spill] sm:$0xff]  ;;  %4807 = vperm.xlu0 %9413, %v13319_v45   ;;  %v15805_v43 = vld [vmem:[#allocation300_spill] sm:$0xff]  ;;  %v15806_v6 = vld [vmem:[#allocation301_spill] sm:$0xff]  ;;  %v13352_v52 = vpop.permute.xlu1 %4717 }
 0x4e8   : > { %v3154_v10 = vmul.f32 %v13136_v17, %v15803_v51  ;;  %v6203_v14 = vmul.f32 1.050701, %v6131_v4  ;;  %v6440_v55 = vmul.f32 0.25, %v6438_v31  ;;  %v13344_v53 = vadd.f32 %v2586_v1, %v13177_v54  ;;  %v15807_v13 = vld [vmem:[#allocation302_spill] sm:$0xff]  ;;  %9138 = vmatpush3.bf16.msra.mxu0 %v9417_v0  ;;  %v15810_v54 = vld [vmem:[#allocation303_spill] sm:$0xff]  ;;  %v15811_v57 = vld [vmem:[#allocation304_spill] sm:$0xff] }
 0x4e9   : > { %v3157_v15 = vmul.f32 %v13136_v17, %v15805_v43  ;;  %v3156_v24 = vmul.f32 %v13136_v17, %v15806_v6  ;;  %v3159_v30 = vmul.f32 %v13136_v17, %v15807_v13  ;;  %v13355_v39 = vadd.f32 %v2585_v58, %v13185_v48  ;;  %v15809_v11 = vld [vmem:[#allocation234_spill] sm:$0xff]  ;;  %9197 = vmatprep.subr.bf16.mxu0 %v15679_v7  ;;  %v15812_v42 = vld [vmem:[#allocation235_spill] sm:$0xff]  ;;  %v15813_v58 = vld [vmem:[#allocation305_spill] sm:$0xff] }
 0x4ea   : > { %15804 = vst [vmem:[#allocation23_spill] sm:$0xff] %v13344_v53  ;;  %v13359_v56 = vmul.f32 %v13116_v27, %v15809_v11  ;;  %v3158_v1 = vmul.f32 %v13136_v17, %v15810_v54  ;;  %v3161_v31 = vmul.f32 %v13136_v17, %v15811_v57  ;;  %6276 = vst.msk [vmem:[#allocation2 + $0x120] sm:$0xff] %vm6239_vm2, %v6203_v14  ;;  %v15814_v0 = vld [vmem:[#allocation306_spill] sm:$0xff]  ;;  %v15815_v51 = vld [vmem:[#allocation307_spill] sm:$0xff]  ;;  %3655 = vperm.xlu1 %9414, %v13206_v2  }
 0x4eb   : > { %15808 = vst [vmem:[#allocation114_spill] sm:$0xff] %v13355_v39  ;;  %6442 = vst.msk [vmem:[%s12401_s24 + $0x34] sm:$0x7] %vm6337_vm14, %v6440_v55  ;;  %v13371_v48 = vmul.f32 %v13116_v27, %v15812_v42  ;;  %v3160_v4 = vmul.f32 %v13136_v17, %v15813_v58  ;;  %v3163_v33 = vmul.f32 %v13136_v17, %v15814_v0  ;;  %v13379_v6 = vpop.permute.xlu0 %4712  ;;  %v15816_v13 = vld [vmem:[#allocation309_spill] sm:$0xff]  ;;  %v13389_v54 = vld [vmem:[%s14924_s1 + $0x5] ss:$0 sm:$0xff]  ;;  %3650 = vperm.xlu0 %9413, %v13160_v8   ;;  %v13402_v40 = vpop.permute.xlu1 %4702 }
 0x4ec   : > { %v3162_v43 = vmul.f32 %v13136_v17, %v15815_v51  ;;  %v3227_v14 = vadd.f32 %v3155_v18, %v13260_v44  ;;  %v3226_v55 = vadd.f32 %v3154_v10, %v13263_v21  ;;  %v3164_v11 = vmul.f32 %v13136_v17, %v15816_v13  ;;  %v15817_v57 = vld [vmem:[#allocation370_spill] sm:$0xff]  ;;  %v13395_v58 = vld [vmem:[%s9714_s14 + $0x22b] sm:$0xff]  ;;  %v9508_v2 = vpop.eup %9507  ;;  %v15818_v10 = vld [vmem:[#allocation371_spill] sm:$0xff] }
 0x4ed   : > { %v3736_v42 = vmul.f32 %v13389_v54, %v15817_v57  ;;  %v3229_v44 = vadd.f32 %v3157_v15, %v13266_v63  ;;  %v3228_v21 = vadd.f32 %v3156_v24, %v13273_v38  ;;  %v3231_v18 = vadd.f32 %v3159_v30, %v13280_v61  ;;  %v6444_v51 = vld [vmem:[#allocation2 + $0xfa] ss:$2 sm:$0xff]  ;;  %v6448_v13 = vld [vmem:[#allocation2 + $0xfb] ss:$2 sm:$0xff]  ;;  %v15820_v24 = vld [vmem:[#allocation373_spill] sm:$0xff] }
 0x4ee   : > { %v3735_v0 = vmul.f32 %v13389_v54, %v15818_v10  ;;  %v3230_v57 = vadd.f32 %v3158_v1, %v13309_v26  ;;  %v3233_v8 = vadd.f32 %v3161_v31, %v2652_v28  ;;  %v15819_v39 = vld [vmem:[#allocation372_spill] sm:$0xff]  ;;  %v8810_v16 = vadd.f32 -1.0, %v9508_v2  ;;  %3665 = vperm.xlu1 %9414, %v13395_v58   ;;  %v15821_v1 = vld [vmem:[#allocation374_spill] sm:$0xff]  ;;  %v15825_v2 = vld [vmem:[#allocation13_spill] sm:$0xff] }
 0x4ef   : > { %v3738_v53 = vmul.f32 %v13389_v54, %v15819_v39  ;;  %v3232_v63 = vadd.f32 %v3160_v4, %v2651_v59  ;;  %v3235_v15 = vadd.f32 %v3163_v33, %v2654_v29  ;;  %v3234_v38 = vadd.f32 %v3162_v43, %v2653_v5  ;;  %v13409_v30 = vpop.permute.xlu0 %4722  ;;  %3660 = vperm.xlu0 %9413, %v13319_v45   ;;  %v3904_v28 = vld [vmem:[%s9714_s14 + $0x22a] sm:$0xff]  ;;  %v15822_v29 = vld [vmem:[#allocation375_spill] sm:$0xff]  ;;  %v13419_v4 = vpop.permute.xlu1 %4727  ;;  %v13422_v33 = vld [vmem:[%s9714_s14 + $0x233] sm:$0xff] }
 0x4f0   : > { %v3737_v61 = vmul.f32 %v13389_v54, %v15820_v24  ;;  %v3236_v10 = vadd.f32 %v3164_v11, %v2655_v41  ;;  %v3808_v17 = vadd.f32 %v3736_v42, %v3227_v14  ;;  %v6451_v35 = vadd.f32 %v6448_v13, %v6444_v51  ;;  %v15824_v11 = vld [vmem:[#allocation376_spill] sm:$0xff] }
 0x4f1   : > { %v6060_v26 = vmul.f32 1.6732632, %v8810_v16  ;;  %v3807_v39 = vadd.f32 %v3735_v0, %v3226_v55  ;;  %v3740_v59 = vmul.f32 %v13389_v54, %v15821_v1  ;;  %v3739_v5 = vmul.f32 %v13389_v54, %v15822_v29  ;;  %v6454_v31 = vld [vmem:[#allocation2 + $0x113] ss:$2 sm:$0xff]  ;;  %v6460_v51 = vld [vmem:[#allocation2 + $0x114] ss:$2 sm:$0xff] }
 0x4f2   : > { %v13424_v41 = vadd.f32 %v3738_v53, %v3229_v44  ;;  %v15823_v16 = vld [vmem:[#allocation5_spill] sm:$0xff]  ;;  %v6457_v43 = vadd.f32 %v6454_v31, %v6451_v35  ;;  %v3809_v55 = vadd.f32 %v3737_v61, %v3228_v21  ;;  %v3741_v42 = vmul.f32 %v13389_v54, %v15824_v11  ;;  %4231 = vperm.xlu1 %9414, %v3904_v28   ;;  %v15826_v53 = vld [vmem:[#allocation14_spill] sm:$0xff]  ;;  %v6446_v31 = vld [vmem:[#allocation2 + $0x10a] ss:$2 sm:$0x7] }
 0x4f3   : > { %v3742_v45 = vmul.f32 %v13389_v54, %v15823_v16  ;;  %v6132_v14 = vsel %vm5700_vm13, %v13237_v37, %v6060_v26  ;;  %v3744_v0 = vmul.f32 %v13389_v54, %v15825_v2  ;;  %v13433_v24 = vpop.permute.xlu0 %4707  ;;  %v3743_v44 = vmul.f32 %v13389_v54, %v15826_v53  ;;  %v15827_v1 = vld [vmem:[#allocation285_spill] sm:$0xff]  ;;  %v13442_v37 = vld [vmem:[%s14924_s1 + $0x6] ss:$0 sm:$0xff]  ;;  %3670 = vperm.xlu0 %9413, %v13422_v33   ;;  %v3906_v61 = vld [vmem:[%s9714_s14 + $0x23a] sm:$0xff]  ;;  %v13453_v11 = vpop.permute.xlu1 %4737 }
 0x4f4   : > { %v6204_v13 = vmul.f32 1.050701, %v6132_v14  ;;  %v3745_v35 = vmul.f32 %v13389_v54, %v15827_v1  ;;  %v4317_v21 = vmul.f32 %v13442_v37, %v13150_v49  ;;  %v6463_v26 = vadd.f32 %v6460_v51, %v6457_v43  ;;  %v3905_v2 = vld [vmem:[%s9714_s14 + $0x232] sm:$0xff]  ;;  %v6450_v49 = vld [vmem:[#allocation2 + $0x10b] ss:$2 sm:$0x7] }
 0x4f5   : > { %v3812_v29 = vadd.f32 %v3740_v59, %v3231_v18  ;;  %v3811_v28 = vadd.f32 %v3739_v5, %v3230_v57  ;;  %v4316_v16 = vmul.f32 %v13442_v37, %v13108_v22  ;;  %v4318_v14 = vmul.f32 %v13442_v37, %v13144_v9  ;;  %v13461_v18 = vld [vmem:[%s14924_s1 + $0x7] ss:$0 sm:$0xff] }
 0x4f6   : > { %6277 = vst.msk [vmem:[#allocation2 + $0x128] sm:$0xff] %vm6239_vm2, %v6204_v13  ;;  %v3814_v53 = vadd.f32 %v3742_v45, %v3233_v8  ;;  %v4322_v1 = vmul.f32 %v13442_v37, %v13174_v34  ;;  %v4898_v22 = vmul.f32 %v13461_v18, %v13333_v25  ;;  %v6465_v9 = vmul.f32 0.25, %v6463_v26  ;;  %4241 = vperm.xlu1 %9414, %v3906_v61   ;;  %v6456_v51 = vld [vmem:[#allocation2 + $0x123] ss:$2 sm:$0x7] }
 0x4f7   : > { %v3813_v57 = vadd.f32 %v3741_v42, %v3232_v63  ;;  %v3816_v59 = vadd.f32 %v3744_v0, %v3235_v15  ;;  %v4321_v8 = vmul.f32 %v13442_v37, %v13181_v3  ;;  %v4323_v5 = vmul.f32 %v13442_v37, %v13210_v50  ;;  %v13469_v34 = vpop.permute.xlu0 %4732  ;;  %4236 = vperm.xlu0 %9413, %v3905_v2   ;;  %v3908_v63 = vld [vmem:[%s9714_s14 + $0x24a] sm:$0xff]  ;;  %v5274_v0 = vpop.permute.xlu1 %5273  ;;  %v3907_v61 = vld [vmem:[%s9714_s14 + $0x242] sm:$0xff] }
 0x4f8   : > { %v3815_v45 = vadd.f32 %v3743_v44, %v3234_v38  ;;  %v13471_v43 = vadd.f32 %v3745_v35, %v3236_v10  ;;  %v4389_v13 = vadd.f32 %v4317_v21, %v3808_v17  ;;  %v4897_v25 = vmul.f32 %v13461_v18, %v13293_v62  ;;  %6467 = vst.msk [vmem:[%s12401_s24 + $0x37] sm:$0xff] %vm6239_vm2, %v6465_v9  ;;  %v13486_v62 = vld [vmem:[%s14924_s1 + $0x8] ss:$0 sm:$0xff] }
 0x4f9   : > { %v6452_v3 = vadd.f32 %v6450_v49, %v6446_v31  ;;  %v4388_v15 = vadd.f32 %v4316_v16, %v3807_v39  ;;  %v4390_v42 = vadd.f32 %v4318_v14, %v3809_v55  ;;  %v4320_v50 = vmul.f32 %v13442_v37, %v13229_v47 }
 0x4fa   : > { %v4394_v38 = vadd.f32 %v4322_v1, %v3813_v57  ;;  %v4970_v10 = vadd.f32 %v4898_v22, %v4389_v13  ;;  %v4902_v17 = vmul.f32 %v13461_v18, %v13379_v6  ;;  %v5479_v44 = vmul.f32 %v13486_v62, %v5274_v0  ;;  %4251 = vperm.xlu1 %9414, %v3908_v63   ;;  %v13501_v22 = vld [vmem:[%s14925_s2] ss:$0 sm:$0xff] }
 0x4fb   : > { %v6458_v35 = vadd.f32 %v6456_v51, %v6452_v3  ;;  %v4393_v39 = vadd.f32 %v4321_v8, %v3812_v29  ;;  %v4395_v55 = vadd.f32 %v4323_v5, %v3814_v53  ;;  %v4319_v47 = vmul.f32 %v13442_v37, %v13241_v20  ;;  %v5269_v21 = vpop.permute.xlu0 %5268  ;;  %4246 = vperm.xlu0 %9413, %v3907_v61   ;;  %v5294_v53 = vpop.permute.xlu1 %5293  ;;  %v9418_v51 = vld [vmem:[%s14926_s3 + $0x18] sm:$0xff]  }
 0x4fc   : > { %v4325_v31 = vmul.f32 %v13442_v37, %v13269_v23  ;;  %v4969_v6 = vadd.f32 %v4897_v25, %v4388_v15  ;;  %v5551_v16 = vadd.f32 %v5479_v44, %v4970_v10  ;;  %v5478_v14 = vmul.f32 %v13486_v62, %v5269_v21  ;;  %9168 = vmatpush3.bf16.msra.mxu1 %v9418_v51 }
 0x4fd   : > { %v6462_v26 = vld [vmem:[#allocation2 + $0x124] ss:$2 sm:$0x7]  ;;  %v4392_v2 = vadd.f32 %v4320_v50, %v3811_v28  ;;  %v4324_v49 = vmul.f32 %v13442_v37, %v13277_v46  ;;  %v4899_v29 = vmul.f32 %v13461_v18, %v13316_v19  ;;  %v4974_v1 = vadd.f32 %v4902_v17, %v4393_v39  ;;  %9227 = vmatprep.subr.bf16.mxu1 %v15679_v7 }
 0x4fe   : > { %v6464_v20 = vadd.f32 %v6462_v26, %v6458_v35  ;;  %v13504_v23 = vadd.f32 %v13501_v22, %v5551_v16  ;;  %v5550_v9 = vadd.f32 %v5478_v14, %v4969_v6  ;;  %v5483_v28 = vmul.f32 %v13486_v62, %v5294_v53  ;;  %4817 = vperm.xlu1 %9414, %v13422_v33   ;;  %v13555_v6 = vld [vmem:[%s9714_s14 + $0x24b] sm:$0xff] }
 0x4ff   : > { %v4391_v46 = vadd.f32 %v4319_v47, %v13424_v41  ;;  %v4903_v19 = vmul.f32 %v13461_v18, %v13352_v52  ;;  %v4904_v57 = vmul.f32 %v13461_v18, %v13409_v30  ;;  %v5279_v8 = vpop.permute.xlu0 %5278  ;;  %v4397_v13 = vadd.f32 %v4325_v31, %v3816_v59  ;;  %4812 = vperm.xlu0 %9413, %v13395_v58   ;;  %v13522_v30 = vld [vmem:[%s9714_s14 + $0x243] sm:$0xff]  ;;  %v5304_v50 = vpop.permute.xlu1 %5303  ;;  %v13530_v59 = vld [vmem:[%s9714_s14 + $0x23b] sm:$0xff]  ;;  %v5066_v47 = vld [vmem:[%s9714_s14 + $0x22c] sm:$0xff] }
 0x500   : > { %v6466_v5 = vmul.f32 0.25, %v6464_v20  ;;  %v5774_v25 = vmin.f32 %v13504_v23, 0.0  ;;  %v13518_v41 = vadd.f32 %v13501_v22, %v5550_v9  ;;  %v5555_v52 = vadd.f32 %v5483_v28, %v4974_v1  ;;  %v5068_v28 = vld [vmem:[%s9714_s14 + $0x23c] sm:$0xff] }
 0x501   : > { %v4396_v63 = vadd.f32 %v4324_v49, %v3815_v45  ;;  %v13526_v33 = vmul.f32 %v13442_v37, %v13301_v60  ;;  %v4971_v3 = vadd.f32 %v4899_v29, %v4390_v42  ;;  %v5480_v15 = vmul.f32 %v13486_v62, %v5279_v8 }
 0x502   : > { %6468 = vst.msk [vmem:[%s12401_s24 + $0x3f] sm:$0x7] %vm6337_vm14, %v6466_v5  ;;  %v4901_v0 = vmul.f32 %v13461_v18, %v13433_v24  ;;  %v5885_v58 = vmul.f32 1.442695, %v5774_v25  ;;  %v5773_v45 = vmin.f32 %v13518_v41, 0.0  ;;  %v13538_v61 = vadd.f32 %v13501_v22, %v5555_v52  ;;  %4827 = vperm.xlu1 %9414, %v13522_v30   ;;  %v5067_v25 = vld [vmem:[%s9714_s14 + $0x234] sm:$0xff] }
 0x503   : > { %v4975_v60 = vadd.f32 %v4903_v19, %v4394_v38  ;;  %v4976_v42 = vadd.f32 %v4904_v57, %v4395_v55  ;;  %v5552_v10 = vadd.f32 %v5480_v15, %v4971_v3  ;;  %v5485_v17 = vmul.f32 %v13486_v62, %v5304_v50  ;;  %v5299_v44 = vpop.permute.xlu0 %5298  ;;  %4822 = vperm.xlu0 %9413, %v13530_v59   ;;  %v5289_v31 = vpop.permute.xlu1 %5288  ;;  %v6627_v52 = vld [vmem:[%s12401_s24 + $0x31] sm:$0xff] }
 0x504   : > { %v4900_v24 = vmul.f32 %v13461_v18, %v13402_v40  ;;  %9509 = vpow2.f32 %v5885_v58  ;;  %v5883_v35 = vmul.f32 1.442695, %v5773_v45  ;;  %v5778_v39 = vmin.f32 %v13538_v61, 0.0 }
 0x505   : > { %v4906_v38 = vmul.f32 %v13461_v18, %v13469_v34  ;;  %v13551_v55 = vadd.f32 %v13501_v22, %v5552_v10  ;;  %v5557_v21 = vadd.f32 %v5485_v17, %v4976_v42  ;;  %v5484_v26 = vmul.f32 %v13486_v62, %v5299_v44 }
 0x506   : > { %v4973_v40 = vadd.f32 %v4901_v0, %v4392_v2  ;;  %9511 = vpow2.f32 %v5883_v35  ;;  %v5893_v16 = vmul.f32 1.442695, %v5778_v39  ;;  %v5482_v14 = vmul.f32 %v13486_v62, %v5289_v31  ;;  %5393 = vperm.xlu1 %9414, %v5066_v47  }
 0x507   : > { %v4905_v49 = vmul.f32 %v13461_v18, %v13419_v4  ;;  %v5775_v34 = vmin.f32 %v13551_v55, 0.0  ;;  %v13562_v29 = vadd.f32 %v13501_v22, %v5557_v21  ;;  %v5556_v53 = vadd.f32 %v5484_v26, %v4975_v60  ;;  %v5284_v20 = vpop.permute.xlu0 %5283  ;;  %4832 = vperm.xlu0 %9413, %v13555_v6   ;;  %v5314_v51 = vpop.permute.xlu1 %5313  ;;  %v5069_v21 = vld [vmem:[%s9714_s14 + $0x244] sm:$0xff] }
 0x508   : > { %v4972_v1 = vadd.f32 %v4900_v24, %v4391_v46  ;;  %9513 = vpow2.f32 %v5893_v16  ;;  %v5554_v2 = vadd.f32 %v5482_v14, %v4973_v40  ;;  %v5481_v9 = vmul.f32 %v13486_v62, %v5284_v20  ;;  %v5070_v24 = vld [vmem:[%s9714_s14 + $0x24c] sm:$0xff] }
 0x509   : > { %v6628_v4 = vld [vmem:[%s12401_s24 + $0x39] sm:$0xff]  ;;  %v4978_v19 = vadd.f32 %v4906_v38, %v4397_v13  ;;  %v5887_v57 = vmul.f32 1.442695, %v5775_v34  ;;  %v5780_v8 = vmin.f32 %v13562_v29, 0.0  ;;  %v13570_v5 = vadd.f32 %v13501_v22, %v5556_v53  ;;  %v15829_v14 = vld [vmem:[#allocation237_spill] sm:$0xff] }
 0x50a   : > { %v13575_v46 = vadd.f32 %v13501_v22, %v5554_v2  ;;  %v5553_v3 = vadd.f32 %v5481_v9, %v4972_v1  ;;  %v5487_v15 = vmul.f32 %v13486_v62, %v5314_v51  ;;  %v6637_v50 = vpack.c.bf16 %v6628_v4, %v6627_v52  ;;  %v6606_v0 = vld [vmem:[%s12401_s24 + $0x38] sm:$0xff]  ;;  %5403 = vperm.xlu1 %9414, %v5068_v28  }
 0x50b   : > { %v4977_v13 = vadd.f32 %v4905_v49, %v4396_v63  ;;  %9515 = vpow2.f32 %v5887_v57  ;;  %v5897_v58 = vmul.f32 1.442695, %v5780_v8  ;;  %v5779_v45 = vmin.f32 %v13570_v5, 0.0  ;;  %v5309_v60 = vpop.permute.xlu0 %5308  ;;  %5398 = vperm.xlu0 %9413, %v5067_v25   ;;  %v6605_v63 = vld [vmem:[%s12401_s24 + $0x30] sm:$0xff]  ;;  %v13590_v38 = vpop.permute.xlu1 %4166  ;;  %v15830_v25 = vld [vmem:[#allocation111_spill] sm:$0xff] }
 0x50c   : > { %v4907_v42 = vmul.f32 %v13461_v18, %v13453_v11  ;;  %v5777_v10 = vmin.f32 %v13575_v46, 0.0  ;;  %v13584_v17 = vadd.f32 %v13501_v22, %v5553_v3  ;;  %v5559_v44 = vadd.f32 %v5487_v15, %v4978_v19  ;;  %9092 = vmatmul.mubr.msk.bf16.gmra.mxu0 %vm6239_vm2, %v6637_v50  ;;  %v15828_v11 = vld [vmem:[#allocation236_spill] sm:$0xff]  ;;  %v3909_v28 = vld [vmem:[%s9714_s14 + $0x252] sm:$0xff] }
 0x50d   : > { %9517 = vpow2.f32 %v5897_v58  ;;  %v5895_v35 = vmul.f32 1.442695, %v5779_v45  ;;  %v5486_v39 = vmul.f32 %v13486_v62, %v5309_v60  ;;  %v6615_v47 = vpack.c.bf16 %v6606_v0, %v6605_v63  ;;  %9095 = vmatprep.mubr.msk.bf16.mxu0 %vm9649_vm0, %v15679_v7  ;;  %v5071_v60 = vld [vmem:[%s9714_s14 + $0x254] sm:$0xff] }
 0x50e   : > { %v2590_v26 = vmul.f32 %v13116_v27, %v15828_v11  ;;  %v5891_v31 = vmul.f32 1.442695, %v5777_v10  ;;  %v5776_v40 = vmin.f32 %v13584_v17, 0.0  ;;  %v13599_v16 = vadd.f32 %v13501_v22, %v5559_v44  ;;  %5413 = vperm.xlu1 %9414, %v5070_v24   ;;  %v15834_v10 = vld [vmem:[#allocation311_spill] sm:$0xff] }
 0x50f   : > { %v2589_v49 = vmul.f32 %v13116_v27, %v15829_v14  ;;  %v4398_v34 = vadd.f32 %v13526_v33, %v13471_v43  ;;  %9519 = vpow2.f32 %v5895_v35  ;;  %v5558_v53 = vadd.f32 %v5486_v39, %v4977_v13  ;;  %9122 = vmatmul.mubr.msk.bf16.gmra.mxu1 %vm6239_vm2, %v6615_v47  ;;  %v5319_v20 = vpop.permute.xlu0 %5318  ;;  %5408 = vperm.xlu0 %9413, %v5069_v21   ;;  %v4490_v39 = vld [vmem:[%s9714_s14 + $0x253] sm:$0xff]  ;;  %v15835_v47 = vld [vmem:[#allocation312_spill] sm:$0xff] }
 0x510   : > { %v13608_v1 = vadd.f32 %v13359_v56, %v13188_v32  ;;  %9521 = vpow2.f32 %v5891_v31  ;;  %v5889_v2 = vmul.f32 1.442695, %v5776_v40  ;;  %v5782_v9 = vmin.f32 %v13599_v16, 0.0  ;;  %9125 = vmatprep.mubr.msk.bf16.mxu1 %vm9649_vm0, %v15679_v7  ;;  %v13622_v56 = vpop.permute.xlu1 %4176 }
 0x511   : > { %v9510_v27 = vpop.eup %9509  ;;  %v13616_v43 = vadd.f32 %v13371_v48, %v13194_v36  ;;  %v4979_v33 = vadd.f32 %v4907_v42, %v4398_v34  ;;  %v13619_v4 = vadd.f32 %v13501_v22, %v5558_v53  ;;  %v5488_v32 = vmul.f32 %v13486_v62, %v5319_v20  ;;  %v15831_v36 = vld [vmem:[#allocation308_spill] sm:$0xff]  ;;  %v15832_v48 = vld [vmem:[#allocation21_spill] sm:$0xff]  ;;  %v15837_v20 = vld [vmem:[#allocation314_spill] sm:$0xff] }
 0x512   : > { %v13625_v19 = vadd.f32 %v2590_v26, %v13197_v12  ;;  %v8812_v57 = vadd.f32 -1.0, %v9510_v27  ;;  %9523 = vpow2.f32 %v5889_v2  ;;  %v5901_v8 = vmul.f32 1.442695, %v5782_v9  ;;  %4256 = vperm.xlu1 %9414, %v3909_v28   ;;  %v15833_v12 = vld [vmem:[#allocation310_spill] sm:$0xff]  ;;  %v15836_v34 = vld [vmem:[#allocation313_spill] sm:$0xff] }
 0x513   : > { %v9512_v51 = vpop.eup %9511  ;;  %v13628_v52 = vadd.f32 %v2589_v49, %v15830_v25  ;;  %v3165_v3 = vmul.f32 %v15832_v48, %v15831_v36  ;;  %v5781_v15 = vmin.f32 %v13619_v4, 0.0  ;;  %v5560_v50 = vadd.f32 %v5488_v32, %v4979_v33  ;;  %v13633_v0 = vpop.permute.xlu0 %4171  ;;  %3675 = vperm.xlu0 %9413, %v13530_v59   ;;  %v15839_v25 = vld [vmem:[#allocation23_spill] sm:$0xff] }
 0x514   : > { %v3167_v13 = vmul.f32 %v15832_v48, %v15833_v12  ;;  %v6062_v58 = vmul.f32 1.6732632, %v8812_v57  ;;  %v8811_v45 = vadd.f32 -1.0, %v9512_v51  ;;  %9525 = vpow2.f32 %v5901_v8  ;;  %v13645_v35 = vpop.permute.xlu1 %4181  ;;  %v15838_v8 = vld [vmem:[#allocation113_spill] sm:$0xff] }
 0x515   : > { %v9514_v42 = vpop.eup %9513  ;;  %v3166_v44 = vmul.f32 %v15832_v48, %v15834_v10  ;;  %vm5702_vm15 = vcmp.gt.f32.partialorder %v13504_v23, 0.0  ;;  %v5899_v63 = vmul.f32 1.442695, %v5781_v15  ;;  %v13643_v24 = vadd.f32 %v13501_v22, %v5560_v50  ;;  %v15840_v15 = vld [vmem:[#allocation114_spill] sm:$0xff]  ;;  %v15841_v10 = vld [vmem:[#allocation315_spill] sm:$0xff] }
 0x516   : > { %v3169_v21 = vmul.f32 %v15832_v48, %v15835_v47  ;;  %v6134_v11 = vsel %vm5702_vm15, %v13504_v23, %v6062_v58  ;;  %v6061_v59 = vmul.f32 1.6732632, %v8811_v45  ;;  %v8816_v26 = vadd.f32 -1.0, %v9514_v42  ;;  %5418 = vperm.xlu1 %9414, %v5071_v60  }
 0x517   : > { %v6206_v31 = vmul.f32 1.050701, %v6134_v11  ;;  %vm5701_vm1 = vcmp.gt.f32.partialorder %v13518_v41, 0.0  ;;  %9527 = vpow2.f32 %v5899_v63  ;;  %v5783_v40 = vmin.f32 %v13643_v24, 0.0  ;;  %v13653_v14 = vpop.permute.xlu0 %4161  ;;  %4837 = vperm.xlu0 %9413, %v4490_v39   ;;  %v15842_v11 = vld [vmem:[#allocation284_spill] sm:$0xff] }
 0x518   : > { %v9516_v49 = vpop.eup %9515  ;;  %v3168_v53 = vmul.f32 %v15832_v48, %v15836_v34  ;;  %v3171_v2 = vmul.f32 %v15832_v48, %v15837_v20  ;;  %v6133_v23 = vsel %vm5701_vm1, %v13518_v41, %v6061_v59  ;;  %v6066_v9 = vmul.f32 1.6732632, %v8816_v26  ;;  %v13662_v32 = vpop.permute.xlu1 %4191  ;;  %v3912_v20 = vld [vmem:[%s9714_s14 + $0x26a] sm:$0x1f] }
 0x519   : > { %6279 = vst.msk [vmem:[#allocation2 + $0x138] sm:$0xff] %vm6239_vm2, %v6206_v31  ;;  %v6205_v28 = vmul.f32 1.050701, %v6133_v23  ;;  %vm5706_vm3 = vcmp.gt.f32.partialorder %v13538_v61, 0.0  ;;  %v8813_v27 = vadd.f32 -1.0, %v9516_v49  ;;  %v3237_v51 = vadd.f32 %v3165_v3, %v15838_v8  ;;  %v15843_v31 = vld [vmem:[#allocation42_spill] sm:$0xff] }
 0x51a   : > { %v5903_v33 = vmul.f32 1.442695, %v5783_v40  ;;  %v9518_v57 = vpop.eup %9517  ;;  %v3239_v36 = vadd.f32 %v3167_v13, %v15839_v25  ;;  %v3238_v50 = vadd.f32 %v3166_v44, %v15840_v15  ;;  %v6138_v41 = vsel %vm5706_vm3, %v13538_v61, %v6066_v9  ;;  %3685 = vperm.xlu1 %9414, %v13555_v6   ;;  %v3910_v44 = vld [vmem:[%s9714_s14 + $0x25a] sm:$0xff]  ;;  %v3911_v25 = vld [vmem:[%s9714_s14 + $0x262] sm:$0xff] }
 0x51b   : > { %6278 = vst.msk [vmem:[#allocation2 + $0x130] sm:$0xff] %vm6239_vm2, %v6205_v28  ;;  %v6210_v12 = vmul.f32 1.050701, %v6138_v41  ;;  %v6063_v58 = vmul.f32 1.6732632, %v8813_v27  ;;  %v8818_v45 = vadd.f32 -1.0, %v9518_v57  ;;  %v13669_v60 = vpop.permute.xlu0 %4186  ;;  %v3241_v3 = vadd.f32 %v3169_v21, %v13608_v1  ;;  %3680 = vperm.xlu0 %9413, %v13522_v30  }
 0x51c   : > { %9529 = vpow2.f32 %v5903_v33  ;;  %v9520_v42 = vpop.eup %9519  ;;  %v13674_v13 = vadd.f32 %v3168_v53, %v13616_v43  ;;  %v3170_v61 = vmul.f32 %v15832_v48, %v15841_v10  ;;  %vm5703_vm4 = vcmp.gt.f32.partialorder %v13551_v55, 0.0  ;;  %v13684_v43 = vpop.permute.xlu1 %4752  ;;  %v3331_v21 = vld [vmem:[%s9714_s14 + $0x253] sm:$0x1f]  ;;  %v15844_v40 = vld [vmem:[#allocation27_spill] sm:$0xff]  ;;  %v15845_v33 = vld [vmem:[#allocation28_spill] sm:$0xff] }
 0x51d   : > { %v9522_v63 = vpop.eup %9521  ;;  %v3243_v39 = vadd.f32 %v3171_v2, %v13625_v19  ;;  %6283 = vst.msk [vmem:[#allocation2 + $0x158] sm:$0xff] %vm6239_vm2, %v6210_v12  ;;  %v6135_v6 = vsel %vm5703_vm4, %v13551_v55, %v6063_v58  ;;  %v6068_v1 = vmul.f32 1.6732632, %v8818_v45  ;;  %v8817_v47 = vadd.f32 -1.0, %v9520_v42  ;;  %v15846_v41 = vld [vmem:[#allocation29_spill] sm:$0xff]  ;;  %v15847_v45 = vld [vmem:[#allocation43_spill] sm:$0xff] }
 0x51e   : > { %v3746_v48 = vmul.f32 %v13389_v54, %v15842_v11  ;;  %v6207_v59 = vmul.f32 1.050701, %v6135_v6  ;;  %vm5708_vm5 = vcmp.gt.f32.partialorder %v13562_v29, 0.0  ;;  %v8815_v30 = vadd.f32 -1.0, %v9522_v63  ;;  %4261 = vperm.xlu1 %9414, %v3910_v44  }
 0x51f   : > { %v9524_v26 = vpop.eup %9523  ;;  %v3748_v19 = vmul.f32 %v13389_v54, %v15843_v31  ;;  %v3747_v55 = vmul.f32 %v13389_v54, %v15844_v40  ;;  %v6140_v49 = vsel %vm5708_vm5, %v13562_v29, %v6068_v1  ;;  %v6067_v34 = vmul.f32 1.6732632, %v8817_v47  ;;  %v4748_v53 = vpop.permute.xlu0 %4747  ;;  %3690 = vperm.xlu0 %9413, %v3331_v21  }
 0x520   : > { %6280 = vst.msk [vmem:[#allocation2 + $0x140] sm:$0xff] %vm6239_vm2, %v6207_v59  ;;  %v6212_v2 = vmul.f32 1.050701, %v6140_v49  ;;  %vm5707_vm6 = vcmp.gt.f32.partialorder %v13570_v5, 0.0  ;;  %v6065_v23 = vmul.f32 1.6732632, %v8815_v30  ;;  %v13699_v27 = vadd.f32 %v3170_v61, %v13628_v52  ;;  %v13705_v8 = vpop.permute.xlu1 %4742 }
 0x521   : > { %v8814_v9 = vadd.f32 -1.0, %v9524_v26  ;;  %v9526_v28 = vpop.eup %9525  ;;  %v3750_v29 = vmul.f32 %v13389_v54, %v15845_v33  ;;  %v6139_v57 = vsel %vm5707_vm6, %v13570_v5, %v6067_v34  ;;  %vm5705_vm7 = vcmp.gt.f32.partialorder %v13575_v46, 0.0 }
 0x522   : > { %v13708_v15 = vadd.f32 %v3746_v48, %v3237_v51  ;;  %v3749_v12 = vmul.f32 %v13389_v54, %v15846_v41  ;;  %6285 = vst.msk [vmem:[#allocation2 + $0x168] sm:$0xff] %vm6239_vm2, %v6212_v2  ;;  %v6211_v52 = vmul.f32 1.050701, %v6139_v57  ;;  %v6137_v58 = vsel %vm5705_vm7, %v13575_v46, %v6065_v23  ;;  %4271 = vperm.xlu1 %9414, %v3912_v20   ;;  %v4492_v46 = vld [vmem:[%s9714_s14 + $0x263] sm:$0xff]  ;;  %v4493_v23 = vld [vmem:[%s9714_s14 + $0x26b] sm:$0x1f] }
 0x523   : > { %v3752_v42 = vmul.f32 %v13389_v54, %v15847_v45  ;;  %v6209_v5 = vmul.f32 1.050701, %v6137_v58  ;;  %v6064_v10 = vmul.f32 1.6732632, %v8814_v9  ;;  %v8820_v61 = vadd.f32 -1.0, %v9526_v28  ;;  %v4758_v44 = vpop.permute.xlu0 %4757  ;;  %4266 = vperm.xlu0 %9413, %v3911_v25  }
 0x524   : > { %v9528_v51 = vpop.eup %9527  ;;  %v3820_v63 = vadd.f32 %v3748_v19, %v3239_v36  ;;  %v3819_v6 = vadd.f32 %v3747_v55, %v3238_v50  ;;  %6284 = vst.msk [vmem:[#allocation2 + $0x160] sm:$0xff] %vm6239_vm2, %v6211_v52  ;;  %vm5704_vm8 = vcmp.gt.f32.partialorder %v13584_v17, 0.0  ;;  %v4328_v1 = vmul.f32 %v13442_v37, %v13590_v38  ;;  %v13723_v59 = vpop.permute.xlu1 %4767  ;;  %v4491_v36 = vld [vmem:[%s9714_s14 + $0x25b] sm:$0xff]  ;;  %v6470_v57 = vld [vmem:[#allocation2 + $0x12c] ss:$2 sm:$0xff] }
 0x525   : > { %v3822_v47 = vadd.f32 %v3750_v29, %v3241_v3  ;;  %6282 = vst.msk [vmem:[#allocation2 + $0x150] sm:$0xff] %vm6239_vm2, %v6209_v5  ;;  %v6136_v21 = vsel %vm5704_vm8, %v13584_v17, %v6064_v10  ;;  %v6070_v11 = vmul.f32 1.6732632, %v8820_v61  ;;  %v8819_v48 = vadd.f32 -1.0, %v9528_v51  ;;  %v15848_v3 = vld [vmem:[#allocation30_spill] sm:$0xff] }
 0x526   : > { %v3821_v50 = vadd.f32 %v3749_v12, %v13674_v13  ;;  %v6208_v30 = vmul.f32 1.050701, %v6136_v21  ;;  %vm5710_vm9 = vcmp.gt.f32.partialorder %v13599_v16, 0.0  ;;  %v4909_v26 = vmul.f32 %v13461_v18, %v4748_v53  ;;  %4847 = vperm.xlu1 %9414, %v4492_v46   ;;  %v6474_v25 = vld [vmem:[#allocation2 + $0x12d] ss:$2 sm:$0xff] }
 0x527   : > { %v13729_v38 = vadd.f32 %v3752_v42, %v3243_v39  ;;  %v3751_v31 = vmul.f32 %v13389_v54, %v15848_v3  ;;  %v6472_v19 = vld [vmem:[#allocation2 + $0x13c] ss:$2 sm:$0x7]  ;;  %v6476_v17 = vld [vmem:[#allocation2 + $0x13d] ss:$2 sm:$0x7]  ;;  %v6142_v40 = vsel %vm5710_vm9, %v13599_v16, %v6070_v11  ;;  %v4330_v55 = vmul.f32 %v13442_v37, %v13622_v56  ;;  %v4763_v13 = vpop.permute.xlu0 %4762  ;;  %4842 = vperm.xlu0 %9413, %v4491_v36   ;;  %v6705_v52 = vpop.f32.mrf.mxu0 }
 0x528   : > { %6281 = vst.msk [vmem:[#allocation2 + $0x148] sm:$0xff] %vm6239_vm2, %v6208_v30  ;;  %v6214_v34 = vmul.f32 1.050701, %v6142_v40  ;;  %v6069_v53 = vmul.f32 1.6732632, %v8819_v48  ;;  %v4400_v39 = vadd.f32 %v4328_v1, %v3819_v6  ;;  %v4329_v20 = vmul.f32 %v13442_v37, %v13633_v0  ;;  %v5072_v54 = vld [vmem:[%s9714_s14 + $0x25c] sm:$0xff]  ;;  %v5329_v2 = vpop.permute.xlu1 %5328  ;;  %v6820_v58 = vpop.f32.mrf.mxu1 }
 0x529   : > { %v9530_v49 = vpop.eup %9529  ;;  %vm5709_vm10 = vcmp.gt.f32.partialorder %v13619_v4, 0.0  ;;  %vm5711_vm11 = vcmp.gt.f32.partialorder %v13643_v24, 0.0  ;;  %v4331_v56 = vmul.f32 %v13442_v37, %v13645_v35  ;;  %v4911_v33 = vmul.f32 %v13461_v18, %v4758_v44  ;;  %v5074_v61 = vld [vmem:[%s9714_s14 + $0x26c] sm:$0x1f]  ;;  %v9081_v46 = vpop.f32.mrf.mxu0 }
 0x52a   : > { %v8821_v16 = vadd.f32 -1.0, %v9530_v49  ;;  %6287 = vst.msk [vmem:[#allocation2 + $0x178] sm:$0xff] %vm6239_vm2, %v6214_v34  ;;  %v6141_v9 = vsel %vm5709_vm10, %v13619_v4, %v6069_v53  ;;  %v4981_v28 = vadd.f32 %v4909_v26, %v4400_v39  ;;  %v5490_v0 = vmul.f32 %v13486_v62, %v5329_v2  ;;  %5423 = vperm.xlu1 %9414, %v5072_v54   ;;  %v9111_v21 = vpop.f32.mrf.mxu1 }
 0x52b   : > { %v13750_v29 = vadd.f32 %v3751_v31, %v13699_v27  ;;  %v6478_v41 = vadd.f32 %v6476_v17, %v6472_v19  ;;  %v6213_v12 = vmul.f32 1.050701, %v6141_v9  ;;  %v4402_v35 = vadd.f32 %v4330_v55, %v3821_v50  ;;  %v4773_v27 = vpop.permute.xlu0 %4772  ;;  %4852 = vperm.xlu0 %9413, %v4493_v23   ;;  %v6708_v31 = vpop.f32.mrf.mxu0 }
 0x52c   : > { %v6482_v45 = vld [vmem:[#allocation2 + $0x155] ss:$2 sm:$0x7]  ;;  %v4401_v4 = vadd.f32 %v4329_v20, %v3820_v63  ;;  %v4910_v42 = vmul.f32 %v13461_v18, %v13684_v43  ;;  %v13754_v5 = vadd.f32 %v6820_v58, %v6705_v52  ;;  %v5562_v10 = vadd.f32 %v5490_v0, %v4981_v28  ;;  %v5073_v63 = vld [vmem:[%s9714_s14 + $0x264] sm:$0xff]  ;;  %v5339_v30 = vpop.permute.xlu1 %5338  ;;  %v6823_v19 = vpop.f32.mrf.mxu1  ;;  %s14826_s14 = scalar_lea.vmem %s14931_s8, %s8986_s23 }
 0x52d   : > { %v6484_v44 = vadd.f32 %v6482_v45, %v6478_v41  ;;  %6286 = vst.msk [vmem:[#allocation2 + $0x170] sm:$0xff] %vm6239_vm2, %v6213_v12  ;;  %v6071_v51 = vmul.f32 1.6732632, %v8821_v16  ;;  %v4403_v6 = vadd.f32 %v4331_v56, %v3822_v47  ;;  %v4327_v1 = vmul.f32 %v13442_v37, %v13653_v14  ;;  %v6488_v48 = vld [vmem:[#allocation2 + $0x156] ss:$2 sm:$0x7] }
 0x52e   : > { %v6477_v11 = vadd.f32 %v6474_v25, %v6470_v57  ;;  %v4333_v43 = vmul.f32 %v13442_v37, %v13662_v32  ;;  %v4983_v36 = vadd.f32 %v4911_v33, %v4402_v35  ;;  %v13764_v50 = vadd.f32 %v13501_v22, %v5562_v10  ;;  %5433 = vperm.xlu1 %9414, %v5074_v61   ;;  %v9112_v54 = vpop.f32.mrf.mxu1  ;;  %v6500_v35 = vld [vmem:[#allocation2 + $0x15f] ss:$2 sm:$0xff] }
 0x52f   : > { %v6490_v26 = vadd.f32 %v6488_v48, %v6484_v44  ;;  %v6480_v3 = vld [vmem:[#allocation2 + $0x145] ss:$2 sm:$0xff]  ;;  %v6143_v47 = vsel %vm5711_vm11, %v13643_v24, %v6071_v51  ;;  %v4912_v14 = vmul.f32 %v13461_v18, %v4763_v13  ;;  %v5492_v17 = vmul.f32 %v13486_v62, %v5339_v30  ;;  %v5334_v34 = vpop.permute.xlu0 %5333  ;;  %5428 = vperm.xlu0 %9413, %v5073_v63   ;;  %v6486_v39 = vld [vmem:[#allocation2 + $0x146] ss:$2 sm:$0xff]  ;;  %v9082_v24 = vpop.f32.mrf.mxu0 }
 0x530   : > { %v6483_v40 = vadd.f32 %v6480_v3, %v6477_v11  ;;  %v6215_v32 = vmul.f32 1.050701, %v6143_v47  ;;  %v4982_v55 = vadd.f32 %v4910_v42, %v4401_v4  ;;  %v5785_v49 = vmin.f32 %v13764_v50, 0.0  ;;  %v5344_v28 = vpop.permute.xlu1 %5343  ;;  %v13797_v42 = vld [vmem:[%s14924_s1 + $0x2] ss:$0 sm:$0xff]  ;;  %v15850_v3 = vld [vmem:[#allocation78_spill] sm:$0xff] }
 0x531   : > { %v6492_v53 = vmul.f32 0.25, %v6490_v26  ;;  %v13772_v20 = vadd.f32 %v6823_v19, %v6708_v31  ;;  %v5564_v13 = vadd.f32 %v5492_v17, %v4983_v36  ;;  %v5491_v16 = vmul.f32 %v13486_v62, %v5334_v34  ;;  %v15852_v17 = vld [vmem:[#allocation170_spill] sm:$0xff]  ;;  %v15853_v34 = vld [vmem:[#allocation171_spill] sm:$0xff] }
 0x532   : > { %v6489_v56 = vadd.f32 %v6486_v39, %v6483_v40  ;;  %6288 = vst.msk [vmem:[#allocation2 + $0x180] sm:$0xff] %vm6239_vm2, %v6215_v32  ;;  %v4332_v2 = vmul.f32 %v13442_v37, %v13669_v60  ;;  %v4908_v23 = vmul.f32 %v13461_v18, %v13705_v8  ;;  %v5907_v9 = vmul.f32 1.442695, %v5785_v49  ;;  %v6496_v8 = vld [vmem:[#allocation2 + $0x15e] ss:$2 sm:$0xff] }
 0x533   : > { %6494 = vst.msk [vmem:[%s12401_s24 + $0x4a] sm:$0x7] %vm6337_vm14, %v6492_v53  ;;  %v4984_v33 = vadd.f32 %v4912_v14, %v4403_v6  ;;  %v13783_v0 = vadd.f32 %v13501_v22, %v5564_v13  ;;  %v5563_v57 = vadd.f32 %v5491_v16, %v4982_v55  ;;  %v5493_v25 = vmul.f32 %v13486_v62, %v5344_v28  ;;  %v5324_v60 = vpop.permute.xlu0 %5323  ;;  %v15854_v13 = vld [vmem:[#allocation79_spill] sm:$0xff] }
 0x534   : > { %v6491_v41 = vmul.f32 0.25, %v6489_v56  ;;  %v4399_v12 = vadd.f32 %v4327_v1, %v13708_v15  ;;  %v4913_v37 = vmul.f32 %v13461_v18, %v13723_v59  ;;  %9531 = vpow2.f32 %v5907_v9  ;;  %v15849_v15 = vld [vmem:[#allocation169_spill] sm:$0xff]  ;;  %v13839_v28 = vld [vmem:[%s14924_s1 + $0x3] ss:$0 sm:$0xff] }
 0x535   : > { %v4914_v52 = vmul.f32 %v13461_v18, %v4773_v27  ;;  %v5787_v58 = vmin.f32 %v13783_v0, 0.0  ;;  %v13792_v45 = vadd.f32 %v13501_v22, %v5563_v57  ;;  %v5565_v4 = vadd.f32 %v5493_v25, %v4984_v33  ;;  %v5354_v27 = vpop.permute.xlu1 %5353  ;;  %v15855_v56 = vld [vmem:[#allocation173_spill] sm:$0xff]  ;;  %v15856_v33 = vld [vmem:[#allocation238_spill] sm:$0xff] }
 0x536   : > { %v2012_v59 = vmul.f32 %v13797_v42, %v15849_v15  ;;  %6493 = vst.msk [vmem:[%s12401_s24 + $0x42] sm:$0xff] %vm6239_vm2, %v6491_v41  ;;  %v4404_v10 = vadd.f32 %v4332_v2, %v13750_v29  ;;  %v4980_v61 = vadd.f32 %v4908_v23, %v4399_v12  ;;  %v5489_v18 = vmul.f32 %v13486_v62, %v5324_v60  ;;  %v15860_v15 = vld [vmem:[#allocation240_spill] sm:$0xff] }
 0x537   : > { %v4405_v44 = vadd.f32 %v4333_v43, %v13729_v38  ;;  %v5911_v51 = vmul.f32 1.442695, %v5787_v58  ;;  %v5786_v6 = vmin.f32 %v13792_v45, 0.0  ;;  %v13808_v1 = vadd.f32 %v13501_v22, %v5565_v4  ;;  %v5349_v48 = vpop.permute.xlu0 %5348  ;;  %v15851_v38 = vld [vmem:[#allocation112_spill] sm:$0xff]  ;;  %v15859_v58 = vld [vmem:[#allocation81_spill] sm:$0xff] }
 0x538   : > { %v6503_v46 = vadd.f32 %v6500_v35, %v6496_v8  ;;  %v4985_v21 = vadd.f32 %v4913_v37, %v4404_v10  ;;  %v5561_v63 = vadd.f32 %v5489_v18, %v4980_v61  ;;  %v5495_v11 = vmul.f32 %v13486_v62, %v5354_v27  ;;  %v15857_v37 = vld [vmem:[#allocation80_spill] sm:$0xff]  ;;  %v15858_v8 = vld [vmem:[#allocation239_spill] sm:$0xff]  ;;  %v15861_v10 = vld [vmem:[#allocation241_spill] sm:$0xff] }
 0x539   : > { %v6506_v36 = vld [vmem:[#allocation2 + $0x177] ss:$2 sm:$0xff]  ;;  %v4986_v29 = vadd.f32 %v4914_v52, %v4405_v44  ;;  %9533 = vpow2.f32 %v5911_v51  ;;  %v5909_v30 = vmul.f32 1.442695, %v5786_v6  ;;  %v5494_v26 = vmul.f32 %v13486_v62, %v5349_v48  ;;  %v13818_v19 = vpop.permute.xlu1 %4201  ;;  %v6512_v32 = vld [vmem:[#allocation2 + $0x178] ss:$2 sm:$0xff] }
 0x53a   : > { %v2085_v43 = vadd.f32 %v15851_v38, %v15850_v3  ;;  %v6509_v47 = vadd.f32 %v6506_v36, %v6503_v46  ;;  %v5788_v14 = vmin.f32 %v13808_v1, 0.0  ;;  %v13816_v31 = vadd.f32 %v13501_v22, %v5561_v63  ;;  %v15862_v44 = vld [vmem:[#allocation242_spill] sm:$0xff]  ;;  %v15863_v6 = vld [vmem:[#allocation243_spill] sm:$0xff]  ;;  %v15865_v36 = vld [vmem:[#allocation100_spill] sm:$0xff] }
 0x53b   : > { %v2015_v40 = vmul.f32 %v13797_v42, %v15852_v17  ;;  %9535 = vpow2.f32 %v5909_v30  ;;  %v5567_v55 = vadd.f32 %v5495_v11, %v4986_v29  ;;  %v5566_v49 = vadd.f32 %v5494_v26, %v4985_v21  ;;  %v13825_v54 = vpop.permute.xlu0 %4196  ;;  %v15864_v11 = vld [vmem:[#allocation83_spill] sm:$0xff]  ;;  %v15866_v30 = vld [vmem:[#allocation245_spill] sm:$0xff] }
 0x53c   : > { %v2014_v62 = vmul.f32 %v13797_v42, %v15853_v34  ;;  %v6515_v53 = vadd.f32 %v6512_v32, %v6509_v47  ;;  %v5913_v39 = vmul.f32 1.442695, %v5788_v14  ;;  %v5784_v24 = vmin.f32 %v13816_v31, 0.0  ;;  %v15867_v47 = vld [vmem:[#allocation39_spill] sm:$0xff] }
 0x53d   : > { %v2084_v16 = vadd.f32 %v2012_v59, %v15854_v13  ;;  %v2016_v2 = vmul.f32 %v13797_v42, %v15855_v56  ;;  %v13831_v23 = vadd.f32 %v13501_v22, %v5567_v55  ;;  %v13834_v9 = vadd.f32 %v13501_v22, %v5566_v49  ;;  %v13843_v12 = vpop.permute.xlu1 %4211  ;;  %v13873_v17 = vld [vmem:[%s14924_s1 + $0x4] ss:$0 sm:$0xff]  ;;  %v15869_v55 = vld [vmem:[#allocation317_spill] sm:$0xff] }
 0x53e   : > { %v2592_v57 = vmul.f32 %v13839_v28, %v15856_v33  ;;  %v6517_v25 = vmul.f32 0.25, %v6515_v53  ;;  %9537 = vpow2.f32 %v5913_v39  ;;  %v5905_v41 = vmul.f32 1.442695, %v5784_v24 }
 0x53f   : > { %v2087_v60 = vadd.f32 %v2015_v40, %v15857_v37  ;;  %v2591_v35 = vmul.f32 %v13839_v28, %v15858_v8  ;;  %v5790_v22 = vmin.f32 %v13831_v23, 0.0  ;;  %v5789_v52 = vmin.f32 %v13834_v9, 0.0  ;;  %v13857_v18 = vpop.permute.xlu0 %4206  ;;  %v15868_v40 = vld [vmem:[#allocation316_spill] sm:$0xff] }
 0x540   : > { %v2086_v4 = vadd.f32 %v2014_v62, %v15859_v58  ;;  %v2594_v59 = vmul.f32 %v13839_v28, %v15860_v15  ;;  %v2593_v61 = vmul.f32 %v13839_v28, %v15861_v10  ;;  %6519 = vst.msk [vmem:[%s12401_s24 + $0x4d] sm:$0xff] %vm6239_vm2, %v6517_v25  ;;  %9539 = vpow2.f32 %v5905_v41  ;;  %v15870_v62 = vld [vmem:[#allocation318_spill] sm:$0xff]  ;;  %v15871_v25 = vld [vmem:[#allocation319_spill] sm:$0xff]  ;;  %v15872_v41 = vld [vmem:[#allocation320_spill] sm:$0xff] }
 0x541   : > { %v9532_v27 = vpop.eup %9531  ;;  %v2596_v51 = vmul.f32 %v13839_v28, %v15862_v44  ;;  %v2595_v46 = vmul.f32 %v13839_v28, %v15863_v6  ;;  %v5917_v21 = vmul.f32 1.442695, %v5790_v22  ;;  %v5915_v63 = vmul.f32 1.442695, %v5789_v52  ;;  %v13867_v38 = vpop.permute.xlu1 %4221  ;;  %v6629_v22 = vld [vmem:[%s12401_s24 + $0x41] sm:$0xff] }
 0x542   : > { %v2088_v48 = vadd.f32 %v2016_v2, %v15864_v11  ;;  %v2664_v29 = vadd.f32 %v2592_v57, %v15865_v36  ;;  %v2597_v26 = vmul.f32 %v13839_v28, %v15866_v30  ;;  %v8823_v3 = vadd.f32 -1.0, %v9532_v27  ;;  %v6607_v15 = vld [vmem:[%s12401_s24 + $0x40] sm:$0xff]  ;;  %v15873_v27 = vld [vmem:[#allocation321_spill] sm:$0xff]  ;;  %v15875_v11 = vld [vmem:[#allocation44_spill] sm:$0xff] }
 0x543   : > { %v2663_v14 = vadd.f32 %v2591_v35, %v15867_v47  ;;  %v3173_v32 = vmul.f32 %v13873_v17, %v15868_v40  ;;  %v3172_v49 = vmul.f32 %v13873_v17, %v15869_v55  ;;  %9541 = vpow2.f32 %v5917_v21  ;;  %v13881_v24 = vpop.permute.xlu0 %4216  ;;  %v15874_v21 = vld [vmem:[#allocation323_spill] sm:$0xff] }
 0x544   : > { %v2666_v34 = vadd.f32 %v2594_v59, %v2085_v43  ;;  %v3175_v53 = vmul.f32 %v13873_v17, %v15870_v62  ;;  %v6073_v39 = vmul.f32 1.6732632, %v8823_v3  ;;  %9543 = vpow2.f32 %v5915_v63  ;;  %v13902_v63 = vld [vmem:[%s14924_s1 + $0x5] ss:$0 sm:$0xff]  ;;  %v15876_v3 = vld [vmem:[#allocation289_spill] sm:$0xff] }
 0x545   : > { %v2665_v13 = vadd.f32 %v2593_v61, %v2084_v16  ;;  %v2668_v56 = vadd.f32 %v2596_v51, %v2087_v60  ;;  %v2667_v2 = vadd.f32 %v2595_v46, %v2086_v4  ;;  %vm5713_vm12 = vcmp.gt.f32.partialorder %v13764_v50, 0.0  ;;  %v13889_v35 = vpop.permute.xlu1 %4782 }
 0x546   : > { %v9534_v33 = vpop.eup %9533  ;;  %v2669_v57 = vadd.f32 %v2597_v26, %v2088_v48  ;;  %v3174_v43 = vmul.f32 %v13873_v17, %v15871_v25  ;;  %v3177_v37 = vmul.f32 %v13873_v17, %v15872_v41  ;;  %v6145_v8 = vsel %vm5713_vm12, %v13764_v50, %v6073_v39 }
 0x547   : > { %v3245_v16 = vadd.f32 %v3173_v32, %v2664_v29  ;;  %v3244_v52 = vadd.f32 %v3172_v49, %v2663_v14  ;;  %v6217_v60 = vmul.f32 1.050701, %v6145_v8  ;;  %v8825_v58 = vadd.f32 -1.0, %v9534_v33  ;;  %v6630_v4 = vld [vmem:[%s12401_s24 + $0x49] sm:$0xff]  ;;  %v4778_v46 = vpop.permute.xlu0 %4777 }
 0x548   : > { %v6608_v59 = vld [vmem:[%s12401_s24 + $0x48] sm:$0xff]  ;;  %v9536_v10 = vpop.eup %9535  ;;  %v3247_v61 = vadd.f32 %v3175_v53, %v2666_v34  ;;  %v3176_v44 = vmul.f32 %v13873_v17, %v15873_v27  ;;  %v6638_v51 = vpack.c.bf16 %v6630_v4, %v6629_v22  ;;  %v3178_v50 = vmul.f32 %v13873_v17, %v15874_v21  ;;  %v15878_v49 = vld [vmem:[#allocation53_spill] sm:$0xff]  ;;  %v13942_v4 = vld [vmem:[%s14924_s1 + $0x7] ss:$0 sm:$0xff] }
 0x549   : > { %v6616_v6 = vpack.c.bf16 %v6608_v59, %v6607_v15  ;;  %v3753_v48 = vmul.f32 %v13902_v63, %v15875_v11  ;;  %6290 = vst.msk [vmem:[#allocation2 + $0x190] sm:$0xff] %vm6239_vm2, %v6217_v60  ;;  %v6075_v36 = vmul.f32 1.6732632, %v8825_v58  ;;  %v8824_v29 = vadd.f32 -1.0, %v9536_v10  ;;  %v13914_v14 = vpop.permute.xlu1 %3645  ;;  %v15877_v32 = vld [vmem:[#allocation52_spill] sm:$0xff]  ;;  %v15879_v59 = vld [vmem:[#allocation62_spill] sm:$0xff] }
 0x54a   : > { %v3246_v30 = vadd.f32 %v3174_v43, %v2665_v13  ;;  %v13907_v26 = vadd.f32 %v3177_v37, %v2668_v56  ;;  %v3754_v47 = vmul.f32 %v13902_v63, %v15876_v3  ;;  %vm5715_vm13 = vcmp.gt.f32.partialorder %v13783_v0, 0.0  ;;  %9096 = vmatmul.mubr.msk.bf16.gmra.mxu0 %vm6239_vm2, %v6638_v51  ;;  %v13929_v56 = vld [vmem:[%s14924_s1 + $0x6] ss:$0 sm:$0xff] }
 0x54b   : > { %9126 = vmatmul.mubr.msk.bf16.gmra.mxu1 %vm6239_vm2, %v6616_v6  ;;  %v9538_v40 = vpop.eup %9537  ;;  %v3756_v55 = vmul.f32 %v13902_v63, %v15877_v32  ;;  %v3755_v34 = vmul.f32 %v13902_v63, %v15878_v49  ;;  %v6147_v62 = vsel %vm5715_vm13, %v13783_v0, %v6075_v36  ;;  %v6074_v53 = vmul.f32 1.6732632, %v8824_v29  ;;  %9099 = vmatprep.mubr.msk.bf16.mxu0 %vm9649_vm0, %v15679_v7  ;;  %v4788_v0 = vpop.permute.xlu0 %4787  ;;  %v13965_v32 = vld [vmem:[%s14924_s1 + $0x8] ss:$0 sm:$0xff] }
 0x54c   : > { %9129 = vmatprep.mubr.msk.bf16.mxu1 %vm9649_vm0, %v15679_v7  ;;  %v6219_v39 = vmul.f32 1.050701, %v6147_v62  ;;  %vm5714_vm15 = vcmp.gt.f32.partialorder %v13792_v45, 0.0  ;;  %v8826_v13 = vadd.f32 -1.0, %v9538_v40  ;;  %v4334_v33 = vmul.f32 %v13929_v56, %v13825_v54 }
 0x54d   : > { %v9540_v25 = vpop.eup %9539  ;;  %v13933_v43 = vadd.f32 %v3176_v44, %v2667_v2  ;;  %v13935_v41 = vadd.f32 %v3178_v50, %v2669_v57  ;;  %v3825_v37 = vadd.f32 %v3753_v48, %v3244_v52  ;;  %v6146_v8 = vsel %vm5714_vm15, %v13792_v45, %v6074_v53  ;;  %v13945_v15 = vpop.permute.xlu1 %4797  ;;  %v15880_v50 = vld [vmem:[#allocation63_spill] sm:$0xff] }
 0x54e   : > { %6292 = vst.msk [vmem:[#allocation2 + $0x1a0] sm:$0xff] %vm6239_vm2, %v6219_v39  ;;  %v6218_v22 = vmul.f32 1.050701, %v6146_v8  ;;  %v6076_v60 = vmul.f32 1.6732632, %v8826_v13  ;;  %v8822_v58 = vadd.f32 -1.0, %v9540_v25  ;;  %v4915_v54 = vmul.f32 %v13942_v4, %v4778_v46 }
 0x54f   : > { %v3826_v2 = vadd.f32 %v3754_v47, %v3245_v16  ;;  %v13947_v57 = vadd.f32 %v3756_v55, %v3247_v61  ;;  %v3827_v52 = vadd.f32 %v3755_v34, %v3246_v30  ;;  %vm5716_vm1 = vcmp.gt.f32.partialorder %v13808_v1, 0.0  ;;  %v4793_v6 = vpop.permute.xlu0 %4792 }
 0x550   : > { %v9542_v45 = vpop.eup %9541  ;;  %v3758_v10 = vmul.f32 %v13902_v63, %v15879_v59  ;;  %6291 = vst.msk [vmem:[#allocation2 + $0x198] sm:$0xff] %vm6239_vm2, %v6218_v22  ;;  %v6148_v27 = vsel %vm5716_vm1, %v13808_v1, %v6076_v60  ;;  %v6072_v44 = vmul.f32 1.6732632, %v8822_v58  ;;  %v4406_v51 = vadd.f32 %v4334_v33, %v3825_v37  ;;  %v6502_v59 = vld [vmem:[#allocation2 + $0x16f] ss:$2 sm:$0x7] }
 0x551   : > { %v9544_v46 = vpop.eup %9543  ;;  %v6220_v21 = vmul.f32 1.050701, %v6148_v27  ;;  %vm5712_vm3 = vcmp.gt.f32.partialorder %v13816_v31, 0.0  ;;  %v8828_v16 = vadd.f32 -1.0, %v9542_v45  ;;  %v4336_v61 = vmul.f32 %v13929_v56, %v13857_v18  ;;  %v5359_v30 = vpop.permute.xlu1 %5358 }
 0x552   : > { %v3757_v11 = vmul.f32 %v13902_v63, %v15880_v50  ;;  %v6144_v48 = vsel %vm5712_vm3, %v13816_v31, %v6072_v44  ;;  %v8827_v36 = vadd.f32 -1.0, %v9544_v46  ;;  %v4987_v29 = vadd.f32 %v4915_v54, %v4406_v51  ;;  %v6713_v1 = vpop.f32.mrf.mxu0  ;;  %v6498_v45 = vld [vmem:[#allocation2 + $0x16e] ss:$2 sm:$0x7] }
 0x553   : > { %6293 = vst.msk [vmem:[#allocation2 + $0x1a8] sm:$0xff] %vm6239_vm2, %v6220_v21  ;;  %v6216_v3 = vmul.f32 1.050701, %v6144_v48  ;;  %v6078_v47 = vmul.f32 1.6732632, %v8828_v16  ;;  %v4917_v40 = vmul.f32 %v13942_v4, %v4788_v0  ;;  %v5496_v18 = vmul.f32 %v13965_v32, %v5359_v30  ;;  %v6828_v49 = vpop.f32.mrf.mxu1  ;;  %v4803_v34 = vpop.permute.xlu0 %4802 }
 0x554   : > { %vm5718_vm4 = vcmp.gt.f32.partialorder %v13831_v23, 0.0  ;;  %vm5717_vm5 = vcmp.gt.f32.partialorder %v13834_v9, 0.0  ;;  %v6077_v31 = vmul.f32 1.6732632, %v8827_v36  ;;  %v4335_v55 = vmul.f32 %v13929_v56, %v13818_v19  ;;  %v9085_v33 = vpop.f32.mrf.mxu0 }
 0x555   : > { %6289 = vst.msk [vmem:[#allocation2 + $0x188] sm:$0xff] %vm6239_vm2, %v6216_v3  ;;  %v6150_v62 = vsel %vm5718_vm4, %v13831_v23, %v6078_v47  ;;  %v4408_v53 = vadd.f32 %v4336_v61, %v3827_v52  ;;  %v5568_v39 = vadd.f32 %v5496_v18, %v4987_v29  ;;  %v13974_v13 = vadd.f32 %v6828_v49, %v6713_v1  ;;  %v9115_v8 = vpop.f32.mrf.mxu1  ;;  %v5369_v22 = vpop.permute.xlu1 %5368  ;;  %v13984_v23 = vld [vmem:[%s14925_s2] ss:$0 sm:$0xff]  ;;  %v6528_v48 = vld [vmem:[#allocation2 + $0x1a1] ss:$2 sm:$0x7] }
 0x556   : > { %v6222_v0 = vmul.f32 1.050701, %v6150_v62  ;;  %v6149_v25 = vsel %vm5717_vm5, %v13834_v9, %v6077_v31  ;;  %v4337_v37 = vmul.f32 %v13929_v56, %v13843_v12  ;;  %v4916_v19 = vmul.f32 %v13942_v4, %v13889_v35  ;;  %v6716_v52 = vpop.f32.mrf.mxu0  ;;  %v6524_v50 = vld [vmem:[#allocation2 + $0x1a0] ss:$2 sm:$0x7] }
 0x557   : > { %v6221_v60 = vmul.f32 1.050701, %v6149_v25  ;;  %v4989_v58 = vadd.f32 %v4917_v40, %v4408_v53  ;;  %v13987_v54 = vadd.f32 %v13984_v23, %v5568_v39  ;;  %v5498_v9 = vmul.f32 %v13965_v32, %v5369_v22  ;;  %v6831_v51 = vpop.f32.mrf.mxu1  ;;  %v5364_v46 = vpop.permute.xlu0 %5363  ;;  %v6522_v30 = vld [vmem:[#allocation2 + $0x190] ss:$2 sm:$0xff]  ;;  %v6526_v40 = vld [vmem:[#allocation2 + $0x191] ss:$2 sm:$0xff] }
 0x558   : > { %v3830_v12 = vadd.f32 %v3758_v10, %v13907_v26  ;;  %6295 = vst.msk [vmem:[#allocation2 + $0x1b8] sm:$0xff] %vm6239_vm2, %v6222_v0  ;;  %v4407_v35 = vadd.f32 %v4335_v55, %v3826_v2  ;;  %v4339_v27 = vmul.f32 %v13929_v56, %v13867_v38  ;;  %v4918_v44 = vmul.f32 %v13942_v4, %v4793_v6  ;;  %v9086_v10 = vpop.f32.mrf.mxu0 }
 0x559   : > { %v3829_v21 = vadd.f32 %v3757_v11, %v13933_v43  ;;  %6294 = vst.msk [vmem:[#allocation2 + $0x1b0] sm:$0xff] %vm6239_vm2, %v6221_v60  ;;  %v5791_v16 = vmin.f32 %v13987_v54, 0.0  ;;  %v5570_v61 = vadd.f32 %v5498_v9, %v4989_v58  ;;  %v13998_v26 = vadd.f32 %v6831_v51, %v6716_v52  ;;  %v9116_v29 = vpop.f32.mrf.mxu1  ;;  %v5374_v43 = vpop.permute.xlu1 %5373 }
 0x55a   : > { %v4409_v2 = vadd.f32 %v4337_v37, %v13947_v57  ;;  %v4338_v38 = vmul.f32 %v13929_v56, %v13881_v24  ;;  %v4988_v6 = vadd.f32 %v4916_v19, %v4407_v35  ;;  %v5497_v36 = vmul.f32 %v13965_v32, %v5364_v46  ;;  %v15881_v29 = vld [vmem:[#allocation102_spill] sm:$0xff] }
 0x55b   : > { %v6504_v11 = vadd.f32 %v6502_v59, %v6498_v45  ;;  %v5919_v1 = vmul.f32 1.442695, %v5791_v16  ;;  %v14005_v3 = vadd.f32 %v13984_v23, %v5570_v61  ;;  %v5499_v47 = vmul.f32 %v13965_v32, %v5374_v43  ;;  %v4227_v49 = vpop.permute.xlu0 %4226 }
 0x55c   : > { %v6508_v18 = vld [vmem:[#allocation2 + $0x187] ss:$2 sm:$0x7]  ;;  %v4411_v31 = vadd.f32 %v4339_v27, %v3830_v12  ;;  %v4919_v57 = vmul.f32 %v13942_v4, %v13945_v15  ;;  %v4990_v24 = vadd.f32 %v4918_v44, %v4409_v2  ;;  %v5569_v55 = vadd.f32 %v5497_v36, %v4988_v6  ;;  %v6514_v0 = vld [vmem:[#allocation2 + $0x188] ss:$2 sm:$0x7] }
 0x55d   : > { %v6510_v62 = vadd.f32 %v6508_v18, %v6504_v11  ;;  %9545 = vpow2.f32 %v5919_v1  ;;  %v4920_v53 = vmul.f32 %v13942_v4, %v4803_v34  ;;  %v5793_v39 = vmin.f32 %v14005_v3, 0.0  ;;  %v5384_v8 = vpop.permute.xlu1 %5383  ;;  %v14030_v36 = vld [vmem:[%s14924_s1 + $0x1] ss:$0 sm:$0xff] }
 0x55e   : > { %v6530_v33 = vadd.f32 %v6528_v48, %v6524_v50  ;;  %v4410_v25 = vadd.f32 %v4338_v38, %v3829_v21  ;;  %v14013_v37 = vadd.f32 %v13984_v23, %v5569_v55  ;;  %v5571_v19 = vadd.f32 %v5499_v47, %v4990_v24 }
 0x55f   : > { %v6529_v22 = vadd.f32 %v6526_v40, %v6522_v30  ;;  %v6516_v60 = vadd.f32 %v6514_v0, %v6510_v62  ;;  %v6534_v15 = vld [vmem:[#allocation2 + $0x1b9] ss:$2 sm:$0x7]  ;;  %v3759_v58 = vmul.f32 %v13902_v63, %v13914_v14  ;;  %v5501_v9 = vmul.f32 %v13965_v32, %v5384_v8  ;;  %v5379_v35 = vpop.permute.xlu0 %5378  ;;  %v6540_v44 = vld [vmem:[#allocation2 + $0x1ba] ss:$2 sm:$0x7] }
 0x560   : > { %v6536_v52 = vadd.f32 %v6534_v15, %v6530_v33  ;;  %v6532_v34 = vld [vmem:[#allocation2 + $0x1a9] ss:$2 sm:$0xff]  ;;  %v4991_v12 = vadd.f32 %v4919_v57, %v4410_v25  ;;  %v5923_v45 = vmul.f32 1.442695, %v5793_v39  ;;  %v14019_v59 = vadd.f32 %v13984_v23, %v5571_v19  ;;  %v6538_v61 = vld [vmem:[#allocation2 + $0x1aa] ss:$2 sm:$0xff] }
 0x561   : > { %v6518_v27 = vmul.f32 0.25, %v6516_v60  ;;  %v6535_v51 = vadd.f32 %v6532_v34, %v6529_v22  ;;  %v4992_v46 = vadd.f32 %v4920_v53, %v4411_v31  ;;  %v5792_v21 = vmin.f32 %v14013_v37, 0.0  ;;  %v5389_v50 = vpop.permute.xlu1 %5388  ;;  %v15882_v57 = vld [vmem:[#allocation103_spill] sm:$0xff]  ;;  %v15884_v33 = vld [vmem:[#allocation104_spill] sm:$0xff]  ;;  %v15886_v60 = vld [vmem:[#allocation105_spill] sm:$0xff] }
 0x562   : > { %v6542_v16 = vadd.f32 %v6540_v44, %v6536_v52  ;;  %9547 = vpow2.f32 %v5923_v45  ;;  %v5794_v14 = vmin.f32 %v14019_v59, 0.0  ;;  %v4340_v10 = vmul.f32 %v13929_v56, %v4227_v49  ;;  %v15883_v53 = vld [vmem:[#allocation31_spill] sm:$0xff]  ;;  %v15885_v8 = vld [vmem:[#allocation32_spill] sm:$0xff]  ;;  %v15887_v34 = vld [vmem:[#allocation33_spill] sm:$0xff] }
 0x563   : > { %6520 = vst.msk [vmem:[%s12401_s24 + $0x55] sm:$0x7] %vm6337_vm14, %v6518_v27  ;;  %v6541_v48 = vadd.f32 %v6538_v61, %v6535_v51  ;;  %v5921_v2 = vmul.f32 1.442695, %v5792_v21  ;;  %v5573_v38 = vadd.f32 %v5501_v9, %v4992_v46  ;;  %v5500_v6 = vmul.f32 %v13965_v32, %v5379_v35  ;;  %v4808_v47 = vpop.permute.xlu0 %4807  ;;  %v15888_v45 = vld [vmem:[#allocation35_spill] sm:$0xff]  ;;  %v15889_v46 = vld [vmem:[#allocation38_spill] sm:$0xff] }
 0x564   : > { %v1438_v43 = vmul.f32 %v14030_v36, %v15881_v29  ;;  %v6544_v11 = vmul.f32 0.25, %v6542_v16  ;;  %v3831_v30 = vadd.f32 %v3759_v58, %v13935_v41  ;;  %v5925_v1 = vmul.f32 1.442695, %v5794_v14  ;;  %v14048_v41 = vld [vmem:[%s14924_s1] ss:$0 sm:$0xff]  ;;  %v15890_v21 = vld [vmem:[#allocation82_spill] sm:$0xff] }
 0x565   : > { %v6543_v40 = vmul.f32 0.25, %v6541_v48  ;;  %9549 = vpow2.f32 %v5921_v2  ;;  %v14036_v18 = vadd.f32 %v13984_v23, %v5573_v38  ;;  %v5572_v31 = vadd.f32 %v5500_v6, %v4991_v12  ;;  %v14043_v62 = vpop.permute.xlu1 %3655  ;;  %v15891_v61 = vld [vmem:[#allocation22_spill] sm:$0xff] }
 0x566   : > { %v1437_v24 = vmul.f32 %v14030_v36, %v15882_v57  ;;  %6546 = vst.msk [vmem:[%s12401_s24 + $0x60] sm:$0x7] %vm6337_vm14, %v6544_v11  ;;  %9551 = vpow2.f32 %v5925_v1  ;;  %v4412_v55 = vadd.f32 %v4340_v10, %v3831_v30  ;;  %v4921_v49 = vmul.f32 %v13942_v4, %v4808_v47  ;;  %v15892_v11 = vld [vmem:[#allocation107_spill] sm:$0xff]  ;;  %v15893_v1 = vld [vmem:[#allocation172_spill] sm:$0xff] }
 0x567   : > { %v856_v39 = vmul.f32 %v14048_v41, %v15883_v53  ;;  %v1440_v0 = vmul.f32 %v14030_v36, %v15884_v33  ;;  %6545 = vst.msk [vmem:[%s12401_s24 + $0x58] sm:$0xff] %vm6239_vm2, %v6543_v40  ;;  %v5796_v25 = vmin.f32 %v14036_v18, 0.0  ;;  %v14058_v19 = vadd.f32 %v13984_v23, %v5572_v31  ;;  %v14065_v52 = vpop.permute.xlu0 %3650  ;;  %v15894_v31 = vld [vmem:[#allocation174_spill] sm:$0xff]  ;;  %v15896_v53 = vld [vmem:[#allocation176_spill] sm:$0xff]  ;;  %v15897_v33 = vld [vmem:[#allocation177_spill] sm:$0xff] }
 0x568   : > { %v859_v22 = vmul.f32 %v14048_v41, %v15885_v8  ;;  %v1439_v15 = vmul.f32 %v14030_v36, %v15886_v60  ;;  %v5502_v58 = vmul.f32 %v13965_v32, %v5389_v50  ;;  %v4993_v9 = vadd.f32 %v4921_v49, %v4412_v55 }
 0x569   : > { %v858_v12 = vmul.f32 %v14048_v41, %v15887_v34  ;;  %v860_v35 = vmul.f32 %v14048_v41, %v15888_v45  ;;  %v5929_v27 = vmul.f32 1.442695, %v5796_v25  ;;  %v5795_v44 = vmin.f32 %v14058_v19, 0.0  ;;  %v14075_v48 = vpop.permute.xlu1 %3665 }
 0x56a   : > { %v9546_v51 = vpop.eup %9545  ;;  %v1508_v16 = vadd.f32 %v15890_v21, %v15889_v46  ;;  %v1510_v14 = vadd.f32 %v1438_v43, %v15891_v61  ;;  %v1509_v10 = vadd.f32 %v1437_v24, %v856_v39  ;;  %v5574_v50 = vadd.f32 %v5502_v58, %v4993_v9  ;;  %v15895_v24 = vld [vmem:[#allocation175_spill] sm:$0xff] }
 0x56b   : > { %v1512_v2 = vadd.f32 %v1440_v0, %v859_v22  ;;  %v8829_v38 = vadd.f32 -1.0, %v9546_v51  ;;  %9553 = vpow2.f32 %v5929_v27  ;;  %v5927_v6 = vmul.f32 1.442695, %v5795_v44  ;;  %v14084_v40 = vpop.permute.xlu0 %3660  ;;  %v15898_v9 = vld [vmem:[#allocation179_spill] sm:$0xff]  ;;  %v6609_v51 = vld [vmem:[%s12401_s24 + $0x50] sm:$0xff] }
 0x56c   : > { %v1511_v29 = vadd.f32 %v1439_v15, %v858_v12  ;;  %v1441_v30 = vmul.f32 %v14030_v36, %v15892_v11  ;;  %v2017_v47 = vmul.f32 %v13797_v42, %v15893_v1  ;;  %v14082_v43 = vadd.f32 %v13984_v23, %v5574_v50  ;;  %v15899_v12 = vld [vmem:[#allocation244_spill] sm:$0xff] }
 0x56d   : > { %v2019_v57 = vmul.f32 %v13797_v42, %v15894_v31  ;;  %v2018_v55 = vmul.f32 %v13797_v42, %v15895_v24  ;;  %v6079_v49 = vmul.f32 1.6732632, %v8829_v38  ;;  %9555 = vpow2.f32 %v5927_v6  ;;  %v14096_v8 = vpop.permute.xlu1 %4231  ;;  %v15900_v31 = vld [vmem:[#allocation246_spill] sm:$0xff] }
 0x56e   : > { %v2021_v39 = vmul.f32 %v13797_v42, %v15896_v53  ;;  %v2020_v0 = vmul.f32 %v13797_v42, %v15897_v33  ;;  %vm5719_vm6 = vcmp.gt.f32.partialorder %v13987_v54, 0.0  ;;  %v5797_v25 = vmin.f32 %v14082_v43, 0.0  ;;  %v6631_v22 = vld [vmem:[%s12401_s24 + $0x51] sm:$0xff]  ;;  %v6632_v60 = vld [vmem:[%s12401_s24 + $0x59] sm:$0xff] }
 0x56f   : > { %v6610_v15 = vld [vmem:[%s12401_s24 + $0x58] sm:$0xff]  ;;  %v9548_v58 = vpop.eup %9547  ;;  %v2022_v34 = vmul.f32 %v13797_v42, %v15898_v9  ;;  %v2598_v45 = vmul.f32 %v13839_v28, %v15899_v12  ;;  %v6151_v27 = vsel %vm5719_vm6, %v13987_v54, %v6079_v49  ;;  %v6639_v44 = vpack.c.bf16 %v6632_v60, %v6631_v22  ;;  %v14107_v38 = vpop.permute.xlu0 %3670  ;;  %v15902_v60 = vld [vmem:[#allocation248_spill] sm:$0xff]  ;;  %v15903_v9 = vld [vmem:[#allocation249_spill] sm:$0xff] }
 0x570   : > { %v6223_v46 = vmul.f32 1.050701, %v6151_v27  ;;  %v8831_v21 = vadd.f32 -1.0, %v9548_v58  ;;  %v5931_v61 = vmul.f32 1.442695, %v5797_v25  ;;  %v6617_v50 = vpack.c.bf16 %v6610_v15, %v6609_v51  ;;  %v15904_v12 = vld [vmem:[#allocation251_spill] sm:$0xff] }
 0x571   : > { %v1513_v6 = vadd.f32 %v1441_v30, %v860_v35  ;;  %v2089_v11 = vadd.f32 %v2017_v47, %v1508_v16  ;;  %v2091_v1 = vadd.f32 %v2019_v57, %v1510_v14  ;;  %v2600_v24 = vmul.f32 %v13839_v28, %v15900_v31  ;;  %9100 = vmatmul.mubr.msk.bf16.gmra.mxu0 %vm6239_vm2, %v6639_v44  ;;  %v14114_v49 = vpop.permute.xlu1 %4241  ;;  %v15901_v30 = vld [vmem:[#allocation247_spill] sm:$0xff]  ;;  %v15905_v44 = vld [vmem:[#allocation322_spill] sm:$0xff] }
 0x572   : > { %v9550_v42 = vpop.eup %9549  ;;  %v2090_v53 = vadd.f32 %v2018_v55, %v1509_v10  ;;  %v2093_v33 = vadd.f32 %v2021_v39, %v1512_v2  ;;  %6296 = vst.msk [vmem:[#allocation2 + $0x1c0] sm:$0xff] %vm6239_vm2, %v6223_v46  ;;  %v6081_v54 = vmul.f32 1.6732632, %v8831_v21  ;;  %9557 = vpow2.f32 %v5931_v61  ;;  %9130 = vmatmul.mubr.msk.bf16.gmra.mxu1 %vm6239_vm2, %v6617_v50  ;;  %9103 = vmatprep.mubr.msk.bf16.mxu0 %vm9649_vm0, %v15679_v7  ;;  %v6633_v25 = vld [vmem:[%s12401_s24 + $0x61] sm:$0x1]  ;;  %v15906_v50 = vld [vmem:[#allocation324_spill] sm:$0xff] }
 0x573   : > { %v9552_v35 = vpop.eup %9551  ;;  %v2092_v16 = vadd.f32 %v2020_v0, %v1511_v29  ;;  %v2094_v14 = vadd.f32 %v2022_v34, %v1513_v6  ;;  %vm5721_vm7 = vcmp.gt.f32.partialorder %v14005_v3, 0.0  ;;  %v8830_v10 = vadd.f32 -1.0, %v9550_v42  ;;  %9133 = vmatprep.mubr.msk.bf16.mxu1 %vm9649_vm0, %v15679_v7  ;;  %v14124_v39 = vpop.permute.xlu0 %4236  ;;  %v6611_v58 = vld [vmem:[%s12401_s24 + $0x60] sm:$0x1] }
 0x574   : > { %v2670_v2 = vadd.f32 %v2598_v45, %v2089_v11  ;;  %v2599_v47 = vmul.f32 %v13839_v28, %v15901_v30  ;;  %v6153_v57 = vsel %vm5721_vm7, %v14005_v3, %v6081_v54  ;;  %v8832_v55 = vadd.f32 -1.0, %v9552_v35 }
 0x575   : > { %v2672_v22 = vadd.f32 %v2600_v24, %v2091_v1  ;;  %v2602_v29 = vmul.f32 %v13839_v28, %v15902_v60  ;;  %v6225_v0 = vmul.f32 1.050701, %v6153_v57  ;;  %v6080_v15 = vmul.f32 1.6732632, %v8830_v10  ;;  %v14135_v27 = vpop.permute.xlu1 %4251  ;;  %v15907_v57 = vld [vmem:[#allocation325_spill] sm:$0xff]  ;;  %v15908_v60 = vld [vmem:[#allocation326_spill] sm:$0xff] }
 0x576   : > { %v2601_v34 = vmul.f32 %v13839_v28, %v15903_v9  ;;  %v2603_v45 = vmul.f32 %v13839_v28, %v15904_v12  ;;  %vm5720_vm8 = vcmp.gt.f32.partialorder %v14013_v37, 0.0  ;;  %v6082_v3 = vmul.f32 1.6732632, %v8832_v55  ;;  %v7026_v12 = vld [vmem:[%s12401_s24 + $0x13] sm:$0xff] }
 0x577   : > { %v3179_v51 = vmul.f32 %v13873_v17, %v15905_v44  ;;  %6298 = vst.msk [vmem:[#allocation2 + $0x1d0] sm:$0xff] %vm6239_vm2, %v6225_v0  ;;  %v6152_v46 = vsel %vm5720_vm8, %v14013_v37, %v6080_v15  ;;  %vm5722_vm9 = vcmp.gt.f32.partialorder %v14019_v59, 0.0  ;;  %v6640_v21 = vpack.c.bf16 %v6633_v25, %v6633_v25  ;;  %v14145_v31 = vpop.permute.xlu0 %4246  ;;  %v15909_v0 = vld [vmem:[#allocation327_spill] sm:$0xff] }
 0x578   : > { %v9554_v61 = vpop.eup %9553  ;;  %v3181_v6 = vmul.f32 %v13873_v17, %v15906_v50  ;;  %v6224_v28 = vmul.f32 1.050701, %v6152_v46  ;;  %v6154_v11 = vsel %vm5722_vm9, %v14019_v59, %v6082_v3  ;;  %v6618_v1 = vpack.c.bf16 %v6611_v58, %v6611_v58  ;;  %v7025_v50 = vld [vmem:[%s12401_s24 + $0xb] sm:$0xff] }
 0x579   : > { %v2671_v24 = vadd.f32 %v2599_v47, %v2090_v53  ;;  %v2674_v42 = vadd.f32 %v2602_v29, %v2093_v33  ;;  %v6226_v54 = vmul.f32 1.050701, %v6154_v11  ;;  %v8834_v35 = vadd.f32 -1.0, %v9554_v61  ;;  %9104 = vmatmul.mubr.msk.bf16.gmra.mxu0 %vm6239_vm2, %v6640_v21  ;;  %v14154_v59 = vpop.permute.xlu1 %4817  ;;  %v6875_v47 = vld [vmem:[%s12401_s24 + $0xa] sm:$0xff] }
 0x57a   : > { %v9556_v37 = vpop.eup %9555  ;;  %v2673_v10 = vadd.f32 %v2601_v34, %v2092_v16  ;;  %v14148_v30 = vadd.f32 %v2603_v45, %v2094_v14  ;;  %v3180_v55 = vmul.f32 %v13873_v17, %v15907_v57  ;;  %6297 = vst.msk [vmem:[#allocation2 + $0x1c8] sm:$0xff] %vm6239_vm2, %v6224_v28  ;;  %9134 = vmatmul.mubr.msk.bf16.gmra.mxu1 %vm6239_vm2, %v6618_v1  ;;  %vm5724_vm10 = vcmp.gt.f32.partialorder %v14036_v18, 0.0 }
 0x57b   : > { %9139 = vmatprep.mubr.msk.bf16.mxu0 %vm9649_vm0, %v15679_v7  ;;  %v3251_v53 = vadd.f32 %v3179_v51, %v2670_v2  ;;  %6299 = vst.msk [vmem:[#allocation2 + $0x1d8] sm:$0xff] %vm6239_vm2, %v6226_v54  ;;  %v6084_v33 = vmul.f32 1.6732632, %v8834_v35  ;;  %v8833_v16 = vadd.f32 -1.0, %v9556_v37  ;;  %v3760_v14 = vmul.f32 %v13902_v63, %v14065_v52  ;;  %9169 = vmatprep.mubr.msk.bf16.mxu1 %vm9649_vm0, %v15679_v7  ;;  %v4813_v15 = vpop.permute.xlu0 %4812 }
 0x57c   : > { %v3253_v25 = vadd.f32 %v3181_v6, %v2672_v22  ;;  %v3183_v29 = vmul.f32 %v13873_v17, %v15908_v60  ;;  %v3182_v2 = vmul.f32 %v13873_v17, %v15909_v0  ;;  %v3761_v52 = vmul.f32 %v13902_v63, %v14043_v62  ;;  %v6874_v22 = vld [vmem:[%s12401_s24 + $0x2] sm:$0xff] }
 0x57d   : > { %v6156_v58 = vsel %vm5724_vm10, %v14036_v18, %v6084_v33  ;;  %v6083_v9 = vmul.f32 1.6732632, %v8833_v16  ;;  %v4341_v34 = vmul.f32 %v13929_v56, %v14096_v8  ;;  %v3252_v45 = vadd.f32 %v3180_v55, %v2671_v24  ;;  %v14179_v44 = vpop.permute.xlu1 %4827  ;;  %v9419_v18 = vld [vmem:[%s14926_s3 + $0x20] sm:$0xff]   ;;  %v9420_v24 = vld [vmem:[%s14926_s3 + $0x28] sm:$0xff]  }
 0x57e   : > { %vm5723_vm11 = vcmp.gt.f32.partialorder %v14058_v19, 0.0  ;;  %v3762_v3 = vmul.f32 %v13902_v63, %v14084_v40  ;;  %v6887_v51 = vpack.c.bf16 %v6875_v47, %v6874_v22  ;;  %v6228_v62 = vmul.f32 1.050701, %v6156_v58  ;;  %v7027_v0 = vld [vmem:[%s12401_s24 + $0x1b] sm:$0xff] }
 0x57f   : > { %v9558_v46 = vpop.eup %9557  ;;  %v6155_v21 = vsel %vm5723_vm11, %v14058_v19, %v6083_v9  ;;  %v3832_v8 = vadd.f32 %v3760_v14, %v3251_v53  ;;  %v4922_v61 = vmul.f32 %v13942_v4, %v4813_v15  ;;  %v3255_v6 = vadd.f32 %v3183_v29, %v2674_v42  ;;  %v4823_v40 = vpop.permute.xlu0 %4822  ;;  %v6876_v29 = vld [vmem:[%s12401_s24 + $0x12] sm:$0xff] }
 0x580   : > { %v6227_v28 = vmul.f32 1.050701, %v6155_v21  ;;  %v8835_v11 = vadd.f32 -1.0, %v9558_v46  ;;  %v7038_v1 = vpack.c.bf16 %v7026_v12, %v7025_v50  ;;  %v3254_v54 = vadd.f32 %v3182_v2, %v2673_v10  ;;  %6301 = vst.msk [vmem:[#allocation2 + $0x1e8] sm:$0xff] %vm6239_vm2, %v6228_v62 }
 0x581   : > { %v3833_v35 = vadd.f32 %v3761_v52, %v3252_v45  ;;  %v4413_v37 = vadd.f32 %v4341_v34, %v3832_v8  ;;  %v4343_v19 = vmul.f32 %v13929_v56, %v14114_v49  ;;  %9140 = vmatmul.mubr.msk.bf16.vlgmr.msra.gmra.mxu0 %vm6239_vm2, %v6887_v51  ;;  %v3834_v57 = vadd.f32 %v3762_v3, %v3253_v25  ;;  %v5394_v49 = vpop.permute.xlu1 %5393  ;;  %v6548_v2 = vld [vmem:[#allocation2 + $0x1c2] ss:$2 sm:$0xff]  ;;  %v6552_v15 = vld [vmem:[#allocation2 + $0x1c3] ss:$2 sm:$0xff] }
 0x582   : > { %6300 = vst.msk [vmem:[#allocation2 + $0x1e0] sm:$0xff] %vm6239_vm2, %v6227_v28  ;;  %v6085_v42 = vmul.f32 1.6732632, %v8835_v11  ;;  %v3764_v55 = vmul.f32 %v13902_v63, %v14107_v38  ;;  %v4342_v10 = vmul.f32 %v13929_v56, %v14124_v39  ;;  %9170 = vmatmul.mubr.msk.bf16.vlgmr.msra.gmra.mxu1 %vm6239_vm2, %v7038_v1  ;;  %9198 = vmatpush3.bf16.msra.mxu0 %v9419_v18  ;;  %vm5725_vm12 = vcmp.gt.f32.partialorder %v14082_v43, 0.0  ;;  %v6877_v38 = vld [vmem:[%s12401_s24 + $0x1a] sm:$0xff]  ;;  %v7028_v39 = vld [vmem:[%s12401_s24 + $0x23] sm:$0xff] }
 0x583   : > { %v4994_v53 = vadd.f32 %v4922_v61, %v4413_v37  ;;  %v4924_v33 = vmul.f32 %v13942_v4, %v4823_v40  ;;  %v5503_v16 = vmul.f32 %v13965_v32, %v5394_v49  ;;  %9143 = vmatprep.mubr.msk.bf16.mxu0 %vm9649_vm0, %v15679_v7  ;;  %9173 = vmatprep.mubr.msk.bf16.mxu1 %vm9649_vm0, %v15679_v7  ;;  %v4833_v60 = vpop.permute.xlu0 %4832  ;;  %v6554_v34 = vld [vmem:[#allocation2 + $0x1d3] ss:$2 sm:$0x7]  ;;  %vm8080_vm11 = vcmask 125952  }
 0x584   : > { %v6157_v14 = vsel %vm5725_vm12, %v14082_v43, %v6085_v42  ;;  %v3763_v47 = vmul.f32 %v13902_v63, %v14075_v48  ;;  %v4345_v25 = vmul.f32 %v13929_v56, %v14135_v27  ;;  %9228 = vmatpush3.bf16.msra.mxu1 %v9420_v24  ;;  %9257 = vmatprep.subr.bf16.mxu0 %v15679_v7  ;;  %v6550_v48 = vld [vmem:[#allocation2 + $0x1d2] ss:$2 sm:$0x7] }
 0x585   : > { %v6229_v58 = vmul.f32 1.050701, %v6157_v14  ;;  %v4415_v9 = vadd.f32 %v4343_v19, %v3834_v57  ;;  %v4923_v52 = vmul.f32 %v13942_v4, %v14154_v59  ;;  %v5575_v43 = vadd.f32 %v5503_v16, %v4994_v53  ;;  %9287 = vmatprep.subr.bf16.mxu1 %v15679_v7  ;;  %v5404_v12 = vpop.permute.xlu1 %5403 }
 0x586   : > { %v3836_v22 = vadd.f32 %v3764_v55, %v3255_v6  ;;  %v4414_v27 = vadd.f32 %v4342_v10, %v3833_v35  ;;  %v6888_v45 = vpack.c.bf16 %v6877_v38, %v6876_v29  ;;  %v7039_v3 = vpack.c.bf16 %v7028_v39, %v7027_v0  ;;  %v6879_v39 = vld [vmem:[%s12401_s24 + $0x2a] sm:$0xff] }
 0x587   : > { %6302 = vst.msk [vmem:[#allocation2 + $0x1f0] sm:$0xff] %vm6239_vm2, %v6229_v58  ;;  %v4996_v51 = vadd.f32 %v4924_v33, %v4415_v9  ;;  %v14222_v18 = vadd.f32 %v13984_v23, %v5575_v43  ;;  %v4926_v46 = vmul.f32 %v13942_v4, %v4833_v60  ;;  %v5505_v59 = vmul.f32 %v13965_v32, %v5404_v12  ;;  %v5399_v50 = vpop.permute.xlu0 %5398  ;;  %v6560_v24 = vld [vmem:[#allocation2 + $0x1eb] ss:$2 sm:$0x7]  ;;  %v7030_v60 = vld [vmem:[%s12401_s24 + $0x33] sm:$0xff]  ;;  %v6878_v9 = vld [vmem:[%s12401_s24 + $0x22] sm:$0xff] }
 0x588   : > { %v6555_v62 = vadd.f32 %v6552_v15, %v6548_v2  ;;  %v3835_v21 = vadd.f32 %v3763_v47, %v3254_v54  ;;  %v4417_v8 = vadd.f32 %v4345_v25, %v3836_v22  ;;  %v4344_v61 = vmul.f32 %v13929_v56, %v14145_v31 }
 0x589   : > { %v6556_v6 = vadd.f32 %v6554_v34, %v6550_v48  ;;  %v6558_v28 = vld [vmem:[#allocation2 + $0x1db] ss:$2 sm:$0xff]  ;;  %v4995_v11 = vadd.f32 %v4923_v52, %v4414_v27  ;;  %v5798_v1 = vmin.f32 %v14222_v18, 0.0  ;;  %v5577_v40 = vadd.f32 %v5505_v59, %v4996_v51  ;;  %9144 = vmatmul.mubr.msk.bf16.gmra.mxu0 %vm6239_vm2, %v6888_v45  ;;  %v5414_v31 = vpop.permute.xlu1 %5413  ;;  %v6564_v19 = vld [vmem:[#allocation2 + $0x1dc] ss:$2 sm:$0xff]  ;;  %v7029_v34 = vld [vmem:[%s12401_s24 + $0x2b] sm:$0xff] }
 0x58a   : > { %v6561_v35 = vadd.f32 %v6558_v28, %v6555_v62  ;;  %v4925_v37 = vmul.f32 %v13942_v4, %v14179_v44  ;;  %9174 = vmatmul.mubr.msk.bf16.gmra.mxu1 %vm6239_vm2, %v7039_v3  ;;  %v5504_v54 = vmul.f32 %v13965_v32, %v5399_v50  ;;  %9147 = vmatprep.mubr.msk.bf16.mxu0 %vm9649_vm0, %v15679_v7  ;;  %v15910_v44 = vld [vmem:[#allocation329_spill] sm:$0xff]  ;;  %v15911_v62 = vld [vmem:[#allocation106_spill] sm:$0xff]  ;;  %vm5726_vm13 = vcmp.gt.f32.partialorder %v14222_v18, 0.0 }
 0x58b   : > { %v5933_v42 = vmul.f32 1.442695, %v5798_v1  ;;  %v4998_v57 = vadd.f32 %v4926_v46, %v4417_v8  ;;  %v14237_v55 = vadd.f32 %v13984_v23, %v5577_v40  ;;  %v5507_v10 = vmul.f32 %v13965_v32, %v5414_v31  ;;  %9177 = vmatprep.mubr.msk.bf16.mxu1 %vm9649_vm0, %v15679_v7  ;;  %v5409_v38 = vpop.permute.xlu0 %5408  ;;  %v15913_v40 = vld [vmem:[#allocation36_spill] sm:$0xff] }
 0x58c   : > { %v3184_v49 = vmul.f32 %v13873_v17, %v15910_v44  ;;  %v6567_v53 = vadd.f32 %v6564_v19, %v6561_v35  ;;  %v4416_v33 = vadd.f32 %v4344_v61, %v3835_v21  ;;  %v5576_v16 = vadd.f32 %v5504_v54, %v4995_v11  ;;  %v15914_v35 = vld [vmem:[#allocation108_spill] sm:$0xff]  ;;  %v6881_v19 = vld [vmem:[%s12401_s24 + $0x3a] sm:$0xff] }
 0x58d   : > { %v6562_v14 = vadd.f32 %v6560_v24, %v6556_v6  ;;  %9559 = vpow2.f32 %v5933_v42  ;;  %v5800_v47 = vmin.f32 %v14237_v55, 0.0  ;;  %v5579_v25 = vadd.f32 %v5507_v10, %v4998_v57  ;;  %v4257_v58 = vpop.permute.xlu1 %4256  ;;  %v15912_v6 = vld [vmem:[#allocation34_spill] sm:$0xff]  ;;  %v15915_v42 = vld [vmem:[#allocation109_spill] sm:$0xff] }
 0x58e   : > { %v6569_v29 = vmul.f32 0.25, %v6567_v53  ;;  %v6566_v0 = vld [vmem:[#allocation2 + $0x1ec] ss:$2 sm:$0x7]  ;;  %v4997_v2 = vadd.f32 %v4925_v37, %v4416_v33  ;;  %v14248_v15 = vadd.f32 %v13984_v23, %v5576_v16  ;;  %v5506_v17 = vmul.f32 %v13965_v32, %v5409_v38  ;;  %v7032_v53 = vld [vmem:[%s12401_s24 + $0x43] sm:$0xff] }
 0x58f   : > { %v5937_v52 = vmul.f32 1.442695, %v5800_v47  ;;  %v14253_v43 = vadd.f32 %v13984_v23, %v5579_v25  ;;  %v6889_v48 = vpack.c.bf16 %v6879_v39, %v6878_v9  ;;  %v6568_v22 = vadd.f32 %v6566_v0, %v6562_v14  ;;  %v3676_v3 = vpop.permute.xlu0 %3675  ;;  %v15916_v33 = vld [vmem:[#allocation37_spill] sm:$0xff]  ;;  %v9631_v39 = vld [vmem:[%s14924_s1 + $0x2] ss:$0 sm:$0xff]  ;;  %v15917_v14 = vld [vmem:[#allocation178_spill] sm:$0xff] }
 0x590   : > { %6571 = vst.msk [vmem:[%s12401_s24 + $0x63] sm:$0xff] %vm6239_vm2, %v6569_v29  ;;  %v5799_v27 = vmin.f32 %v14248_v15, 0.0  ;;  %v5578_v12 = vadd.f32 %v5506_v17, %v4997_v2  ;;  %v7040_v45 = vpack.c.bf16 %v7030_v60, %v7029_v34  ;;  %v3256_v51 = vadd.f32 %v3184_v49, %v14148_v30  ;;  %v7031_v49 = vld [vmem:[%s12401_s24 + $0x3b] sm:$0xff]  ;;  %v15918_v29 = vld [vmem:[#allocation180_spill] sm:$0xff] }
 0x591   : > { %9561 = vpow2.f32 %v5937_v52  ;;  %v5802_v46 = vmin.f32 %v14253_v43, 0.0  ;;  %9148 = vmatmul.mubr.msk.bf16.gmra.mxu0 %vm6239_vm2, %v6889_v48  ;;  %v3765_v59 = vmul.f32 %v13902_v63, %v3676_v3  ;;  %v1442_v21 = vmul.f32 %v14030_v36, %v15911_v62  ;;  %v5419_v50 = vpop.permute.xlu1 %5418  ;;  %v15920_v52 = vld [vmem:[#allocation250_spill] sm:$0xff]  ;;  %v15922_v62 = vld [vmem:[#allocation253_spill] sm:$0xff] }
 0x592   : > { %v5935_v8 = vmul.f32 1.442695, %v5799_v27  ;;  %v14266_v61 = vadd.f32 %v13984_v23, %v5578_v12  ;;  %9178 = vmatmul.mubr.msk.bf16.gmra.mxu1 %vm6239_vm2, %v7040_v45  ;;  %9151 = vmatprep.mubr.msk.bf16.mxu0 %vm9649_vm0, %v15679_v7  ;;  %v6570_v30 = vmul.f32 0.25, %v6568_v22  ;;  %v861_v28 = vmul.f32 %v14048_v41, %v15912_v6 }
 0x593   : > { %v5941_v63 = vmul.f32 1.442695, %v5802_v46  ;;  %v4346_v11 = vmul.f32 %v13929_v56, %v4257_v58  ;;  %v3837_v1 = vadd.f32 %v3765_v59, %v3256_v51  ;;  %9181 = vmatprep.mubr.msk.bf16.mxu1 %vm9649_vm0, %v15679_v7  ;;  %v863_v24 = vmul.f32 %v14048_v41, %v15913_v40  ;;  %v4838_v31 = vpop.permute.xlu0 %4837  ;;  %v15919_v58 = vld [vmem:[#allocation181_spill] sm:$0xff]  ;;  %v15921_v46 = vld [vmem:[#allocation252_spill] sm:$0xff] }
 0x594   : > { %v1444_v37 = vmul.f32 %v14030_v36, %v15914_v35  ;;  %9563 = vpow2.f32 %v5935_v8  ;;  %v5801_v54 = vmin.f32 %v14266_v61, 0.0  ;;  %6572 = vst.msk [vmem:[%s12401_s24 + $0x6b] sm:$0x7] %vm6337_vm14, %v6570_v30  ;;  %v1443_v57 = vmul.f32 %v14030_v36, %v15915_v42  ;;  %v6880_v36 = vld [vmem:[%s12401_s24 + $0x32] sm:$0xff]  ;;  %v9633_v35 = vld [vmem:[%s14924_s1 + $0x4] ss:$0 sm:$0xff] }
 0x595   : > { %9565 = vpow2.f32 %v5941_v63  ;;  %v4418_v10 = vadd.f32 %v4346_v11, %v3837_v1  ;;  %v4927_v44 = vmul.f32 %v13942_v4, %v4838_v31  ;;  %v862_v16 = vmul.f32 %v14048_v41, %v15916_v33  ;;  %v14295_v60 = vpop.permute.xlu1 %3685  ;;  %v9632_v41 = vld [vmem:[%s14924_s1 + $0x3] ss:$0 sm:$0xff]  ;;  %v6883_v11 = vld [vmem:[%s12401_s24 + $0x4a] sm:$0xff]  ;;  %v15924_v42 = vld [vmem:[#allocation330_spill] sm:$0xff] }
 0x596   : > { %v1514_v38 = vadd.f32 %v1442_v21, %v861_v28  ;;  %v2023_v47 = vmul.f32 %v9631_v39, %v15917_v14  ;;  %v5939_v25 = vmul.f32 1.442695, %v5801_v54  ;;  %v2025_v0 = vmul.f32 %v9631_v39, %v15918_v29 }
 0x597   : > { %v5508_v4 = vmul.f32 %v13965_v32, %v5419_v50  ;;  %v4999_v2 = vadd.f32 %v4927_v44, %v4418_v10  ;;  %v6890_v17 = vpack.c.bf16 %v6881_v19, %v6880_v36  ;;  %v2024_v9 = vmul.f32 %v9631_v39, %v15919_v58  ;;  %v3681_v22 = vpop.permute.xlu0 %3680  ;;  %v15925_v10 = vld [vmem:[#allocation331_spill] sm:$0xff] }
 0x598   : > { %v2604_v48 = vmul.f32 %v9632_v41, %v15920_v52  ;;  %9567 = vpow2.f32 %v5939_v25  ;;  %v7041_v34 = vpack.c.bf16 %v7032_v53, %v7031_v49  ;;  %v1516_v27 = vadd.f32 %v1444_v37, %v863_v24  ;;  %v15923_v37 = vld [vmem:[#allocation328_spill] sm:$0xff]  ;;  %v14337_v52 = vld [vmem:[%s12401_s24 + $0x5a] sm:$0xff] }
 0x599   : > { %v1515_v12 = vadd.f32 %v1443_v57, %v862_v16  ;;  %v5580_v45 = vadd.f32 %v5508_v4, %v4999_v2  ;;  %9152 = vmatmul.mubr.msk.bf16.gmra.mxu0 %vm6239_vm2, %v6890_v17  ;;  %v2095_v51 = vadd.f32 %v2023_v47, %v1514_v38  ;;  %v2606_v59 = vmul.f32 %v9632_v41, %v15921_v46  ;;  %v6721_v8 = vpop.f32.mrf.mxu0  ;;  %v4262_v63 = vpop.permute.xlu1 %4261  ;;  %v6882_v16 = vld [vmem:[%s12401_s24 + $0x42] sm:$0xff]  ;;  %v7034_v38 = vld [vmem:[%s12401_s24 + $0x53] sm:$0xff] }
 0x59a   : > { %v9560_v3 = vpop.eup %9559  ;;  %v2605_v21 = vmul.f32 %v9632_v41, %v15922_v62  ;;  %9182 = vmatmul.mubr.msk.bf16.gmra.mxu1 %vm6239_vm2, %v7041_v34  ;;  %v6836_v50 = vpop.f32.mrf.mxu1  ;;  %9155 = vmatprep.mubr.msk.bf16.mxu0 %vm9649_vm0, %v15679_v7  ;;  %v2097_v1 = vadd.f32 %v2025_v0, %v1516_v27  ;;  %v3185_v54 = vmul.f32 %v9633_v35, %v15923_v37  ;;  %v14334_v41 = vld [vmem:[%s12401_s24 + $0x52] sm:$0xff]  ;;  %v9634_v27 = vld [vmem:[%s14924_s1 + $0x5] ss:$0 sm:$0xff]  ;;  %vm5728_vm15 = vcmp.gt.f32.partialorder %v14237_v55, 0.0 }
 0x59b   : > { %v8836_v30 = vadd.f32 -1.0, %v9560_v3  ;;  %v14312_v6 = vadd.f32 %v13984_v23, %v5580_v45  ;;  %v14314_v28 = vadd.f32 %v6836_v50, %v6721_v8  ;;  %9185 = vmatprep.mubr.msk.bf16.mxu1 %vm9649_vm0, %v15679_v7  ;;  %v2096_v40 = vadd.f32 %v2024_v9, %v1515_v12  ;;  %v9089_v31 = vpop.f32.mrf.mxu0  ;;  %v3691_v33 = vpop.permute.xlu0 %3690  ;;  %v7033_v9 = vld [vmem:[%s12401_s24 + $0x4b] sm:$0xff] }
 0x59c   : > { %v2676_v24 = vadd.f32 %v2604_v48, %v2095_v51  ;;  %v9119_v19 = vpop.f32.mrf.mxu1  ;;  %v3187_v57 = vmul.f32 %v9633_v35, %v15924_v42  ;;  %v3186_v44 = vmul.f32 %v9633_v35, %v15925_v10  ;;  %v2678_v14 = vadd.f32 %v2606_v59, %v2097_v1 }
 0x59d   : > { %v6086_v49 = vmul.f32 1.6732632, %v8836_v30  ;;  %v5803_v53 = vmin.f32 %v14312_v6, 0.0  ;;  %v2677_v47 = vadd.f32 %v2605_v21, %v2096_v40  ;;  %v6724_v25 = vpop.f32.mrf.mxu0  ;;  %v6891_v29 = vpack.c.bf16 %v6883_v11, %v6882_v16  ;;  %v4272_v58 = vpop.permute.xlu1 %4271  ;;  %v7036_v11 = vld [vmem:[%s12401_s24 + $0x63] sm:$0xff] }
 0x59e   : > { %v9562_v39 = vpop.eup %9561  ;;  %v6839_v36 = vpop.f32.mrf.mxu1  ;;  %v3257_v48 = vadd.f32 %v3185_v54, %v2676_v24  ;;  %v3766_v12 = vmul.f32 %v9634_v27, %v3681_v22  ;;  %v3259_v46 = vadd.f32 %v3187_v57, %v2678_v14  ;;  %v4347_v22 = vmul.f32 %v13929_v56, %v4262_v63  ;;  %v7035_v54 = vld [vmem:[%s12401_s24 + $0x5b] sm:$0xff]  ;;  %v9636_v16 = vld [vmem:[%s14924_s1 + $0x7] ss:$0 sm:$0xff] }
 0x59f   : > { %v6158_v0 = vsel %vm5726_vm13, %v14222_v18, %v6086_v49  ;;  %v8838_v4 = vadd.f32 -1.0, %v9562_v39  ;;  %v5943_v2 = vmul.f32 1.442695, %v5803_v53  ;;  %v14330_v17 = vadd.f32 %v6839_v36, %v6724_v25  ;;  %v9090_v45 = vpop.f32.mrf.mxu0  ;;  %v4267_v21 = vpop.permute.xlu0 %4266 }
 0x5a0   : > { %v6230_v34 = vmul.f32 1.050701, %v6158_v0  ;;  %v9120_v3 = vpop.f32.mrf.mxu1  ;;  %v7042_v18 = vpack.c.bf16 %v7034_v38, %v7033_v9  ;;  %v3258_v59 = vadd.f32 %v3186_v44, %v2677_v47  ;;  %v6892_v30 = vpack.c.bf16 %v14337_v52, %v14334_v41 }
 0x5a1   : > { %v9564_v51 = vpop.eup %9563  ;;  %v6088_v62 = vmul.f32 1.6732632, %v8838_v4  ;;  %9569 = vpow2.f32 %v5943_v2  ;;  %9156 = vmatmul.mubr.msk.bf16.gmra.mxu0 %vm6239_vm2, %v6891_v29  ;;  %vm5727_vm1 = vcmp.gt.f32.partialorder %v14248_v15, 0.0  ;;  %v3768_v24 = vmul.f32 %v9634_v27, %v3691_v33  ;;  %v4848_v35 = vpop.permute.xlu1 %4847  ;;  %v6886_v3 = vld [vmem:[%s12401_s24 + $0x62] sm:$0x1] }
 0x5a2   : > { %v9566_v8 = vpop.eup %9565  ;;  %6303 = vst.msk [vmem:[#allocation2 + $0x1f8] sm:$0xff] %vm6239_vm2, %v6230_v34  ;;  %v8837_v50 = vadd.f32 -1.0, %v9564_v51  ;;  %9186 = vmatmul.mubr.msk.bf16.gmra.mxu1 %vm6239_vm2, %v7042_v18  ;;  %9159 = vmatprep.mubr.msk.bf16.mxu0 %vm9649_vm0, %v15679_v7  ;;  %vm5730_vm3 = vcmp.gt.f32.partialorder %v14253_v43, 0.0  ;;  %v3838_v37 = vadd.f32 %v3766_v12, %v3257_v48  ;;  %v3767_v42 = vmul.f32 %v9634_v27, %v14295_v60  ;;  %v7037_v51 = vld [vmem:[%s12401_s24 + $0x6b] sm:$0x1] }
 0x5a3   : > { %v6160_v1 = vsel %vm5728_vm15, %v14237_v55, %v6088_v62  ;;  %v8840_v40 = vadd.f32 -1.0, %v9566_v8  ;;  %9189 = vmatprep.mubr.msk.bf16.mxu1 %vm9649_vm0, %v15679_v7  ;;  %v9635_v55 = vld [vmem:[%s14924_s1 + $0x6] ss:$0 sm:$0xff]  ;;  %v4843_v10 = vpop.permute.xlu0 %4842  ;;  %v7043_v44 = vpack.c.bf16 %v7036_v11, %v7035_v54  ;;  %v3840_v14 = vadd.f32 %v3768_v24, %v3259_v46 }
 0x5a4   : > { %v6232_v56 = vmul.f32 1.050701, %v6160_v1  ;;  %v6087_v63 = vmul.f32 1.6732632, %v8837_v50  ;;  %v4349_v57 = vmul.f32 %v9635_v55, %v4272_v58  ;;  %v4419_v33 = vadd.f32 %v4347_v22, %v3838_v37 }
 0x5a5   : > { %v9568_v31 = vpop.eup %9567  ;;  %v6090_v19 = vmul.f32 1.6732632, %v8840_v40  ;;  %v4928_v60 = vmul.f32 %v9636_v16, %v4843_v10  ;;  %v4348_v47 = vmul.f32 %v9635_v55, %v4267_v21  ;;  %v5424_v25 = vpop.permute.xlu1 %5423  ;;  %vm5729_vm4 = vcmp.gt.f32.partialorder %v14266_v61, 0.0 }
 0x5a6   : > { %6305 = vst.msk [vmem:[#allocation2 + $0x208] sm:$0xff] %vm6239_vm2, %v6232_v56  ;;  %v6159_v49 = vsel %vm5727_vm1, %v14248_v15, %v6087_v63  ;;  %v8839_v53 = vadd.f32 -1.0, %v9568_v31  ;;  %v5509_v15 = vmul.f32 %v13965_v32, %v5424_v25  ;;  %v3839_v4 = vadd.f32 %v3767_v42, %v3258_v59  ;;  %v7177_v42 = vld [vmem:[%s12401_s24 + $0x14] sm:$0xff] }
 0x5a7   : > { %v6231_v38 = vmul.f32 1.050701, %v6159_v49  ;;  %v6162_v39 = vsel %vm5730_vm3, %v14253_v43, %v6090_v19  ;;  %v5000_v0 = vadd.f32 %v4928_v60, %v4419_v33  ;;  %v4421_v2 = vadd.f32 %v4349_v57, %v3840_v14  ;;  %v4853_v9 = vpop.permute.xlu0 %4852  ;;  %v7176_v33 = vld [vmem:[%s12401_s24 + $0xc] sm:$0xff] }
 0x5a8   : > { %v6234_v36 = vmul.f32 1.050701, %v6162_v39  ;;  %v6089_v29 = vmul.f32 1.6732632, %v8839_v53  ;;  %v4929_v58 = vmul.f32 %v9636_v16, %v4848_v35  ;;  %v4930_v32 = vmul.f32 %v9636_v16, %v4853_v9  ;;  %v9421_v16 = vld [vmem:[%s14926_s3 + $0x30] sm:$0xff]  }
 0x5a9   : > { %6304 = vst.msk [vmem:[#allocation2 + $0x200] sm:$0xff] %vm6239_vm2, %v6231_v38  ;;  %9160 = vmatmul.mubr.msk.bf16.gmra.mxu0 %vm6239_vm2, %v6892_v30  ;;  %v5581_v41 = vadd.f32 %v5509_v15, %v5000_v0  ;;  %v5434_v48 = vpop.permute.xlu1 %5433  ;;  %v4420_v34 = vadd.f32 %v4348_v47, %v3839_v4  ;;  %v6893_v22 = vpack.c.bf16 %v6886_v3, %v6886_v3  ;;  %vm5731_vm5 = vcmp.gt.f32.partialorder %v14312_v6, 0.0  ;;  %v7327_v38 = vld [vmem:[%s12401_s24 + $0xd] sm:$0xff]  ;;  %v9422_v47 = vld [vmem:[%s14926_s3 + $0x38] sm:$0xff]   ;;  %v7179_v0 = vld [vmem:[%s12401_s24 + $0x24] sm:$0xff] }
 0x5aa   : > { %6307 = vst.msk [vmem:[#allocation2 + $0x218] sm:$0xff] %vm6239_vm2, %v6234_v36  ;;  %v6161_v43 = vsel %vm5729_vm4, %v14266_v61, %v6089_v29  ;;  %9190 = vmatmul.mubr.msk.bf16.gmra.mxu1 %vm6239_vm2, %v7043_v44  ;;  %9163 = vmatprep.mubr.msk.bf16.mxu0 %vm9649_vm0, %v15679_v7  ;;  %v5002_v12 = vadd.f32 %v4930_v32, %v4421_v2  ;;  %v9637_v61 = vld [vmem:[%s14924_s1 + $0x8] ss:$0 sm:$0xff]  ;;  %v7328_v44 = vld [vmem:[%s12401_s24 + $0x15] sm:$0xff]  ;;  %v7180_v3 = vld [vmem:[%s12401_s24 + $0x2c] sm:$0xff]  ;;  %vm8067_vm4 = vcmask 122880  }
 0x5ab   : > { %v6233_v52 = vmul.f32 1.050701, %v6161_v43  ;;  %9193 = vmatprep.mubr.msk.bf16.mxu1 %vm9649_vm0, %v15679_v7  ;;  %v5660_v27 = vadd.f32 %v13984_v23, %v5581_v41  ;;  %v5511_v45 = vmul.f32 %v9637_v61, %v5434_v48  ;;  %v5429_v18 = vpop.permute.xlu0 %5428  ;;  %v5001_v59 = vadd.f32 %v4929_v58, %v4420_v34  ;;  %v9638_v23 = vld [vmem:[%s14925_s2] ss:$0 sm:$0xff]  ;;  %v7330_v4 = vld [vmem:[%s12401_s24 + $0x25] sm:$0xff] }
 0x5ac   : > { %v5510_v8 = vmul.f32 %v9637_v61, %v5429_v18  ;;  %v7044_v40 = vpack.c.bf16 %v7037_v51, %v7037_v51  ;;  %v7340_v14 = vpack.c.bf16 %v7328_v44, %v7327_v38  ;;  %v7178_v58 = vld [vmem:[%s12401_s24 + $0x1c] sm:$0xff]  ;;  %v7181_v61 = vld [vmem:[%s12401_s24 + $0x34] sm:$0xff]  ;;  %v7187_v44 = vld [vmem:[%s12401_s24 + $0x64] sm:$0xff] }
 0x5ad   : > { %6306 = vst.msk [vmem:[#allocation2 + $0x210] sm:$0xff] %vm6239_vm2, %v6233_v52  ;;  %v5804_v62 = vmin.f32 %v5660_v27, 0.0  ;;  %v5583_v21 = vadd.f32 %v5511_v45, %v5002_v12  ;;  %v7190_v43 = vpack.c.bf16 %v7179_v0, %v7178_v58  ;;  %v7329_v41 = vld [vmem:[%s12401_s24 + $0x1d] sm:$0xff]  ;;  %v7332_v45 = vld [vmem:[%s12401_s24 + $0x35] sm:$0xff]  ;;  %v7191_v51 = vpack.c.bf16 %v7181_v61, %v7180_v3  ;;  %v7339_v38 = vld [vmem:[%s12401_s24 + $0x6d] sm:$0x1] }
 0x5ae   : > { %v9570_v46 = vpop.eup %9569  ;;  %v5582_v1 = vadd.f32 %v5510_v8, %v5001_v59  ;;  %v7341_v52 = vpack.c.bf16 %v7330_v4, %v7329_v41  ;;  %v7183_v8 = vld [vmem:[%s12401_s24 + $0x44] sm:$0xff]  ;;  %v7632_v58 = vld [vmem:[%s12401_s24 + $0x2f] sm:$0xff] }
 0x5af   : > { %v8841_v50 = vadd.f32 -1.0, %v9570_v46  ;;  %v5662_v11 = vadd.f32 %v9638_v23, %v5583_v21  ;;  %v5945_v56 = vmul.f32 1.442695, %v5804_v62  ;;  %v7331_v46 = vld [vmem:[%s12401_s24 + $0x2d] sm:$0xff]  ;;  %v7182_v21 = vld [vmem:[%s12401_s24 + $0x3c] sm:$0xff] }
 0x5b0   : > { %v6574_v30 = vld [vmem:[#allocation2 + $0x1f4] ss:$2 sm:$0xff]  ;;  %v6578_v24 = vld [vmem:[#allocation2 + $0x1f5] ss:$2 sm:$0xff]  ;;  %v5661_v54 = vadd.f32 %v9638_v23, %v5582_v1  ;;  %v7342_v59 = vpack.c.bf16 %v7332_v45, %v7331_v46  ;;  %v7631_v41 = vld [vmem:[%s12401_s24 + $0x27] sm:$0xff] }
 0x5b1   : > { %9164 = vmatmul.mubr.msk.bf16.gmra.mxu0 %vm6239_vm2, %v6893_v22  ;;  %v6091_v35 = vmul.f32 1.6732632, %v8841_v50  ;;  %v6581_v63 = vadd.f32 %v6578_v24, %v6574_v30  ;;  %v5806_v37 = vmin.f32 %v5662_v11, 0.0  ;;  %9571 = vpow2.f32 %v5945_v56  ;;  %v6576_v36 = vld [vmem:[#allocation2 + $0x204] ss:$2 sm:$0x7] }
 0x5b2   : > { %9194 = vmatmul.mubr.msk.bf16.gmra.mxu1 %vm6239_vm2, %v7044_v40  ;;  %9199 = vmatprep.mubr.msk.bf16.mxu0 %vm9649_vm0, %v15679_v7  ;;  %v5805_v53 = vmin.f32 %v5661_v54, 0.0  ;;  %v6580_v29 = vld [vmem:[#allocation2 + $0x205] ss:$2 sm:$0x7]  ;;  %v7333_v50 = vld [vmem:[%s12401_s24 + $0x3d] sm:$0xff]  ;;  %v7192_v11 = vpack.c.bf16 %v7183_v8, %v7182_v21  ;;  %v7185_v54 = vld [vmem:[%s12401_s24 + $0x54] sm:$0xff] }
 0x5b3   : > { %9229 = vmatprep.mubr.msk.bf16.mxu1 %vm9649_vm0, %v15679_v7  ;;  %v6163_v19 = vsel %vm5731_vm5, %v14312_v6, %v6091_v35  ;;  %v5949_v10 = vmul.f32 1.442695, %v5806_v37  ;;  %v7189_v6 = vpack.c.bf16 %v7177_v42, %v7176_v33  ;;  %v6582_v15 = vadd.f32 %v6580_v29, %v6576_v36  ;;  %v7334_v22 = vld [vmem:[%s12401_s24 + $0x45] sm:$0xff]  ;;  %v7478_v36 = vld [vmem:[%s12401_s24 + $0x16] sm:$0xff]  ;;  %v7485_v45 = vld [vmem:[%s12401_s24 + $0x4e] sm:$0xff] }
 0x5b4   : > { %v6584_v31 = vld [vmem:[#allocation2 + $0x20d] ss:$2 sm:$0xff]  ;;  %v6235_v57 = vmul.f32 1.050701, %v6163_v19  ;;  %v6590_v49 = vld [vmem:[#allocation2 + $0x20e] ss:$2 sm:$0xff]  ;;  %v7343_v40 = vpack.c.bf16 %v7334_v22, %v7333_v50 }
 0x5b5   : > { %v6587_v55 = vadd.f32 %v6584_v31, %v6581_v63  ;;  %9573 = vpow2.f32 %v5949_v10  ;;  %v5947_v39 = vmul.f32 1.442695, %v5805_v53  ;;  %v7336_v19 = vld [vmem:[%s12401_s24 + $0x55] sm:$0xff]  ;;  %v7184_v42 = vld [vmem:[%s12401_s24 + $0x4c] sm:$0xff]  ;;  %v9423_v29 = vld [vmem:[%s14926_s3 + $0x40] sm:$0xff]  }
 0x5b6   : > { %6308 = vst.msk [vmem:[#allocation2 + $0x220] sm:$0xff] %vm6239_vm2, %v6235_v57  ;;  %v7335_v57 = vld [vmem:[%s12401_s24 + $0x4d] sm:$0xff]  ;;  %v7186_v53 = vld [vmem:[%s12401_s24 + $0x5c] sm:$0xff] }
 0x5b7   : > { %v6593_v60 = vadd.f32 %v6590_v49, %v6587_v55  ;;  %9575 = vpow2.f32 %v5947_v39  ;;  %v7193_v55 = vpack.c.bf16 %v7185_v54, %v7184_v42  ;;  %v7344_v10 = vpack.c.bf16 %v7336_v19, %v7335_v57  ;;  %v7338_v49 = vld [vmem:[%s12401_s24 + $0x65] sm:$0xff]  ;;  %v7636_v3 = vld [vmem:[%s12401_s24 + $0x4f] sm:$0xff] }
 0x5b8   : > { %v7194_v33 = vpack.c.bf16 %v7187_v44, %v7186_v53  ;;  %v7635_v46 = vld [vmem:[%s12401_s24 + $0x47] sm:$0xff] }
 0x5b9   : > { %v6595_v25 = vmul.f32 0.25, %v6593_v60  ;;  %9200 = vmatmul.mubr.msk.bf16.vlgmr.msra.gmra.mxu0 %vm6239_vm2, %v7189_v6  ;;  %v7188_v6 = vld [vmem:[%s12401_s24 + $0x6c] sm:$0x1] }
 0x5ba   : > { %9230 = vmatmul.mubr.msk.bf16.vlgmr.msra.gmra.mxu1 %vm6239_vm2, %v7340_v14  ;;  %9258 = vmatpush3.bf16.msra.mxu0 %v9421_v16  ;;  %v7337_v16 = vld [vmem:[%s12401_s24 + $0x5d] sm:$0xff]  ;;  %v7195_v39 = vpack.c.bf16 %v7188_v6, %v7188_v6  ;;  %v7346_v14 = vpack.c.bf16 %v7339_v38, %v7339_v38  ;;  %v7488_v57 = vld [vmem:[%s12401_s24 + $0x66] sm:$0xff] }
 0x5bb   : > { %6597 = vst.msk [vmem:[%s12401_s24 + $0x6e] sm:$0xff] %vm6239_vm2, %v6595_v25  ;;  %9203 = vmatprep.mubr.msk.bf16.mxu0 %vm9649_vm0, %v15679_v7  ;;  %9233 = vmatprep.mubr.msk.bf16.mxu1 %vm9649_vm0, %v15679_v7  ;;  %v7345_v60 = vpack.c.bf16 %v7338_v49, %v7337_v16  ;;  %v7630_v25 = vld [vmem:[%s12401_s24 + $0x1f] sm:$0xff] }
 0x5bc   : > { %9288 = vmatpush3.bf16.msra.mxu1 %v9422_v47  ;;  %9317 = vmatprep.subr.bf16.mxu0 %v15679_v7  ;;  %v7479_v47 = vld [vmem:[%s12401_s24 + $0x1e] sm:$0xff] }
 0x5bd   : > { %9347 = vmatprep.subr.bf16.mxu1 %v15679_v7  ;;  %v6586_v2 = vld [vmem:[#allocation2 + $0x21d] ss:$2 sm:$0x7]  ;;  %v6592_v32 = vld [vmem:[#allocation2 + $0x21e] ss:$2 sm:$0x7]  ;;  %v7491_v0 = vpack.c.bf16 %v7479_v47, %v7478_v36 }
 0x5be   : > { %v6588_v9 = vadd.f32 %v6586_v2, %v6582_v15  ;;  %v9572_v48 = vpop.eup %9571  ;;  %v7629_v15 = vld [vmem:[%s12401_s24 + $0x17] sm:$0xff]  ;;  %v7481_v2 = vld [vmem:[%s12401_s24 + $0x2e] sm:$0xff]  ;;  %v7781_v6 = vld [vmem:[%s12401_s24 + $0x20] sm:$0xff] }
 0x5bf   : > { %v7642_v4 = vpack.c.bf16 %v7630_v25, %v7629_v15  ;;  %v7634_v48 = vld [vmem:[%s12401_s24 + $0x3f] sm:$0xff]  ;;  %v7782_v47 = vld [vmem:[%s12401_s24 + $0x28] sm:$0xff] }
 0x5c0   : > { %v6594_v34 = vadd.f32 %v6592_v32, %v6588_v9  ;;  %v7480_v9 = vld [vmem:[%s12401_s24 + $0x26] sm:$0xff]  ;;  %v7643_v32 = vpack.c.bf16 %v7632_v58, %v7631_v41  ;;  %v7780_v38 = vld [vmem:[%s12401_s24 + $0x18] sm:$0xff] }
 0x5c1   : > { %9204 = vmatmul.mubr.msk.bf16.gmra.mxu0 %vm6239_vm2, %v7190_v43  ;;  %v7492_v43 = vpack.c.bf16 %v7481_v2, %v7480_v9  ;;  %v7785_v2 = vld [vmem:[%s12401_s24 + $0x40] sm:$0xff] }
 0x5c2   : > { %9234 = vmatmul.mubr.msk.bf16.gmra.mxu1 %vm6239_vm2, %v7341_v52  ;;  %9207 = vmatprep.mubr.msk.bf16.mxu0 %vm9649_vm0, %v15679_v7  ;;  %v6596_v27 = vmul.f32 0.25, %v6594_v34  ;;  %v9574_v12 = vpop.eup %9573  ;;  %v7483_v52 = vld [vmem:[%s12401_s24 + $0x3e] sm:$0xff]  ;;  %v7482_v34 = vld [vmem:[%s12401_s24 + $0x36] sm:$0xff]  ;;  %v7489_v42 = vld [vmem:[%s12401_s24 + $0x6e] sm:$0xff] }
 0x5c3   : > { %9237 = vmatprep.mubr.msk.bf16.mxu1 %vm9649_vm0, %v15679_v7  ;;  %v7633_v12 = vld [vmem:[%s12401_s24 + $0x37] sm:$0xff]  ;;  %v7639_v44 = vld [vmem:[%s12401_s24 + $0x67] sm:$0xff] }
 0x5c4   : > { %6598 = vst.msk [vmem:[%s12401_s24 + $0x76] sm:$0x7] %vm6337_vm14, %v6596_v27  ;;  %v9576_v18 = vpop.eup %9575  ;;  %v7493_v27 = vpack.c.bf16 %v7483_v52, %v7482_v34  ;;  %v7644_v61 = vpack.c.bf16 %v7634_v48, %v7633_v12 }
 0x5c5   : > { %v7484_v18 = vld [vmem:[%s12401_s24 + $0x46] sm:$0xff] }
 0x5c9   : > { %9208 = vmatmul.mubr.msk.bf16.gmra.mxu0 %vm6239_vm2, %v7191_v51  ;;  %v7494_v51 = vpack.c.bf16 %v7485_v45, %v7484_v18 }
 0x5ca   : > { %9238 = vmatmul.mubr.msk.bf16.gmra.mxu1 %vm6239_vm2, %v7342_v59  ;;  %9211 = vmatprep.mubr.msk.bf16.mxu0 %vm9649_vm0, %v15679_v7  ;;  %v7645_v59 = vpack.c.bf16 %v7636_v3, %v7635_v46  ;;  %v7787_v3 = vld [vmem:[%s12401_s24 + $0x50] sm:$0xff]  ;;  %v7786_v46 = vld [vmem:[%s12401_s24 + $0x48] sm:$0xff] }
 0x5cb   : > { %9241 = vmatprep.mubr.msk.bf16.mxu1 %vm9649_vm0, %v15679_v7  ;;  %v7490_v53 = vld [vmem:[%s12401_s24 + $0x76] sm:$0x1] }
 0x5cc   : > { %v6729_v62 = vpop.f32.mrf.mxu0  ;;  %v7497_v16 = vpack.c.bf16 %v7490_v53, %v7490_v53 }
 0x5ce   : > { %v9093_v30 = vpop.f32.mrf.mxu0 }
 0x5cf   : > { %v6844_v23 = vpop.f32.mrf.mxu1  ;;  %v7487_v30 = vld [vmem:[%s12401_s24 + $0x5e] sm:$0xff] }
 0x5d0   : > { %v14448_v1 = vadd.f32 %v6844_v23, %v6729_v62  ;;  %v6732_v24 = vpop.f32.mrf.mxu0  ;;  %v7638_v23 = vld [vmem:[%s12401_s24 + $0x5f] sm:$0xff] }
 0x5d1   : > { %v9123_v35 = vpop.f32.mrf.mxu1  ;;  %9212 = vmatmul.mubr.msk.bf16.gmra.mxu0 %vm6239_vm2, %v7192_v11 }
 0x5d2   : > { %9242 = vmatmul.mubr.msk.bf16.gmra.mxu1 %vm6239_vm2, %v7343_v40  ;;  %v9094_v56 = vpop.f32.mrf.mxu0  ;;  %9215 = vmatprep.mubr.msk.bf16.mxu0 %vm9649_vm0, %v15679_v7 }
 0x5d3   : > { %v6847_v63 = vpop.f32.mrf.mxu1  ;;  %9245 = vmatprep.mubr.msk.bf16.mxu1 %vm9649_vm0, %v15679_v7 }
 0x5d4   : > { %v14456_v37 = vadd.f32 %v6847_v63, %v6732_v24  ;;  %v7486_v24 = vld [vmem:[%s12401_s24 + $0x56] sm:$0xff] }
 0x5d5   : > { %v9124_v31 = vpop.f32.mrf.mxu1  ;;  %v7495_v56 = vpack.c.bf16 %v7487_v30, %v7486_v24  ;;  %v7637_v63 = vld [vmem:[%s12401_s24 + $0x57] sm:$0xff]  ;;  %v7789_v24 = vld [vmem:[%s12401_s24 + $0x60] sm:$0xff] }
 0x5d6   : > { %v7646_v19 = vpack.c.bf16 %v7638_v23, %v7637_v63 }
 0x5d9   : > { %9216 = vmatmul.mubr.msk.bf16.gmra.mxu0 %vm6239_vm2, %v7193_v55  ;;  %v7640_v55 = vld [vmem:[%s12401_s24 + $0x6f] sm:$0xff] }
 0x5da   : > { %9246 = vmatmul.mubr.msk.bf16.gmra.mxu1 %vm6239_vm2, %v7344_v10  ;;  %9219 = vmatprep.mubr.msk.bf16.mxu0 %vm9649_vm0, %v15679_v7  ;;  %v7496_v10 = vpack.c.bf16 %v7489_v42, %v7488_v57  ;;  %v7647_v49 = vpack.c.bf16 %v7640_v55, %v7639_v44 }
 0x5db   : > { %9249 = vmatprep.mubr.msk.bf16.mxu1 %vm9649_vm0, %v15679_v7 }
 0x5e1   : > { %9220 = vmatmul.mubr.msk.bf16.gmra.mxu0 %vm6239_vm2, %v7194_v33  ;;  %v7641_v33 = vld [vmem:[%s12401_s24 + $0x77] sm:$0x1] }
 0x5e2   : > { %9250 = vmatmul.mubr.msk.bf16.gmra.mxu1 %vm6239_vm2, %v7345_v60  ;;  %9223 = vmatprep.mubr.msk.bf16.mxu0 %vm9649_vm0, %v15679_v7  ;;  %v7648_v60 = vpack.c.bf16 %v7641_v33, %v7641_v33  ;;  %v7791_v33 = vld [vmem:[%s12401_s24 + $0x70] sm:$0xff] }
 0x5e3   : > { %9253 = vmatprep.mubr.msk.bf16.mxu1 %vm9649_vm0, %v15679_v7 }
 0x5e9   : > { %9224 = vmatmul.mubr.msk.bf16.gmra.mxu0 %vm6239_vm2, %v7195_v39  ;;  %v7793_v39 = vpack.c.bf16 %v7781_v6, %v7780_v38  ;;  %v7790_v38 = vld [vmem:[%s12401_s24 + $0x68] sm:$0xff] }
 0x5ea   : > { %9254 = vmatmul.mubr.msk.bf16.gmra.mxu1 %vm6239_vm2, %v7346_v14  ;;  %9259 = vmatprep.mubr.msk.bf16.mxu0 %vm9649_vm0, %v15679_v7  ;;  %v7783_v14 = vld [vmem:[%s12401_s24 + $0x30] sm:$0xff] }
 0x5eb   : > { %9289 = vmatprep.mubr.msk.bf16.mxu1 %vm9649_vm0, %v15679_v7  ;;  %v7794_v25 = vpack.c.bf16 %v7783_v14, %v7782_v47  ;;  %v7798_v14 = vpack.c.bf16 %v7791_v33, %v7790_v38 }
 0x5f1   : > { %9260 = vmatmul.mubr.msk.bf16.vlgmr.msra.gmra.mxu0 %vm6239_vm2, %v7491_v0 }
 0x5f2   : > { %9290 = vmatmul.mubr.msk.bf16.vlgmr.msra.gmra.mxu1 %vm6239_vm2, %v7642_v4  ;;  %9318 = vmatpush3.bf16.msra.mxu0 %v9423_v29 }
 0x5f3   : > { %9263 = vmatprep.mubr.msk.bf16.mxu0 %vm9649_vm0, %v15679_v7  ;;  %9293 = vmatprep.mubr.msk.bf16.mxu1 %vm9649_vm0, %v15679_v7 }
 0x5f4   : > { %9389 = vmatprep.subr.bf16.mxu0 %v15679_v7 }
 0x5f9   : > { %9264 = vmatmul.mubr.msk.bf16.gmra.mxu0 %vm6239_vm2, %v7492_v43  ;;  %v7784_v43 = vld [vmem:[%s12401_s24 + $0x38] sm:$0xff] }
 0x5fa   : > { %9294 = vmatmul.mubr.msk.bf16.gmra.mxu1 %vm6239_vm2, %v7643_v32  ;;  %9267 = vmatprep.mubr.msk.bf16.mxu0 %vm9649_vm0, %v15679_v7  ;;  %v7795_v52 = vpack.c.bf16 %v7785_v2, %v7784_v43  ;;  %v7792_v2 = vld [vmem:[%s12401_s24 + $0x78] sm:$0x1] }
 0x5fb   : > { %9297 = vmatprep.mubr.msk.bf16.mxu1 %vm9649_vm0, %v15679_v7 }
 0x601   : > { %9268 = vmatmul.mubr.msk.bf16.gmra.mxu0 %vm6239_vm2, %v7493_v27 }
 0x602   : > { %9298 = vmatmul.mubr.msk.bf16.gmra.mxu1 %vm6239_vm2, %v7644_v61  ;;  %9271 = vmatprep.mubr.msk.bf16.mxu0 %vm9649_vm0, %v15679_v7 }
 0x603   : > { %9301 = vmatprep.mubr.msk.bf16.mxu1 %vm9649_vm0, %v15679_v7 }
 0x609   : > { %9272 = vmatmul.mubr.msk.bf16.gmra.mxu0 %vm6239_vm2, %v7494_v51 }
 0x60a   : > { %v6737_v62 = vpop.f32.mrf.mxu0  ;;  %9302 = vmatmul.mubr.msk.bf16.gmra.mxu1 %vm6239_vm2, %v7645_v59  ;;  %9275 = vmatprep.mubr.msk.bf16.mxu0 %vm9649_vm0, %v15679_v7 }
 0x60b   : > { %v6852_v21 = vpop.f32.mrf.mxu1  ;;  %9305 = vmatprep.mubr.msk.bf16.mxu1 %vm9649_vm0, %v15679_v7 }
 0x60c   : > { %v14528_v8 = vadd.f32 %v6852_v21, %v6737_v62  ;;  %v9097_v50 = vpop.f32.mrf.mxu0  ;;  %v7796_v62 = vpack.c.bf16 %v7787_v3, %v7786_v46 }
 0x60d   : > { %v9127_v22 = vpop.f32.mrf.mxu1 }
 0x60e   : > { %v6740_v11 = vpop.f32.mrf.mxu0 }
 0x60f   : > { %v6855_v40 = vpop.f32.mrf.mxu1 }
 0x610   : > { %v14535_v35 = vadd.f32 %v6855_v40, %v6740_v11  ;;  %v9098_v54 = vpop.f32.mrf.mxu0 }
 0x611   : > { %v9128_v31 = vpop.f32.mrf.mxu1  ;;  %9276 = vmatmul.mubr.msk.bf16.gmra.mxu0 %vm6239_vm2, %v7495_v56 }
 0x612   : > { %9306 = vmatmul.mubr.msk.bf16.gmra.mxu1 %vm6239_vm2, %v7646_v19  ;;  %9279 = vmatprep.mubr.msk.bf16.mxu0 %vm9649_vm0, %v15679_v7  ;;  %v7788_v31 = vld [vmem:[%s12401_s24 + $0x58] sm:$0xff] }
 0x613   : > { %9309 = vmatprep.mubr.msk.bf16.mxu1 %vm9649_vm0, %v15679_v7  ;;  %v7797_v42 = vpack.c.bf16 %v7789_v24, %v7788_v31 }
 0x619   : > { %9280 = vmatmul.mubr.msk.bf16.gmra.mxu0 %vm6239_vm2, %v7496_v10 }
 0x61a   : > { %9310 = vmatmul.mubr.msk.bf16.gmra.mxu1 %vm6239_vm2, %v7647_v49  ;;  %9283 = vmatprep.mubr.msk.bf16.mxu0 %vm9649_vm0, %v15679_v7 }
 0x61b   : > { %9313 = vmatprep.mubr.msk.bf16.mxu1 %vm9649_vm0, %v15679_v7 }
 0x621   : > { %9284 = vmatmul.mubr.msk.bf16.gmra.mxu0 %vm6239_vm2, %v7497_v16 }
 0x622   : > { %9314 = vmatmul.mubr.msk.bf16.gmra.mxu1 %vm6239_vm2, %v7648_v60  ;;  %9319 = vmatprep.mubr.msk.bf16.mxu0 %vm9649_vm0, %v15679_v7 }
 0x623   : > { %9349 = vmatprep.mubr.msk.bf16.mxu1 %vm9649_vm0, %v15679_v7 }
 0x629   : > { %9320 = vmatmul.mubr.msk.bf16.vlgmr.msra.gmra.mxu0 %vm6239_vm2, %v7793_v39 }
 0x62a   : > { %9323 = vmatprep.mubr.msk.bf16.mxu0 %vm9649_vm0, %v15679_v7 }
 0x631   : > { %v6745_v36 = vpop.f32.mrf.mxu0  ;;  %9324 = vmatmul.mubr.msk.bf16.gmra.mxu0 %vm6239_vm2, %v7794_v25 }
 0x632   : > { %v6860_v29 = vpop.f32.mrf.mxu1  ;;  %9327 = vmatprep.mubr.msk.bf16.mxu0 %vm9649_vm0, %v15679_v7 }
 0x633   : > { %v14572_v0 = vadd.f32 %v6860_v29, %v6745_v36  ;;  %v9101_v15 = vpop.f32.mrf.mxu0 }
 0x634   : > { %v9131_v4 = vpop.f32.mrf.mxu1 }
 0x635   : > { %v6748_v58 = vpop.f32.mrf.mxu0 }
 0x636   : > { %v6863_v9 = vpop.f32.mrf.mxu1 }
 0x637   : > { %v14576_v41 = vadd.f32 %v6863_v9, %v6748_v58  ;;  %v9102_v32 = vpop.f32.mrf.mxu0 }
 0x638   : > { %v9132_v48 = vpop.f32.mrf.mxu1 }
 0x639   : > { %v6753_v34 = vpop.f32.mrf.mxu0  ;;  %9328 = vmatmul.mubr.msk.bf16.gmra.mxu0 %vm6239_vm2, %v7795_v52  ;;  %v7799_v52 = vpack.c.bf16 %v7792_v2, %v7792_v2 }
 0x63a   : > { %v6868_v27 = vpop.f32.mrf.mxu1  ;;  %9331 = vmatprep.mubr.msk.bf16.mxu0 %vm9649_vm0, %v15679_v7 }
 0x63b   : > { %v14581_v12 = vadd.f32 %v6868_v27, %v6753_v34  ;;  %v9105_v61 = vpop.f32.mrf.mxu0 }
 0x63c   : > { %v9135_v45 = vpop.f32.mrf.mxu1 }
 0x63d   : > { %v6756_v18 = vpop.f32.mrf.mxu0 }
 0x63e   : > { %v6871_v51 = vpop.f32.mrf.mxu1 }
 0x63f   : > { %v9106_v59 = vpop.f32.mrf.mxu0 }
 0x640   : > { %v9136_v21 = vpop.f32.mrf.mxu1 }
 0x641   : > { %v6958_v50 = vpop.f32.mrf.mxu0  ;;  %9332 = vmatmul.mubr.msk.bf16.gmra.mxu0 %vm6239_vm2, %v7796_v62 }
 0x642   : > { %v7012_v22 = vadd.f32 %v6958_v50, %v13754_v5  ;;  %v7109_v30 = vpop.f32.mrf.mxu1  ;;  %9335 = vmatprep.mubr.msk.bf16.mxu0 %vm9649_vm0, %v15679_v7 }
 0x643   : > { %v9141_v23 = vpop.f32.mrf.mxu0 }
 0x644   : > { %v14589_v11 = vadd.f32 %v7109_v30, %v7012_v22  ;;  %v9171_v40 = vpop.f32.mrf.mxu1 }
 0x645   : > { %v6961_v56 = vpop.f32.mrf.mxu0 }
 0x646   : > { %v7013_v63 = vadd.f32 %v6961_v56, %v13772_v20  ;;  %v7112_v54 = vpop.f32.mrf.mxu1 }
 0x647   : > { %v9142_v19 = vpop.f32.mrf.mxu0 }
 0x648   : > { %v14594_v55 = vadd.f32 %v7112_v54, %v7013_v63  ;;  %v9172_v5 = vpop.f32.mrf.mxu1 }
 0x649   : > { %v6966_v57 = vpop.f32.mrf.mxu0  ;;  %9336 = vmatmul.mubr.msk.bf16.gmra.mxu0 %vm6239_vm2, %v7797_v42 }
 0x64a   : > { %v7014_v10 = vadd.f32 %v6966_v57, %v13974_v13  ;;  %v7117_v44 = vpop.f32.mrf.mxu1  ;;  %9339 = vmatprep.mubr.msk.bf16.mxu0 %vm9649_vm0, %v15679_v7 }
 0x64b   : > { %v9145_v49 = vpop.f32.mrf.mxu0 }
 0x64c   : > { %v14600_v53 = vadd.f32 %v7117_v44, %v7014_v10  ;;  %v9175_v20 = vpop.f32.mrf.mxu1 }
 0x64d   : > { %v6969_v16 = vpop.f32.mrf.mxu0 }
 0x64e   : > { %v7015_v60 = vadd.f32 %v6969_v16, %v13998_v26  ;;  %v7120_v6 = vpop.f32.mrf.mxu1 }
 0x64f   : > { %v9146_v39 = vpop.f32.mrf.mxu0 }
 0x650   : > { %v14605_v47 = vadd.f32 %v7120_v6, %v7015_v60  ;;  %v9176_v13 = vpop.f32.mrf.mxu1 }
 0x651   : > { %v6974_v25 = vpop.f32.mrf.mxu0  ;;  %9340 = vmatmul.mubr.msk.bf16.gmra.mxu0 %vm6239_vm2, %v7798_v14 }
 0x652   : > { %v7016_v36 = vadd.f32 %v6974_v25, %v14314_v28  ;;  %v7125_v29 = vpop.f32.mrf.mxu1  ;;  %9343 = vmatprep.mubr.msk.bf16.mxu0 %vm9649_vm0, %v15679_v7 }
 0x653   : > { %v9149_v15 = vpop.f32.mrf.mxu0 }
 0x654   : > { %v14611_v4 = vadd.f32 %v7125_v29, %v7016_v36  ;;  %v9179_v26 = vpop.f32.mrf.mxu1 }
 0x655   : > { %v6977_v58 = vpop.f32.mrf.mxu0 }
 0x656   : > { %v7017_v9 = vadd.f32 %v6977_v58, %v14330_v17  ;;  %v7128_v43 = vpop.f32.mrf.mxu1 }
 0x657   : > { %v9150_v32 = vpop.f32.mrf.mxu0 }
 0x658   : > { %v14615_v48 = vadd.f32 %v7128_v43, %v7017_v9  ;;  %v9180_v34 = vpop.f32.mrf.mxu1 }
 0x659   : > { %v6982_v27 = vpop.f32.mrf.mxu0  ;;  %9344 = vmatmul.mubr.msk.bf16.gmra.mxu0 %vm6239_vm2, %v7799_v52 }
 0x65a   : > { %v7018_v28 = vadd.f32 %v6982_v27, %v14448_v1  ;;  %v7133_v61 = vpop.f32.mrf.mxu1  ;;  %9391 = vmatprep.mubr.msk.bf16.mxu0 %vm9649_vm0, %v15679_v7 }
 0x65b   : > { %v9153_v45 = vpop.f32.mrf.mxu0 }
 0x65c   : > { %v14621_v3 = vadd.f32 %v7133_v61, %v7018_v28  ;;  %v9183_v18 = vpop.f32.mrf.mxu1 }
 0x65d   : > { %v6985_v17 = vpop.f32.mrf.mxu0 }
 0x65e   : > { %v7019_v51 = vadd.f32 %v6985_v17, %v14456_v37  ;;  %v7136_v46 = vpop.f32.mrf.mxu1 }
 0x65f   : > { %v9154_v59 = vpop.f32.mrf.mxu0 }
 0x660   : > { %v14624_v62 = vadd.f32 %v7136_v46, %v7019_v51  ;;  %v9184_v21 = vpop.f32.mrf.mxu1 }
 0x661   : > { %v6990_v50 = vpop.f32.mrf.mxu0 }
 0x662   : > { %v7020_v22 = vadd.f32 %v6990_v50, %v14528_v8  ;;  %v7141_v1 = vpop.f32.mrf.mxu1 }
 0x663   : > { %v9157_v30 = vpop.f32.mrf.mxu0 }
 0x664   : > { %v14627_v23 = vadd.f32 %v7141_v1, %v7020_v22  ;;  %v9187_v40 = vpop.f32.mrf.mxu1 }
 0x665   : > { %v6993_v24 = vpop.f32.mrf.mxu0 }
 0x666   : > { %v7021_v56 = vadd.f32 %v6993_v24, %v14535_v35  ;;  %v7144_v63 = vpop.f32.mrf.mxu1 }
 0x667   : > { %v9158_v54 = vpop.f32.mrf.mxu0 }
 0x668   : > { %v14630_v31 = vadd.f32 %v7144_v63, %v7021_v56  ;;  %v9188_v37 = vpop.f32.mrf.mxu1 }
 0x669   : > { %v6998_v19 = vpop.f32.mrf.mxu0 }
 0x66a   : > { %v7022_v42 = vadd.f32 %v6998_v19, %v14572_v0  ;;  %v7149_v5 = vpop.f32.mrf.mxu1 }
 0x66b   : > { %v9161_v57 = vpop.f32.mrf.mxu0 }
 0x66c   : > { %v14633_v10 = vadd.f32 %v7149_v5, %v7022_v42  ;;  %v9191_v8 = vpop.f32.mrf.mxu1 }
 0x66d   : > { %v7001_v44 = vpop.f32.mrf.mxu0 }
 0x66e   : > { %v7023_v49 = vadd.f32 %v7001_v44, %v14576_v41  ;;  %v7152_v20 = vpop.f32.mrf.mxu1 }
 0x66f   : > { %v9162_v33 = vpop.f32.mrf.mxu0 }
 0x670   : > { %v14636_v16 = vadd.f32 %v7152_v20, %v7023_v49  ;;  %v9192_v35 = vpop.f32.mrf.mxu1 }
 0x671   : > { %v7006_v60 = vpop.f32.mrf.mxu0 }
 0x672   : > { %v7024_v6 = vadd.f32 %v7006_v60, %v14581_v12  ;;  %v7157_v38 = vpop.f32.mrf.mxu1 }
 0x673   : > { %v9165_v39 = vpop.f32.mrf.mxu0 }
 0x674   : > { %v14639_v14 = vadd.f32 %v7157_v38, %v7024_v6  ;;  %v9195_v0 = vpop.f32.mrf.mxu1 }
 0x675   : > { %v7009_v13 = vpop.f32.mrf.mxu0 }
 0x676   : > { %v7160_v25 = vpop.f32.mrf.mxu1 }
 0x677   : > { %v9166_v36 = vpop.f32.mrf.mxu0 }
 0x678   : > { %v9196_v29 = vpop.f32.mrf.mxu1 }
 0x679   : > { %v7260_v15 = vpop.f32.mrf.mxu0 }
 0x67a   : > { %v7314_v41 = vadd.f32 %v7260_v15, %v14589_v11  ;;  %v7411_v26 = vpop.f32.mrf.mxu1 }
 0x67b   : > { %v9201_v2 = vpop.f32.mrf.mxu0 }
 0x67c   : > { %v14642_v58 = vadd.f32 %v7411_v26, %v7314_v41  ;;  %v9231_v9 = vpop.f32.mrf.mxu1 }
 0x67d   : > { %v7263_v43 = vpop.f32.mrf.mxu0 }
 0x67e   : > { %v7315_v12 = vadd.f32 %v7263_v43, %v14594_v55  ;;  %v7414_v32 = vpop.f32.mrf.mxu1 }
 0x67f   : > { %v9202_v52 = vpop.f32.mrf.mxu0 }
 0x680   : > { %v14645_v34 = vadd.f32 %v7414_v32, %v7315_v12  ;;  %v9232_v27 = vpop.f32.mrf.mxu1 }
 0x681   : > { %v7268_v28 = vpop.f32.mrf.mxu0 }
 0x682   : > { %v7316_v61 = vadd.f32 %v7268_v28, %v14600_v53  ;;  %v7419_v45 = vpop.f32.mrf.mxu1 }
 0x683   : > { %v9205_v18 = vpop.f32.mrf.mxu0 }
 0x684   : > { %v14648_v17 = vadd.f32 %v7419_v45, %v7316_v61  ;;  %v9235_v11 = vpop.f32.mrf.mxu1 }
 0x685   : > { %v7271_v51 = vpop.f32.mrf.mxu0 }
 0x686   : > { %v7317_v46 = vadd.f32 %v7271_v51, %v14605_v47  ;;  %v7422_v59 = vpop.f32.mrf.mxu1 }
 0x687   : > { %v9206_v21 = vpop.f32.mrf.mxu0 }
 0x688   : > { %v14651_v50 = vadd.f32 %v7422_v59, %v7317_v46  ;;  %v9236_v55 = vpop.f32.mrf.mxu1 }
 0x689   : > { %v7276_v22 = vpop.f32.mrf.mxu0 }
 0x68a   : > { %v7318_v1 = vadd.f32 %v7276_v22, %v14611_v4  ;;  %v7427_v30 = vpop.f32.mrf.mxu1 }
 0x68b   : > { %v9209_v40 = vpop.f32.mrf.mxu0 }
 0x68c   : > { %v14654_v24 = vadd.f32 %v7427_v30, %v7318_v1  ;;  %v9239_v53 = vpop.f32.mrf.mxu1 }
 0x68d   : > { %v7279_v56 = vpop.f32.mrf.mxu0 }
 0x68e   : > { %v7319_v63 = vadd.f32 %v7279_v56, %v14615_v48  ;;  %v7430_v54 = vpop.f32.mrf.mxu1 }
 0x68f   : > { %v9210_v37 = vpop.f32.mrf.mxu0 }
 0x690   : > { %v14657_v19 = vadd.f32 %v7430_v54, %v7319_v63  ;;  %v9240_v47 = vpop.f32.mrf.mxu1 }
 0x691   : > { %v7284_v42 = vpop.f32.mrf.mxu0 }
 0x692   : > { %v7320_v5 = vadd.f32 %v7284_v42, %v14621_v3  ;;  %v7435_v57 = vpop.f32.mrf.mxu1 }
 0x693   : > { %v9213_v8 = vpop.f32.mrf.mxu0 }
 0x694   : > { %v14660_v44 = vadd.f32 %v7435_v57, %v7320_v5  ;;  %v9243_v4 = vpop.f32.mrf.mxu1 }
 0x695   : > { %v7287_v49 = vpop.f32.mrf.mxu0 }
 0x696   : > { %v7321_v20 = vadd.f32 %v7287_v49, %v14624_v62  ;;  %v7438_v33 = vpop.f32.mrf.mxu1  ;;  %v9424_v62 = vld [vmem:[%s14928_s5 + $0x8] sm:$0xff]   ;;  %v9425_v49 = vld [vmem:[%s14928_s5 + $0x38] sm:$0xff]  }
 0x697   : > { %v9214_v35 = vpop.f32.mrf.mxu0  ;;  %9348 = vmatpush3.bf16.msra.mxu1 %v9424_v62  ;;  %9390 = vmatpush3.bf16.msra.mxu0 %v9425_v49 }
 0x698   : > { %v14663_v60 = vadd.f32 %v7438_v33, %v7321_v20  ;;  %v9244_v48 = vpop.f32.mrf.mxu1  ;;  %9353 = vmatprep.subr.bf16.mxu1 %v15679_v7 }
 0x699   : > { %v7292_v6 = vpop.f32.mrf.mxu0 }
 0x69a   : > { %v7322_v38 = vadd.f32 %v7292_v6, %v14627_v23  ;;  %v7443_v39 = vpop.f32.mrf.mxu1 }
 0x69b   : > { %v9217_v0 = vpop.f32.mrf.mxu0 }
 0x69c   : > { %v14666_v13 = vadd.f32 %v7443_v39, %v7322_v38  ;;  %v9247_v3 = vpop.f32.mrf.mxu1 }
 0x69d   : > { %v7295_v25 = vpop.f32.mrf.mxu0 }
 0x69e   : > { %v7323_v36 = vadd.f32 %v7295_v25, %v14630_v31  ;;  %v7446_v29 = vpop.f32.mrf.mxu1 }
 0x69f   : > { %v9218_v15 = vpop.f32.mrf.mxu0 }
 0x6a0   : > { %v14672_v41 = vadd.f32 %v7446_v29, %v7323_v36  ;;  %v9248_v26 = vpop.f32.mrf.mxu1 }
 0x6a1   : > { %v7300_v2 = vpop.f32.mrf.mxu0 }
 0x6a2   : > { %v7324_v23 = vadd.f32 %v7300_v2, %v14633_v10  ;;  %v7451_v9 = vpop.f32.mrf.mxu1 }
 0x6a3   : > { %v9221_v43 = vpop.f32.mrf.mxu0 }
 0x6a4   : > { %v14676_v12 = vadd.f32 %v7451_v9, %v7324_v23  ;;  %v9251_v31 = vpop.f32.mrf.mxu1 }
 0x6a5   : > { %v7303_v32 = vpop.f32.mrf.mxu0 }
 0x6a6   : > { %v7325_v52 = vadd.f32 %v7303_v32, %v14636_v16  ;;  %v7454_v27 = vpop.f32.mrf.mxu1 }
 0x6a7   : > { %v9222_v28 = vpop.f32.mrf.mxu0 }
 0x6a8   : > { %v14679_v61 = vadd.f32 %v7454_v27, %v7325_v52  ;;  %v9252_v45 = vpop.f32.mrf.mxu1 }
 0x6a9   : > { %v7308_v18 = vpop.f32.mrf.mxu0 }
 0x6aa   : > { %v7326_v11 = vadd.f32 %v7308_v18, %v14639_v14  ;;  %v7459_v51 = vpop.f32.mrf.mxu1 }
 0x6ab   : > { %v9225_v10 = vpop.f32.mrf.mxu0 }
 0x6ac   : > { %v14682_v46 = vadd.f32 %v7459_v51, %v7326_v11  ;;  %v9255_v59 = vpop.f32.mrf.mxu1 }
 0x6ad   : > { %v7311_v21 = vpop.f32.mrf.mxu0 }
 0x6ae   : > { %v7462_v55 = vpop.f32.mrf.mxu1 }
 0x6af   : > { %v9226_v22 = vpop.f32.mrf.mxu0 }
 0x6b0   : > { %v9256_v1 = vpop.f32.mrf.mxu1 }
 0x6b1   : > { %v7562_v30 = vpop.f32.mrf.mxu0 }
 0x6b2   : > { %v7713_v40 = vpop.f32.mrf.mxu1 }
 0x6b3   : > { %v9261_v16 = vpop.f32.mrf.mxu0 }
 0x6b4   : > { %v9291_v53 = vpop.f32.mrf.mxu1 }
 0x6b5   : > { %v7565_v56 = vpop.f32.mrf.mxu0 }
 0x6b6   : > { %v7716_v63 = vpop.f32.mrf.mxu1 }
 0x6b7   : > { %v9262_v54 = vpop.f32.mrf.mxu0 }
 0x6b8   : > { %v9292_v37 = vpop.f32.mrf.mxu1  ;;  %v7616_v54 = vadd.f32 %v7562_v30, %v14642_v58 }
 0x6b9   : > { %v7570_v47 = vpop.f32.mrf.mxu0 }
 0x6ba   : > { %v14684_v42 = vpop.f32.mrf.mxu1  ;;  %v7767_v49 = vadd.f32 %v7713_v40, %v7616_v54 }
 0x6bb   : > { %v9265_v14 = vpop.f32.mrf.mxu0 }
 0x6bc   : > { %v9295_v5 = vpop.f32.mrf.mxu1 }
 0x6bd   : > { %v7573_v57 = vpop.f32.mrf.mxu0 }
 0x6be   : > { %v14686_v8 = vpop.f32.mrf.mxu1 }
 0x6bf   : > { %v9266_v4 = vpop.f32.mrf.mxu0 }
 0x6c0   : > { %v9296_v20 = vpop.f32.mrf.mxu1 }
 0x6c1   : > { %v14691_v33 = vpop.f32.mrf.mxu0  ;;  %v7617_v20 = vadd.f32 %v7565_v56, %v14645_v34  ;;  %v7619_v56 = vadd.f32 %v7573_v57, %v14651_v50 }
 0x6c2   : > { %v14693_v35 = vpop.f32.mrf.mxu1 }
 0x6c3   : > { %v9269_v48 = vpop.f32.mrf.mxu0 }
 0x6c4   : > { %v9299_v6 = vpop.f32.mrf.mxu1 }
 0x6c5   : > { %v14695_v38 = vpop.f32.mrf.mxu0 }
 0x6c6   : > { %v14697_v39 = vpop.f32.mrf.mxu1 }
 0x6c7   : > { %v9270_v0 = vpop.f32.mrf.mxu0 }
 0x6c8   : > { %v9300_v3 = vpop.f32.mrf.mxu1  ;;  %v14732_v0 = vld [vmem:[%s14927_s4] ss:$0 sm:$0xff] }
 0x6c9   : > { %v14699_v25 = vpop.f32.mrf.mxu0 }
 0x6ca   : > { %v14701_v36 = vpop.f32.mrf.mxu1 }
 0x6cb   : > { %v9273_v29 = vpop.f32.mrf.mxu0 }
 0x6cc   : > { %v9303_v15 = vpop.f32.mrf.mxu1 }
 0x6cd   : > { %v14703_v62 = vpop.f32.mrf.mxu0  ;;  %v7768_v15 = vadd.f32 %v7716_v63, %v7617_v20 }
 0x6ce   : > { %v14705_v26 = vpop.f32.mrf.mxu1 }
 0x6cf   : > { %v9274_v2 = vpop.f32.mrf.mxu0 }
 0x6d0   : > { %v9304_v23 = vpop.f32.mrf.mxu1  ;;  %v7618_v2 = vadd.f32 %v7570_v47, %v14648_v17  ;;  %v7770_v47 = vadd.f32 %v14686_v8, %v7619_v56 }
 0x6d1   : > { %v14707_v9 = vpop.f32.mrf.mxu0 }
 0x6d2   : > { %v14709_v43 = vpop.f32.mrf.mxu1  ;;  %v7769_v34 = vadd.f32 %v14684_v42, %v7618_v2 }
 0x6d3   : > { %v9277_v31 = vpop.f32.mrf.mxu0 }
 0x6d4   : > { %v9307_v32 = vpop.f32.mrf.mxu1 }
 0x6d5   : > { %v14711_v52 = vpop.f32.mrf.mxu0 }
 0x6d6   : > { %v14713_v27 = vpop.f32.mrf.mxu1 }
 0x6d7   : > { %v9278_v28 = vpop.f32.mrf.mxu0 }
 0x6d8   : > { %v9308_v45 = vpop.f32.mrf.mxu1 }
 0x6d9   : > { %v14715_v18 = vpop.f32.mrf.mxu0 }
 0x6da   : > { %v14717_v11 = vpop.f32.mrf.mxu1 }
 0x6db   : > { %v9281_v51 = vpop.f32.mrf.mxu0 }
 0x6dc   : > { %v9311_v10 = vpop.f32.mrf.mxu1 }
 0x6dd   : > { %v14719_v59 = vpop.f32.mrf.mxu0  ;;  %v7620_v10 = vadd.f32 %v14691_v33, %v14654_v24 }
 0x6de   : > { %v14721_v21 = vpop.f32.mrf.mxu1 }
 0x6df   : > { %v9282_v55 = vpop.f32.mrf.mxu0  ;;  %v7771_v54 = vadd.f32 %v14693_v35, %v7620_v10  ;;  %v7622_v35 = vadd.f32 %v14699_v25, %v14660_v44 }
 0x6e0   : > { %v9312_v22 = vpop.f32.mrf.mxu1 }
 0x6e1   : > { %v14723_v1 = vpop.f32.mrf.mxu0 }
 0x6e2   : > { %v14725_v16 = vpop.f32.mrf.mxu1 }
 0x6e3   : > { %v9285_v53 = vpop.f32.mrf.mxu0 }
 0x6e4   : > { %v9315_v37 = vpop.f32.mrf.mxu1 }
 0x6e5   : > { %v7613_v14 = vpop.f32.mrf.mxu0  ;;  %v7621_v37 = vadd.f32 %v14695_v38, %v14657_v19 }
 0x6e6   : > { %v7764_v5 = vpop.f32.mrf.mxu1 }
 0x6e7   : > { %v9286_v4 = vpop.f32.mrf.mxu0 }
 0x6e8   : > { %v9316_v48 = vpop.f32.mrf.mxu1 }
 0x6e9   : > { %v7864_v6 = vpop.f32.mrf.mxu0 }
 0x6ea   : > { %v7918_v3 = vadd.f32 %v7864_v6, %v7767_v49  ;;  %v7772_v49 = vadd.f32 %v14697_v39, %v7621_v37 }
 0x6eb   : > { %v9321_v29 = vpop.f32.mrf.mxu0 }
 0x6ec   : > { %v7938_v58 = vadd.f32 %v14732_v0, %v7918_v3  ;;  %v7623_v29 = vadd.f32 %v14703_v62, %v14663_v60  ;;  %v7624_v60 = vadd.f32 %v14707_v9, %v14666_v13 }
 0x6ed   : > { %v7867_v30 = vpop.f32.mrf.mxu0 }
 0x6ee   : > { %v7964_v23 = vmin.f32 %v7938_v58, 0.0  ;;  %v7919_v31 = vadd.f32 %v7867_v30, %v7768_v15  ;;  %vm7951_vm14 = vcmp.gt.f32.partialorder %v7938_v58, 0.0 }
 0x6ef   : > { %v9322_v40 = vpop.f32.mrf.mxu0 }
 0x6f0   : > { %v7977_v32 = vmul.f32 1.442695, %v7964_v23  ;;  %v14739_v28 = vadd.f32 %v14732_v0, %v7919_v31  ;;  %v7773_v23 = vadd.f32 %v14701_v36, %v7622_v35 }
 0x6f1   : > { %v7872_v45 = vpop.f32.mrf.mxu0 }
 0x6f2   : > { %9577 = vpow2.f32 %v7977_v32  ;;  %v7965_v63 = vmin.f32 %v14739_v28, 0.0  ;;  %v7920_v51 = vadd.f32 %v7872_v45, %v7769_v34  ;;  %v7774_v34 = vadd.f32 %v14705_v26, %v7623_v29 }
 0x6f3   : > { %v9325_v17 = vpop.f32.mrf.mxu0  ;;  %v7625_v26 = vadd.f32 %v14711_v52, %v14672_v41  ;;  %vm7952_vm6 = vcmp.gt.f32.partialorder %v14739_v28, 0.0 }
 0x6f4   : > { %v7979_v55 = vmul.f32 1.442695, %v7965_v63  ;;  %v14746_v42 = vadd.f32 %v14732_v0, %v7920_v51 }
 0x6f5   : > { %v7875_v50 = vpop.f32.mrf.mxu0 }
 0x6f6   : > { %9579 = vpow2.f32 %v7979_v55  ;;  %v7966_v57 = vmin.f32 %v14746_v42, 0.0  ;;  %v7921_v22 = vadd.f32 %v7875_v50, %v7770_v47  ;;  %vm7953_vm7 = vcmp.gt.f32.partialorder %v14746_v42, 0.0 }
 0x6f7   : > { %v9326_v53 = vpop.f32.mrf.mxu0 }
 0x6f8   : > { %v7981_v14 = vmul.f32 1.442695, %v7966_v57  ;;  %v14753_v8 = vadd.f32 %v14732_v0, %v7921_v22 }
 0x6f9   : > { %v7880_v24 = vpop.f32.mrf.mxu0 }
 0x6fa   : > { %9581 = vpow2.f32 %v7981_v14  ;;  %v7967_v33 = vmin.f32 %v14753_v8, 0.0  ;;  %v7922_v5 = vadd.f32 %v7880_v24, %v7771_v54  ;;  %vm7954_vm8 = vcmp.gt.f32.partialorder %v14753_v8, 0.0 }
 0x6fb   : > { %v9329_v4 = vpop.f32.mrf.mxu0 }
 0x6fc   : > { %v7983_v20 = vmul.f32 1.442695, %v7967_v33  ;;  %v14758_v48 = vadd.f32 %v14732_v0, %v7922_v5  ;;  %v7776_v33 = vadd.f32 %v14713_v27, %v7625_v26 }
 0x6fd   : > { %v7883_v19 = vpop.f32.mrf.mxu0 }
 0x6fe   : > { %9583 = vpow2.f32 %v7983_v20  ;;  %v7968_v38 = vmin.f32 %v14758_v48, 0.0  ;;  %v7923_v6 = vadd.f32 %v7883_v19, %v7772_v49  ;;  %v7626_v20 = vadd.f32 %v14715_v18, %v14676_v12 }
 0x6ff   : > { %v9578_v3 = vpop.eup %9577  ;;  %v9330_v15 = vpop.f32.mrf.mxu0  ;;  %vm7955_vm9 = vcmp.gt.f32.partialorder %v14758_v48, 0.0 }
 0x700   : > { %v8934_v2 = vadd.f32 -1.0, %v9578_v3  ;;  %v7985_v30 = vmul.f32 1.442695, %v7968_v38  ;;  %v14766_v39 = vadd.f32 %v14732_v0, %v7923_v6  ;;  %v7627_v6 = vadd.f32 %v14719_v59, %v14679_v61 }
 0x701   : > { %v7888_v31 = vpop.f32.mrf.mxu0  ;;  %v7777_v18 = vadd.f32 %v14717_v11, %v7626_v20  ;;  %v7628_v11 = vadd.f32 %v14723_v1, %v14682_v46 }
 0x702   : > { %v8016_v40 = vmul.f32 1.6732632, %v8934_v2  ;;  %9585 = vpow2.f32 %v7985_v30  ;;  %v7969_v44 = vmin.f32 %v14766_v39, 0.0  ;;  %v7924_v56 = vadd.f32 %v7888_v31, %v7773_v23 }
 0x703   : > { %v9580_v25 = vpop.eup %9579  ;;  %v9333_v32 = vpop.f32.mrf.mxu0  ;;  %v7779_v26 = vadd.f32 %v14725_v16, %v7628_v11  ;;  %vm7956_vm10 = vcmp.gt.f32.partialorder %v14766_v39, 0.0 }
 0x704   : > { %v8029_v62 = vsel %vm7951_vm14, %v7938_v58, %v8016_v40  ;;  %v8935_v45 = vadd.f32 -1.0, %v9580_v25  ;;  %v7987_v63 = vmul.f32 1.442695, %v7969_v44  ;;  %v14774_v36 = vadd.f32 %v14732_v0, %v7924_v56 }
 0x705   : > { %v8042_v51 = vmul.f32 1.050701, %v8029_v62  ;;  %v7891_v17 = vpop.f32.mrf.mxu0  ;;  %v7775_v58 = vadd.f32 %v14709_v43, %v7624_v60 }
 0x706   : > { %v8017_v47 = vmul.f32 1.6732632, %v8935_v45  ;;  %9587 = vpow2.f32 %v7987_v63  ;;  %v7925_v10 = vadd.f32 %v7891_v17, %v7774_v34  ;;  %v7970_v13 = vmin.f32 %v14774_v36, 0.0 }
 0x707   : > { %v9582_v55 = vpop.eup %9581  ;;  %8055 = vst.msk [vmem:[#allocation3] sm:$0xff] %vm6239_vm2, %v8042_v51  ;;  %v9334_v9 = vpop.f32.mrf.mxu0  ;;  %v7778_v34 = vadd.f32 %v14721_v21, %v7627_v6  ;;  %vm7957_vm12 = vcmp.gt.f32.partialorder %v14774_v36, 0.0 }
 0x708   : > { %v8030_v50 = vsel %vm7952_vm6, %v14739_v28, %v8017_v47  ;;  %v8936_v57 = vadd.f32 -1.0, %v9582_v55  ;;  %v14784_v22 = vadd.f32 %v14732_v0, %v7925_v10  ;;  %v7989_v54 = vmul.f32 1.442695, %v7970_v13 }
 0x709   : > { %v8043_v53 = vmul.f32 1.050701, %v8030_v50  ;;  %v7896_v37 = vpop.f32.mrf.mxu0 }
 0x70a   : > { %v8018_v14 = vmul.f32 1.6732632, %v8936_v57  ;;  %v7971_v41 = vmin.f32 %v14784_v22, 0.0  ;;  %v7926_v52 = vadd.f32 %v7896_v37, %v7775_v58  ;;  %9589 = vpow2.f32 %v7989_v54 }
 0x70b   : > { %v9584_v24 = vpop.eup %9583  ;;  %8056 = vst.msk [vmem:[#allocation3 + $0x8] sm:$0xff] %vm6239_vm2, %v8043_v53  ;;  %v9337_v43 = vpop.f32.mrf.mxu0  ;;  %vm7958_vm13 = vcmp.gt.f32.partialorder %v14784_v22, 0.0 }
 0x70c   : > { %v8031_v28 = vsel %vm7953_vm7, %v14746_v42, %v8018_v14  ;;  %v8937_v5 = vadd.f32 -1.0, %v9584_v24  ;;  %v7991_v4 = vmul.f32 1.442695, %v7971_v41  ;;  %v14792_v49 = vadd.f32 %v14732_v0, %v7926_v52 }
 0x70d   : > { %v8044_v35 = vmul.f32 1.050701, %v8031_v28  ;;  %v7899_v19 = vpop.f32.mrf.mxu0 }
 0x70e   : > { %9591 = vpow2.f32 %v7991_v4  ;;  %v7927_v27 = vadd.f32 %v7899_v19, %v7776_v33  ;;  %v8019_v3 = vmul.f32 1.6732632, %v8937_v5  ;;  %v7972_v42 = vmin.f32 %v14792_v49, 0.0  ;;  %v8069_v15 = vld [vmem:[#allocation3] ss:$2 sm:$0xf] }
 0x70f   : > { %v9586_v38 = vpop.eup %9585  ;;  %8057 = vst.msk [vmem:[#allocation3 + $0x10] sm:$0xff] %vm6239_vm2, %v8044_v35  ;;  %v9338_v29 = vpop.f32.mrf.mxu0  ;;  %v8071_v30 = vld [vmem:[#allocation3 + $0x1] ss:$2 sm:$0xf]  ;;  %vm7959_vm15 = vcmp.gt.f32.partialorder %v14792_v49, 0.0 }
 0x710   : > { %v8938_v2 = vadd.f32 -1.0, %v9586_v38  ;;  %v14802_v12 = vadd.f32 %v14732_v0, %v7927_v27  ;;  %v8032_v23 = vsel %vm7954_vm8, %v14753_v8, %v8019_v3  ;;  %v7993_v31 = vmul.f32 1.442695, %v7972_v42 }
 0x711   : > { %v7904_v61 = vpop.f32.mrf.mxu0  ;;  %v8045_v59 = vmul.f32 1.050701, %v8032_v23  ;;  %v8072_v45 = vadd.f32 %v8071_v30, %v8069_v15 }
 0x712   : > { %v8020_v40 = vmul.f32 1.6732632, %v8938_v2  ;;  %v7973_v44 = vmin.f32 %v14802_v12, 0.0  ;;  %9593 = vpow2.f32 %v7993_v31  ;;  %v7928_v56 = vadd.f32 %v7904_v61, %v7777_v18 }
 0x713   : > { %v9588_v25 = vpop.eup %9587  ;;  %v9341_v32 = vpop.f32.mrf.mxu0  ;;  %8058 = vst.msk [vmem:[#allocation3 + $0x18] sm:$0xff] %vm6239_vm2, %v8045_v59  ;;  %vm7960_vm1 = vcmp.gt.f32.partialorder %v14802_v12, 0.0 }
 0x714   : > { %v8033_v8 = vsel %vm7955_vm9, %v14758_v48, %v8020_v40  ;;  %v8939_v60 = vadd.f32 -1.0, %v9588_v25  ;;  %v7995_v62 = vmul.f32 1.442695, %v7973_v44  ;;  %v14814_v51 = vadd.f32 %v14732_v0, %v7928_v56 }
 0x715   : > { %v8046_v63 = vmul.f32 1.050701, %v8033_v8  ;;  %v7907_v21 = vpop.f32.mrf.mxu0 }
 0x716   : > { %v8074_v17 = vld [vmem:[#allocation3 + $0xb] ss:$2 sm:$0xf]  ;;  %9595 = vpow2.f32 %v7995_v62  ;;  %v7929_v47 = vadd.f32 %v7907_v21, %v7778_v34  ;;  %v8021_v46 = vmul.f32 1.6732632, %v8939_v60  ;;  %v7974_v1 = vmin.f32 %v14814_v51, 0.0 }
 0x717   : > { %v8075_v10 = vadd.f32 %v8074_v17, %v8072_v45  ;;  %8059 = vst.msk [vmem:[#allocation3 + $0x20] sm:$0xff] %vm6239_vm2, %v8046_v63  ;;  %v9342_v55 = vpop.f32.mrf.mxu0  ;;  %v9590_v48 = vpop.eup %9589  ;;  %v8077_v13 = vld [vmem:[#allocation3 + $0xc] ss:$2 sm:$0xf]  ;;  %vm7961_vm3 = vcmp.gt.f32.partialorder %v14814_v51, 0.0 }
 0x718   : > { %v7949_v9 = vadd.f32 %v14732_v0, %v7929_v47  ;;  %v8034_v50 = vsel %vm7956_vm10, %v14766_v39, %v8021_v46  ;;  %v8940_v57 = vadd.f32 -1.0, %v9590_v48  ;;  %v7997_v53 = vmul.f32 1.442695, %v7974_v1 }
 0x719   : > { %v8078_v58 = vadd.f32 %v8077_v13, %v8075_v10  ;;  %v7912_v54 = vpop.f32.mrf.mxu0  ;;  %v8047_v37 = vmul.f32 1.050701, %v8034_v50  ;;  %v9427_v50 = vld [vmem:[%s14928_s5 + $0x10] sm:$0xff]  }
 0x71a   : > { %v7975_v16 = vmin.f32 %v7949_v9, 0.0  ;;  %v7930_v14 = vadd.f32 %v7912_v54, %v7779_v26  ;;  %v8022_v24 = vmul.f32 1.6732632, %v8940_v57  ;;  %9597 = vpow2.f32 %v7997_v53  ;;  %v8083_v5 = vld [vmem:[#allocation3 + $0x16] ss:$2 sm:$0xf] }
 0x71b   : > { %v9592_v41 = vpop.eup %9591  ;;  %v8079_v52 = vmul.f32 0.25, %v8078_v58  ;;  %v9345_v33 = vpop.f32.mrf.mxu0  ;;  %8060 = vst.msk [vmem:[#allocation3 + $0x28] sm:$0xff] %vm6239_vm2, %v8047_v37  ;;  %v8085_v4 = vld [vmem:[#allocation3 + $0x17] ss:$2 sm:$0xf] }
 0x71c   : > { %v8941_v39 = vadd.f32 -1.0, %v9592_v41  ;;  %v7999_v43 = vmul.f32 1.442695, %v7975_v16  ;;  %v7950_v28 = vadd.f32 %v14732_v0, %v7930_v14  ;;  %v8035_v20 = vsel %vm7957_vm12, %v14774_v36, %v8022_v24 }
 0x71d   : > { %8081 = vst.msk [vmem:[%s14826_s14] sm:$0xf] %vm8080_vm11, %v8079_v52  ;;  %v7915_v35 = vpop.f32.mrf.mxu0  ;;  %v8048_v19 = vmul.f32 1.050701, %v8035_v20  ;;  %v8086_v29 = vadd.f32 %v8085_v4, %v8083_v5  ;;  %v9428_v52 = vld [vmem:[%s14928_s5 + $0x18] sm:$0xff]   ;;  %v9430_v20 = vld [vmem:[%s14928_s5 + $0x28] sm:$0xff]  }
 0x71e   : > { %9599 = vpow2.f32 %v7999_v43  ;;  %v8088_v27 = vld [vmem:[#allocation3 + $0x21] ss:$2 sm:$0xf]  ;;  %v8023_v38 = vmul.f32 1.6732632, %v8941_v39  ;;  %v7976_v6 = vmin.f32 %v7950_v28, 0.0 }
 0x71f   : > { %v9346_v3 = vpop.f32.mrf.mxu0  ;;  %v9594_v42 = vpop.eup %9593  ;;  %8061 = vst.msk [vmem:[#allocation3 + $0x30] sm:$0xff] %vm6239_vm2, %v8048_v19  ;;  %v8089_v18 = vadd.f32 %v8088_v27, %v8086_v29  ;;  %v9429_v28 = vld [vmem:[%s14928_s5 + $0x20] sm:$0xff]   ;;  %v9431_v27 = vld [vmem:[%s14928_s5 + $0x30] sm:$0xff]  }
 0x720   : > { %v8036_v0 = vsel %vm7958_vm13, %v14784_v22, %v8023_v38  ;;  %v8942_v15 = vadd.f32 -1.0, %v9594_v42  ;;  %v8001_v2 = vmul.f32 1.442695, %v7976_v6  ;;  %v9432_v3 = vld [vmem:[%s14928_s5 + $0x40] sm:$0xff]  }
 0x721   : > { %v8049_v30 = vmul.f32 1.050701, %v8036_v0 }
 0x722   : > { %v8091_v23 = vld [vmem:[#allocation3 + $0x22] ss:$2 sm:$0xf]  ;;  %v8024_v31 = vmul.f32 1.6732632, %v8942_v15  ;;  %9601 = vpow2.f32 %v8001_v2 }
 0x723   : > { %v9596_v36 = vpop.eup %9595  ;;  %v8092_v61 = vadd.f32 %v8091_v23, %v8089_v18  ;;  %8062 = vst.msk [vmem:[#allocation3 + $0x38] sm:$0xff] %vm6239_vm2, %v8049_v30 }
 0x724   : > { %v8943_v59 = vadd.f32 -1.0, %v9596_v36  ;;  %v8037_v40 = vsel %vm7959_vm15, %v14792_v49, %v8024_v31 }
 0x725   : > { %v8093_v44 = vmul.f32 0.25, %v8092_v61  ;;  %v8050_v25 = vmul.f32 1.050701, %v8037_v40 }
 0x726   : > { %v8025_v22 = vmul.f32 1.6732632, %v8943_v59  ;;  %v8096_v34 = vld [vmem:[#allocation3 + $0x2c] ss:$2 sm:$0xf] }
 0x727   : > { %v8098_v56 = vld [vmem:[#allocation3 + $0x2d] ss:$2 sm:$0xf]  ;;  %v9598_v32 = vpop.eup %9597  ;;  %8094 = vst.msk [vmem:[%s14826_s14 + $0x4] sm:$0xf] %vm8080_vm11, %v8093_v44 }
 0x728   : > { %8063 = vst.msk [vmem:[#allocation3 + $0x40] sm:$0xff] %vm6239_vm2, %v8050_v25  ;;  %v8038_v11 = vsel %vm7960_vm1, %v14802_v12, %v8025_v22  ;;  %v8944_v60 = vadd.f32 -1.0, %v9598_v32  ;;  %v8099_v62 = vadd.f32 %v8098_v56, %v8096_v34  ;;  %v9426_v12 = vld [vmem:[%s14928_s5] sm:$0xff]  }
 0x729   : > { %v8051_v8 = vmul.f32 1.050701, %v8038_v11 }
 0x72a   : > { %v8101_v49 = vld [vmem:[#allocation3 + $0x37] ss:$2 sm:$0xf]  ;;  %v8026_v21 = vmul.f32 1.6732632, %v8944_v60 }
 0x72b   : > { %v9600_v45 = vpop.eup %9599  ;;  %8064 = vst.msk [vmem:[#allocation3 + $0x48] sm:$0xff] %vm6239_vm2, %v8051_v8  ;;  %v8102_v63 = vadd.f32 %v8101_v49, %v8099_v62  ;;  %v8104_v17 = vld [vmem:[#allocation3 + $0x38] ss:$2 sm:$0xf] }
 0x72c   : > { %v8039_v10 = vsel %vm7961_vm3, %v14814_v51, %v8026_v21 }
 0x72d   : > { %v8105_v47 = vadd.f32 %v8104_v17, %v8102_v63  ;;  %v8052_v46 = vmul.f32 1.050701, %v8039_v10 }
 0x72e   : > { %v8125_v1 = vld [vmem:[%s14826_s14 + $0x1] sm:$0x3f] }
 0x72f   : > { %v9602_v55 = vpop.eup %9601  ;;  %v8106_v48 = vmul.f32 0.25, %v8105_v47  ;;  %v8126_v26 = vpack.c.bf16 %v8125_v1, %v8125_v1  ;;  %8065 = vst.msk [vmem:[#allocation3 + $0x50] sm:$0xff] %vm6239_vm2, %v8052_v46  ;;  %v8121_v9 = vld [vmem:[%s14826_s14] sm:$0x3f] }
 0x730   : > { %v8122_v53 = vpack.c.bf16 %v8121_v9, %v8121_v9  ;;  %v8228_v41 = vld [vmem:[%s14826_s14 + $0x2] sm:$0x3f] }
 0x731   : > { %8107 = vst.msk [vmem:[%s14826_s14 + $0x8] sm:$0xf] %vm8080_vm11, %v8106_v48  ;;  %9350 = vmatmul.mubr.msk.bf16.vlgmr.msra.gmra.mxu1 %vm6239_vm2, %v8126_v26  ;;  %v8229_v24 = vpack.c.bf16 %v8228_v41, %v8228_v41 }
 0x732   : > { %9354 = vmatpush3.bf16.msra.mxu1 %v9426_v12  ;;  %9355 = vmatprep.mubr.msk.bf16.mxu1 %vm9649_vm0, %v15679_v7  ;;  %v8109_v51 = vld [vmem:[#allocation3 + $0x42] ss:$2 sm:$0xf]  ;;  %v8111_v13 = vld [vmem:[#allocation3 + $0x43] ss:$2 sm:$0xf] }
 0x733   : > { %9359 = vmatprep.subr.bf16.mxu1 %v15679_v7  ;;  %v8112_v58 = vadd.f32 %v8111_v13, %v8109_v51 }
 0x736   : > { %v8114_v57 = vld [vmem:[#allocation3 + $0x4d] ss:$2 sm:$0xf]  ;;  %v8117_v37 = vld [vmem:[#allocation3 + $0x4e] ss:$2 sm:$0xf] }
 0x737   : > { %v8115_v54 = vadd.f32 %v8114_v57, %v8112_v58 }
 0x738   : > { %v8283_v33 = vld [vmem:[%s14826_s14 + $0x4] sm:$0x3f] }
 0x739   : > { %9356 = vmatmul.mubr.msk.bf16.vlgmr.msra.gmra.mxu1 %vm6239_vm2, %v8122_v53  ;;  %v8118_v16 = vadd.f32 %v8117_v37, %v8115_v54  ;;  %v8284_v5 = vpack.c.bf16 %v8283_v33, %v8283_v33  ;;  %v8338_v4 = vld [vmem:[%s14826_s14 + $0x5] sm:$0x3f]  ;;  %v8981_v53 = vld [vmem:[%s14929_s6] ss:$0 sm:$0xff] }
 0x73a   : > { %9360 = vmatpush3.bf16.msra.mxu1 %v9427_v50  ;;  %9361 = vmatprep.mubr.msk.bf16.mxu1 %vm9649_vm0, %v15679_v7  ;;  %v8339_v35 = vpack.c.bf16 %v8338_v4, %v8338_v4  ;;  %v8393_v19 = vld [vmem:[%s14826_s14 + $0x6] sm:$0x3f] }
 0x73b   : > { %9365 = vmatprep.subr.bf16.mxu1 %v15679_v7  ;;  %v8119_v14 = vmul.f32 0.25, %v8118_v16  ;;  %v8394_v38 = vpack.c.bf16 %v8393_v19, %v8393_v19 }
 0x73d   : > { %8120 = vst.msk [vmem:[%s14826_s14 + $0xc] sm:$0xf] %vm8080_vm11, %v8119_v14 }
 0x741   : > { %9362 = vmatmul.mubr.msk.bf16.vlgmr.msra.gmra.mxu1 %vm6239_vm2, %v8229_v24 }
 0x742   : > { %9366 = vmatpush3.bf16.msra.mxu1 %v9428_v52  ;;  %9367 = vmatprep.mubr.msk.bf16.mxu1 %vm9649_vm0, %v15679_v7 }
 0x743   : > { %9371 = vmatprep.subr.bf16.mxu1 %v15679_v7 }
 0x744   : > { %v8503_v39 = vld [vmem:[%s14826_s14 + $0x9] sm:$0x3f] }
 0x745   : > { %v8504_v43 = vpack.c.bf16 %v8503_v39, %v8503_v39  ;;  %v8448_v6 = vld [vmem:[%s14826_s14 + $0x8] sm:$0x3f] }
 0x746   : > { %v8449_v42 = vpack.c.bf16 %v8448_v6, %v8448_v6  ;;  %v8558_v29 = vld [vmem:[%s14826_s14 + $0xa] sm:$0x3f]  ;;  %s353_s14 = scalar_lea.vmem %s14932_s9, %s15927_s10 }
 0x747   : > { %9392 = vmatmul.mubr.msk.bf16.vlgmr.msra.gmra.mxu0 %vm6239_vm2, %v8504_v43  ;;  %v8559_v0 = vpack.c.bf16 %v8558_v29, %v8558_v29 }
 0x749   : > { %9368 = vmatmul.mubr.msk.bf16.vlgmr.msra.gmra.mxu1 %vm6239_vm2, %v8284_v5 }
 0x74a   : > { %9372 = vmatpush3.bf16.msra.mxu1 %v9429_v28  ;;  %9373 = vmatprep.mubr.msk.bf16.mxu1 %vm9649_vm0, %v15679_v7 }
 0x74b   : > { %9377 = vmatprep.subr.bf16.mxu1 %v15679_v7 }
 0x751   : > { %9374 = vmatmul.mubr.msk.bf16.vlgmr.msra.gmra.mxu1 %vm6239_vm2, %v8339_v35 }
 0x752   : > { %9378 = vmatpush3.bf16.msra.mxu1 %v9430_v20  ;;  %9379 = vmatprep.mubr.msk.bf16.mxu1 %vm9649_vm0, %v15679_v7 }
 0x753   : > { %9383 = vmatprep.subr.bf16.mxu1 %v15679_v7 }
 0x759   : > { %9380 = vmatmul.mubr.msk.bf16.vlgmr.msra.gmra.mxu1 %vm6239_vm2, %v8394_v38 }
 0x75a   : > { %9384 = vmatpush3.bf16.msra.mxu1 %v9431_v27  ;;  %9385 = vmatprep.mubr.msk.bf16.mxu1 %vm9649_vm0, %v15679_v7 }
 0x75b   : > { %9395 = vmatprep.subr.bf16.mxu1 %v15679_v7 }
 0x761   : > { %9386 = vmatmul.mubr.msk.bf16.vlgmr.msra.gmra.mxu1 %vm6239_vm2, %v8449_v42 }
 0x762   : > { %9396 = vmatpush3.bf16.msra.mxu1 %v9432_v3  ;;  %9397 = vmatprep.mubr.msk.bf16.mxu1 %vm9649_vm0, %v15679_v7 }
 0x769   : > { %9398 = vmatmul.mubr.msk.bf16.vlgmr.msra.gmra.mxu1 %vm6239_vm2, %v8559_v0  ;;  %vm8629_vm2 = vcmask 128000  }
 0x7f1   : > { %v8173_v15 = vpop.f32.mrf.mxu1 }
 0x7f3   : > { %v9351_v2 = vpop.f32.mrf.mxu1 }
 0x7f5   : > { %v8176_v18 = vpop.f32.mrf.mxu1 }
 0x7f7   : > { %v9352_v30 = vpop.f32.mrf.mxu1 }
 0x7f9   : > { %v8222_v36 = vpop.f32.mrf.mxu1 }
 0x7fa   : > { %v8223_v17 = vadd.f32 %v8222_v36, %v8173_v15 }
 0x7fb   : > { %v9357_v23 = vpop.f32.mrf.mxu1 }
 0x7fd   : > { %v8225_v31 = vpop.f32.mrf.mxu1 }
 0x7ff   : > { %v9358_v61 = vpop.f32.mrf.mxu1 }
 0x801   : > { %v8276_v59 = vpop.f32.mrf.mxu1 }
 0x802   : > { %v8282_v10 = vadd.f32 %v8276_v59, %v8223_v17 }
 0x803   : > { %v9363_v40 = vpop.f32.mrf.mxu1 }
 0x805   : > { %v8279_v44 = vpop.f32.mrf.mxu1 }
 0x807   : > { %v9364_v25 = vpop.f32.mrf.mxu1  ;;  %v8551_v22 = vpop.f32.mrf.mxu0 }
 0x809   : > { %v8331_v34 = vpop.f32.mrf.mxu1  ;;  %v9393_v56 = vpop.f32.mrf.mxu0 }
 0x80a   : > { %v8337_v1 = vadd.f32 %v8331_v34, %v8282_v10 }
 0x80b   : > { %v9369_v7 = vpop.f32.mrf.mxu1  ;;  %v8554_v32 = vpop.f32.mrf.mxu0 }
 0x80d   : > { %v8334_v11 = vpop.f32.mrf.mxu1  ;;  %v9394_v8 = vpop.f32.mrf.mxu0 }
 0x80f   : > { %v9370_v60 = vpop.f32.mrf.mxu1 }
 0x811   : > { %v8386_v62 = vpop.f32.mrf.mxu1 }
 0x812   : > { %v8392_v55 = vadd.f32 %v8386_v62, %v8337_v1 }
 0x813   : > { %v9375_v45 = vpop.f32.mrf.mxu1 }
 0x815   : > { %v8389_v49 = vpop.f32.mrf.mxu1 }
 0x817   : > { %v9376_v63 = vpop.f32.mrf.mxu1 }
 0x819   : > { %v8441_v21 = vpop.f32.mrf.mxu1 }
 0x81a   : > { %v8447_v26 = vadd.f32 %v8441_v21, %v8392_v55 }
 0x81b   : > { %v9381_v47 = vpop.f32.mrf.mxu1 }
 0x81d   : > { %v8444_v46 = vpop.f32.mrf.mxu1 }
 0x81f   : > { %v9382_v12 = vpop.f32.mrf.mxu1 }
 0x821   : > { %v8496_v48 = vpop.f32.mrf.mxu1 }
 0x822   : > { %v8502_v13 = vadd.f32 %v8496_v48, %v8447_v26 }
 0x823   : > { %v9387_v51 = vpop.f32.mrf.mxu1 }
 0x824   : > { %v8557_v50 = vadd.f32 %v8551_v22, %v8502_v13 }
 0x825   : > { %v8499_v9 = vpop.f32.mrf.mxu1 }
 0x827   : > { %v9388_v58 = vpop.f32.mrf.mxu1 }
 0x829   : > { %v8606_v57 = vpop.f32.mrf.mxu1 }
 0x82a   : > { %v8612_v54 = vadd.f32 %v8606_v57, %v8557_v50 }
 0x82b   : > { %v9399_v37 = vpop.f32.mrf.mxu1 }
 0x82c   : > { %v8620_v16 = vadd.f32 %v8981_v53, %v8612_v54 }
 0x82d   : > { %v8609_v14 = vpop.f32.mrf.mxu1 }
 0x82e   : > { %v8622_v41 = vmin.f32 %v8620_v16, 0.0  ;;  %vm8621_vm0 = vcmp.gt.f32.partialorder %v8620_v16, 0.0 }
 0x82f   : > { %v9400_v52 = vpop.f32.mrf.mxu1 }
 0x830   : > { %v8623_v24 = vmul.f32 1.442695, %v8622_v41 }
 0x832   : > { %9603 = vpow2.f32 %v8623_v24 }
 0x83f   : > { %v9604_v33 = vpop.eup %9603 }
 0x840   : > { %v8982_v39 = vadd.f32 -1.0, %v9604_v33 }
 0x842   : > { %v8626_v43 = vmul.f32 1.6732632, %v8982_v39 }
 0x844   : > { %v8627_v28 = vsel %vm8621_vm0, %v8620_v16, %v8626_v43 }
 0x845   : > { %v8628_v5 = vmul.f32 1.050701, %v8627_v28 }
 0x847   : > { %8630 = vst.msk [vmem:[#allocation4] sm:$0x3f] %vm8629_vm2, %v8628_v5 }
 0x84e   : > { %v8631_v4 = vld [vmem:[#allocation4] sm:$0x1]  ;;  %v8632_v20 = vld [vmem:[#allocation4 + $0x1] sm:$0x1]  ;;  %v8634_v19 = vld [vmem:[#allocation4 + $0x4] sm:$0x1] }
 0x84f   : > { %v8633_v35 = vadd.f32 %v8632_v20, %v8631_v4  ;;  %v8636_v38 = vld [vmem:[#allocation4 + $0x5] sm:$0x1] }
 0x851   : > { %v8635_v27 = vadd.f32 %v8634_v19, %v8633_v35 }
 0x853   : > { %v8637_v6 = vadd.f32 %v8636_v38, %v8635_v27 }
 0x855   : > { %v8638_v3 = vmul.f32 0.25, %v8637_v6 }
 0x857   : > { %8639 = vst.msk [vmem:[%s353_s14] sm:$0x1] %vm8067_vm4, %v8638_v3 }
 0x858 PF: > { %s20_s30 = sadd.s32 1, %s9645_s30  }
 0x859   : > { %p17_p4 = scmp.ge.s32.totalorder %s20_s30, 4  }
 0x85b   :  { %19 = sbr.rel (!%p17_p4) target bundleno = 1 (0x1), region = 220 }

</bundles_post_ra>
